<compile_context>
chip_gen: v7x
topology: tpu7x:2x2x1
jax: 0.10.0
libtpu: 0.0.40
codegen_flags: <defaults>
</compile_context>

<pallas_src>
import jax
import jax.numpy as jnp
from jax.experimental import pallas as pl
from jax.experimental.pallas import tpu as pltpu

IMG_SHAPE = (3, 56, 56)
IMG_FEATURES = IMG_SHAPE[0] * IMG_SHAPE[1] * IMG_SHAPE[2]  # 9408
LATENT_DIM = 128
LEAKY_SLOPE = 0.2
BN_EPS = 0.8
LANE = 128

# Head tiling: pad 9408 -> 9728 = 76*128 so N splits into 4 lane-aligned
# tiles of 2432.  Even tile count keeps v7x megacore balanced; on v5e/v6e
# the tile size only changes VMEM footprint (stream-bound either way).
N_PAD = 9728
TN = 2432


# ------------------------- shared math (kernel + reference) ------------------

def _leaky(x):
    return jnp.where(x > 0, x, LEAKY_SLOPE * x)


def _bf16_dot(x, w):
    # bf16 operands on the MXU, f32 accumulation.
    return jnp.dot(x.astype(jnp.bfloat16), w.astype(jnp.bfloat16),
                   preferred_element_type=jnp.float32)


def _batchnorm(x, gamma, beta):
    # Training-mode BatchNorm1d: batch mean / biased batch variance, eps=0.8.
    mean = jnp.mean(x, axis=0, keepdims=True)
    var = jnp.mean(jnp.square(x - mean), axis=0, keepdims=True)
    return (x - mean) * jax.lax.rsqrt(var + BN_EPS) * gamma + beta


# --------------------------- fused generator kernel --------------------------

def _generator_kernel(z_ref,
                      w1_ref, b1_ref,
                      w2_ref, b2_ref, g2_ref, be2_ref,
                      w3_ref, b3_ref, g3_ref, be3_ref,
                      w4_ref, b4_ref, g4_ref, be4_ref,
                      w5_ref, s5_ref, b5_ref,
                      o_ref):
    # ---- trunk (layers 1-4): VMEM-resident, recomputed per N-tile ----
    h = _leaky(_bf16_dot(z_ref[...], w1_ref[...]) + b1_ref[...])
    h = _leaky(_batchnorm(_bf16_dot(h, w2_ref[...]) + b2_ref[...],
                          g2_ref[...], be2_ref[...]))
    h = _leaky(_batchnorm(_bf16_dot(h, w3_ref[...]) + b3_ref[...],
                          g3_ref[...], be3_ref[...]))
    h = _leaky(_batchnorm(_bf16_dot(h, w4_ref[...]) + b4_ref[...],
                          g4_ref[...], be4_ref[...]))

    # ---- head tile: int8 weight dequant -> bf16 MXU dot -> scale/bias/tanh ----
    w_tile = w5_ref[...].astype(jnp.bfloat16)          # VPU dequant (exact: |q|<=127)
    y = jnp.dot(h.astype(jnp.bfloat16), w_tile,
                preferred_element_type=jnp.float32)
    y = y * s5_ref[...] + b5_ref[...]                  # per-column f32 scale + bias
    o_ref[...] = jnp.tanh(y).astype(o_ref.dtype)       # bf16 writeback


def generator_pallas(params, z):
    """z: (B, 128) -> (B, N_PAD) bf16 (padded, tanh-activated flat image)."""
    B = z.shape[0]
    (w1, b1), (w2, b2, g2, be2), (w3, b3, g3, be3), (w4, b4, g4, be4) = params["trunk"]
    w5_q, s5, b5 = params["head"]
    K = w4.shape[1]                    # 1024
    n_pad = w5_q.shape[1]
    assert n_pad % TN == 0 and TN % LANE == 0

    const = lambda j: (0, 0)           # resident / constant-index blocks
    return pl.pallas_call(
        _generator_kernel,
        out_shape=jax.ShapeDtypeStruct((B, n_pad), jnp.bfloat16),
        grid_spec=pltpu.PrefetchScalarGridSpec(
            num_scalar_prefetch=0,
            grid=(n_pad // TN,),
            in_specs=[
                pl.BlockSpec((B, LATENT_DIM), const),          # z
                pl.BlockSpec(w1.shape, const), pl.BlockSpec(b1.shape, const),
                pl.BlockSpec(w2.shape, const), pl.BlockSpec(b2.shape, const),
                pl.BlockSpec(g2.shape, const), pl.BlockSpec(be2.shape, const),
                pl.BlockSpec(w3.shape, const), pl.BlockSpec(b3.shape, const),
                pl.BlockSpec(g3.shape, const), pl.BlockSpec(be3.shape, const),
                pl.BlockSpec(w4.shape, const), pl.BlockSpec(b4.shape, const),
                pl.BlockSpec(g4.shape, const), pl.BlockSpec(be4.shape, const),
                pl.BlockSpec((K, TN), lambda j: (0, j)),       # int8 weight tile (streamed)
                pl.BlockSpec((1, TN), lambda j: (0, j)),       # per-column scale tile
                pl.BlockSpec((1, TN), lambda j: (0, j)),       # bias tile
            ],
            out_specs=pl.BlockSpec((B, TN), lambda j: (0, j)),
        ),
        compiler_params=pltpu.CompilerParams(
            dimension_semantics=("parallel",),                 # megacore shards N on v7x
            vmem_limit_bytes=48 * 1024 * 1024,                 # valid on v5e/v6e/v7x
        ),
    )(z.astype(jnp.float32), w1, b1, w2, b2, g2, be2, w3, b3, g3, be3,
      w4, b4, g4, be4, w5_q, s5, b5)


# ------------------------------ parameters -----------------------------------

def _linear_init(key, fan_in, fan_out):
    """torch.nn.Linear default init: U(-1/sqrt(fan_in), 1/sqrt(fan_in))."""
    kw, kb = jax.random.split(key)
    bound = float(fan_in) ** -0.5
    w = jax.random.uniform(kw, (fan_in, fan_out), jnp.float32, -bound, bound)
    b = jax.random.uniform(kb, (1, fan_out), jnp.float32, -bound, bound)
    return w, b


def _quantize_per_column(w):
    """Symmetric int8 quantization with a per-output-column f32 scale."""
    amax = jnp.max(jnp.abs(w), axis=0, keepdims=True)
    scale = jnp.where(amax > 0, amax / 127.0, 1.0).astype(jnp.float32)
    w_q = jnp.clip(jnp.round(w / scale), -127.0, 127.0).astype(jnp.int8)
    return w_q, scale


def init_generator_params(key):
    sizes = [(LATENT_DIM, 128), (128, 256), (256, 512), (512, 1024),
             (1024, IMG_FEATURES)]
    keys = jax.random.split(key, 5)

    trunk = []
    w1, b1 = _linear_init(keys[0], *sizes[0])                 # no BN on layer 1
    trunk.append((w1.astype(jnp.bfloat16), b1))
    for i in range(1, 4):
        w, b = _linear_init(keys[i], *sizes[i])
        n = sizes[i][1]
        trunk.append((w.astype(jnp.bfloat16), b,
                      jnp.ones((1, n), jnp.float32),
                      jnp.zeros((1, n), jnp.float32)))

    # Output layer: pad N once (9408 -> 9728), then int8-quantize per column.
    w5, b5 = _linear_init(keys[4], *sizes[4])
    w5 = jnp.pad(w5, ((0, 0), (0, N_PAD - IMG_FEATURES)))
    b5 = jnp.pad(b5, ((0, 0), (0, N_PAD - IMG_FEATURES)))
    w5_q, s5 = _quantize_per_column(w5)                       # padded cols -> q=0, scale=1
    return {"trunk": trunk, "head": (w5_q, s5, b5)}


# ------------------------------ forward / reference --------------------------

def generator_forward(params, z):
    """z: (B, latent_dim) -> img: (B, 3, 56, 56) f32."""
    B = z.shape[0]
    out = generator_pallas(params, z)                         # (B, N_PAD) bf16
    img = out[:, :IMG_FEATURES].reshape(B, *IMG_SHAPE)
    return img.astype(jnp.float32)                            # match torch output dtype


def generator_reference(params, z):
    """Pure-JAX reference (same bf16 / int8-dequant math as the kernel)."""
    B = z.shape[0]
    x = z.astype(jnp.float32)
    (w1, b1), l2, l3, l4 = params["trunk"]
    x = _leaky(_bf16_dot(x, w1) + b1)
    for (w, b, g, be) in (l2, l3, l4):
        x = _leaky(_batchnorm(_bf16_dot(x, w) + b, g, be))
    w5_q, s5, b5 = params["head"]
    y = jnp.dot(x.astype(jnp.bfloat16), w5_q.astype(jnp.bfloat16),
                preferred_element_type=jnp.float32) * s5 + b5
    y = jnp.tanh(y).astype(jnp.bfloat16)[:, :IMG_FEATURES]
    return y.reshape(B, *IMG_SHAPE).astype(jnp.float32)


if __name__ == "__main__":
    key = jax.random.PRNGKey(0)
    pkey, zkey = jax.random.split(key)

    params = init_generator_params(pkey)

    B = 2
    z = jax.random.normal(zkey, (B, LATENT_DIM), dtype=jnp.float32)

    img = jax.block_until_ready(generator_forward(params, z))
    ref = generator_reference(params, z)

    assert img.shape == (B,) + IMG_SHAPE, img.shape
    assert jnp.allclose(img, ref, atol=1e-2, rtol=1e-2), \
        float(jnp.max(jnp.abs(img - ref)))

    print("KERNEL_OK")
</pallas_src>

<mosaic_0001>
module attributes {stable_mosaic.version = 11 : i64} {
  func.func @_generator_kernel(%arg0: i32, %arg1: memref<2x128xf32, #tpu.memory_space<vmem>>, %arg2: memref<128x128xbf16, #tpu.memory_space<vmem>>, %arg3: memref<1x128xf32, #tpu.memory_space<vmem>>, %arg4: memref<128x256xbf16, #tpu.memory_space<vmem>>, %arg5: memref<1x256xf32, #tpu.memory_space<vmem>>, %arg6: memref<1x256xf32, #tpu.memory_space<vmem>>, %arg7: memref<1x256xf32, #tpu.memory_space<vmem>>, %arg8: memref<256x512xbf16, #tpu.memory_space<vmem>>, %arg9: memref<1x512xf32, #tpu.memory_space<vmem>>, %arg10: memref<1x512xf32, #tpu.memory_space<vmem>>, %arg11: memref<1x512xf32, #tpu.memory_space<vmem>>, %arg12: memref<512x1024xbf16, #tpu.memory_space<vmem>>, %arg13: memref<1x1024xf32, #tpu.memory_space<vmem>>, %arg14: memref<1x1024xf32, #tpu.memory_space<vmem>>, %arg15: memref<1x1024xf32, #tpu.memory_space<vmem>>, %arg16: memref<1024x2432xi8, #tpu.memory_space<vmem>>, %arg17: memref<1x2432xf32, #tpu.memory_space<vmem>>, %arg18: memref<1x2432xf32, #tpu.memory_space<vmem>>, %arg19: memref<2x2432xbf16, #tpu.memory_space<vmem>>) attributes {dimension_semantics = [#tpu.dimension_semantics<parallel>], iteration_bounds = array<i64: 4>, scalar_prefetch = 0 : i64, scratch_operands = 0 : i64, tpu.core_type = #tpu.core_type<tc>, window_params = [{pipeline_mode = #tpu.pipeline_mode<synchronous>, transform_indices = @transform_0, window_bounds = array<i64: 2, 128>}, {pipeline_mode = #tpu.pipeline_mode<synchronous>, transform_indices = @transform_1, window_bounds = array<i64: 128, 128>}, {pipeline_mode = #tpu.pipeline_mode<synchronous>, transform_indices = @transform_2, window_bounds = array<i64: 1, 128>}, {pipeline_mode = #tpu.pipeline_mode<synchronous>, transform_indices = @transform_3, window_bounds = array<i64: 128, 256>}, {pipeline_mode = #tpu.pipeline_mode<synchronous>, transform_indices = @transform_4, window_bounds = array<i64: 1, 256>}, {pipeline_mode = #tpu.pipeline_mode<synchronous>, transform_indices = @transform_5, window_bounds = array<i64: 1, 256>}, {pipeline_mode = #tpu.pipeline_mode<synchronous>, transform_indices = @transform_6, window_bounds = array<i64: 1, 256>}, {pipeline_mode = #tpu.pipeline_mode<synchronous>, transform_indices = @transform_7, window_bounds = array<i64: 256, 512>}, {pipeline_mode = #tpu.pipeline_mode<synchronous>, transform_indices = @transform_8, window_bounds = array<i64: 1, 512>}, {pipeline_mode = #tpu.pipeline_mode<synchronous>, transform_indices = @transform_9, window_bounds = array<i64: 1, 512>}, {pipeline_mode = #tpu.pipeline_mode<synchronous>, transform_indices = @transform_10, window_bounds = array<i64: 1, 512>}, {pipeline_mode = #tpu.pipeline_mode<synchronous>, transform_indices = @transform_11, window_bounds = array<i64: 512, 1024>}, {pipeline_mode = #tpu.pipeline_mode<synchronous>, transform_indices = @transform_12, window_bounds = array<i64: 1, 1024>}, {pipeline_mode = #tpu.pipeline_mode<synchronous>, transform_indices = @transform_13, window_bounds = array<i64: 1, 1024>}, {pipeline_mode = #tpu.pipeline_mode<synchronous>, transform_indices = @transform_14, window_bounds = array<i64: 1, 1024>}, {transform_indices = @transform_15, window_bounds = array<i64: 1024, 2432>}, {transform_indices = @transform_16, window_bounds = array<i64: 1, 2432>}, {transform_indices = @transform_17, window_bounds = array<i64: 1, 2432>}, {transform_indices = @transform_18, window_bounds = array<i64: 2, 2432>}]} {
    %c0 = arith.constant 0 : index
    %c0_0 = arith.constant 0 : index
    %0 = vector.load %arg1[%c0, %c0_0] : memref<2x128xf32, #tpu.memory_space<vmem>>, vector<2x128xf32>
    %c0_1 = arith.constant 0 : index
    %c0_2 = arith.constant 0 : index
    %1 = vector.load %arg2[%c0_1, %c0_2] : memref<128x128xbf16, #tpu.memory_space<vmem>>, vector<128x128xbf16>
    %2 = arith.truncf %0 : vector<2x128xf32> to vector<2x128xbf16>
    %cst = arith.constant dense<0.000000e+00> : vector<2x128xf32>
    %3 = tpu.matmul %2, %1, %cst {dimension_numbers = #tpu.dot_dimension_numbers<[1], [0], [0], [1], [0, 0, 1, 1], [], []>} : vector<2x128xbf16>, vector<128x128xbf16>, vector<2x128xf32> -> vector<2x128xf32>
    %c0_3 = arith.constant 0 : index
    %c0_4 = arith.constant 0 : index
    %4 = vector.load %arg3[%c0_3, %c0_4] : memref<1x128xf32, #tpu.memory_space<vmem>>, vector<1x128xf32>
    %5 = vector.broadcast %4 : vector<1x128xf32> to vector<2x128xf32>
    %6 = arith.addf %3, %5 : vector<2x128xf32>
    %cst_5 = arith.constant 0.000000e+00 : f32
    %7 = vector.broadcast %cst_5 : f32 to vector<2x128xf32>
    %8 = arith.cmpf ogt, %6, %7 : vector<2x128xf32>
    %cst_6 = arith.constant 2.000000e-01 : f32
    %9 = vector.broadcast %cst_6 : f32 to vector<2x128xf32>
    %10 = arith.mulf %9, %6 : vector<2x128xf32>
    %11 = arith.select %8, %6, %10 : vector<2x128xi1>, vector<2x128xf32>
    %c0_7 = arith.constant 0 : index
    %c0_8 = arith.constant 0 : index
    %12 = vector.load %arg4[%c0_7, %c0_8] : memref<128x256xbf16, #tpu.memory_space<vmem>>, vector<128x256xbf16>
    %13 = arith.truncf %11 : vector<2x128xf32> to vector<2x128xbf16>
    %cst_9 = arith.constant dense<0.000000e+00> : vector<2x256xf32>
    %14 = tpu.matmul %13, %12, %cst_9 {dimension_numbers = #tpu.dot_dimension_numbers<[1], [0], [0], [1], [0, 0, 1, 1], [], []>} : vector<2x128xbf16>, vector<128x256xbf16>, vector<2x256xf32> -> vector<2x256xf32>
    %c0_10 = arith.constant 0 : index
    %c0_11 = arith.constant 0 : index
    %15 = vector.load %arg5[%c0_10, %c0_11] : memref<1x256xf32, #tpu.memory_space<vmem>>, vector<1x256xf32>
    %16 = vector.broadcast %15 : vector<1x256xf32> to vector<2x256xf32>
    %17 = arith.addf %14, %16 : vector<2x256xf32>
    %c0_12 = arith.constant 0 : index
    %c0_13 = arith.constant 0 : index
    %18 = vector.load %arg6[%c0_12, %c0_13] : memref<1x256xf32, #tpu.memory_space<vmem>>, vector<1x256xf32>
    %c0_14 = arith.constant 0 : index
    %c0_15 = arith.constant 0 : index
    %19 = vector.load %arg7[%c0_14, %c0_15] : memref<1x256xf32, #tpu.memory_space<vmem>>, vector<1x256xf32>
    %cst_16 = arith.constant dense<0.000000e+00> : vector<256xf32>
    %20 = vector.multi_reduction <add>, %17, %cst_16 [0] : vector<2x256xf32> to vector<256xf32>
    %21 = vector.shape_cast %20 : vector<256xf32> to vector<1x256xf32>
    %cst_17 = arith.constant 2.000000e+00 : f32
    %22 = vector.broadcast %cst_17 : f32 to vector<1x256xf32>
    %23 = arith.divf %21, %22 : vector<1x256xf32>
    %24 = vector.broadcast %23 : vector<1x256xf32> to vector<2x256xf32>
    %25 = arith.subf %17, %24 : vector<2x256xf32>
    %26 = arith.mulf %25, %25 : vector<2x256xf32>
    %cst_18 = arith.constant dense<0.000000e+00> : vector<256xf32>
    %27 = vector.multi_reduction <add>, %26, %cst_18 [0] : vector<2x256xf32> to vector<256xf32>
    %28 = vector.shape_cast %27 : vector<256xf32> to vector<1x256xf32>
    %cst_19 = arith.constant 2.000000e+00 : f32
    %29 = vector.broadcast %cst_19 : f32 to vector<1x256xf32>
    %30 = arith.divf %28, %29 : vector<1x256xf32>
    %31 = vector.broadcast %23 : vector<1x256xf32> to vector<2x256xf32>
    %32 = arith.subf %17, %31 : vector<2x256xf32>
    %cst_20 = arith.constant 8.000000e-01 : f32
    %33 = vector.broadcast %cst_20 : f32 to vector<1x256xf32>
    %34 = arith.addf %30, %33 : vector<1x256xf32>
    %35 = math.rsqrt %34 : vector<1x256xf32>
    %36 = vector.broadcast %35 : vector<1x256xf32> to vector<2x256xf32>
    %37 = arith.mulf %32, %36 : vector<2x256xf32>
    %38 = vector.broadcast %18 : vector<1x256xf32> to vector<2x256xf32>
    %39 = arith.mulf %37, %38 : vector<2x256xf32>
    %40 = vector.broadcast %19 : vector<1x256xf32> to vector<2x256xf32>
    %41 = arith.addf %39, %40 : vector<2x256xf32>
    %cst_21 = arith.constant 0.000000e+00 : f32
    %42 = vector.broadcast %cst_21 : f32 to vector<2x256xf32>
    %43 = arith.cmpf ogt, %41, %42 : vector<2x256xf32>
    %cst_22 = arith.constant 2.000000e-01 : f32
    %44 = vector.broadcast %cst_22 : f32 to vector<2x256xf32>
    %45 = arith.mulf %44, %41 : vector<2x256xf32>
    %46 = arith.select %43, %41, %45 : vector<2x256xi1>, vector<2x256xf32>
    %c0_23 = arith.constant 0 : index
    %c0_24 = arith.constant 0 : index
    %47 = vector.load %arg8[%c0_23, %c0_24] : memref<256x512xbf16, #tpu.memory_space<vmem>>, vector<256x512xbf16>
    %48 = arith.truncf %46 : vector<2x256xf32> to vector<2x256xbf16>
    %cst_25 = arith.constant dense<0.000000e+00> : vector<2x512xf32>
    %49 = tpu.matmul %48, %47, %cst_25 {dimension_numbers = #tpu.dot_dimension_numbers<[1], [0], [0], [1], [0, 0, 1, 1], [], []>} : vector<2x256xbf16>, vector<256x512xbf16>, vector<2x512xf32> -> vector<2x512xf32>
    %c0_26 = arith.constant 0 : index
    %c0_27 = arith.constant 0 : index
    %50 = vector.load %arg9[%c0_26, %c0_27] : memref<1x512xf32, #tpu.memory_space<vmem>>, vector<1x512xf32>
    %51 = vector.broadcast %50 : vector<1x512xf32> to vector<2x512xf32>
    %52 = arith.addf %49, %51 : vector<2x512xf32>
    %c0_28 = arith.constant 0 : index
    %c0_29 = arith.constant 0 : index
    %53 = vector.load %arg10[%c0_28, %c0_29] : memref<1x512xf32, #tpu.memory_space<vmem>>, vector<1x512xf32>
    %c0_30 = arith.constant 0 : index
    %c0_31 = arith.constant 0 : index
    %54 = vector.load %arg11[%c0_30, %c0_31] : memref<1x512xf32, #tpu.memory_space<vmem>>, vector<1x512xf32>
    %cst_32 = arith.constant dense<0.000000e+00> : vector<512xf32>
    %55 = vector.multi_reduction <add>, %52, %cst_32 [0] : vector<2x512xf32> to vector<512xf32>
    %56 = vector.shape_cast %55 : vector<512xf32> to vector<1x512xf32>
    %cst_33 = arith.constant 2.000000e+00 : f32
    %57 = vector.broadcast %cst_33 : f32 to vector<1x512xf32>
    %58 = arith.divf %56, %57 : vector<1x512xf32>
    %59 = vector.broadcast %58 : vector<1x512xf32> to vector<2x512xf32>
    %60 = arith.subf %52, %59 : vector<2x512xf32>
    %61 = arith.mulf %60, %60 : vector<2x512xf32>
    %cst_34 = arith.constant dense<0.000000e+00> : vector<512xf32>
    %62 = vector.multi_reduction <add>, %61, %cst_34 [0] : vector<2x512xf32> to vector<512xf32>
    %63 = vector.shape_cast %62 : vector<512xf32> to vector<1x512xf32>
    %cst_35 = arith.constant 2.000000e+00 : f32
    %64 = vector.broadcast %cst_35 : f32 to vector<1x512xf32>
    %65 = arith.divf %63, %64 : vector<1x512xf32>
    %66 = vector.broadcast %58 : vector<1x512xf32> to vector<2x512xf32>
    %67 = arith.subf %52, %66 : vector<2x512xf32>
    %cst_36 = arith.constant 8.000000e-01 : f32
    %68 = vector.broadcast %cst_36 : f32 to vector<1x512xf32>
    %69 = arith.addf %65, %68 : vector<1x512xf32>
    %70 = math.rsqrt %69 : vector<1x512xf32>
    %71 = vector.broadcast %70 : vector<1x512xf32> to vector<2x512xf32>
    %72 = arith.mulf %67, %71 : vector<2x512xf32>
    %73 = vector.broadcast %53 : vector<1x512xf32> to vector<2x512xf32>
    %74 = arith.mulf %72, %73 : vector<2x512xf32>
    %75 = vector.broadcast %54 : vector<1x512xf32> to vector<2x512xf32>
    %76 = arith.addf %74, %75 : vector<2x512xf32>
    %cst_37 = arith.constant 0.000000e+00 : f32
    %77 = vector.broadcast %cst_37 : f32 to vector<2x512xf32>
    %78 = arith.cmpf ogt, %76, %77 : vector<2x512xf32>
    %cst_38 = arith.constant 2.000000e-01 : f32
    %79 = vector.broadcast %cst_38 : f32 to vector<2x512xf32>
    %80 = arith.mulf %79, %76 : vector<2x512xf32>
    %81 = arith.select %78, %76, %80 : vector<2x512xi1>, vector<2x512xf32>
    %c0_39 = arith.constant 0 : index
    %c0_40 = arith.constant 0 : index
    %82 = vector.load %arg12[%c0_39, %c0_40] : memref<512x1024xbf16, #tpu.memory_space<vmem>>, vector<512x1024xbf16>
    %83 = arith.truncf %81 : vector<2x512xf32> to vector<2x512xbf16>
    %cst_41 = arith.constant dense<0.000000e+00> : vector<2x1024xf32>
    %84 = tpu.matmul %83, %82, %cst_41 {dimension_numbers = #tpu.dot_dimension_numbers<[1], [0], [0], [1], [0, 0, 1, 1], [], []>} : vector<2x512xbf16>, vector<512x1024xbf16>, vector<2x1024xf32> -> vector<2x1024xf32>
    %c0_42 = arith.constant 0 : index
    %c0_43 = arith.constant 0 : index
    %85 = vector.load %arg13[%c0_42, %c0_43] : memref<1x1024xf32, #tpu.memory_space<vmem>>, vector<1x1024xf32>
    %86 = vector.broadcast %85 : vector<1x1024xf32> to vector<2x1024xf32>
    %87 = arith.addf %84, %86 : vector<2x1024xf32>
    %c0_44 = arith.constant 0 : index
    %c0_45 = arith.constant 0 : index
    %88 = vector.load %arg14[%c0_44, %c0_45] : memref<1x1024xf32, #tpu.memory_space<vmem>>, vector<1x1024xf32>
    %c0_46 = arith.constant 0 : index
    %c0_47 = arith.constant 0 : index
    %89 = vector.load %arg15[%c0_46, %c0_47] : memref<1x1024xf32, #tpu.memory_space<vmem>>, vector<1x1024xf32>
    %cst_48 = arith.constant dense<0.000000e+00> : vector<1024xf32>
    %90 = vector.multi_reduction <add>, %87, %cst_48 [0] : vector<2x1024xf32> to vector<1024xf32>
    %91 = vector.shape_cast %90 : vector<1024xf32> to vector<1x1024xf32>
    %cst_49 = arith.constant 2.000000e+00 : f32
    %92 = vector.broadcast %cst_49 : f32 to vector<1x1024xf32>
    %93 = arith.divf %91, %92 : vector<1x1024xf32>
    %94 = vector.broadcast %93 : vector<1x1024xf32> to vector<2x1024xf32>
    %95 = arith.subf %87, %94 : vector<2x1024xf32>
    %96 = arith.mulf %95, %95 : vector<2x1024xf32>
    %cst_50 = arith.constant dense<0.000000e+00> : vector<1024xf32>
    %97 = vector.multi_reduction <add>, %96, %cst_50 [0] : vector<2x1024xf32> to vector<1024xf32>
    %98 = vector.shape_cast %97 : vector<1024xf32> to vector<1x1024xf32>
    %cst_51 = arith.constant 2.000000e+00 : f32
    %99 = vector.broadcast %cst_51 : f32 to vector<1x1024xf32>
    %100 = arith.divf %98, %99 : vector<1x1024xf32>
    %101 = vector.broadcast %93 : vector<1x1024xf32> to vector<2x1024xf32>
    %102 = arith.subf %87, %101 : vector<2x1024xf32>
    %cst_52 = arith.constant 8.000000e-01 : f32
    %103 = vector.broadcast %cst_52 : f32 to vector<1x1024xf32>
    %104 = arith.addf %100, %103 : vector<1x1024xf32>
    %105 = math.rsqrt %104 : vector<1x1024xf32>
    %106 = vector.broadcast %105 : vector<1x1024xf32> to vector<2x1024xf32>
    %107 = arith.mulf %102, %106 : vector<2x1024xf32>
    %108 = vector.broadcast %88 : vector<1x1024xf32> to vector<2x1024xf32>
    %109 = arith.mulf %107, %108 : vector<2x1024xf32>
    %110 = vector.broadcast %89 : vector<1x1024xf32> to vector<2x1024xf32>
    %111 = arith.addf %109, %110 : vector<2x1024xf32>
    %cst_53 = arith.constant 0.000000e+00 : f32
    %112 = vector.broadcast %cst_53 : f32 to vector<2x1024xf32>
    %113 = arith.cmpf ogt, %111, %112 : vector<2x1024xf32>
    %cst_54 = arith.constant 2.000000e-01 : f32
    %114 = vector.broadcast %cst_54 : f32 to vector<2x1024xf32>
    %115 = arith.mulf %114, %111 : vector<2x1024xf32>
    %116 = arith.select %113, %111, %115 : vector<2x1024xi1>, vector<2x1024xf32>
    %c0_55 = arith.constant 0 : index
    %c0_56 = arith.constant 0 : index
    %117 = vector.load %arg16[%c0_55, %c0_56] : memref<1024x2432xi8, #tpu.memory_space<vmem>>, vector<1024x2432xi8>
    %118 = arith.sitofp %117 : vector<1024x2432xi8> to vector<1024x2432xbf16>
    %119 = arith.truncf %116 : vector<2x1024xf32> to vector<2x1024xbf16>
    %cst_57 = arith.constant dense<0.000000e+00> : vector<2x2432xf32>
    %120 = tpu.matmul %119, %118, %cst_57 {dimension_numbers = #tpu.dot_dimension_numbers<[1], [0], [0], [1], [0, 0, 1, 1], [], []>} : vector<2x1024xbf16>, vector<1024x2432xbf16>, vector<2x2432xf32> -> vector<2x2432xf32>
    %c0_58 = arith.constant 0 : index
    %c0_59 = arith.constant 0 : index
    %121 = vector.load %arg17[%c0_58, %c0_59] : memref<1x2432xf32, #tpu.memory_space<vmem>>, vector<1x2432xf32>
    %122 = vector.broadcast %121 : vector<1x2432xf32> to vector<2x2432xf32>
    %123 = arith.mulf %120, %122 : vector<2x2432xf32>
    %c0_60 = arith.constant 0 : index
    %c0_61 = arith.constant 0 : index
    %124 = vector.load %arg18[%c0_60, %c0_61] : memref<1x2432xf32, #tpu.memory_space<vmem>>, vector<1x2432xf32>
    %125 = vector.broadcast %124 : vector<1x2432xf32> to vector<2x2432xf32>
    %126 = arith.addf %123, %125 : vector<2x2432xf32>
    %127 = math.tanh %126 : vector<2x2432xf32>
    %128 = arith.truncf %127 : vector<2x2432xf32> to vector<2x2432xbf16>
    %c0_62 = arith.constant 0 : index
    %c0_63 = arith.constant 0 : index
    %129 = vector.load %arg19[%c0_62, %c0_63] : memref<2x2432xbf16, #tpu.memory_space<vmem>>, vector<2x2432xbf16>
    tpu.vector_store %arg19[%c0_62, %c0_63], %128 {strides = array<i32>} : memref<2x2432xbf16, #tpu.memory_space<vmem>>, vector<2x2432xbf16>,
    return
  }
  func.func @transform_0(%arg0: i32) -> (i32, i32) {
    %c0_i32 = arith.constant 0 : i32
    %c0_i32_0 = arith.constant 0 : i32
    %c0_i32_1 = arith.constant 0 : i32
    return %c0_i32, %c0_i32_0 : i32, i32
  }
  func.func @transform_1(%arg0: i32) -> (i32, i32) {
    %c0_i32 = arith.constant 0 : i32
    %c0_i32_0 = arith.constant 0 : i32
    %c0_i32_1 = arith.constant 0 : i32
    return %c0_i32, %c0_i32_0 : i32, i32
  }
  func.func @transform_2(%arg0: i32) -> (i32, i32) {
    %c0_i32 = arith.constant 0 : i32
    %c0_i32_0 = arith.constant 0 : i32
    %c0_i32_1 = arith.constant 0 : i32
    return %c0_i32, %c0_i32_0 : i32, i32
  }
  func.func @transform_3(%arg0: i32) -> (i32, i32) {
    %c0_i32 = arith.constant 0 : i32
    %c0_i32_0 = arith.constant 0 : i32
    %c0_i32_1 = arith.constant 0 : i32
    return %c0_i32, %c0_i32_0 : i32, i32
  }
  func.func @transform_4(%arg0: i32) -> (i32, i32) {
    %c0_i32 = arith.constant 0 : i32
    %c0_i32_0 = arith.constant 0 : i32
    %c0_i32_1 = arith.constant 0 : i32
    return %c0_i32, %c0_i32_0 : i32, i32
  }
  func.func @transform_5(%arg0: i32) -> (i32, i32) {
    %c0_i32 = arith.constant 0 : i32
    %c0_i32_0 = arith.constant 0 : i32
    %c0_i32_1 = arith.constant 0 : i32
    return %c0_i32, %c0_i32_0 : i32, i32
  }
  func.func @transform_6(%arg0: i32) -> (i32, i32) {
    %c0_i32 = arith.constant 0 : i32
    %c0_i32_0 = arith.constant 0 : i32
    %c0_i32_1 = arith.constant 0 : i32
    return %c0_i32, %c0_i32_0 : i32, i32
  }
  func.func @transform_7(%arg0: i32) -> (i32, i32) {
    %c0_i32 = arith.constant 0 : i32
    %c0_i32_0 = arith.constant 0 : i32
    %c0_i32_1 = arith.constant 0 : i32
    return %c0_i32, %c0_i32_0 : i32, i32
  }
  func.func @transform_8(%arg0: i32) -> (i32, i32) {
    %c0_i32 = arith.constant 0 : i32
    %c0_i32_0 = arith.constant 0 : i32
    %c0_i32_1 = arith.constant 0 : i32
    return %c0_i32, %c0_i32_0 : i32, i32
  }
  func.func @transform_9(%arg0: i32) -> (i32, i32) {
    %c0_i32 = arith.constant 0 : i32
    %c0_i32_0 = arith.constant 0 : i32
    %c0_i32_1 = arith.constant 0 : i32
    return %c0_i32, %c0_i32_0 : i32, i32
  }
  func.func @transform_10(%arg0: i32) -> (i32, i32) {
    %c0_i32 = arith.constant 0 : i32
    %c0_i32_0 = arith.constant 0 : i32
    %c0_i32_1 = arith.constant 0 : i32
    return %c0_i32, %c0_i32_0 : i32, i32
  }
  func.func @transform_11(%arg0: i32) -> (i32, i32) {
    %c0_i32 = arith.constant 0 : i32
    %c0_i32_0 = arith.constant 0 : i32
    %c0_i32_1 = arith.constant 0 : i32
    return %c0_i32, %c0_i32_0 : i32, i32
  }
  func.func @transform_12(%arg0: i32) -> (i32, i32) {
    %c0_i32 = arith.constant 0 : i32
    %c0_i32_0 = arith.constant 0 : i32
    %c0_i32_1 = arith.constant 0 : i32
    return %c0_i32, %c0_i32_0 : i32, i32
  }
  func.func @transform_13(%arg0: i32) -> (i32, i32) {
    %c0_i32 = arith.constant 0 : i32
    %c0_i32_0 = arith.constant 0 : i32
    %c0_i32_1 = arith.constant 0 : i32
    return %c0_i32, %c0_i32_0 : i32, i32
  }
  func.func @transform_14(%arg0: i32) -> (i32, i32) {
    %c0_i32 = arith.constant 0 : i32
    %c0_i32_0 = arith.constant 0 : i32
    %c0_i32_1 = arith.constant 0 : i32
    return %c0_i32, %c0_i32_0 : i32, i32
  }
  func.func @transform_15(%arg0: i32) -> (i32, i32) {
    %c0_i32 = arith.constant 0 : i32
    %c0_i32_0 = arith.constant 0 : i32
    return %c0_i32, %arg0 : i32, i32
  }
  func.func @transform_16(%arg0: i32) -> (i32, i32) {
    %c0_i32 = arith.constant 0 : i32
    %c0_i32_0 = arith.constant 0 : i32
    return %c0_i32, %arg0 : i32, i32
  }
  func.func @transform_17(%arg0: i32) -> (i32, i32) {
    %c0_i32 = arith.constant 0 : i32
    %c0_i32_0 = arith.constant 0 : i32
    return %c0_i32, %arg0 : i32, i32
  }
  func.func @transform_18(%arg0: i32) -> (i32, i32) {
    %c0_i32 = arith.constant 0 : i32
    %c0_i32_0 = arith.constant 0 : i32
    return %c0_i32, %arg0 : i32, i32
  }
}

</mosaic_0001>

<bundles_post_ra>
// kernel: tpu_custom_call.1
= control target key start
LH: loop header
LB: loop body
LE: loop exit
PB: predicated region body
PF: predicated region fallthrough
CT: control target
= control target key end

     0   :  { %s11695_s0 = inlined_call_operand.hbm [shape: f32[2,128], index: 0, kind: input, shape index: {}]   ;;  %s11696_s1 = inlined_call_operand.hbm [shape: bf16[128,128], index: 1, kind: input, shape index: {}]   ;;  %s11697_s2 = inlined_call_operand.hbm [shape: f32[1,128], index: 2, kind: input, shape index: {}]   ;;  %s11698_s3 = inlined_call_operand.hbm [shape: bf16[128,256], index: 3, kind: input, shape index: {}]   ;;  %s11699_s4 = inlined_call_operand.hbm [shape: f32[1,256], index: 4, kind: input, shape index: {}]   ;;  %s11700_s5 = inlined_call_operand.hbm [shape: f32[1,256], index: 5, kind: input, shape index: {}]   ;;  %s11701_s6 = inlined_call_operand.hbm [shape: f32[1,256], index: 6, kind: input, shape index: {}]   ;;  %s11702_s7 = inlined_call_operand.hbm [shape: bf16[256,512], index: 7, kind: input, shape index: {}]   ;;  %s11703_s8 = inlined_call_operand.hbm [shape: f32[1,512], index: 8, kind: input, shape index: {}]   ;;  %s11704_s9 = inlined_call_operand.hbm [shape: f32[1,512], index: 9, kind: input, shape index: {}]   ;;  %s11705_s10 = inlined_call_operand.hbm [shape: f32[1,512], index: 10, kind: input, shape index: {}]   ;;  %s11706_s11 = inlined_call_operand.hbm [shape: bf16[512,1024], index: 11, kind: input, shape index: {}]   ;;  %s11707_s12 = inlined_call_operand.hbm [shape: f32[1,1024], index: 12, kind: input, shape index: {}]   ;;  %s11708_s13 = inlined_call_operand.hbm [shape: f32[1,1024], index: 13, kind: input, shape index: {}]   ;;  %s11709_s14 = inlined_call_operand.hbm [shape: f32[1,1024], index: 14, kind: input, shape index: {}]   ;;  %s11710_s15 = inlined_call_operand.hbm [shape: s8[1024,9728], index: 15, kind: input, shape index: {}]   ;;  %s11711_s16 = inlined_call_operand.hbm [shape: f32[1,9728], index: 16, kind: input, shape index: {}]   ;;  %s11712_s17 = inlined_call_operand.hbm [shape: f32[1,9728], index: 17, kind: input, shape index: {}]   ;;  %s11713_s18 = inlined_call_operand.hbm [shape: bf16[2,9728], index: 18, kind: output, shape index: {}]  }
   0x1   :  { %11743 = sst [smem:[#allocation47_spill]] %s11695_s0 }
   0x2   :  { %11744 = sst [smem:[#allocation48_spill]] %s11696_s1 }
   0x3   :  { %11745 = sst [smem:[#allocation49_spill]] %s11697_s2 }
   0x4   :  { %11746 = sst [smem:[#allocation50_spill]] %s11698_s3 }
   0x5   :  { %11747 = sst [smem:[#allocation51_spill]] %s11699_s4 }
   0x6   :  { %11748 = sst [smem:[#allocation52_spill]] %s11700_s5 }
   0x7   :  { %11749 = sst [smem:[#allocation53_spill]] %s11701_s6 }
   0x8   :  { %11750 = sst [smem:[#allocation54_spill]] %s11702_s7 }
   0x9   :  { %11751 = sst [smem:[#allocation55_spill]] %s11703_s8 }
   0xa   :  { %11752 = sst [smem:[#allocation56_spill]] %s11704_s9 }
   0xb   :  { %11753 = sst [smem:[#allocation57_spill]] %s11705_s10 }
   0xc   :  { %11754 = sst [smem:[#allocation58_spill]] %s11706_s11 }
   0xd   :  { %11755 = sst [smem:[#allocation59_spill]] %s11707_s12 }
   0xe   :  { %11756 = sst [smem:[#allocation60_spill]] %s11708_s13 }
   0xf   :  { %11757 = sst [smem:[#allocation61_spill]] %s11709_s14 }
  0x10   :  { %11758 = sst [smem:[#allocation62_spill]] %s11710_s15 }
  0x11   :  { %11759 = sst [smem:[#allocation63_spill]] %s11711_s16 }
  0x12   :  { %11760 = sst [smem:[#allocation64_spill]] %s11712_s17 }
  0x13   :  { %11761 = sst [smem:[#allocation65_spill]] %s11713_s18 }
  0x14   :  { %23 = vsyncpa [#allocation3], 0 }
  0x15   :  { %24 = vsyncpa [#allocation6], 0 }
  0x16   :  { %25 = vsyncpa [#allocation9], 0 }
  0x17   :  { %26 = vsyncpa [#allocation12], 0 }
  0x18   :  { %27 = vsyncpa [#allocation15], 0 }
  0x19   :  { %28 = vsyncpa [#allocation18], 0 }
  0x1a   :  { %29 = vsyncpa [#allocation21], 0 }
  0x1b   :  { %30 = vsyncpa [#allocation24], 0 }
  0x1c   :  { %31 = vsyncpa [#allocation27], 0 }
  0x1d   :  { %33 = vsyncpa [#allocation27 + $0x1], 0 }
  0x1e   :  { %34 = vsyncpa [#allocation30], 0 }
  0x1f   :  { %36 = vsyncpa [#allocation30 + $0x1], 0 }
  0x20   :  { %37 = vsyncpa [#allocation4], 0 }
  0x21   :  { %39 = vsyncpa [#allocation4 + $0x1], 0  ;;  %s10035_s27 = smov 0   ;;  %s10037_s28 = smov 0  }
  0x22   :  { %s10039_s29 = smov 0   ;;  %s10041_s30 = smov 0  }
  0x23 LB: > { %11762 = sst [smem:[#allocation43_spill]] %s9900_s29  ;;  %s9906_s0 = smov [#allocation5]   ;;  %s9904_s30 = sphi %s10041_s30, %s11820_s30   ;;  %s9900_s29 = sphi %s10039_s29, %s11822_s29   ;;  %s9896_s28 = sphi %s10037_s28, %s11824_s28   ;;  %s9892_s27 = sphi %s10035_s27, %s11823_s27  }
  0x24   : > { %s492_s19 = sshll.u32 %s9906_s0, 4  ;;  %s10056_s1 = sadd.s32 4294967295, %s9904_s30   ;;  %s10061_s19 = int_to_ptr.vmem [resolvable:$true] %s492_s19 }
  0x25   : > { %p8218_p0 = scmp.ge.s32.totalorder %s9904_s30, 1  ;;  %p11725_p1 = scmp.eq.s32.totalorder %s10056_s1, 0 }
  0x26   : > { %p469_p2 = scmp.lt.s32.totalorder %s9904_s30, 5  ;;  %s9907_s21 = smov [#allocation8]  }
  0x27   : > { %s516_s22 = sshll.u32 %s9907_s21, 4  ;;  %s9908_s23 = smov [#allocation11]   ;;  %s10075_s22 = int_to_ptr.vmem [resolvable:$true] %s516_s22 }
  0x28   : > { %p10063_p3 = pnand %p8218_p0, %p469_p2  ;;  %s10077_s24 = sshll.u32 %s9908_s23, 4  ;;  %s542_s24 = int_to_ptr.vmem [resolvable:$true] %s10077_s24 }
  0x29   : > { %s11766_s0 = sld [smem:[#allocation48_spill]] }
  0x2a   : > { %s11763_s20 = scalar_select %p10063_p3, 1, 0 }
  0x2b   : > { %p8938_p4 = pneg %p10063_p3 }
  0x2c   : > { %11764 = sst [smem:[#allocation44_spill]] %s11763_s20 }
  0x2d   : > { %p10071_p5 = pnand %p8938_p4, %p11725_p1 }
  0x2f   : > { %s11765_s2 = scalar_select %p10071_p5, 1, 0 }
  0x30   : > { %s9292_s18 = scalar_lea.hbm %s11766_s0, 1024  ;;  %p10087_p7 = pneg %p10071_p5 }
  0x31   : > { %p9293_p6 = scmp.ne.s32.totalorder %s11766_s0, %s9292_s18  ;;  %p9299_p10 = scmp.lt.u32.totalorder %s9292_s18, %s11766_s0 }
  0x32   : > { %s11767_s21 = scalar_select %p10087_p7, 1, 0 }
  0x33   : > { %p9295_p8 = pnand %p10087_p7, %p9293_p6 }
  0x35   : > { %p9296_p9 = pneg %p9295_p8 }
  0x37   : > { %p9301_p11 = pnand %p9299_p10, %p9296_p9 }
  0x39   : > { %9304 = shalt.err (!%p9301_p11)
}
  0x3a   : > { %s9305_s17 = scalar_lea.vmem %s10061_s19, 1024  ;;  %p9313_p2 = scmp.lt.s32.totalorder %s10061_s19, %s10061_s19 }
  0x3b   : > { %p9306_p12 = scmp.ne.s32.totalorder %s10061_s19, %s9305_s17  ;;  %p9314_p4 = scmp.lt.s32.totalorder %s9305_s17, %s9305_s17 }
  0x3d   : > { %p9308_p13 = pnand %p9306_p12, %p10087_p7  ;;  %p9315_p6 = por %p9314_p4, %p9313_p2 }
  0x3f   : > { %p9309_p0 = pneg %p9308_p13 }
  0x41   : > { %p9316_p8 = pnand %p9315_p6, %p9309_p0 }
  0x43   : > { %9319 = shalt.err (!%p9316_p8)
}
  0x44   : > { %s9909_s20 = smov 64   ;;  %s9910_s16 = smov 4  }
  0x45   : > { %8944 = dma.hbm_to_vmem [thread:$0]  (!%p10071_p5), %s11766_s0, 1024, %s10061_s19, [#allocation6], %s9909_s20, %s9909_s20, %s9910_s16  }
  0x46   : > { %s11768_s3 = sld [smem:[#allocation50_spill]] }
  0x4c   : > { %s9320_s14 = scalar_lea.hbm %s11768_s3, 2048 }
  0x4d   : > { %p9321_p9 = scmp.ne.s32.totalorder %s11768_s3, %s9320_s14  ;;  %p9327_p12 = scmp.lt.u32.totalorder %s9320_s14, %s11768_s3 }
  0x4f   : > { %p9323_p10 = pnand %p9321_p9, %p10087_p7 }
  0x51   : > { %p9324_p11 = pneg %p9323_p10 }
  0x53   : > { %p9329_p13 = pnand %p9327_p12, %p9324_p11 }
  0x55   : > { %9332 = shalt.err (!%p9329_p13)
}
  0x56   : > { %s9333_s19 = scalar_lea.vmem %s10075_s22, 2048  ;;  %p9341_p6 = scmp.lt.s32.totalorder %s10075_s22, %s10075_s22 }
  0x57   : > { %p9334_p0 = scmp.ne.s32.totalorder %s10075_s22, %s9333_s19  ;;  %p9342_p8 = scmp.lt.s32.totalorder %s9333_s19, %s9333_s19 }
  0x59   : > { %p9336_p2 = pnand %p9334_p0, %p10087_p7  ;;  %p9343_p9 = por %p9342_p8, %p9341_p6 }
  0x5b   : > { %p9337_p4 = pneg %p9336_p2 }
  0x5d   : > { %p9344_p10 = pnand %p9343_p9, %p9337_p4 }
  0x5f   : > { %9347 = shalt.err (!%p9344_p10)
}
  0x60   : > { %s9911_s10 = smov 128   ;;  %s9912_s8 = smov 8  }
  0x61   : > { %8950 = dma.hbm_to_vmem [thread:$0]  (!%p10071_p5), %s11768_s3, 2048, %s10075_s22, [#allocation9], %s9911_s10, %s9911_s10, %s9912_s8  }
  0x62   : > { %s11769_s5 = sld [smem:[#allocation52_spill]] }
  0x68   : > { %s9348_s18 = scalar_lea.hbm %s11769_s5, 32 }
  0x69   : > { %p9349_p11 = scmp.ne.s32.totalorder %s11769_s5, %s9348_s18  ;;  %p9355_p0 = scmp.lt.u32.totalorder %s9348_s18, %s11769_s5 }
  0x6b   : > { %p9351_p12 = pnand %p9349_p11, %p10087_p7 }
  0x6d   : > { %p9352_p13 = pneg %p9351_p12 }
  0x6f   : > { %p9357_p2 = pnand %p9355_p0, %p9352_p13 }
  0x71   : > { %9360 = shalt.err (!%p9357_p2)
}
  0x72   : > { %s9361_s19 = scalar_lea.vmem %s542_s24, 32  ;;  %p9369_p9 = scmp.lt.s32.totalorder %s542_s24, %s542_s24 }
  0x73   : > { %p9362_p4 = scmp.ne.s32.totalorder %s542_s24, %s9361_s19  ;;  %p9370_p10 = scmp.lt.s32.totalorder %s9361_s19, %s9361_s19 }
  0x75   : > { %p9364_p6 = pnand %p9362_p4, %p10087_p7  ;;  %p9371_p1 = por %p9370_p10, %p9369_p9 }
  0x77   : > { %p9365_p8 = pneg %p9364_p6 }
  0x79   : > { %p9372_p3 = pnand %p9371_p1, %p9365_p8 }
  0x7b   : > { %9375 = shalt.err (!%p9372_p3)
}
  0x7c   : > { %8956 = dma.hbm_to_vmem [thread:$0]  (!%p10071_p5), %s11769_s5, 32, %s542_s24, [#allocation12]  }
  0x7d   : > { %s9913_s8 = smov [#allocation14]   ;;  %s11770_s7 = sld [smem:[#allocation54_spill]] }
  0x7e   : > { %s562_s12 = sshll.u32 %s9913_s8, 4  ;;  %s563_s12 = int_to_ptr.vmem [resolvable:$true] %s562_s12 }
  0x83   : > { %s9376_s16 = scalar_lea.hbm %s11770_s7, 8192 }
  0x84   : > { %p9377_p11 = scmp.ne.s32.totalorder %s11770_s7, %s9376_s16  ;;  %p9383_p12 = scmp.lt.u32.totalorder %s9376_s16, %s11770_s7 }
  0x86   : > { %p9379_p1 = pnand %p9377_p11, %p10087_p7 }
  0x88   : > { %p9380_p3 = pneg %p9379_p1 }
  0x8a   : > { %p9385_p13 = pnand %p9383_p12, %p9380_p3 }
  0x8c   : > { %9388 = shalt.err (!%p9385_p13)
}
  0x8d   : > { %s9389_s24 = scalar_lea.vmem %s563_s12, 8192  ;;  %p9397_p6 = scmp.lt.s32.totalorder %s563_s12, %s563_s12 }
  0x8e   : > { %p9390_p0 = scmp.ne.s32.totalorder %s563_s12, %s9389_s24  ;;  %p9398_p8 = scmp.lt.s32.totalorder %s9389_s24, %s9389_s24 }
  0x90   : > { %p9392_p2 = pnand %p9390_p0, %p10087_p7  ;;  %p9399_p9 = por %p9398_p8, %p9397_p6 }
  0x92   : > { %p9393_p4 = pneg %p9392_p2 }
  0x94   : > { %p9400_p10 = pnand %p9399_p9, %p9393_p4 }
  0x96   : > { %9403 = shalt.err (!%p9400_p10)
}
  0x97   : > { %s9914_s17 = smov 256   ;;  %s9915_s19 = smov 16  }
  0x98   : > { %8962 = dma.hbm_to_vmem [thread:$0]  (!%p10071_p5), %s11770_s7, 8192, %s563_s12, [#allocation15], %s9914_s17, %s9914_s17, %s9915_s19  }
  0x99   : > { %s9916_s8 = smov [#allocation17]   ;;  %s9917_s20 = smov [#allocation20]  }
  0x9a   : > { %s587_s14 = sshll.u32 %s9916_s8, 4  ;;  %s608_s16 = sshll.u32 %s9917_s20, 4  ;;  %s588_s14 = int_to_ptr.vmem [resolvable:$true] %s587_s14  ;;  %s10168_s16 = int_to_ptr.vmem [resolvable:$true] %s608_s16 }
  0x9b   : > { %s11771_s9 = sld [smem:[#allocation56_spill]] }
  0xa1   : > { %s9404_s26 = scalar_lea.hbm %s11771_s9, 64 }
  0xa2   : > { %p9405_p11 = scmp.ne.s32.totalorder %s11771_s9, %s9404_s26  ;;  %p9411_p12 = scmp.lt.u32.totalorder %s9404_s26, %s11771_s9 }
  0xa4   : > { %p9407_p1 = pnand %p9405_p11, %p10087_p7 }
  0xa6   : > { %p9408_p3 = pneg %p9407_p1 }
  0xa8   : > { %p9413_p13 = pnand %p9411_p12, %p9408_p3 }
  0xaa   : > { %9416 = shalt.err (!%p9413_p13)
}
  0xab   : > { %s9417_s17 = scalar_lea.vmem %s588_s14, 64  ;;  %p9425_p6 = scmp.lt.s32.totalorder %s588_s14, %s588_s14 }
  0xac   : > { %p9418_p0 = scmp.ne.s32.totalorder %s588_s14, %s9417_s17  ;;  %p9426_p8 = scmp.lt.s32.totalorder %s9417_s17, %s9417_s17 }
  0xae   : > { %p9420_p2 = pnand %p9418_p0, %p10087_p7  ;;  %p9427_p9 = por %p9426_p8, %p9425_p6 }
  0xb0   : > { %p9421_p4 = pneg %p9420_p2 }
  0xb2   : > { %p9428_p10 = pnand %p9427_p9, %p9421_p4 }
  0xb4   : > { %9431 = shalt.err (!%p9428_p10)
}
  0xb5   : > { %8968 = dma.hbm_to_vmem [thread:$0]  (!%p10071_p5), %s11771_s9, 64, %s588_s14, [#allocation18]  }
  0xb6   : > { %s11772_s11 = sld [smem:[#allocation58_spill]] }
  0xbc   : > { %s9432_s18 = scalar_lea.hbm %s11772_s11, 32768 }
  0xbd   : > { %p9433_p11 = scmp.ne.s32.totalorder %s11772_s11, %s9432_s18  ;;  %p9439_p12 = scmp.lt.u32.totalorder %s9432_s18, %s11772_s11 }
  0xbf   : > { %p9435_p1 = pnand %p9433_p11, %p10087_p7 }
  0xc1   : > { %p9436_p3 = pneg %p9435_p1 }
  0xc3   : > { %p9441_p13 = pnand %p9439_p12, %p9436_p3 }
  0xc5   : > { %9444 = shalt.err (!%p9441_p13)
}
  0xc6   : > { %s9445_s14 = scalar_lea.vmem %s10168_s16, 32768  ;;  %p9453_p6 = scmp.lt.s32.totalorder %s10168_s16, %s10168_s16 }
  0xc7   : > { %p9446_p0 = scmp.ne.s32.totalorder %s10168_s16, %s9445_s14  ;;  %p9454_p8 = scmp.lt.s32.totalorder %s9445_s14, %s9445_s14 }
  0xc9   : > { %p9448_p2 = pnand %p9446_p0, %p10087_p7  ;;  %p9455_p9 = por %p9454_p8, %p9453_p6 }
  0xcb   : > { %p9449_p4 = pneg %p9448_p2 }
  0xcd   : > { %p9456_p10 = pnand %p9455_p9, %p9449_p4 }
  0xcf   : > { %9459 = shalt.err (!%p9456_p10)
}
  0xd0   : > { %s9918_s22 = smov 512   ;;  %s9919_s12 = smov 32  }
  0xd1   : > { %8974 = dma.hbm_to_vmem [thread:$0]  (!%p10071_p5), %s11772_s11, 32768, %s10168_s16, [#allocation21], %s9918_s22, %s9918_s22, %s9919_s12  }
  0xd2   : > { %s9920_s10 = smov [#allocation23]   ;;  %s11773_s13 = sld [smem:[#allocation60_spill]] }
  0xd3   : > { %s633_s8 = sshll.u32 %s9920_s10, 4  ;;  %s634_s8 = int_to_ptr.vmem [resolvable:$true] %s633_s8 }
  0xd8   : > { %s9460_s25 = scalar_lea.hbm %s11773_s13, 128 }
  0xd9   : > { %p9461_p11 = scmp.ne.s32.totalorder %s11773_s13, %s9460_s25  ;;  %p9467_p12 = scmp.lt.u32.totalorder %s9460_s25, %s11773_s13 }
  0xdb   : > { %p9463_p1 = pnand %p9461_p11, %p10087_p7 }
  0xdd   : > { %p9464_p3 = pneg %p9463_p1 }
  0xdf   : > { %p9469_p13 = pnand %p9467_p12, %p9464_p3 }
  0xe1   : > { %9472 = shalt.err (!%p9469_p13)
}
  0xe2   : > { %s9473_s16 = scalar_lea.vmem %s634_s8, 128  ;;  %p9481_p6 = scmp.lt.s32.totalorder %s634_s8, %s634_s8 }
  0xe3   : > { %p9474_p0 = scmp.ne.s32.totalorder %s634_s8, %s9473_s16  ;;  %p9482_p8 = scmp.lt.s32.totalorder %s9473_s16, %s9473_s16 }
  0xe5   : > { %p9476_p2 = pnand %p9474_p0, %p10087_p7  ;;  %p9483_p9 = por %p9482_p8, %p9481_p6 }
  0xe7   : > { %p9477_p4 = pneg %p9476_p2 }
  0xe9   : > { %p9484_p10 = pnand %p9483_p9, %p9477_p4 }
  0xeb   : > { %9487 = shalt.err (!%p9484_p10)
}
  0xec   : > { %8980 = dma.hbm_to_vmem [thread:$0]  (!%p10071_p5), %s11773_s13, 128, %s634_s8, [#allocation24]  }
  0xed   : > { %s8217_s17 = sadd.s32 4294967294, %s9904_s30   ;;  %s10231_s19 = sadd.s32 1, %s9904_s30  }
  0xee   : > { %11774 = sst [smem:[#allocation45_spill]] %s10231_s19  ;;  %s367_s10 = sadd.s32 1, %s9900_s29 }
  0xef   : > { %s364_s20 = ssub.s32 %s9904_s30, %s10231_s19  ;;  %p374_p11 = scmp.ne.s32.totalorder %s9900_s29, %s9896_s28 }
  0xf0   : > { %p365_p1 = scmp.eq.s32.totalorder %s364_s20, 0  ;;  %p375_p3 = scmp.eq.s32.totalorder %s9904_s30, 0 }
  0xf1   : > { %p380_p12 = scmp.ne.s32.totalorder %s9896_s28, %s9892_s27  ;;  %p456_p13 = scmp.eq.s32.totalorder %s10056_s1, 3 }
  0xf2   : > { %s10243_s18 = scalar_select %p365_p1, %s9900_s29, %s367_s10  }
  0xf3   : > { %p376_p0 = por %p375_p3, %p374_p11  ;;  %p11776_p2 = scmp.eq.s32.totalorder %s10056_s1, 0 }
  0xf4   : > { %11775 = sst [smem:[#allocation46_spill]] %s10243_s18  ;;  %p10251_p6 = por %p456_p13, %p374_p11 }
  0xf5   : > { %p10247_p4 = por %p11776_p2, %p380_p12  ;;  %p462_p8 = scmp.eq.s32.totalorder %s8217_s17, 3 }
  0xf6   : > { %s11778_s25 = scalar_select %p10251_p6, 1, 0 }
  0xf7   : > { %s11777_s8 = scalar_select %p10247_p4, 1, 0 }
  0xf8   : > { %p9013_p9 = scmp.lt.s32.totalorder %s9904_s30, 4  ;;  %s655_s26 = sand.u32 1, %s9904_s30  }
  0xf9   : > { %p10257_p10 = por %p462_p8, %p380_p12  ;;  %s10262_s24 = sand.u32 1, %s9900_s29  }
  0xfa   : > { %s8612_s14 = smul.u32 2432, %s9904_s30  ;;  %p10266_p1 = pnand %p9013_p9, %p376_p0 }
  0xfb   : > { %s11779_s23 = scalar_select %p10257_p10, 1, 0 }
  0xfc   : > { %s8865_s16 = smul.u32 4864, %s10262_s24  ;;  %s11781_s15 = sld [smem:[#allocation62_spill]] }
  0xfd   : > { %s11780_s22 = scalar_select %p10266_p1, 1, 0 }
  0xfe   : > { %s659_s20 = scalar_lea.vmem [#allocation26], %s8865_s16  ;;  %s10277_s3 = scalar_lea.sflag [#allocation27], %s655_s26 }
  0xff   : > { %s666_s0 = sshll.u32 %s659_s20, 4  ;;  %p10283_p3 = pneg %p10266_p1  ;;  %s10275_s0 = int_to_ptr.vmem [resolvable:$true] %s666_s0 }
 0x101   : > { %s11782_s7 = scalar_select %p10283_p3, 1, 0 }
 0x102   : > { %s10273_s17 = scalar_lea.hbm %s11781_s15, %s8612_s14  ;;  %s9493_s16 = scalar_lea.hbm %s11781_s15, 311296 }
 0x103   : > { %s9488_s5 = scalar_lea.hbm %s10273_s17, 77824  ;;  %p9494_p0 = scmp.lt.u32.totalorder %s10273_s17, %s11781_s15 }
 0x104   : > { %p9489_p11 = scmp.ne.s32.totalorder %s10273_s17, %s9488_s5  ;;  %p9495_p2 = scmp.lt.u32.totalorder %s9493_s16, %s9488_s5 }
 0x105   : > { %p9497_p9 = scmp.lt.u32.totalorder %s9488_s5, %s10273_s17 }
 0x106   : > { %p9491_p12 = pnand %p10283_p3, %p9489_p11  ;;  %p9496_p8 = por %p9495_p2, %p9494_p0 }
 0x108   : > { %p9492_p13 = pneg %p9491_p12  ;;  %p9498_p10 = por %p9497_p9, %p9496_p8 }
 0x10a   : > { %p9499_p6 = pnand %p9498_p10, %p9492_p13 }
 0x10c   : > { %9502 = shalt.err (!%p9499_p6)
}
 0x10d   : > { %s9503_s26 = scalar_lea.vmem %s10275_s0, 77824  ;;  %s9921_s14 = smov [#allocation26]  }
 0x10e   : > { %p9504_p11 = scmp.ne.s32.totalorder %s10275_s0, %s9503_s26  ;;  %s9508_s12 = sshll.u32 %s9921_s14, 4  ;;  %s9509_s12 = int_to_ptr.vmem [resolvable:$false] %s9508_s12 }
 0x10f   : > { %s9510_s10 = scalar_lea.vmem %s9509_s12, 155648  ;;  %p9511_p5 = scmp.lt.s32.totalorder %s10275_s0, %s9509_s12 }
 0x110   : > { %p9506_p12 = pnand %p9504_p11, %p10283_p3  ;;  %p9512_p7 = scmp.lt.s32.totalorder %s9510_s10, %s9503_s26 }
 0x112   : > { %p9507_p4 = pneg %p9506_p12  ;;  %p9513_p0 = por %p9512_p7, %p9511_p5 }
 0x114   : > { %p9514_p2 = pnand %p9513_p0, %p9507_p4 }
 0x116   : > { %9517 = shalt.err (!%p9514_p2)
}
 0x117   : > { %s9922_s5 = smov 9728   ;;  %s9923_s16 = smov 2432  }
 0x118   : > { %s9924_s20 = smov 152   ;;  %s9925_s9 = smov [#allocation2]  }
 0x119   : > { %8987 = dma.hbm_to_vmem [thread:$0]  (!%p10266_p1), %s10273_s17, 77824, %s10275_s0, %s10277_s3, %s9922_s5, %s9923_s16, %s9924_s20  }
 0x11a   : > { %s482_s11 = sshll.u32 %s9925_s9, 4  ;;  %s9926_s14 = smov [#allocation7]   ;;  %s483_s11 = int_to_ptr.vmem [resolvable:$true] %s482_s11 }
 0x11b   : > { %s506_s13 = sshll.u32 %s9926_s14, 4  ;;  %s11783_s10 = sld [smem:[#allocation47_spill]]  ;;  %s10307_s13 = int_to_ptr.vmem [resolvable:$true] %s506_s13 }
 0x11c   : > { %p11784_p7 = scmp.ne.s32.totalorder %s11767_s21, 0 }
 0x121   : > { %s9518_s15 = scalar_lea.hbm %s11783_s10, 32 }
 0x122   : > { %p9519_p5 = scmp.ne.s32.totalorder %s11783_s10, %s9518_s15  ;;  %p9525_p10 = scmp.lt.u32.totalorder %s9518_s15, %s11783_s10 }
 0x124   : > { %p9521_p4 = pnand %p9519_p5, %p11784_p7 }
 0x126   : > { %p9522_p6 = pneg %p9521_p4 }
 0x128   : > { %p9527_p13 = pnand %p9525_p10, %p9522_p6 }
 0x12a   : > { %9530 = shalt.err (!%p9527_p13)
}
 0x12b   : > { %s9531_s9 = scalar_lea.vmem %s483_s11, 32  ;;  %p9539_p12 = scmp.lt.s32.totalorder %s483_s11, %s483_s11 }
 0x12c   : > { %p9532_p8 = scmp.ne.s32.totalorder %s483_s11, %s9531_s9  ;;  %p9540_p0 = scmp.lt.s32.totalorder %s9531_s9, %s9531_s9 }
 0x12e   : > { %p9534_p9 = pnand %p9532_p8, %p11784_p7  ;;  %p9541_p2 = por %p9540_p0, %p9539_p12 }
 0x130   : > { %p9535_p11 = pneg %p9534_p9 }
 0x132   : > { %p9542_p1 = pnand %p9541_p2, %p9535_p11 }
 0x134   : > { %9545 = shalt.err (!%p9542_p1)
}
 0x135   : > { %p11785_p5 = scmp.ne.s32.totalorder %s11765_s2, 0  ;;  %s11786_s17 = sld [smem:[#allocation49_spill]] }
 0x137   : > { %8941 = dma.hbm_to_vmem [thread:$0]  (!%p11785_p5), %s11783_s10, 32, %s483_s11, [#allocation3]  }
 0x13b   : > { %s9546_s5 = scalar_lea.hbm %s11786_s17, 16 }
 0x13c   : > { %p9547_p4 = scmp.ne.s32.totalorder %s11786_s17, %s9546_s5  ;;  %p9553_p1 = scmp.lt.u32.totalorder %s9546_s5, %s11786_s17 }
 0x13e   : > { %p9549_p6 = pnand %p9547_p4, %p11784_p7 }
 0x140   : > { %p9550_p10 = pneg %p9549_p6 }
 0x142   : > { %p9555_p13 = pnand %p9553_p1, %p9550_p10 }
 0x144   : > { %9558 = shalt.err (!%p9555_p13)
}
 0x145   : > { %s9559_s11 = scalar_lea.vmem %s10307_s13, 16  ;;  %s9566_s12 = scalar_lea.vmem %s10307_s13, 32 }
 0x146   : > { %p9560_p8 = scmp.ne.s32.totalorder %s10307_s13, %s9559_s11  ;;  %p9567_p12 = scmp.lt.s32.totalorder %s10307_s13, %s10307_s13 }
 0x147   : > { %p9568_p0 = scmp.lt.s32.totalorder %s9566_s12, %s9559_s11 }
 0x148   : > { %p9562_p9 = pnand %p9560_p8, %p11784_p7 }
 0x149   : > { %p9569_p2 = por %p9568_p0, %p9567_p12 }
 0x14a   : > { %p9563_p11 = pneg %p9562_p9 }
 0x14c   : > { %p9570_p4 = pnand %p9569_p2, %p9563_p11 }
 0x14e   : > { %9573 = shalt.err (!%p9570_p4)
}
 0x14f   : > { %8947 = dma.hbm_to_vmem [thread:$0]  (!%p11785_p5), %s11786_s17, 16, %s10307_s13, [#allocation6]  }
 0x150   : > { %s9927_s29 = smov [#allocation10]   ;;  %s9928_s15 = smov [#allocation13]  }
 0x151   : > { %s530_s18 = sshll.u32 %s9927_s29, 4  ;;  %s552_s19 = sshll.u32 %s9928_s15, 4  ;;  %s531_s18 = int_to_ptr.vmem [resolvable:$true] %s530_s18  ;;  %s10351_s19 = int_to_ptr.vmem [resolvable:$true] %s552_s19 }
 0x152   : > { %s11787_s4 = sld [smem:[#allocation51_spill]] }
 0x158   : > { %s9574_s20 = scalar_lea.hbm %s11787_s4, 32 }
 0x159   : > { %p9575_p6 = scmp.ne.s32.totalorder %s11787_s4, %s9574_s20  ;;  %p9581_p13 = scmp.lt.u32.totalorder %s9574_s20, %s11787_s4 }
 0x15b   : > { %p9577_p10 = pnand %p9575_p6, %p11784_p7 }
 0x15d   : > { %p9578_p1 = pneg %p9577_p10 }
 0x15f   : > { %p9583_p8 = pnand %p9581_p13, %p9578_p1 }
 0x161   : > { %9586 = shalt.err (!%p9583_p8)
}
 0x162   : > { %s9587_s12 = scalar_lea.vmem %s531_s18, 32  ;;  %p9595_p0 = scmp.lt.s32.totalorder %s531_s18, %s531_s18 }
 0x163   : > { %p9588_p9 = scmp.ne.s32.totalorder %s531_s18, %s9587_s12  ;;  %p9596_p2 = scmp.lt.s32.totalorder %s9587_s12, %s9587_s12 }
 0x165   : > { %p9590_p11 = pnand %p9588_p9, %p11784_p7  ;;  %p9597_p4 = por %p9596_p2, %p9595_p0 }
 0x167   : > { %p9591_p12 = pneg %p9590_p11 }
 0x169   : > { %p9598_p3 = pnand %p9597_p4, %p9591_p12 }
 0x16b   : > { %9601 = shalt.err (!%p9598_p3)
}
 0x16c   : > { %8953 = dma.hbm_to_vmem [thread:$0]  (!%p11785_p5), %s11787_s4, 32, %s531_s18, [#allocation9]  }
 0x16d   : > { %s11788_s6 = sld [smem:[#allocation53_spill]] }
 0x173   : > { %s9602_s5 = scalar_lea.hbm %s11788_s6, 32 }
 0x174   : > { %p9603_p6 = scmp.ne.s32.totalorder %s11788_s6, %s9602_s5  ;;  %p9609_p3 = scmp.lt.u32.totalorder %s9602_s5, %s11788_s6 }
 0x176   : > { %p9605_p10 = pnand %p9603_p6, %p11784_p7 }
 0x178   : > { %p9606_p1 = pneg %p9605_p10 }
 0x17a   : > { %p9611_p13 = pnand %p9609_p3, %p9606_p1 }
 0x17c   : > { %9614 = shalt.err (!%p9611_p13)
}
 0x17d   : > { %s9615_s18 = scalar_lea.vmem %s10351_s19, 32  ;;  %p9623_p12 = scmp.lt.s32.totalorder %s10351_s19, %s10351_s19 }
 0x17e   : > { %p9616_p8 = scmp.ne.s32.totalorder %s10351_s19, %s9615_s18  ;;  %p9624_p0 = scmp.lt.s32.totalorder %s9615_s18, %s9615_s18 }
 0x180   : > { %p9618_p9 = pnand %p9616_p8, %p11784_p7  ;;  %p9625_p2 = por %p9624_p0, %p9623_p12 }
 0x182   : > { %p9619_p11 = pneg %p9618_p9 }
 0x184   : > { %p9626_p4 = pnand %p9625_p2, %p9619_p11 }
 0x186   : > { %9629 = shalt.err (!%p9626_p4)
}
 0x187   : > { %8959 = dma.hbm_to_vmem [thread:$0]  (!%p11785_p5), %s11788_s6, 32, %s10351_s19, [#allocation12]  }
 0x188   : > { %s9929_s12 = smov [#allocation16]   ;;  %s9930_s9 = smov [#allocation19]  }
 0x189   : > { %s576_s0 = sshll.u32 %s9929_s12, 4  ;;  %s598_s29 = sshll.u32 %s9930_s9, 4  ;;  %s577_s0 = int_to_ptr.vmem [resolvable:$true] %s576_s0  ;;  %s10394_s29 = int_to_ptr.vmem [resolvable:$true] %s598_s29 }
 0x18a   : > { %s11789_s16 = sld [smem:[#allocation55_spill]] }
 0x190   : > { %s9630_s20 = scalar_lea.hbm %s11789_s16, 64 }
 0x191   : > { %p9631_p6 = scmp.ne.s32.totalorder %s11789_s16, %s9630_s20  ;;  %p9637_p3 = scmp.lt.u32.totalorder %s9630_s20, %s11789_s16 }
 0x193   : > { %p9633_p10 = pnand %p9631_p6, %p11784_p7 }
 0x195   : > { %p9634_p1 = pneg %p9633_p10 }
 0x197   : > { %p9639_p13 = pnand %p9637_p3, %p9634_p1 }
 0x199   : > { %9642 = shalt.err (!%p9639_p13)
}
 0x19a   : > { %s9643_s11 = scalar_lea.vmem %s577_s0, 64  ;;  %p9651_p12 = scmp.lt.s32.totalorder %s577_s0, %s577_s0 }
 0x19b   : > { %p9644_p8 = scmp.ne.s32.totalorder %s577_s0, %s9643_s11  ;;  %p9652_p0 = scmp.lt.s32.totalorder %s9643_s11, %s9643_s11 }
 0x19d   : > { %p9646_p9 = pnand %p9644_p8, %p11784_p7  ;;  %p9653_p2 = por %p9652_p0, %p9651_p12 }
 0x19f   : > { %p9647_p11 = pneg %p9646_p9 }
 0x1a1   : > { %p9654_p4 = pnand %p9653_p2, %p9647_p11 }
 0x1a3   : > { %9657 = shalt.err (!%p9654_p4)
}
 0x1a4   : > { %8965 = dma.hbm_to_vmem [thread:$0]  (!%p11785_p5), %s11789_s16, 64, %s577_s0, [#allocation15]  }
 0x1a5   : > { %s11790_s5 = sld [smem:[#allocation57_spill]] }
 0x1ab   : > { %s9658_s20 = scalar_lea.hbm %s11790_s5, 64 }
 0x1ac   : > { %p9659_p6 = scmp.ne.s32.totalorder %s11790_s5, %s9658_s20  ;;  %p9665_p3 = scmp.lt.u32.totalorder %s9658_s20, %s11790_s5 }
 0x1ae   : > { %p9661_p10 = pnand %p9659_p6, %p11784_p7 }
 0x1b0   : > { %p9662_p1 = pneg %p9661_p10 }
 0x1b2   : > { %p9667_p13 = pnand %p9665_p3, %p9662_p1 }
 0x1b4   : > { %9670 = shalt.err (!%p9667_p13)
}
 0x1b5   : > { %s9671_s0 = scalar_lea.vmem %s10394_s29, 64  ;;  %p9679_p12 = scmp.lt.s32.totalorder %s10394_s29, %s10394_s29 }
 0x1b6   : > { %p9672_p8 = scmp.ne.s32.totalorder %s10394_s29, %s9671_s0  ;;  %p9680_p0 = scmp.lt.s32.totalorder %s9671_s0, %s9671_s0 }
 0x1b8   : > { %p9674_p9 = pnand %p9672_p8, %p11784_p7  ;;  %p9681_p2 = por %p9680_p0, %p9679_p12 }
 0x1ba   : > { %p9675_p11 = pneg %p9674_p9 }
 0x1bc   : > { %p9682_p4 = pnand %p9681_p2, %p9675_p11 }
 0x1be   : > { %9685 = shalt.err (!%p9682_p4)
}
 0x1bf   : > { %8971 = dma.hbm_to_vmem [thread:$0]  (!%p11785_p5), %s11790_s5, 64, %s10394_s29, [#allocation18]  }
 0x1c0   : > { %s9931_s12 = smov [#allocation22]   ;;  %s9932_s15 = smov [#allocation25]  }
 0x1c1   : > { %s622_s9 = sshll.u32 %s9931_s12, 4  ;;  %s644_s20 = sshll.u32 %s9932_s15, 4  ;;  %s623_s9 = int_to_ptr.vmem [resolvable:$true] %s622_s9  ;;  %s10437_s20 = int_to_ptr.vmem [resolvable:$true] %s644_s20 }
 0x1c2   : > { %s11791_s18 = sld [smem:[#allocation59_spill]] }
 0x1c8   : > { %s9686_s19 = scalar_lea.hbm %s11791_s18, 128 }
 0x1c9   : > { %p9687_p6 = scmp.ne.s32.totalorder %s11791_s18, %s9686_s19  ;;  %p9693_p3 = scmp.lt.u32.totalorder %s9686_s19, %s11791_s18 }
 0x1cb   : > { %p9689_p10 = pnand %p9687_p6, %p11784_p7 }
 0x1cd   : > { %p9690_p1 = pneg %p9689_p10 }
 0x1cf   : > { %p9695_p13 = pnand %p9693_p3, %p9690_p1 }
 0x1d1   : > { %9698 = shalt.err (!%p9695_p13)
}
 0x1d2   : > { %s9699_s13 = scalar_lea.vmem %s623_s9, 128  ;;  %p9707_p12 = scmp.lt.s32.totalorder %s623_s9, %s623_s9 }
 0x1d3   : > { %p9700_p8 = scmp.ne.s32.totalorder %s623_s9, %s9699_s13  ;;  %p9708_p0 = scmp.lt.s32.totalorder %s9699_s13, %s9699_s13 }
 0x1d5   : > { %p9702_p9 = pnand %p9700_p8, %p11784_p7  ;;  %p9709_p2 = por %p9708_p0, %p9707_p12 }
 0x1d7   : > { %p9703_p11 = pneg %p9702_p9 }
 0x1d9   : > { %p9710_p4 = pnand %p9709_p2, %p9703_p11 }
 0x1db   : > { %9713 = shalt.err (!%p9710_p4)
}
 0x1dc   : > { %8977 = dma.hbm_to_vmem [thread:$0]  (!%p11785_p5), %s11791_s18, 128, %s623_s9, [#allocation21]  }
 0x1dd   : > { %s11792_s26 = sld [smem:[#allocation61_spill]] }
 0x1e3   : > { %s9714_s19 = scalar_lea.hbm %s11792_s26, 128 }
 0x1e4   : > { %p9715_p6 = scmp.ne.s32.totalorder %s11792_s26, %s9714_s19  ;;  %p9721_p3 = scmp.lt.u32.totalorder %s9714_s19, %s11792_s26 }
 0x1e6   : > { %p9717_p10 = pnand %p9715_p6, %p11784_p7 }
 0x1e8   : > { %p9718_p1 = pneg %p9717_p10 }
 0x1ea   : > { %p9723_p13 = pnand %p9721_p3, %p9718_p1 }
 0x1ec   : > { %9726 = shalt.err (!%p9723_p13)
}
 0x1ed   : > { %s9727_s9 = scalar_lea.vmem %s10437_s20, 128  ;;  %p9735_p12 = scmp.lt.s32.totalorder %s10437_s20, %s10437_s20 }
 0x1ee   : > { %p9728_p8 = scmp.ne.s32.totalorder %s10437_s20, %s9727_s9  ;;  %p9736_p0 = scmp.lt.s32.totalorder %s9727_s9, %s9727_s9 }
 0x1f0   : > { %p9730_p9 = pnand %p9728_p8, %p11784_p7  ;;  %p9737_p2 = por %p9736_p0, %p9735_p12 }
 0x1f2   : > { %p9731_p11 = pneg %p9730_p9 }
 0x1f4   : > { %p9738_p4 = pnand %p9737_p2, %p9731_p11 }
 0x1f6   : > { %9741 = shalt.err (!%p9738_p4)
}
 0x1f7   : > { %8983 = dma.hbm_to_vmem [thread:$0]  (!%p11785_p5), %s11792_s26, 128, %s10437_s20, [#allocation24]  }
 0x1f8   : > { %s8866_s21 = smul.u32 19, %s10262_s24  ;;  %s11793_s0 = sld [smem:[#allocation63_spill]] }
 0x1f9   : > { %s8613_s15 = smul.u32 304, %s9904_s30  ;;  %s11794_s4 = sld [smem:[#allocation64_spill]] }
 0x1fa   : > { %s680_s2 = scalar_lea.vmem [#allocation28], %s8866_s21  ;;  %p11795_p5 = scmp.ne.s32.totalorder %s11782_s7, 0 }
 0x1fb   : > { %s688_s29 = sshll.u32 %s680_s2, 4  ;;  %s689_s29 = int_to_ptr.vmem [resolvable:$true] %s688_s29 }
 0x1fe   : > { %s10485_s11 = scalar_lea.hbm %s11793_s0, %s8613_s15  ;;  %s9747_s5 = scalar_lea.hbm %s11793_s0, 1216 }
 0x1ff   : > { %s10492_s12 = scalar_lea.hbm %s11794_s4, %s8613_s15  ;;  %s9742_s20 = scalar_lea.hbm %s10485_s11, 304 }
 0x200   : > { %p9743_p7 = scmp.ne.s32.totalorder %s10485_s11, %s9742_s20  ;;  %p9748_p1 = scmp.lt.u32.totalorder %s10485_s11, %s11793_s0 }
 0x201   : > { %p9749_p3 = scmp.lt.u32.totalorder %s9747_s5, %s9742_s20  ;;  %p9751_p8 = scmp.lt.u32.totalorder %s9742_s20, %s10485_s11 }
 0x202   : > { %p9745_p6 = pnand %p9743_p7, %p11795_p5 }
 0x203   : > { %p9750_p13 = por %p9749_p3, %p9748_p1 }
 0x204   : > { %p9746_p10 = pneg %p9745_p6 }
 0x205   : > { %p9752_p9 = por %p9751_p8, %p9750_p13 }
 0x207   : > { %p9753_p11 = pnand %p9752_p9, %p9746_p10 }
 0x209   : > { %9756 = shalt.err (!%p9753_p11)
}
 0x20a   : > { %s9757_s15 = scalar_lea.vmem %s689_s29, 304  ;;  %s9933_s2 = smov [#allocation28]  }
 0x20b   : > { %p9758_p12 = scmp.ne.s32.totalorder %s689_s29, %s9757_s15  ;;  %s9762_s13 = sshll.u32 %s9933_s2, 4  ;;  %s9763_s13 = int_to_ptr.vmem [resolvable:$false] %s9762_s13 }
 0x20c   : > { %s9764_s9 = scalar_lea.vmem %s9763_s13, 608  ;;  %p9765_p4 = scmp.lt.s32.totalorder %s689_s29, %s9763_s13 }
 0x20d   : > { %p9760_p0 = pnand %p9758_p12, %p11795_p5  ;;  %p9766_p7 = scmp.lt.s32.totalorder %s9764_s9, %s9757_s15 }
 0x20f   : > { %p9761_p2 = pneg %p9760_p0  ;;  %p9767_p6 = por %p9766_p7, %p9765_p4 }
 0x211   : > { %p9768_p1 = pnand %p9767_p6, %p9761_p2 }
 0x213   : > { %9771 = shalt.err (!%p9768_p1)
}
 0x214   : > { %p11796_p3 = scmp.ne.s32.totalorder %s11780_s22, 0  ;;  %s699_s6 = scalar_lea.vmem [#allocation29], %s8866_s21 }
 0x215   : > { %s707_s10 = sshll.u32 %s699_s6, 4  ;;  %s696_s5 = scalar_lea.sflag [#allocation30], %s10262_s24  ;;  %s708_s10 = int_to_ptr.vmem [resolvable:$true] %s707_s10 }
 0x216   : > { %8990 = dma.hbm_to_vmem [thread:$0]  (!%p11796_p3), %s10485_s11, 304, %s689_s29, %s10277_s3  }
 0x217   : > { %s9772_s20 = scalar_lea.hbm %s10492_s12, 304  ;;  %s9777_s15 = scalar_lea.hbm %s11794_s4, 1216 }
 0x218   : > { %p9773_p10 = scmp.ne.s32.totalorder %s10492_s12, %s9772_s20  ;;  %p9778_p9 = scmp.lt.u32.totalorder %s10492_s12, %s11794_s4 }
 0x219   : > { %p9779_p11 = scmp.lt.u32.totalorder %s9777_s15, %s9772_s20  ;;  %p9781_p0 = scmp.lt.u32.totalorder %s9772_s20, %s10492_s12 }
 0x21a   : > { %p9775_p13 = pnand %p9773_p10, %p11795_p5 }
 0x21b   : > { %p9780_p12 = por %p9779_p11, %p9778_p9 }
 0x21c   : > { %p9776_p8 = pneg %p9775_p13 }
 0x21d   : > { %p9782_p2 = por %p9781_p0, %p9780_p12 }
 0x21f   : > { %p9783_p4 = pnand %p9782_p2, %p9776_p8 }
 0x221   : > { %9786 = shalt.err (!%p9783_p4)
}
 0x222   : > { %s9787_s3 = scalar_lea.vmem %s708_s10, 304  ;;  %s9934_s24 = smov [#allocation29]  }
 0x223   : > { %p9788_p7 = scmp.ne.s32.totalorder %s708_s10, %s9787_s3  ;;  %s9792_s21 = sshll.u32 %s9934_s24, 4  ;;  %s9793_s21 = int_to_ptr.vmem [resolvable:$false] %s9792_s21 }
 0x224   : > { %s9794_s11 = scalar_lea.vmem %s9793_s21, 608  ;;  %p9795_p10 = scmp.lt.s32.totalorder %s708_s10, %s9793_s21 }
 0x225   : > { %p9790_p6 = pnand %p9788_p7, %p11795_p5  ;;  %p9796_p13 = scmp.lt.s32.totalorder %s9794_s11, %s9787_s3 }
 0x227   : > { %p9791_p1 = pneg %p9790_p6  ;;  %p9797_p3 = por %p9796_p13, %p9795_p10 }
 0x229   : > { %p9798_p9 = pnand %p9797_p3, %p9791_p1 }
 0x22b   : > { %9801 = shalt.err (!%p9798_p9)
}
 0x22c   : > { %p11797_p11 = scmp.ne.s32.totalorder %s11780_s22, 0  ;;  %s11798_s29 = sld [smem:[#allocation44_spill]] }
 0x22e   : > { %8993 = dma.hbm_to_vmem [thread:$0]  (!%p11797_p11), %s10492_s12, 304, %s708_s10, %s696_s5  }
 0x232   : > { %p11799_p8 = scmp.ne.s32.totalorder %s11798_s29, 0 }
 0x233   : > { %p11800_p12 = scmp.eq.s32.totalorder (!%p11799_p8), %s10056_s1, 0 }
 0x234   : > { %716 = sbr.rel (%p11799_p8) target bundleno = 3205 (0xc85), region = 92 }
 0x23b   : > { %9847 = dma.done.wait (%p11800_p12), [#allocation3], 32   ;;  %p11801_p5 = pmov %p11800_p12 }
 0x23d   : > { %9849 = vsyncadd (%p11801_p5), [#allocation3], 4294967264  ;;  %p11802_p0 = pmov %p11801_p5 }
 0x23f   : > { %9851 = dma.done.wait (%p11802_p0), [#allocation6], 1040   ;;  %p11803_p2 = pmov %p11802_p0 }
 0x240   : > { %p11804_p3 = pmov %p11802_p0 }
 0x241   : > { %9853 = vsyncadd (%p11803_p2), [#allocation6], 4294966256 }
 0x242   : > { %9855 = dma.done.wait (%p11804_p3), [#allocation9], 2080   ;;  %p11805_p4 = pmov %p11802_p0 }
 0x243   : > { %p11806_p7 = pmov %p11802_p0 }
 0x244   : > { %9857 = vsyncadd (%p11805_p4), [#allocation9], 4294965216 }
 0x245   : > { %9859 = dma.done.wait (%p11806_p7), [#allocation12], 64   ;;  %p11807_p6 = pmov %p11802_p0 }
 0x246   : > { %p11808_p1 = pmov %p11802_p0 }
 0x247   : > { %9861 = vsyncadd (%p11807_p6), [#allocation12], 4294967232 }
 0x248   : > { %9863 = dma.done.wait (%p11808_p1), [#allocation15], 8256   ;;  %p11809_p10 = pmov %p11802_p0 }
 0x249   : > { %p11810_p13 = pmov %p11802_p0 }
 0x24a   : > { %9865 = vsyncadd (%p11809_p10), [#allocation15], 4294959040 }
 0x24b   : > { %9867 = dma.done.wait (%p11810_p13), [#allocation18], 128   ;;  %p11811_p9 = pmov %p11802_p0 }
 0x24c   : > { %p11812_p11 = pmov %p11802_p0 }
 0x24d   : > { %9869 = vsyncadd (%p11811_p9), [#allocation18], 4294967168 }
 0x24e   : > { %9871 = dma.done.wait (%p11812_p11), [#allocation21], 32896   ;;  %p11813_p8 = pmov %p11802_p0 }
 0x24f   : > { %p11814_p12 = pmov %p11802_p0 }
 0x250   : > { %9873 = vsyncadd (%p11813_p8), [#allocation21], 4294934400 }
 0x251   : > { %9875 = dma.done.wait (%p11814_p12), [#allocation24], 256   ;;  %p11815_p5 = pmov %p11802_p0 }
 0x252   : > { %s778_s7 = sand.u32 1, %s10056_s1   ;;  %s10568_s22 = sand.u32 1, %s9896_s28  }
 0x253   : > { %9877 = vsyncadd (%p11815_p5), [#allocation24], 4294967040  ;;  %s8868_s12 = smul.u32 4864, %s10568_s22  ;;  %s779_s9 = scalar_lea.sflag [#allocation27], %s778_s7 }
 0x254   : > { %p11816_p0 = scmp.ne.s32.totalorder %s11777_s8, 0 }
 0x255   : > { %s10571_s6 = scalar_lea.vmem [#allocation26], %s8868_s12 }
 0x256   : > { %9879 = dma.done.wait (%p11816_p0), %s779_s9, 78128  }
 0x257   : > { %9881 = vsyncadd (%p11816_p0), %s779_s9, 4294889168  ;;  %s10578_s10 = smul.u32 19, %s10568_s22  ;;  %s797_s20 = scalar_lea.sflag [#allocation30], %s10568_s22 }
 0x259   : > { %s10581_s5 = scalar_lea.vmem [#allocation28], %s10578_s10  ;;  %s10585_s14 = scalar_lea.vmem [#allocation29], %s10578_s10 }
 0x25a   : > { %9883 = dma.done.wait (%p11816_p0), %s797_s20, 304  }
 0x25b   : > { %9885 = vsyncadd (%p11816_p0), %s797_s20, 4294966992  ;;  %v9935_v0 = vmov 0.0   ;;  %vm9936_vm0 = vmmov 0   ;;  %v9092_v1 = vld [vmem:[#allocation5] sm:$0xff]   ;;  %v9093_v2 = vld [vmem:[#allocation5 + $0x8] sm:$0xff]   ;;  %v9937_v27 = vmov 0  }
 0x25c   : > { %8713 = vmatprep.subr.bf16.mxu0 %v9935_v0  ;;  %8729 = vmatprep.mubr.msk.bf16.mxu0 %vm9936_vm0, %v9935_v0  ;;  %v9094_v3 = vld [vmem:[#allocation5 + $0x10] sm:$0xff]   ;;  %v9102_v5 = vld [vmem:[#allocation8] ss:$8 sps:$4 sm:$0xff]   ;;  %v9095_v6 = vld [vmem:[#allocation5 + $0x18] sm:$0xff]   ;;  %vm1136_vm2 = vcmask 1041408   ;;  %s11337_s8 = scalar_lea.vmem [#allocation31], %s10578_s10 }
 0x25d   : > { %8714 = vmatpush3.bf16.msra.mxu0 %v9092_v1  ;;  %v9100_v4 = vld [vmem:[#allocation8 + $0x4] ss:$8 sps:$4 sm:$0xff]   ;;  %v9103_v7 = vld [vmem:[#allocation8 + $0x14] ss:$8 sps:$4 sm:$0xff]   ;;  %v9105_v8 = vld [vmem:[#allocation8 + $0x10] ss:$8 sps:$4 sm:$0xff]   ;;  %1125 = vmatprep.mubr.bf16.mxu1 %v9937_v27 }
 0x25e   : > { %8715 = vmatprep.subr.bf16.mxu0 %v9935_v0  ;;  %1093 = vmatprep.subr.bf16.mxu1 %v9100_v4  ;;  %v9106_v9 = vld [vmem:[#allocation8 + $0x24] ss:$8 sps:$4 sm:$0xff]   ;;  %v9108_v12 = vld [vmem:[#allocation8 + $0x20] ss:$8 sps:$4 sm:$0xff]   ;;  %v9109_v13 = vld [vmem:[#allocation8 + $0x34] ss:$8 sps:$4 sm:$0xff]  }
 0x25f   : > { %1094 = vmatpush1.bf16.msra.mxu1 %v9102_v5  ;;  %v9096_v10 = vld [vmem:[#allocation5 + $0x20] sm:$0xff]   ;;  %v9097_v11 = vld [vmem:[#allocation5 + $0x28] sm:$0xff]   ;;  %v9111_v14 = vld [vmem:[#allocation8 + $0x30] ss:$8 sps:$4 sm:$0xff]   ;;  %s8615_s19 = smul.u32 304, %s10056_s1  ;;  %s7959_s15 = sshll.u32 %s11337_s8, 4  ;;  %s11653_s15 = int_to_ptr.vmem [resolvable:$true] %s7959_s15 }
 0x260   : > { %1095 = vmatprep.subr.bf16.mxu1 %v9103_v7  ;;  %v9112_v15 = vld [vmem:[#allocation8 + $0x44] ss:$8 sps:$4 sm:$0xff]   ;;  %v9114_v17 = vld [vmem:[#allocation8 + $0x40] ss:$8 sps:$4 sm:$0xff]   ;;  %v9115_v18 = vld [vmem:[#allocation8 + $0x54] ss:$8 sps:$4 sm:$0xff]  }
 0x261   : > { %8716 = vmatpush3.bf16.msra.mxu0 %v9093_v2  ;;  %v9098_v16 = vld [vmem:[#allocation5 + $0x30] sm:$0xff]   ;;  %v9099_v19 = vld [vmem:[#allocation5 + $0x38] sm:$0xff]   ;;  %v9120_v24 = vld [vmem:[#allocation8 + $0x60] ss:$8 sps:$4 sm:$0xff]   ;;  %s11817_s3 = sld [smem:[#allocation65_spill]]  ;;  %s7945_s21 = scalar_lea.sflag [#allocation4], %s10568_s22 }
 0x262   : > { %8717 = vmatprep.subr.bf16.mxu0 %v9935_v0  ;;  %v868_v20 = vld [vmem:[#allocation2] sm:$0x3]  ;;  %v9117_v21 = vld [vmem:[#allocation8 + $0x50] ss:$8 sps:$4 sm:$0xff]   ;;  %v9118_v23 = vld [vmem:[#allocation8 + $0x64] ss:$8 sps:$4 sm:$0xff]  }
 0x263   : > { %1096 = vmatpush1.bf16.msra.mxu1 %v9105_v8  ;;  %v885_v22 = vpack.c.bf16 %v868_v20, %v868_v20  ;;  %v9121_v25 = vld [vmem:[#allocation8 + $0x74] ss:$8 sps:$4 sm:$0xff]   ;;  %v9123_v26 = vld [vmem:[#allocation8 + $0x70] ss:$8 sps:$4 sm:$0xff]   ;;  %s9802_s11 = scalar_lea.vmem %s11653_s15, 304  ;;  %p11818_p3 = scmp.ne.s32.totalorder %s11778_s25, 0 }
 0x264   : > { %1097 = vmatprep.subr.bf16.mxu1 %v9106_v9  ;;  %v9126_v28 = vld [vmem:[#allocation14 + $0x4] ss:$16 sps:$4 sm:$0xff]   ;;  %v8254_v29 = vld [vmem:[#allocation7] ss:$0 sm:$0xff]  ;;  %v9124_v37 = vld [vmem:[#allocation14] ss:$16 sps:$4 sm:$0xff]   ;;  %p9803_p2 = scmp.ne.s32.totalorder %s11653_s15, %s9802_s11 }
 0x265   : > { %8718 = vmatpush3.bf16.msra.mxu0 %v9094_v3  ;;  %v9129_v39 = vld [vmem:[#allocation14 + $0x24] ss:$16 sps:$4 sm:$0xff]   ;;  %v9127_v40 = vld [vmem:[#allocation14 + $0x20] ss:$16 sps:$4 sm:$0xff]   ;;  %v9174_v5 = vld [vmem:[#allocation14 + $0xc] ss:$16 sps:$4 sm:$0xff]  }
 0x266   : > { %8719 = vmatprep.subr.bf16.mxu0 %v9935_v0  ;;  %v9132_v41 = vld [vmem:[#allocation14 + $0x44] ss:$16 sps:$4 sm:$0xff]   ;;  %v9130_v42 = vld [vmem:[#allocation14 + $0x40] ss:$16 sps:$4 sm:$0xff]   ;;  %v1001_v9 = vld [vmem:[#allocation10] sm:$0x3]  ;;  %p9804_p4 = pnand %p9803_p2, %p11818_p3 }
 0x267   : > { %1098 = vmatpush1.bf16.msra.mxu1 %v9108_v12  ;;  %v9135_v43 = vld [vmem:[#allocation14 + $0x64] ss:$16 sps:$4 sm:$0xff]   ;;  %v9133_v44 = vld [vmem:[#allocation14 + $0x60] ss:$16 sps:$4 sm:$0xff]   ;;  %s11651_s24 = scalar_lea.hbm %s11817_s3, %s8615_s19  ;;  %s9939_s1 = smov [#allocation31]  }
 0x268   : > { %1099 = vmatprep.subr.bf16.mxu1 %v9109_v13  ;;  %v9138_v45 = vld [vmem:[#allocation14 + $0x84] ss:$16 sps:$4 sm:$0xff]   ;;  %v9136_v46 = vld [vmem:[#allocation14 + $0x80] ss:$16 sps:$4 sm:$0xff]   ;;  %p9805_p7 = pneg %p9804_p4  ;;  %s9806_s29 = sshll.u32 %s9939_s1, 4  ;;  %s9807_s29 = int_to_ptr.vmem [resolvable:$false] %s9806_s29 }
 0x269   : > { %8720 = vmatpush3.bf16.msra.mxu0 %v9095_v6  ;;  %v9141_v47 = vld [vmem:[#allocation14 + $0xa4] ss:$16 sps:$4 sm:$0xff]   ;;  %v9139_v48 = vld [vmem:[#allocation14 + $0xa0] ss:$16 sps:$4 sm:$0xff]   ;;  %v1003_v6 = vlaneseq  ;;  %s9808_s7 = scalar_lea.vmem %s9807_s29, 608  ;;  %p9809_p6 = scmp.lt.s32.totalorder %s11653_s15, %s9807_s29 }
 0x26a   : > { %8721 = vmatprep.subr.bf16.mxu0 %v9935_v0  ;;  %v9144_v49 = vld [vmem:[#allocation14 + $0xc4] ss:$16 sps:$4 sm:$0xff]   ;;  %v9142_v50 = vld [vmem:[#allocation14 + $0xc0] ss:$16 sps:$4 sm:$0xff]   ;;  %p9810_p1 = scmp.lt.s32.totalorder %s9808_s7, %s9802_s11 }
 0x26b   : > { %1100 = vmatpush1.bf16.msra.mxu1 %v9111_v14  ;;  %v9147_v51 = vld [vmem:[#allocation14 + $0xe4] ss:$16 sps:$4 sm:$0xff]   ;;  %v9145_v52 = vld [vmem:[#allocation14 + $0xe0] ss:$16 sps:$4 sm:$0xff]   ;;  %v10591_v7 = vshrl.u32 %v1003_v6, 7 }
 0x26c   : > { %1101 = vmatprep.subr.bf16.mxu1 %v9112_v15  ;;  %v9150_v53 = vld [vmem:[#allocation14 + $0x104] ss:$16 sps:$4 sm:$0xff]   ;;  %v9148_v54 = vld [vmem:[#allocation14 + $0x100] ss:$16 sps:$4 sm:$0xff]   ;;  %p9811_p10 = por %p9810_p1, %p9809_p6 }
 0x26d   : > { %8722 = vmatpush3.bf16.msra.mxu0 %v9096_v10  ;;  %v9153_v55 = vld [vmem:[#allocation14 + $0x124] ss:$16 sps:$4 sm:$0xff]   ;;  %v9151_v56 = vld [vmem:[#allocation14 + $0x120] ss:$16 sps:$4 sm:$0xff]   ;;  %v10594_v8 = vsub.s32 0, %v10591_v7  ;;  %v10597_v10 = vsub.s32 1, %v10591_v7 }
 0x26e   : > { %8723 = vmatprep.subr.bf16.mxu0 %v9935_v0  ;;  %v9156_v57 = vld [vmem:[#allocation14 + $0x144] ss:$16 sps:$4 sm:$0xff]   ;;  %v9154_v58 = vld [vmem:[#allocation14 + $0x140] ss:$16 sps:$4 sm:$0xff]   ;;  %p9812_p13 = pnand %p9811_p10, %p9805_p7 }
 0x26f   : > { %1102 = vmatpush1.bf16.msra.mxu1 %v9114_v17  ;;  %v9159_v59 = vld [vmem:[#allocation14 + $0x164] ss:$16 sps:$4 sm:$0xff]   ;;  %v9157_v60 = vld [vmem:[#allocation14 + $0x160] ss:$16 sps:$4 sm:$0xff]   ;;  %v1010_v12 = vrot.slane %v1001_v9, %v10597_v10 }
 0x270   : > { %1103 = vmatprep.subr.bf16.mxu1 %v9115_v18  ;;  %v9162_v61 = vld [vmem:[#allocation14 + $0x184] ss:$16 sps:$4 sm:$0xff]   ;;  %v9160_v62 = vld [vmem:[#allocation14 + $0x180] ss:$16 sps:$4 sm:$0xff]  }
 0x271   : > { %8724 = vmatpush3.bf16.msra.mxu0 %v9097_v11  ;;  %v9165_v63 = vld [vmem:[#allocation14 + $0x1a4] ss:$16 sps:$4 sm:$0xff]   ;;  %v9166_v2 = vld [vmem:[#allocation14 + $0x1c0] ss:$16 sps:$4 sm:$0xff]   ;;  %v1006_v11 = vrot.slane %v1001_v9, %v10594_v8 }
 0x272   : > { %8725 = vmatprep.subr.bf16.mxu0 %v9935_v0  ;;  %v9168_v1 = vld [vmem:[#allocation14 + $0x1c4] ss:$16 sps:$4 sm:$0xff]   ;;  %v9169_v4 = vld [vmem:[#allocation14 + $0x1e0] ss:$16 sps:$4 sm:$0xff]  }
 0x273   : > { %1104 = vmatpush1.bf16.msra.mxu1 %v9117_v21  ;;  %v9171_v3 = vld [vmem:[#allocation14 + $0x1e4] ss:$16 sps:$4 sm:$0xff]   ;;  %v1850_v13 = vld [vmem:[#allocation20] sm:$0xff] }
 0x274   : > { %1105 = vmatprep.subr.bf16.mxu1 %v9118_v23  ;;  %v1854_v14 = vld [vmem:[#allocation20 + $0x20] sm:$0xff] }
 0x275   : > { %8726 = vmatpush3.bf16.msra.mxu0 %v9098_v16  ;;  %v8343_v16 = vcombine.low %v1850_v13, %v1854_v14  ;;  %v8344_v17 = vcombine.high %v1850_v13, %v1854_v14 }
 0x276   : > { %8727 = vmatprep.subr.bf16.mxu0 %v9935_v0  ;;  %v9163_v0 = vld [vmem:[#allocation14 + $0x1a0] ss:$16 sps:$4 sm:$0xff]  }
 0x277   : > { %1106 = vmatpush1.bf16.msra.mxu1 %v9120_v24 }
 0x278   : > { %1107 = vmatprep.subr.bf16.mxu1 %v9121_v25 }
 0x279   : > { %8728 = vmatpush3.bf16.msra.mxu0 %v9099_v19 }
 0x27a   : > { %3432 = vmatprep.subr.bf16.mxu0 %v8344_v17 }
 0x27b   : > { %1108 = vmatpush1.bf16.msra.mxu1 %v9123_v26 }
 0x27c   : > { %8730 = vmatmul.mubr.bf16.vlgmr.msra.gmra.mrb[0].mxu0 %v885_v22  ;;  %1620 = vmatprep.subr.bf16.mxu1 %v9126_v28 }
 0x27d   : > { %3433 = vmatpush1.bf16.msra.mxu0 %v8343_v16 }
 0x34f   : > { %v975_v30 = vpop.f32.mrb[0].mxu0 }
 0x350   : > { %v976_v31 = vadd.f32 %v8254_v29, %v975_v30  ;;  %v8731_v32 = vpop.f32.mrb[1].mxu0 }
 0x351   : > { %v978_v33 = vpop.f32.mrb[2].mxu0 }
 0x352   : > { %vm981_vm1 = vcmp.gt.f32.partialorder %v976_v31, 0.0  ;;  %v982_v34 = vmul.f32 0.2, %v976_v31  ;;  %v8732_v35 = vpop.f32.mrb[3].mxu0 }
 0x354   : > { %v983_v36 = vsel %vm981_vm1, %v976_v31, %v982_v34 }
 0x355   : > { %v1000_v38 = vpack.c.bf16 %v983_v36, %v983_v36 }
 0x357   : > { %1126 = vmatmul.mubr.bf16.vlgmr.msra.gmra.mrb[0].mxu1 %v1000_v38 }
 0x358   : > { %1621 = vmatpush1.bf16.msra.mxu1 %v9124_v37 }
 0x359   : > { %1622 = vmatprep.subr.bf16.mxu1 %v9129_v39 }
 0x35c   : > { %1623 = vmatpush1.bf16.msra.mxu1 %v9127_v40 }
 0x35d   : > { %1624 = vmatprep.subr.bf16.mxu1 %v9132_v41 }
 0x360   : > { %1625 = vmatpush1.bf16.msra.mxu1 %v9130_v42 }
 0x361   : > { %1626 = vmatprep.subr.bf16.mxu1 %v9135_v43 }
 0x364   : > { %1627 = vmatpush1.bf16.msra.mxu1 %v9133_v44 }
 0x365   : > { %1628 = vmatprep.subr.bf16.mxu1 %v9138_v45 }
 0x368   : > { %1629 = vmatpush1.bf16.msra.mxu1 %v9136_v46 }
 0x369   : > { %1630 = vmatprep.subr.bf16.mxu1 %v9141_v47 }
 0x36c   : > { %1631 = vmatpush1.bf16.msra.mxu1 %v9139_v48 }
 0x36d   : > { %1632 = vmatprep.subr.bf16.mxu1 %v9144_v49 }
 0x370   : > { %1633 = vmatpush1.bf16.msra.mxu1 %v9142_v50 }
 0x371   : > { %1634 = vmatprep.subr.bf16.mxu1 %v9147_v51 }
 0x374   : > { %1635 = vmatpush1.bf16.msra.mxu1 %v9145_v52 }
 0x375   : > { %1636 = vmatprep.subr.bf16.mxu1 %v9150_v53 }
 0x378   : > { %1637 = vmatpush1.bf16.msra.mxu1 %v9148_v54 }
 0x379   : > { %1638 = vmatprep.subr.bf16.mxu1 %v9153_v55 }
 0x37c   : > { %1639 = vmatpush1.bf16.msra.mxu1 %v9151_v56 }
 0x37d   : > { %1640 = vmatprep.subr.bf16.mxu1 %v9156_v57 }
 0x380   : > { %1641 = vmatpush1.bf16.msra.mxu1 %v9154_v58 }
 0x381   : > { %1642 = vmatprep.subr.bf16.mxu1 %v9159_v59 }
 0x384   : > { %1643 = vmatpush1.bf16.msra.mxu1 %v9157_v60 }
 0x385   : > { %1644 = vmatprep.subr.bf16.mxu1 %v9162_v61  ;;  %v1134_v61 = vld [vmem:[#allocation11] sm:$0x3] }
 0x388   : > { %1645 = vmatpush1.bf16.msra.mxu1 %v9160_v62  ;;  %v1135_v62 = vld [vmem:[#allocation13] sm:$0x3] }
 0x389   : > { %1646 = vmatprep.subr.bf16.mxu1 %v9165_v63  ;;  %v1184_v63 = vrot.slane %v1134_v61, %v10594_v8  ;;  %v1201_v6 = vrot.slane %v1135_v62, %v10597_v10 }
 0x38c   : > { %1647 = vmatpush1.bf16.msra.mxu1 %v9163_v0 }
 0x38d   : > { %1648 = vmatprep.subr.bf16.mxu1 %v9168_v1  ;;  %v1188_v1 = vrot.slane %v1134_v61, %v10597_v10 }
 0x390   : > { %1649 = vmatpush1.bf16.msra.mxu1 %v9166_v2 }
 0x391   : > { %1650 = vmatprep.subr.bf16.mxu1 %v9171_v3 }
 0x394   : > { %1651 = vmatpush1.bf16.msra.mxu1 %v9169_v4  ;;  %v1197_v4 = vrot.slane %v1135_v62, %v10594_v8 }
 0x395   : > { %1661 = vmatprep.subr.bf16.mxu1 %v9174_v5 }
 0x42a   : > { %v1127_v15 = vpop.f32.mrb[0].mxu1 }
 0x42b   : > { %v1128_v18 = vadd.f32 %v1127_v15, %v1006_v11  ;;  %v1129_v19 = vpop.f32.mrb[1].mxu1 }
 0x42c   : > { %v1130_v20 = vadd.f32 %v1129_v19, %v1010_v12  ;;  %v1131_v21 = vpop.f32.mrb[2].mxu1  ;;  %v9172_v19 = vld [vmem:[#allocation14 + $0x8] ss:$16 sps:$4 sm:$0xff]  }
 0x42d   : > { %v1137_v22 = vsel %vm1136_vm2, %v1128_v18, 0.0  ;;  %v1132_v23 = vpop.f32.mrb[3].mxu1  ;;  %v9177_v21 = vld [vmem:[#allocation14 + $0x2c] ss:$16 sps:$4 sm:$0xff]  }
 0x42e   : > { %v1138_v24 = vrot.slane %v1137_v22, 4  ;;  %v1144_v25 = vsel %vm1136_vm2, %v1130_v20, 0.0  ;;  %v9180_v23 = vld [vmem:[#allocation14 + $0x4c] ss:$16 sps:$4 sm:$0xff]  }
 0x42f   : > { %v1145_v26 = vrot.slane %v1144_v25, 4 }
 0x430   : > { %v1139_v27 = vadd.f32 %v1138_v24, %v1137_v22  ;;  %v9175_v22 = vld [vmem:[#allocation14 + $0x28] ss:$16 sps:$4 sm:$0xff]  }
 0x431   : > { %v1146_v28 = vadd.f32 %v1145_v26, %v1144_v25  ;;  %v9178_v24 = vld [vmem:[#allocation14 + $0x48] ss:$16 sps:$4 sm:$0xff]   ;;  %v9183_v25 = vld [vmem:[#allocation14 + $0x6c] ss:$16 sps:$4 sm:$0xff]  }
 0x432   : > { %v1140_v29 = vrot.slane %v1139_v27, 2  ;;  %v9181_v26 = vld [vmem:[#allocation14 + $0x68] ss:$16 sps:$4 sm:$0xff]  }
 0x433   : > { %v1147_v30 = vrot.slane %v1146_v28, 2 }
 0x434   : > { %v1141_v31 = vadd.f32 %v1140_v29, %v1139_v27  ;;  %v9186_v27 = vld [vmem:[#allocation14 + $0x8c] ss:$16 sps:$4 sm:$0xff]  }
 0x435   : > { %v1148_v32 = vadd.f32 %v1147_v30, %v1146_v28  ;;  %v9184_v28 = vld [vmem:[#allocation14 + $0x88] ss:$16 sps:$4 sm:$0xff]   ;;  %v9189_v29 = vld [vmem:[#allocation14 + $0xac] ss:$16 sps:$4 sm:$0xff]  }
 0x436   : > { %v1142_v33 = vrot.slane %v1141_v31, 1  ;;  %v9187_v30 = vld [vmem:[#allocation14 + $0xa8] ss:$16 sps:$4 sm:$0xff]  }
 0x437   : > { %v1149_v34 = vrot.slane %v1148_v32, 1 }
 0x438   : > { %v1143_v35 = vadd.f32 %v1142_v33, %v1141_v31  ;;  %v9192_v31 = vld [vmem:[#allocation14 + $0xcc] ss:$16 sps:$4 sm:$0xff]  }
 0x439   : > { %v1150_v36 = vadd.f32 %v1149_v34, %v1148_v32  ;;  %v9190_v32 = vld [vmem:[#allocation14 + $0xc8] ss:$16 sps:$4 sm:$0xff]   ;;  %v9195_v33 = vld [vmem:[#allocation14 + $0xec] ss:$16 sps:$4 sm:$0xff]  }
 0x43a   : > { %v1152_v37 = vmul.f32 0.5, %v1143_v35  ;;  %v9193_v34 = vld [vmem:[#allocation14 + $0xe8] ss:$16 sps:$4 sm:$0xff]   ;;  %v9198_v35 = vld [vmem:[#allocation14 + $0x10c] ss:$16 sps:$4 sm:$0xff]  }
 0x43b   : > { %v1153_v38 = vmul.f32 0.5, %v1150_v36  ;;  %v9196_v36 = vld [vmem:[#allocation14 + $0x108] ss:$16 sps:$4 sm:$0xff]  }
 0x43c   : > { %v1154_v39 = vsub.f32 %v1128_v18, %v1152_v37  ;;  %v9201_v37 = vld [vmem:[#allocation14 + $0x12c] ss:$16 sps:$4 sm:$0xff]  }
 0x43d   : > { %v1155_v40 = vsub.f32 %v1130_v20, %v1153_v38  ;;  %v9199_v38 = vld [vmem:[#allocation14 + $0x128] ss:$16 sps:$4 sm:$0xff]  }
 0x43e   : > { %v1156_v41 = vmul.f32 %v1154_v39, %v1154_v39 }
 0x43f   : > { %v1157_v42 = vmul.f32 %v1155_v40, %v1155_v40 }
 0x440   : > { %v1158_v43 = vsel %vm1136_vm2, %v1156_v41, 0.0  ;;  %v9207_v41 = vld [vmem:[#allocation14 + $0x16c] ss:$16 sps:$4 sm:$0xff]  }
 0x441   : > { %v1159_v44 = vrot.slane %v1158_v43, 4  ;;  %v1165_v45 = vsel %vm1136_vm2, %v1157_v42, 0.0  ;;  %v9205_v42 = vld [vmem:[#allocation14 + $0x168] ss:$16 sps:$4 sm:$0xff]  }
 0x442   : > { %v1166_v46 = vrot.slane %v1165_v45, 4 }
 0x443   : > { %v1160_v47 = vadd.f32 %v1159_v44, %v1158_v43  ;;  %v9210_v43 = vld [vmem:[#allocation14 + $0x18c] ss:$16 sps:$4 sm:$0xff]   ;;  %v9208_v44 = vld [vmem:[#allocation14 + $0x188] ss:$16 sps:$4 sm:$0xff]  }
 0x444   : > { %v1167_v48 = vadd.f32 %v1166_v46, %v1165_v45  ;;  %v9213_v45 = vld [vmem:[#allocation14 + $0x1ac] ss:$16 sps:$4 sm:$0xff]   ;;  %v9211_v46 = vld [vmem:[#allocation14 + $0x1a8] ss:$16 sps:$4 sm:$0xff]  }
 0x445   : > { %v1161_v49 = vrot.slane %v1160_v47, 2 }
 0x446   : > { %v1168_v50 = vrot.slane %v1167_v48, 2 }
 0x447   : > { %v1162_v51 = vadd.f32 %v1161_v49, %v1160_v47  ;;  %v9216_v47 = vld [vmem:[#allocation14 + $0x1cc] ss:$16 sps:$4 sm:$0xff]  }
 0x448   : > { %v1169_v52 = vadd.f32 %v1168_v50, %v1167_v48  ;;  %v9214_v48 = vld [vmem:[#allocation14 + $0x1c8] ss:$16 sps:$4 sm:$0xff]   ;;  %v9219_v49 = vld [vmem:[#allocation14 + $0x1ec] ss:$16 sps:$4 sm:$0xff]  }
 0x449   : > { %v1163_v53 = vrot.slane %v1162_v51, 1  ;;  %v1851_v50 = vld [vmem:[#allocation20 + $0x8] sm:$0xff] }
 0x44a   : > { %v1170_v54 = vrot.slane %v1169_v52, 1 }
 0x44b   : > { %v1164_v55 = vadd.f32 %v1163_v53, %v1162_v51  ;;  %v1855_v51 = vld [vmem:[#allocation20 + $0x28] sm:$0xff] }
 0x44c   : > { %v1171_v56 = vadd.f32 %v1170_v54, %v1169_v52  ;;  %v9217_v52 = vld [vmem:[#allocation14 + $0x1e8] ss:$16 sps:$4 sm:$0xff]   ;;  %v8346_v53 = vcombine.high %v1851_v50, %v1855_v51  ;;  %v8345_v54 = vcombine.low %v1851_v50, %v1855_v51  ;;  %v1914_v50 = vld [vmem:[#allocation20 + $0x200] sm:$0xff] }
 0x44d   : > { %v1172_v57 = vmul.f32 0.5, %v1164_v55  ;;  %v1858_v55 = vld [vmem:[#allocation20 + $0x40] sm:$0xff] }
 0x44e   : > { %v1173_v58 = vmul.f32 0.5, %v1171_v56  ;;  %v1862_v56 = vld [vmem:[#allocation20 + $0x60] sm:$0xff] }
 0x44f   : > { %v1174_v59 = vadd.f32 0.8, %v1172_v57  ;;  %v1859_v57 = vld [vmem:[#allocation20 + $0x48] sm:$0xff]  ;;  %v1918_v51 = vld [vmem:[#allocation20 + $0x220] sm:$0xff] }
 0x450   : > { %v1175_v60 = vadd.f32 0.8, %v1173_v58  ;;  %v8352_v58 = vcombine.high %v1858_v55, %v1862_v56 }
 0x451   : > { %9220 = vrsqrt.f32 %v1174_v59  ;;  %v1863_v59 = vld [vmem:[#allocation20 + $0x68] sm:$0xff] }
 0x452   : > { %9222 = vrsqrt.f32 %v1175_v60  ;;  %v8351_v60 = vcombine.low %v1858_v55, %v1862_v56  ;;  %v8353_v61 = vcombine.low %v1859_v57, %v1863_v59  ;;  %v8354_v62 = vcombine.high %v1859_v57, %v1863_v59  ;;  %3434 = vmatprep.subr.bf16.mxu0 %v8352_v58  ;;  %v1922_v58 = vld [vmem:[#allocation20 + $0x240] sm:$0xff] }
 0x453   : > { %v8407_v55 = vcombine.low %v1914_v50, %v1918_v51  ;;  %v1926_v59 = vld [vmem:[#allocation20 + $0x260] sm:$0xff] }
 0x454   : > { %3435 = vmatpush1.bf16.msra.mxu0 %v8351_v60  ;;  %v1923_v60 = vld [vmem:[#allocation20 + $0x248] sm:$0xff] }
 0x45b   : > { %v9221_v0 = vpop.eup %9220 }
 0x45c   : > { %v9223_v2 = vpop.eup %9222  ;;  %v1178_v3 = vmul.f32 %v9221_v0, %v1154_v39  ;;  %v9204_v39 = vld [vmem:[#allocation14 + $0x14c] ss:$16 sps:$4 sm:$0xff]  }
 0x45d   : > { %v1179_v5 = vmul.f32 %v9223_v2, %v1155_v40  ;;  %v9202_v40 = vld [vmem:[#allocation14 + $0x148] ss:$16 sps:$4 sm:$0xff]   ;;  %v1870_v0 = vld [vmem:[#allocation20 + $0xa0] sm:$0xff] }
 0x45e   : > { %v1191_v9 = vmul.f32 %v1184_v63, %v1178_v3  ;;  %v1866_v63 = vld [vmem:[#allocation20 + $0x80] sm:$0xff]  ;;  %v1871_v3 = vld [vmem:[#allocation20 + $0xa8] sm:$0xff] }
 0x45f   : > { %v1192_v11 = vmul.f32 %v1188_v1, %v1179_v5  ;;  %v1867_v1 = vld [vmem:[#allocation20 + $0x88] sm:$0xff]  ;;  %v8360_v2 = vcombine.high %v1866_v63, %v1870_v0 }
 0x460   : > { %v1204_v12 = vadd.f32 %v1197_v4, %v1191_v9  ;;  %v8359_v4 = vcombine.low %v1866_v63, %v1870_v0  ;;  %v8361_v5 = vcombine.low %v1867_v1, %v1871_v3  ;;  %v1874_v9 = vld [vmem:[#allocation20 + $0xc0] sm:$0xff]  ;;  %v8415_v63 = vcombine.low %v1922_v58, %v1926_v59 }
 0x461   : > { %v1205_v13 = vadd.f32 %v1201_v6, %v1192_v11  ;;  %v8362_v6 = vcombine.high %v1867_v1, %v1871_v3  ;;  %3436 = vmatprep.subr.bf16.mxu0 %v8360_v2  ;;  %v1878_v11 = vld [vmem:[#allocation20 + $0xe0] sm:$0xff] }
 0x462   : > { %vm1206_vm3 = vcmp.gt.f32.partialorder %v1204_v12, 0.0  ;;  %v1208_v14 = vmul.f32 0.2, %v1204_v12  ;;  %3437 = vmatpush1.bf16.msra.mxu0 %v8359_v4  ;;  %v1930_v2 = vld [vmem:[#allocation20 + $0x280] sm:$0xff]  ;;  %v1931_v4 = vld [vmem:[#allocation20 + $0x288] sm:$0xff] }
 0x463   : > { %vm1207_vm4 = vcmp.gt.f32.partialorder %v1205_v13, 0.0  ;;  %v1209_v15 = vmul.f32 0.2, %v1205_v13  ;;  %v1934_v3 = vld [vmem:[#allocation20 + $0x2a0] sm:$0xff] }
 0x464   : > { %v1210_v16 = vsel %vm1206_vm3, %v1204_v12, %v1208_v14  ;;  %v1875_v12 = vld [vmem:[#allocation20 + $0xc8] sm:$0xff] }
 0x465   : > { %v1211_v17 = vsel %vm1207_vm4, %v1205_v13, %v1209_v15  ;;  %v10609_v20 = vpack.c.bf16 %v1210_v16, %v1210_v16  ;;  %v8368_v13 = vcombine.high %v1874_v9, %v1878_v11  ;;  %v1879_v14 = vld [vmem:[#allocation20 + $0xe8] sm:$0xff]  ;;  %v8367_v15 = vcombine.low %v1874_v9, %v1878_v11 }
 0x466   : > { %v1277_v18 = vpack.c.bf16 %v1211_v17, %v1211_v17  ;;  %v8369_v16 = vcombine.low %v1875_v12, %v1879_v14  ;;  %v8370_v17 = vcombine.high %v1875_v12, %v1879_v14  ;;  %v8423_v9 = vcombine.low %v1930_v2, %v1934_v3  ;;  %v1942_v14 = vld [vmem:[#allocation20 + $0x2e0] sm:$0xff] }
 0x467   : > { %3438 = vmatprep.subr.bf16.mxu0 %v8368_v13  ;;  %v1938_v13 = vld [vmem:[#allocation20 + $0x2c0] sm:$0xff] }
 0x468   : > { %1652 = vmatprep.mubr.bf16.mxu1 %v1277_v18  ;;  %3439 = vmatpush1.bf16.msra.mxu0 %v8367_v15  ;;  %v1939_v15 = vld [vmem:[#allocation20 + $0x2c8] sm:$0xff] }
 0x469   : > { %1653 = vmatmul.mubr.bf16.vlgmr.msra.gmra.mrb[4].mxu1 %v10609_v20 }
 0x46a   : > { %1662 = vmatpush1.bf16.msra.mxu1 %v9172_v19  ;;  %1693 = vmatprep.mubr.bf16.mxu1 %v1277_v18  ;;  %v1882_v18 = vld [vmem:[#allocation20 + $0x100] sm:$0xff] }
 0x46b   : > { %1663 = vmatprep.subr.bf16.mxu1 %v9177_v21  ;;  %v1886_v19 = vld [vmem:[#allocation20 + $0x120] sm:$0xff] }
 0x46c   : > { %v8376_v21 = vcombine.high %v1882_v18, %v1886_v19 }
 0x46e   : > { %1664 = vmatpush1.bf16.msra.mxu1 %v9175_v22  ;;  %v1887_v22 = vld [vmem:[#allocation20 + $0x128] sm:$0xff]  ;;  %3440 = vmatprep.subr.bf16.mxu0 %v8376_v21  ;;  %v1946_v21 = vld [vmem:[#allocation20 + $0x300] sm:$0xff] }
 0x46f   : > { %1665 = vmatprep.subr.bf16.mxu1 %v9180_v23  ;;  %v8375_v23 = vcombine.low %v1882_v18, %v1886_v19  ;;  %v8431_v18 = vcombine.low %v1938_v13, %v1942_v14 }
 0x471   : > { %3441 = vmatpush1.bf16.msra.mxu0 %v8375_v23  ;;  %v1947_v23 = vld [vmem:[#allocation20 + $0x308] sm:$0xff] }
 0x472   : > { %1666 = vmatpush1.bf16.msra.mxu1 %v9178_v24 }
 0x473   : > { %1667 = vmatprep.subr.bf16.mxu1 %v9183_v25 }
 0x476   : > { %1668 = vmatpush1.bf16.msra.mxu1 %v9181_v26  ;;  %v1890_v26 = vld [vmem:[#allocation20 + $0x140] sm:$0xff] }
 0x477   : > { %1669 = vmatprep.subr.bf16.mxu1 %v9186_v27  ;;  %v1894_v27 = vld [vmem:[#allocation20 + $0x160] sm:$0xff] }
 0x47a   : > { %1670 = vmatpush1.bf16.msra.mxu1 %v9184_v28  ;;  %v1891_v28 = vld [vmem:[#allocation20 + $0x148] sm:$0xff] }
 0x47b   : > { %1671 = vmatprep.subr.bf16.mxu1 %v9189_v29  ;;  %v8384_v29 = vcombine.high %v1890_v26, %v1894_v27 }
 0x47d   : > { %3442 = vmatprep.subr.bf16.mxu0 %v8384_v29  ;;  %v1954_v29 = vld [vmem:[#allocation20 + $0x340] sm:$0xff] }
 0x47e   : > { %1672 = vmatpush1.bf16.msra.mxu1 %v9187_v30  ;;  %v1895_v30 = vld [vmem:[#allocation20 + $0x168] sm:$0xff] }
 0x47f   : > { %1673 = vmatprep.subr.bf16.mxu1 %v9192_v31  ;;  %v8383_v31 = vcombine.low %v1890_v26, %v1894_v27 }
 0x481   : > { %3443 = vmatpush1.bf16.msra.mxu0 %v8383_v31  ;;  %v1955_v31 = vld [vmem:[#allocation20 + $0x348] sm:$0xff] }
 0x482   : > { %1674 = vmatpush1.bf16.msra.mxu1 %v9190_v32  ;;  %v8385_v32 = vcombine.low %v1891_v28, %v1895_v30 }
 0x483   : > { %1675 = vmatprep.subr.bf16.mxu1 %v9195_v33  ;;  %v8386_v33 = vcombine.high %v1891_v28, %v1895_v30  ;;  %v1958_v30 = vld [vmem:[#allocation20 + $0x360] sm:$0xff] }
 0x486   : > { %1676 = vmatpush1.bf16.msra.mxu1 %v9193_v34  ;;  %v1898_v34 = vld [vmem:[#allocation20 + $0x180] sm:$0xff] }
 0x487   : > { %1677 = vmatprep.subr.bf16.mxu1 %v9198_v35  ;;  %v1902_v35 = vld [vmem:[#allocation20 + $0x1a0] sm:$0xff] }
 0x48a   : > { %1678 = vmatpush1.bf16.msra.mxu1 %v9196_v36  ;;  %v1899_v36 = vld [vmem:[#allocation20 + $0x188] sm:$0xff] }
 0x48b   : > { %1679 = vmatprep.subr.bf16.mxu1 %v9201_v37  ;;  %v8392_v37 = vcombine.high %v1898_v34, %v1902_v35 }
 0x48d   : > { %3444 = vmatprep.subr.bf16.mxu0 %v8392_v37  ;;  %v1962_v37 = vld [vmem:[#allocation20 + $0x380] sm:$0xff] }
 0x48e   : > { %1680 = vmatpush1.bf16.msra.mxu1 %v9199_v38  ;;  %v1903_v38 = vld [vmem:[#allocation20 + $0x1a8] sm:$0xff] }
 0x48f   : > { %1681 = vmatprep.subr.bf16.mxu1 %v9204_v39  ;;  %v8391_v39 = vcombine.low %v1898_v34, %v1902_v35  ;;  %v8447_v34 = vcombine.low %v1954_v29, %v1958_v30 }
 0x491   : > { %3445 = vmatpush1.bf16.msra.mxu0 %v8391_v39  ;;  %v1963_v39 = vld [vmem:[#allocation20 + $0x388] sm:$0xff] }
 0x492   : > { %1682 = vmatpush1.bf16.msra.mxu1 %v9202_v40  ;;  %v8393_v40 = vcombine.low %v1899_v36, %v1903_v38 }
 0x493   : > { %1683 = vmatprep.subr.bf16.mxu1 %v9207_v41  ;;  %v8394_v41 = vcombine.high %v1899_v36, %v1903_v38  ;;  %v1966_v38 = vld [vmem:[#allocation20 + $0x3a0] sm:$0xff] }
 0x496   : > { %1684 = vmatpush1.bf16.msra.mxu1 %v9205_v42  ;;  %v1906_v42 = vld [vmem:[#allocation20 + $0x1c0] sm:$0xff] }
 0x497   : > { %1685 = vmatprep.subr.bf16.mxu1 %v9210_v43  ;;  %v1910_v43 = vld [vmem:[#allocation20 + $0x1e0] sm:$0xff] }
 0x49a   : > { %1686 = vmatpush1.bf16.msra.mxu1 %v9208_v44  ;;  %v1907_v44 = vld [vmem:[#allocation20 + $0x1c8] sm:$0xff] }
 0x49b   : > { %1687 = vmatprep.subr.bf16.mxu1 %v9213_v45  ;;  %v8400_v45 = vcombine.high %v1906_v42, %v1910_v43 }
 0x49d   : > { %3446 = vmatprep.subr.bf16.mxu0 %v8400_v45  ;;  %v1970_v45 = vld [vmem:[#allocation20 + $0x3c0] sm:$0xff] }
 0x49e   : > { %1688 = vmatpush1.bf16.msra.mxu1 %v9211_v46  ;;  %v1911_v46 = vld [vmem:[#allocation20 + $0x1e8] sm:$0xff] }
 0x49f   : > { %1689 = vmatprep.subr.bf16.mxu1 %v9216_v47  ;;  %v8399_v47 = vcombine.low %v1906_v42, %v1910_v43  ;;  %v8455_v42 = vcombine.low %v1962_v37, %v1966_v38 }
 0x4a1   : > { %3447 = vmatpush1.bf16.msra.mxu0 %v8399_v47  ;;  %v1971_v47 = vld [vmem:[#allocation20 + $0x3c8] sm:$0xff] }
 0x4a2   : > { %1690 = vmatpush1.bf16.msra.mxu1 %v9214_v48  ;;  %v8401_v48 = vcombine.low %v1907_v44, %v1911_v46 }
 0x4a3   : > { %1691 = vmatprep.subr.bf16.mxu1 %v9219_v49  ;;  %v8402_v49 = vcombine.high %v1907_v44, %v1911_v46  ;;  %v1974_v46 = vld [vmem:[#allocation20 + $0x3e0] sm:$0xff] }
 0x4a6   : > { %1692 = vmatpush1.bf16.msra.mxu1 %v9217_v52  ;;  %v1915_v52 = vld [vmem:[#allocation20 + $0x208] sm:$0xff] }
 0x4a7   : > { %3514 = vmatprep.subr.bf16.mxu1 %v8346_v53  ;;  %v8408_v53 = vcombine.high %v1914_v50, %v1918_v51  ;;  %v1975_v50 = vld [vmem:[#allocation20 + $0x3e8] sm:$0xff] }
 0x4a8   : > { %v8465_v51 = vcombine.low %v1971_v47, %v1975_v50 }
 0x4a9   : > { %1694 = vmatmul.mubr.bf16.vlgmr.msra.gmra.mrb[8].mxu1 %v10609_v20  ;;  %v1883_v20 = vld [vmem:[#allocation20 + $0x108] sm:$0xff]  ;;  %3448 = vmatprep.subr.bf16.mxu0 %v8408_v53  ;;  %v10613_v53 = vld [vmem:[#allocation20 + $0x400] sm:$0xff] }
 0x4aa   : > { %3515 = vmatpush1.bf16.msra.mxu1 %v8345_v54  ;;  %v8377_v24 = vcombine.low %v1883_v20, %v1887_v22  ;;  %v8378_v25 = vcombine.high %v1883_v20, %v1887_v22  ;;  %v1919_v54 = vld [vmem:[#allocation20 + $0x228] sm:$0xff]  ;;  %3449 = vmatpush1.bf16.msra.mxu0 %v8407_v55  ;;  %v1950_v22 = vld [vmem:[#allocation20 + $0x320] sm:$0xff] }
 0x4ab   : > { %3516 = vmatprep.subr.bf16.mxu1 %v8354_v62  ;;  %v8409_v56 = vcombine.low %v1915_v52, %v1919_v54  ;;  %v8410_v57 = vcombine.high %v1915_v52, %v1919_v54  ;;  %v1927_v62 = vld [vmem:[#allocation20 + $0x268] sm:$0xff]  ;;  %v8439_v26 = vcombine.low %v1946_v21, %v1950_v22  ;;  %v8466_v52 = vcombine.high %v1971_v47, %v1975_v50  ;;  %v10615_v54 = vld [vmem:[#allocation20 + $0x420] sm:$0xff]  ;;  %v10639_v47 = vld [vmem:[#allocation17] sm:$0xf] }
 0x4ac   : > { %v8417_v0 = vcombine.low %v1923_v60, %v1927_v62  ;;  %v8418_v1 = vcombine.high %v1923_v60, %v1927_v62  ;;  %v10617_v55 = vld [vmem:[#allocation20 + $0x408] sm:$0xff] }
 0x4ae   : > { %3517 = vmatpush1.bf16.msra.mxu1 %v8353_v61  ;;  %v8416_v61 = vcombine.high %v1922_v58, %v1926_v59  ;;  %v8471_v58 = vcombine.low %v10613_v53, %v10615_v54 }
 0x4af   : > { %3518 = vmatprep.subr.bf16.mxu1 %v8362_v6  ;;  %v1935_v6 = vld [vmem:[#allocation20 + $0x2a8] sm:$0xff] }
 0x4b0   : > { %3450 = vmatprep.subr.bf16.mxu0 %v8416_v61  ;;  %v8425_v11 = vcombine.low %v1931_v4, %v1935_v6  ;;  %v8426_v12 = vcombine.high %v1931_v4, %v1935_v6  ;;  %v10629_v61 = vld [vmem:[#allocation16] sm:$0xf] }
 0x4b1   : > { %3451 = vmatpush1.bf16.msra.mxu0 %v8415_v63  ;;  %v1283_v62 = vrot.slane %v10629_v61, %v10594_v8  ;;  %v1287_v63 = vrot.slane %v10629_v61, %v10597_v10 }
 0x4b2   : > { %3519 = vmatpush1.bf16.msra.mxu1 %v8361_v5  ;;  %v8424_v5 = vcombine.high %v1930_v2, %v1934_v3 }
 0x4b3   : > { %3520 = vmatprep.subr.bf16.mxu1 %v8370_v17  ;;  %v1943_v17 = vld [vmem:[#allocation20 + $0x2e8] sm:$0xff] }
 0x4b4   : > { %3452 = vmatprep.subr.bf16.mxu0 %v8424_v5  ;;  %v8433_v19 = vcombine.low %v1939_v15, %v1943_v17  ;;  %v8434_v20 = vcombine.high %v1939_v15, %v1943_v17 }
 0x4b5   : > { %3453 = vmatpush1.bf16.msra.mxu0 %v8423_v9 }
 0x4b6   : > { %3521 = vmatpush1.bf16.msra.mxu1 %v8369_v16  ;;  %v8432_v16 = vcombine.high %v1938_v13, %v1942_v14 }
 0x4b7   : > { %3522 = vmatprep.subr.bf16.mxu1 %v8378_v25  ;;  %v1951_v25 = vld [vmem:[#allocation20 + $0x328] sm:$0xff] }
 0x4b8   : > { %3454 = vmatprep.subr.bf16.mxu0 %v8432_v16  ;;  %v8441_v27 = vcombine.low %v1947_v23, %v1951_v25  ;;  %v8442_v28 = vcombine.high %v1947_v23, %v1951_v25 }
 0x4b9   : > { %3455 = vmatpush1.bf16.msra.mxu0 %v8431_v18 }
 0x4ba   : > { %3523 = vmatpush1.bf16.msra.mxu1 %v8377_v24  ;;  %v8440_v24 = vcombine.high %v1946_v21, %v1950_v22 }
 0x4bb   : > { %3524 = vmatprep.subr.bf16.mxu1 %v8386_v33  ;;  %v1959_v33 = vld [vmem:[#allocation20 + $0x368] sm:$0xff] }
 0x4bc   : > { %3456 = vmatprep.subr.bf16.mxu0 %v8440_v24  ;;  %v8449_v35 = vcombine.low %v1955_v31, %v1959_v33  ;;  %v8450_v36 = vcombine.high %v1955_v31, %v1959_v33 }
 0x4bd   : > { %3457 = vmatpush1.bf16.msra.mxu0 %v8439_v26 }
 0x4be   : > { %3525 = vmatpush1.bf16.msra.mxu1 %v8385_v32  ;;  %v8448_v32 = vcombine.high %v1954_v29, %v1958_v30 }
 0x4bf   : > { %3526 = vmatprep.subr.bf16.mxu1 %v8394_v41  ;;  %v1967_v41 = vld [vmem:[#allocation20 + $0x3a8] sm:$0xff] }
 0x4c0   : > { %3458 = vmatprep.subr.bf16.mxu0 %v8448_v32  ;;  %v8457_v43 = vcombine.low %v1963_v39, %v1967_v41  ;;  %v8458_v44 = vcombine.high %v1963_v39, %v1967_v41 }
 0x4c1   : > { %3459 = vmatpush1.bf16.msra.mxu0 %v8447_v34 }
 0x4c2   : > { %3527 = vmatpush1.bf16.msra.mxu1 %v8393_v40  ;;  %v8456_v40 = vcombine.high %v1962_v37, %v1966_v38 }
 0x4c3   : > { %3528 = vmatprep.subr.bf16.mxu1 %v8402_v49  ;;  %v8464_v49 = vcombine.high %v1970_v45, %v1974_v46 }
 0x4c4   : > { %3460 = vmatprep.subr.bf16.mxu0 %v8456_v40 }
 0x4c5   : > { %3461 = vmatpush1.bf16.msra.mxu0 %v8455_v42 }
 0x4c6   : > { %3529 = vmatpush1.bf16.msra.mxu1 %v8401_v48  ;;  %v8463_v48 = vcombine.low %v1970_v45, %v1974_v46  ;;  %3462 = vmatprep.subr.bf16.mxu0 %v8464_v49  ;;  %v1792_v49 = vrot.slane %v10639_v47, %v10594_v8 }
 0x4c7   : > { %3530 = vmatprep.subr.bf16.mxu1 %v8410_v57  ;;  %v10621_v57 = vld [vmem:[#allocation20 + $0x428] sm:$0xff] }
 0x4c8   : > { %v8473_v59 = vcombine.low %v10617_v55, %v10621_v57  ;;  %v8474_v60 = vcombine.high %v10617_v55, %v10621_v57 }
 0x4c9   : > { %3463 = vmatpush1.bf16.msra.mxu0 %v8463_v48  ;;  %v10641_v48 = vld [vmem:[#allocation19] sm:$0xf] }
 0x4ca   : > { %3531 = vmatpush1.bf16.msra.mxu1 %v8409_v56  ;;  %v8472_v56 = vcombine.high %v10613_v53, %v10615_v54  ;;  %v2003_v53 = vld [vmem:[#allocation20 + $0x4c8] sm:$0xff] }
 0x4cb   : > { %3532 = vmatprep.subr.bf16.mxu1 %v8418_v1  ;;  %v2007_v54 = vld [vmem:[#allocation20 + $0x4e8] sm:$0xff] }
 0x4cc   : > { %3473 = vmatprep.subr.bf16.mxu0 %v8472_v56 }
 0x4ce   : > { %3533 = vmatpush1.bf16.msra.mxu1 %v8417_v0 }
 0x4cf   : > { %3534 = vmatprep.subr.bf16.mxu1 %v8426_v12 }
 0x4d2   : > { %3535 = vmatpush1.bf16.msra.mxu1 %v8425_v11 }
 0x4d3   : > { %3536 = vmatprep.subr.bf16.mxu1 %v8434_v20 }
 0x4d6   : > { %3537 = vmatpush1.bf16.msra.mxu1 %v8433_v19 }
 0x4d7   : > { %3538 = vmatprep.subr.bf16.mxu1 %v8442_v28 }
 0x4da   : > { %3539 = vmatpush1.bf16.msra.mxu1 %v8441_v27 }
 0x4db   : > { %3540 = vmatprep.subr.bf16.mxu1 %v8450_v36 }
 0x4de   : > { %3541 = vmatpush1.bf16.msra.mxu1 %v8449_v35 }
 0x4df   : > { %3542 = vmatprep.subr.bf16.mxu1 %v8458_v44 }
 0x4e2   : > { %3543 = vmatpush1.bf16.msra.mxu1 %v8457_v43 }
 0x4e3   : > { %3544 = vmatprep.subr.bf16.mxu1 %v8466_v52 }
 0x4e6   : > { %3545 = vmatpush1.bf16.msra.mxu1 %v8465_v51  ;;  %v1796_v51 = vrot.slane %v10639_v47, %v10597_v10 }
 0x4e7   : > { %3555 = vmatprep.subr.bf16.mxu1 %v8474_v60  ;;  %v1817_v60 = vrot.slane %v10641_v48, %v10594_v8 }
 0x53c   : > { %v1654_v0 = vpop.f32.mrb[4].mxu1 }
 0x53d   : > { %v1655_v1 = vadd.f32 %v1654_v0, %v1283_v62  ;;  %v1656_v2 = vpop.f32.mrb[5].mxu1 }
 0x53e   : > { %v1657_v3 = vadd.f32 %v1656_v2, %v1287_v63  ;;  %v1658_v4 = vpop.f32.mrb[6].mxu1  ;;  %v1821_v63 = vrot.slane %v10641_v48, %v10597_v10 }
 0x53f   : > { %v1704_v5 = vsel %vm1136_vm2, %v1655_v1, 0.0  ;;  %v1659_v6 = vpop.f32.mrb[7].mxu1 }
 0x540   : > { %v1705_v9 = vrot.slane %v1704_v5, 4  ;;  %v1711_v11 = vsel %vm1136_vm2, %v1657_v3, 0.0  ;;  %v10652_v6 = vsub.s32 2, %v10591_v7 }
 0x541   : > { %v1712_v12 = vrot.slane %v1711_v11, 4 }
 0x542   : > { %v1706_v13 = vadd.f32 %v1705_v9, %v1704_v5  ;;  %v1986_v9 = vld [vmem:[#allocation20 + $0x440] sm:$0xff] }
 0x543   : > { %v1713_v14 = vadd.f32 %v1712_v12, %v1711_v11  ;;  %v10655_v12 = vsub.s32 3, %v10591_v7 }
 0x544   : > { %v1707_v15 = vrot.slane %v1706_v13, 2 }
 0x545   : > { %v1714_v16 = vrot.slane %v1713_v14, 2 }
 0x546   : > { %v1708_v17 = vadd.f32 %v1707_v15, %v1706_v13  ;;  %v1990_v13 = vld [vmem:[#allocation20 + $0x460] sm:$0xff]  ;;  %v1991_v15 = vld [vmem:[#allocation20 + $0x468] sm:$0xff] }
 0x547   : > { %v1715_v18 = vadd.f32 %v1714_v16, %v1713_v14  ;;  %v1987_v14 = vld [vmem:[#allocation20 + $0x448] sm:$0xff] }
 0x548   : > { %v1709_v19 = vrot.slane %v1708_v17, 1 }
 0x549   : > { %v1716_v20 = vrot.slane %v1715_v18, 1 }
 0x54a   : > { %v1710_v21 = vadd.f32 %v1709_v19, %v1708_v17 }
 0x54b   : > { %v1717_v22 = vadd.f32 %v1716_v20, %v1715_v18  ;;  %v1291_v18 = vrot.slane %v10629_v61, %v10652_v6  ;;  %v8480_v20 = vcombine.high %v1986_v9, %v1990_v13 }
 0x54c   : > { %v1732_v23 = vmul.f32 0.5, %v1710_v21  ;;  %v8482_v21 = vcombine.high %v1987_v14, %v1991_v15 }
 0x54d   : > { %v1733_v24 = vmul.f32 0.5, %v1717_v22  ;;  %v1994_v22 = vld [vmem:[#allocation20 + $0x480] sm:$0xff] }
 0x54e   : > { %v1736_v25 = vsub.f32 %v1655_v1, %v1732_v23  ;;  %v1295_v23 = vrot.slane %v10629_v61, %v10655_v12 }
 0x54f   : > { %v1737_v26 = vsub.f32 %v1657_v3, %v1733_v24  ;;  %v1998_v24 = vld [vmem:[#allocation20 + $0x4a0] sm:$0xff] }
 0x550   : > { %v1740_v27 = vmul.f32 %v1736_v25, %v1736_v25 }
 0x551   : > { %v1741_v28 = vmul.f32 %v1737_v26, %v1737_v26 }
 0x552   : > { %v1744_v29 = vsel %vm1136_vm2, %v1740_v27, 0.0 }
 0x553   : > { %v1745_v30 = vrot.slane %v1744_v29, 4  ;;  %v1751_v31 = vsel %vm1136_vm2, %v1741_v28, 0.0  ;;  %v8479_v28 = vcombine.low %v1986_v9, %v1990_v13 }
 0x554   : > { %v1752_v32 = vrot.slane %v1751_v31, 4 }
 0x555   : > { %v1746_v33 = vadd.f32 %v1745_v30, %v1744_v29  ;;  %v8481_v29 = vcombine.low %v1987_v14, %v1991_v15 }
 0x556   : > { %v1753_v34 = vadd.f32 %v1752_v32, %v1751_v31  ;;  %v8488_v31 = vcombine.high %v1994_v22, %v1998_v24 }
 0x557   : > { %v1747_v35 = vrot.slane %v1746_v33, 2 }
 0x558   : > { %v1754_v36 = vrot.slane %v1753_v34, 2 }
 0x559   : > { %v1748_v37 = vadd.f32 %v1747_v35, %v1746_v33  ;;  %v2002_v33 = vld [vmem:[#allocation20 + $0x4c0] sm:$0xff] }
 0x55a   : > { %v1755_v38 = vadd.f32 %v1754_v36, %v1753_v34  ;;  %v2006_v36 = vld [vmem:[#allocation20 + $0x4e0] sm:$0xff] }
 0x55b   : > { %v1749_v39 = vrot.slane %v1748_v37, 1 }
 0x55c   : > { %v1756_v40 = vrot.slane %v1755_v38, 1 }
 0x55d   : > { %v1750_v41 = vadd.f32 %v1749_v39, %v1748_v37  ;;  %v8487_v37 = vcombine.low %v1994_v22, %v1998_v24  ;;  %v2031_v22 = vld [vmem:[#allocation20 + $0x5a8] sm:$0xff] }
 0x55e   : > { %v1757_v42 = vadd.f32 %v1756_v40, %v1755_v38  ;;  %v8496_v40 = vcombine.high %v2002_v33, %v2006_v36 }
 0x55f   : > { %v1772_v43 = vmul.f32 0.5, %v1750_v41  ;;  %v8498_v41 = vcombine.high %v2003_v53, %v2007_v54 }
 0x560   : > { %v1773_v44 = vmul.f32 0.5, %v1757_v42  ;;  %v2010_v42 = vld [vmem:[#allocation20 + $0x500] sm:$0xff] }
 0x561   : > { %v1776_v45 = vadd.f32 0.8, %v1772_v43 }
 0x562   : > { %v1777_v46 = vadd.f32 0.8, %v1773_v44  ;;  %v2014_v44 = vld [vmem:[#allocation20 + $0x520] sm:$0xff] }
 0x563   : > { %9224 = vrsqrt.f32 %v1776_v45  ;;  %v2011_v45 = vld [vmem:[#allocation20 + $0x508] sm:$0xff]  ;;  %v8503_v9 = vcombine.low %v2010_v42, %v2014_v44 }
 0x564   : > { %9226 = vrsqrt.f32 %v1777_v46  ;;  %v2015_v46 = vld [vmem:[#allocation20 + $0x528] sm:$0xff] }
 0x56d   : > { %v9225_v50 = vpop.eup %9224 }
 0x56e   : > { %v9227_v52 = vpop.eup %9226  ;;  %v1784_v56 = vmul.f32 %v9225_v50, %v1736_v25  ;;  %v1995_v25 = vld [vmem:[#allocation20 + $0x488] sm:$0xff] }
 0x56f   : > { %v1785_v62 = vmul.f32 %v9227_v52, %v1737_v26  ;;  %v1999_v26 = vld [vmem:[#allocation20 + $0x4a8] sm:$0xff]  ;;  %v8497_v52 = vcombine.low %v2003_v53, %v2007_v54 }
 0x570   : > { %v1809_v0 = vmul.f32 %v1792_v49, %v1784_v56  ;;  %v8490_v32 = vcombine.high %v1995_v25, %v1999_v26  ;;  %v8489_v38 = vcombine.low %v1995_v25, %v1999_v26 }
 0x571   : > { %v1810_v1 = vmul.f32 %v1796_v51, %v1785_v62  ;;  %v8495_v51 = vcombine.low %v2002_v33, %v2006_v36  ;;  %v8506_v62 = vcombine.high %v2011_v45, %v2015_v46  ;;  %v2035_v33 = vld [vmem:[#allocation20 + $0x5c8] sm:$0xff] }
 0x572   : > { %v1834_v2 = vadd.f32 %v1817_v60, %v1809_v0  ;;  %v8504_v60 = vcombine.high %v2010_v42, %v2014_v44 }
 0x573   : > { %v1835_v3 = vadd.f32 %v1821_v63, %v1810_v1  ;;  %v2018_v63 = vld [vmem:[#allocation20 + $0x540] sm:$0xff] }
 0x574   : > { %vm1838_vm5 = vcmp.gt.f32.partialorder %v1834_v2, 0.0  ;;  %v1842_v4 = vmul.f32 0.2, %v1834_v2  ;;  %v2022_v1 = vld [vmem:[#allocation20 + $0x560] sm:$0xff] }
 0x575   : > { %vm1839_vm6 = vcmp.gt.f32.partialorder %v1835_v3, 0.0  ;;  %v1843_v5 = vmul.f32 0.2, %v1835_v3  ;;  %v8512_v14 = vcombine.high %v2018_v63, %v2022_v1  ;;  %v8511_v25 = vcombine.low %v2018_v63, %v2022_v1 }
 0x576   : > { %v1846_v11 = vsel %vm1838_vm5, %v1834_v2, %v1842_v4  ;;  %v2019_v2 = vld [vmem:[#allocation20 + $0x548] sm:$0xff] }
 0x577   : > { %v1847_v16 = vsel %vm1839_vm6, %v1835_v3, %v1843_v5  ;;  %v10661_v19 = vpack.c.bf16 %v1846_v11, %v1846_v11  ;;  %v2023_v3 = vld [vmem:[#allocation20 + $0x568] sm:$0xff]  ;;  %v8505_v11 = vcombine.low %v2011_v45, %v2015_v46 }
 0x578   : > { %v10657_v17 = vpack.c.bf16 %v1847_v16, %v1847_v16  ;;  %v8514_v15 = vcombine.high %v2019_v2, %v2023_v3  ;;  %v2026_v16 = vld [vmem:[#allocation20 + $0x580] sm:$0xff]  ;;  %v8513_v26 = vcombine.low %v2019_v2, %v2023_v3 }
 0x57a   : > { %3464 = vmatprep.mubr.bf16.mxu0 %v10657_v17  ;;  %3546 = vmatprep.mubr.bf16.mxu1 %v10657_v17 }
 0x57b   : > { %3465 = vmatmul.mubr.bf16.vlgmr.msra.gmra.mrb[4].mxu0 %v10661_v19  ;;  %3547 = vmatmul.mubr.bf16.vlgmr.msra.gmra.mrb[12].mxu1 %v10661_v19 }
 0x57c   : > { %v1695_v27 = vpop.f32.mrb[8].mxu1  ;;  %3474 = vmatpush1.bf16.msra.mxu0 %v8471_v58  ;;  %3556 = vmatpush1.bf16.msra.mxu1 %v8473_v59 }
 0x57d   : > { %v10675_v30 = vadd.f32 %v1695_v27, %v1291_v18  ;;  %v1697_v61 = vpop.f32.mrb[9].mxu1  ;;  %3475 = vmatprep.subr.bf16.mxu0 %v8480_v20  ;;  %3557 = vmatprep.subr.bf16.mxu1 %v8482_v21  ;;  %v2030_v20 = vld [vmem:[#allocation20 + $0x5a0] sm:$0xff]  ;;  %v2027_v21 = vld [vmem:[#allocation20 + $0x588] sm:$0xff] }
 0x57e   : > { %v10677_v34 = vadd.f32 %v1697_v61, %v1295_v23  ;;  %v1699_v35 = vpop.f32.mrb[10].mxu1  ;;  %v2034_v61 = vld [vmem:[#allocation20 + $0x5c0] sm:$0xff]  ;;  %v8519_v54 = vcombine.low %v2026_v16, %v2030_v20 }
 0x57f   : > { %v1718_v55 = vsel %vm1136_vm2, %v10675_v30, 0.0  ;;  %v1700_v57 = vpop.f32.mrb[11].mxu1  ;;  %v2039_v35 = vld [vmem:[#allocation20 + $0x5e8] sm:$0xff] }
 0x580   : > { %v1719_v58 = vrot.slane %v1718_v55, 4  ;;  %v1725_v59 = vsel %vm1136_vm2, %v10677_v34, 0.0  ;;  %3476 = vmatpush1.bf16.msra.mxu0 %v8479_v28  ;;  %3558 = vmatpush1.bf16.msra.mxu1 %v8481_v29  ;;  %v8520_v28 = vcombine.high %v2026_v16, %v2030_v20  ;;  %v8522_v29 = vcombine.high %v2027_v21, %v2031_v22 }
 0x581   : > { %v1726_v39 = vrot.slane %v1725_v59, 4  ;;  %3477 = vmatprep.subr.bf16.mxu0 %v8488_v31  ;;  %3559 = vmatprep.subr.bf16.mxu1 %v8490_v32  ;;  %v2038_v32 = vld [vmem:[#allocation20 + $0x5e0] sm:$0xff]  ;;  %v8529_v44 = vcombine.low %v2035_v33, %v2039_v35 }
 0x582   : > { %v1720_v43 = vadd.f32 %v1719_v58, %v1718_v55  ;;  %v8521_v55 = vcombine.low %v2027_v21, %v2031_v22  ;;  %v8530_v58 = vcombine.high %v2035_v33, %v2039_v35 }
 0x583   : > { %v1727_v49 = vadd.f32 %v1726_v39, %v1725_v59  ;;  %v2042_v59 = vld [vmem:[#allocation20 + $0x600] sm:$0xff]  ;;  %v2047_v39 = vld [vmem:[#allocation20 + $0x628] sm:$0xff] }
 0x584   : > { %v1721_v50 = vrot.slane %v1720_v43, 2  ;;  %3478 = vmatpush1.bf16.msra.mxu0 %v8487_v37  ;;  %3560 = vmatpush1.bf16.msra.mxu1 %v8489_v38  ;;  %v2046_v38 = vld [vmem:[#allocation20 + $0x620] sm:$0xff] }
 0x585   : > { %v1728_v56 = vrot.slane %v1727_v49, 2  ;;  %3479 = vmatprep.subr.bf16.mxu0 %v8496_v40  ;;  %3561 = vmatprep.subr.bf16.mxu1 %v8498_v41  ;;  %v8536_v46 = vcombine.high %v2042_v59, %v2046_v38 }
 0x586   : > { %v1722_v0 = vadd.f32 %v1721_v50, %v1720_v43  ;;  %v8527_v43 = vcombine.low %v2034_v61, %v2038_v32  ;;  %v2050_v50 = vld [vmem:[#allocation20 + $0x640] sm:$0xff] }
 0x587   : > { %v1729_v4 = vadd.f32 %v1728_v56, %v1727_v49  ;;  %v2051_v56 = vld [vmem:[#allocation20 + $0x648] sm:$0xff] }
 0x588   : > { %v1723_v5 = vrot.slane %v1722_v0, 1  ;;  %3480 = vmatpush1.bf16.msra.mxu0 %v8495_v51  ;;  %3562 = vmatpush1.bf16.msra.mxu1 %v8497_v52  ;;  %v2054_v52 = vld [vmem:[#allocation20 + $0x660] sm:$0xff] }
 0x589   : > { %v1730_v13 = vrot.slane %v1729_v4, 1  ;;  %3481 = vmatprep.subr.bf16.mxu0 %v8504_v60  ;;  %3563 = vmatprep.subr.bf16.mxu1 %v8506_v62  ;;  %v2055_v60 = vld [vmem:[#allocation20 + $0x668] sm:$0xff]  ;;  %v8544_v3 = vcombine.high %v2050_v50, %v2054_v52 }
 0x58a   : > { %v1724_v18 = vadd.f32 %v1723_v5, %v1722_v0  ;;  %v8535_v0 = vcombine.low %v2042_v59, %v2046_v38  ;;  %v2058_v5 = vld [vmem:[#allocation20 + $0x680] sm:$0xff]  ;;  %v8545_v20 = vcombine.low %v2051_v56, %v2055_v60  ;;  %v2079_v59 = vld [vmem:[#allocation20 + $0x728] sm:$0xff] }
 0x58b   : > { %v1731_v23 = vadd.f32 %v1730_v13, %v1729_v4  ;;  %v8546_v4 = vcombine.high %v2051_v56, %v2055_v60  ;;  %v2059_v13 = vld [vmem:[#allocation20 + $0x688] sm:$0xff]  ;;  %v1800_v60 = vrot.slane %v10639_v47, %v10652_v6 }
 0x58c   : > { %v1734_v24 = vmul.f32 0.5, %v1724_v18  ;;  %3482 = vmatpush1.bf16.msra.mxu0 %v8503_v9  ;;  %3564 = vmatpush1.bf16.msra.mxu1 %v8505_v11  ;;  %v2062_v11 = vld [vmem:[#allocation20 + $0x6a0] sm:$0xff]  ;;  %v8543_v18 = vcombine.low %v2050_v50, %v2054_v52  ;;  %v2091_v52 = vld [vmem:[#allocation20 + $0x788] sm:$0xff] }
 0x58d   : > { %v1735_v27 = vmul.f32 0.5, %v1731_v23  ;;  %3483 = vmatprep.subr.bf16.mxu0 %v8512_v14  ;;  %3565 = vmatprep.subr.bf16.mxu1 %v8514_v15  ;;  %v2063_v14 = vld [vmem:[#allocation20 + $0x6a8] sm:$0xff]  ;;  %v8552_v22 = vcombine.high %v2058_v5, %v2062_v11  ;;  %v2090_v50 = vld [vmem:[#allocation20 + $0x780] sm:$0xff] }
 0x58e   : > { %v10684_v31 = vsub.f32 %v10675_v30, %v1734_v24  ;;  %v8528_v30 = vcombine.high %v2034_v61, %v2038_v32  ;;  %v8554_v23 = vcombine.high %v2059_v13, %v2063_v14  ;;  %v2066_v24 = vld [vmem:[#allocation20 + $0x6c0] sm:$0xff]  ;;  %v8551_v32 = vcombine.low %v2058_v5, %v2062_v11  ;;  %v2095_v56 = vld [vmem:[#allocation20 + $0x7a8] sm:$0xff] }
 0x58f   : > { %v10687_v36 = vsub.f32 %v10677_v34, %v1735_v27  ;;  %v2043_v34 = vld [vmem:[#allocation20 + $0x608] sm:$0xff]  ;;  %v8553_v33 = vcombine.low %v2059_v13, %v2063_v14  ;;  %v1825_v11 = vrot.slane %v10641_v48, %v10652_v6  ;;  %v2102_v13 = vld [vmem:[#allocation20 + $0x7e0] sm:$0xff] }
 0x590   : > { %v1742_v53 = vmul.f32 %v10684_v31, %v10684_v31  ;;  %3484 = vmatpush1.bf16.msra.mxu0 %v8511_v25  ;;  %3566 = vmatpush1.bf16.msra.mxu1 %v8513_v26  ;;  %v8538_v49 = vcombine.high %v2043_v34, %v2047_v39  ;;  %v8537_v1 = vcombine.low %v2043_v34, %v2047_v39  ;;  %v2070_v26 = vld [vmem:[#allocation20 + $0x6e0] sm:$0xff]  ;;  %v2067_v27 = vld [vmem:[#allocation20 + $0x6c8] sm:$0xff] }
 0x591   : > { %v1743_v57 = vmul.f32 %v10687_v36, %v10687_v36  ;;  %3485 = vmatprep.subr.bf16.mxu0 %v8520_v28  ;;  %3567 = vmatprep.subr.bf16.mxu1 %v8522_v29  ;;  %v2071_v28 = vld [vmem:[#allocation20 + $0x6e8] sm:$0xff] }
 0x592   : > { %v1758_v37 = vsel %vm1136_vm2, %v1742_v53, 0.0  ;;  %v8560_v53 = vcombine.high %v2066_v24, %v2070_v26  ;;  %v8561_v38 = vcombine.low %v2067_v27, %v2071_v28  ;;  %v2099_v14 = vld [vmem:[#allocation20 + $0x7c8] sm:$0xff] }
 0x593   : > { %v1759_v40 = vrot.slane %v1758_v37, 4  ;;  %v1765_v41 = vsel %vm1136_vm2, %v1743_v57, 0.0 }
 0x594   : > { %v1766_v42 = vrot.slane %v1765_v41, 4  ;;  %3486 = vmatpush1.bf16.msra.mxu0 %v8519_v54  ;;  %3568 = vmatpush1.bf16.msra.mxu1 %v8521_v55  ;;  %v8562_v54 = vcombine.high %v2067_v27, %v2071_v28  ;;  %v2074_v55 = vld [vmem:[#allocation20 + $0x700] sm:$0xff]  ;;  %v1853_v27 = vld [vmem:[#allocation20 + $0x18] sm:$0xff] }
 0x595   : > { %v1760_v45 = vadd.f32 %v1759_v40, %v1758_v37  ;;  %3487 = vmatprep.subr.bf16.mxu0 %v8528_v30  ;;  %3569 = vmatprep.subr.bf16.mxu1 %v8530_v58  ;;  %v2078_v30 = vld [vmem:[#allocation20 + $0x720] sm:$0xff]  ;;  %v2075_v58 = vld [vmem:[#allocation20 + $0x708] sm:$0xff]  ;;  %v8559_v37 = vcombine.low %v2066_v24, %v2070_v26  ;;  %v1852_v24 = vld [vmem:[#allocation20 + $0x10] sm:$0xff] }
 0x596   : > { %v1767_v51 = vadd.f32 %v1766_v42, %v1765_v41  ;;  %v8568_v34 = vcombine.high %v2074_v55, %v2078_v30  ;;  %v8570_v39 = vcombine.high %v2075_v58, %v2079_v59  ;;  %v2082_v40 = vld [vmem:[#allocation20 + $0x740] sm:$0xff]  ;;  %v2083_v42 = vld [vmem:[#allocation20 + $0x748] sm:$0xff]  ;;  %v1856_v26 = vld [vmem:[#allocation20 + $0x30] sm:$0xff] }
 0x597   : > { %v1761_v62 = vrot.slane %v1760_v45, 2  ;;  %v2086_v41 = vld [vmem:[#allocation20 + $0x760] sm:$0xff]  ;;  %v1857_v28 = vld [vmem:[#allocation20 + $0x38] sm:$0xff] }
 0x598   : > { %v1768_v63 = vrot.slane %v1767_v51, 2  ;;  %3488 = vmatpush1.bf16.msra.mxu0 %v8527_v43  ;;  %3570 = vmatpush1.bf16.msra.mxu1 %v8529_v44  ;;  %v2087_v43 = vld [vmem:[#allocation20 + $0x768] sm:$0xff]  ;;  %v8567_v44 = vcombine.low %v2074_v55, %v2078_v30  ;;  %v1861_v30 = vld [vmem:[#allocation20 + $0x58] sm:$0xff] }
 0x599   : > { %v1762_v2 = vadd.f32 %v1761_v62, %v1760_v45  ;;  %3489 = vmatprep.subr.bf16.mxu0 %v8536_v46  ;;  %3571 = vmatprep.subr.bf16.mxu1 %v8538_v49  ;;  %v8569_v45 = vcombine.low %v2075_v58, %v2079_v59  ;;  %v8576_v46 = vcombine.high %v2082_v40, %v2086_v41  ;;  %v1865_v58 = vld [vmem:[#allocation20 + $0x78] sm:$0xff] }
 0x59a   : > { %v1769_v9 = vadd.f32 %v1768_v63, %v1767_v51  ;;  %v8578_v49 = vcombine.high %v2083_v42, %v2087_v43  ;;  %v2094_v51 = vld [vmem:[#allocation20 + $0x7a0] sm:$0xff]  ;;  %v8575_v62 = vcombine.low %v2082_v40, %v2086_v41  ;;  %v8577_v63 = vcombine.low %v2083_v42, %v2087_v43  ;;  %v1868_v41 = vld [vmem:[#allocation20 + $0x90] sm:$0xff]  ;;  %v1869_v43 = vld [vmem:[#allocation20 + $0x98] sm:$0xff] }
 0x59b   : > { %v1763_v15 = vrot.slane %v1762_v2, 1  ;;  %v8358_v40 = vcombine.high %v1861_v30, %v1865_v58  ;;  %v1872_v42 = vld [vmem:[#allocation20 + $0xb0] sm:$0xff] }
 0x59c   : > { %v1770_v16 = vrot.slane %v1769_v9, 1  ;;  %3490 = vmatpush1.bf16.msra.mxu0 %v8535_v0  ;;  %3572 = vmatpush1.bf16.msra.mxu1 %v8537_v1  ;;  %v1804_v1 = vrot.slane %v10639_v47, %v10655_v12 }
 0x59d   : > { %v1764_v21 = vadd.f32 %v1763_v15, %v1762_v2  ;;  %3491 = vmatprep.subr.bf16.mxu0 %v8544_v3  ;;  %3573 = vmatprep.subr.bf16.mxu1 %v8546_v4  ;;  %v8584_v2 = vcombine.high %v2090_v50, %v2094_v51  ;;  %v8586_v3 = vcombine.high %v2091_v52, %v2095_v56  ;;  %v2098_v4 = vld [vmem:[#allocation20 + $0x7c0] sm:$0xff]  ;;  %v2103_v15 = vld [vmem:[#allocation20 + $0x7e8] sm:$0xff] }
 0x59e   : > { %v1771_v25 = vadd.f32 %v1770_v16, %v1769_v9 }
 0x59f   : > { %v1774_v29 = vmul.f32 0.5, %v1764_v21  ;;  %v8585_v21 = vcombine.low %v2091_v52, %v2095_v56  ;;  %v1880_v52 = vld [vmem:[#allocation20 + $0xf0] sm:$0xff]  ;;  %v1877_v56 = vld [vmem:[#allocation20 + $0xd8] sm:$0xff] }
 0x5a0   : > { %v1775_v61 = vmul.f32 0.5, %v1771_v25  ;;  %3492 = vmatpush1.bf16.msra.mxu0 %v8543_v18  ;;  %3574 = vmatpush1.bf16.msra.mxu1 %v8545_v20  ;;  %v1829_v18 = vrot.slane %v10641_v48, %v10655_v12  ;;  %v8583_v20 = vcombine.low %v2090_v50, %v2094_v51  ;;  %v8593_v48 = vcombine.low %v2099_v14, %v2103_v15  ;;  %v1876_v51 = vld [vmem:[#allocation20 + $0xd0] sm:$0xff] }
 0x5a1   : > { %v1778_v35 = vadd.f32 0.8, %v1774_v29  ;;  %3493 = vmatprep.subr.bf16.mxu0 %v8552_v22  ;;  %3575 = vmatprep.subr.bf16.mxu1 %v8554_v23  ;;  %v8594_v23 = vcombine.high %v2099_v14, %v2103_v15  ;;  %v1892_v14 = vld [vmem:[#allocation20 + $0x150] sm:$0xff] }
 0x5a2   : > { %v1779_v57 = vadd.f32 0.8, %v1775_v61  ;;  %v1896_v15 = vld [vmem:[#allocation20 + $0x170] sm:$0xff] }
 0x5a3   : > { %9228 = vrsqrt.f32 %v1778_v35  ;;  %v8350_v35 = vcombine.high %v1853_v27, %v1857_v28 }
 0x5a4   : > { %9230 = vrsqrt.f32 %v1779_v57  ;;  %3494 = vmatpush1.bf16.msra.mxu0 %v8551_v32  ;;  %3576 = vmatpush1.bf16.msra.mxu1 %v8553_v33  ;;  %v8348_v33 = vcombine.high %v1852_v24, %v1856_v26  ;;  %v1864_v57 = vld [vmem:[#allocation20 + $0x70] sm:$0xff] }
 0x5a5   : > { %3495 = vmatprep.subr.bf16.mxu0 %v8560_v53  ;;  %3577 = vmatprep.subr.bf16.mxu1 %v8562_v54  ;;  %v1860_v54 = vld [vmem:[#allocation20 + $0x50] sm:$0xff] }
 0x5a8   : > { %3496 = vmatpush1.bf16.msra.mxu0 %v8559_v37  ;;  %3578 = vmatpush1.bf16.msra.mxu1 %v8561_v38  ;;  %v8347_v37 = vcombine.low %v1852_v24, %v1856_v26  ;;  %v1901_v24 = vld [vmem:[#allocation20 + $0x198] sm:$0xff]  ;;  %v8387_v26 = vcombine.low %v1892_v14, %v1896_v15 }
 0x5a9   : > { %3497 = vmatprep.subr.bf16.mxu0 %v8568_v34  ;;  %3579 = vmatprep.subr.bf16.mxu1 %v8570_v39  ;;  %v8349_v34 = vcombine.low %v1853_v27, %v1857_v28  ;;  %v8356_v39 = vcombine.high %v1860_v54, %v1864_v57 }
 0x5ac   : > { %3498 = vmatpush1.bf16.msra.mxu0 %v8567_v44  ;;  %3580 = vmatpush1.bf16.msra.mxu1 %v8569_v45  ;;  %v1873_v44 = vld [vmem:[#allocation20 + $0xb8] sm:$0xff]  ;;  %v8355_v45 = vcombine.low %v1860_v54, %v1864_v57  ;;  %v1920_v57 = vld [vmem:[#allocation20 + $0x230] sm:$0xff] }
 0x5ad   : > { %v9229_v0 = vpop.eup %9228  ;;  %3499 = vmatprep.subr.bf16.mxu0 %v8576_v46  ;;  %3581 = vmatprep.subr.bf16.mxu1 %v8578_v49  ;;  %v8357_v46 = vcombine.low %v1861_v30, %v1865_v58  ;;  %v8364_v49 = vcombine.high %v1868_v41, %v1872_v42  ;;  %v8366_v50 = vcombine.high %v1869_v43, %v1873_v44  ;;  %v1917_v30 = vld [vmem:[#allocation20 + $0x218] sm:$0xff] }
 0x5ae   : > { %v9231_v5 = vpop.eup %9230  ;;  %v1786_v9 = vmul.f32 %v9229_v0, %v10684_v31  ;;  %v8592_v31 = vcombine.high %v2098_v4, %v2102_v13  ;;  %v8372_v0 = vcombine.high %v1876_v51, %v1880_v52  ;;  %v1921_v58 = vld [vmem:[#allocation20 + $0x238] sm:$0xff] }
 0x5af   : > { %v1787_v16 = vmul.f32 %v9231_v5, %v10687_v36  ;;  %v8591_v36 = vcombine.low %v2098_v4, %v2102_v13  ;;  %v1889_v4 = vld [vmem:[#allocation20 + $0x138] sm:$0xff]  ;;  %v8371_v5 = vcombine.low %v1876_v51, %v1880_v52  ;;  %v1932_v51 = vld [vmem:[#allocation20 + $0x290] sm:$0xff] }
 0x5b0   : > { %v1811_v47 = vmul.f32 %v1800_v60, %v1786_v9  ;;  %3500 = vmatpush1.bf16.msra.mxu0 %v8575_v62  ;;  %3582 = vmatpush1.bf16.msra.mxu1 %v8577_v63  ;;  %v1881_v60 = vld [vmem:[#allocation20 + $0xf8] sm:$0xff]  ;;  %v8363_v62 = vcombine.low %v1868_v41, %v1872_v42  ;;  %v8365_v63 = vcombine.low %v1869_v43, %v1873_v44  ;;  %v1924_v41 = vld [vmem:[#allocation20 + $0x250] sm:$0xff] }
 0x5b1   : > { %v1812_v22 = vmul.f32 %v1804_v1, %v1787_v16  ;;  %3501 = vmatprep.subr.bf16.mxu0 %v8584_v2  ;;  %3583 = vmatprep.subr.bf16.mxu1 %v8586_v3  ;;  %v8374_v1 = vcombine.high %v1877_v56, %v1881_v60  ;;  %v1884_v2 = vld [vmem:[#allocation20 + $0x110] sm:$0xff]  ;;  %v8373_v9 = vcombine.low %v1877_v56, %v1881_v60  ;;  %v1893_v16 = vld [vmem:[#allocation20 + $0x158] sm:$0xff] }
 0x5b2   : > { %v1836_v25 = vadd.f32 %v1825_v11, %v1811_v47  ;;  %v1888_v3 = vld [vmem:[#allocation20 + $0x130] sm:$0xff]  ;;  %v1925_v43 = vld [vmem:[#allocation20 + $0x258] sm:$0xff] }
 0x5b3   : > { %v1837_v29 = vadd.f32 %v1829_v18, %v1812_v22  ;;  %v8380_v11 = vcombine.high %v1884_v2, %v1888_v3  ;;  %v1897_v18 = vld [vmem:[#allocation20 + $0x178] sm:$0xff]  ;;  %v8379_v47 = vcombine.low %v1884_v2, %v1888_v3  ;;  %v1928_v42 = vld [vmem:[#allocation20 + $0x270] sm:$0xff] }
 0x5b4   : > { %3502 = vmatpush1.bf16.msra.mxu0 %v8583_v20  ;;  %3584 = vmatpush1.bf16.msra.mxu1 %v8585_v21  ;;  %vm1840_vm7 = vcmp.gt.f32.partialorder %v1836_v25, 0.0  ;;  %v1844_v61 = vmul.f32 0.2, %v1836_v25  ;;  %v8388_v21 = vcombine.high %v1892_v14, %v1896_v15  ;;  %v8390_v22 = vcombine.high %v1893_v16, %v1897_v18  ;;  %v1929_v44 = vld [vmem:[#allocation20 + $0x278] sm:$0xff]  ;;  %v1936_v52 = vld [vmem:[#allocation20 + $0x2b0] sm:$0xff] }
 0x5b5   : > { %3503 = vmatprep.subr.bf16.mxu0 %v8592_v31  ;;  %3585 = vmatprep.subr.bf16.mxu1 %v8594_v23  ;;  %vm1841_vm8 = vcmp.gt.f32.partialorder %v1837_v29, 0.0  ;;  %v1845_v32 = vmul.f32 0.2, %v1837_v29  ;;  %v1900_v31 = vld [vmem:[#allocation20 + $0x190] sm:$0xff]  ;;  %v8389_v27 = vcombine.low %v1893_v16, %v1897_v18  ;;  %v1933_v56 = vld [vmem:[#allocation20 + $0x298] sm:$0xff] }
 0x5b6   : > { %v1848_v53 = vsel %vm1840_vm7, %v1836_v25, %v1844_v61  ;;  %v1904_v23 = vld [vmem:[#allocation20 + $0x1b0] sm:$0xff]  ;;  %v1905_v25 = vld [vmem:[#allocation20 + $0x1b8] sm:$0xff] }
 0x5b7   : > { %v1849_v55 = vsel %vm1841_vm8, %v1837_v29, %v1845_v32  ;;  %v10707_v38 = vpack.c.bf16 %v1848_v53, %v1848_v53  ;;  %v8396_v28 = vcombine.high %v1900_v31, %v1904_v23  ;;  %v8398_v29 = vcombine.high %v1901_v24, %v1905_v25  ;;  %v1909_v61 = vld [vmem:[#allocation20 + $0x1d8] sm:$0xff]  ;;  %v1940_v2 = vld [vmem:[#allocation20 + $0x2d0] sm:$0xff] }
 0x5b8   : > { %3504 = vmatpush1.bf16.msra.mxu0 %v8591_v36  ;;  %3586 = vmatpush1.bf16.msra.mxu1 %v8593_v48  ;;  %v10705_v59 = vpack.c.bf16 %v1849_v55, %v1849_v55  ;;  %v1908_v36 = vld [vmem:[#allocation20 + $0x1d0] sm:$0xff]  ;;  %v1913_v32 = vld [vmem:[#allocation20 + $0x1f8] sm:$0xff] }
 0x5b9   : > { %3596 = vmatprep.subr.bf16.mxu0 %v8348_v33  ;;  %3678 = vmatprep.subr.bf16.mxu1 %v8350_v35  ;;  %v1912_v48 = vld [vmem:[#allocation20 + $0x1f0] sm:$0xff]  ;;  %v8395_v33 = vcombine.low %v1900_v31, %v1904_v23  ;;  %v8397_v35 = vcombine.low %v1901_v24, %v1905_v25  ;;  %v8406_v54 = vcombine.high %v1909_v61, %v1913_v32  ;;  %v1937_v60 = vld [vmem:[#allocation20 + $0x2b8] sm:$0xff] }
 0x5ba   : > { %3505 = vmatprep.mubr.bf16.mxu0 %v10705_v59  ;;  %3587 = vmatprep.mubr.bf16.mxu1 %v10705_v59  ;;  %v8404_v53 = vcombine.high %v1908_v36, %v1912_v48  ;;  %v1916_v55 = vld [vmem:[#allocation20 + $0x210] sm:$0xff]  ;;  %v1949_v16 = vld [vmem:[#allocation20 + $0x318] sm:$0xff] }
 0x5bb   : > { %3506 = vmatmul.mubr.bf16.vlgmr.msra.gmra.mrb[4].mxu0 %v10707_v38  ;;  %3588 = vmatmul.mubr.bf16.vlgmr.msra.gmra.mrb[12].mxu1 %v10707_v38  ;;  %v1944_v3 = vld [vmem:[#allocation20 + $0x2f0] sm:$0xff]  ;;  %v1953_v18 = vld [vmem:[#allocation20 + $0x338] sm:$0xff] }
 0x5bc   : > { %3597 = vmatpush1.bf16.msra.mxu0 %v8347_v37  ;;  %3628 = vmatprep.mubr.bf16.mxu0 %v10657_v17  ;;  %v8403_v37 = vcombine.low %v1908_v36, %v1912_v48  ;;  %v1948_v14 = vld [vmem:[#allocation20 + $0x310] sm:$0xff]  ;;  %v1957_v24 = vld [vmem:[#allocation20 + $0x358] sm:$0xff] }
 0x5bd   : > { %3679 = vmatpush1.bf16.msra.mxu1 %v8349_v34  ;;  %3710 = vmatprep.mubr.bf16.mxu1 %v10657_v17  ;;  %v1885_v17 = vld [vmem:[#allocation20 + $0x118] sm:$0xff]  ;;  %v8405_v34 = vcombine.low %v1909_v61, %v1913_v32  ;;  %v1952_v15 = vld [vmem:[#allocation20 + $0x330] sm:$0xff] }
 0x5be   : > { %3598 = vmatprep.subr.bf16.mxu0 %v8356_v39  ;;  %3680 = vmatprep.subr.bf16.mxu1 %v8358_v40  ;;  %v8382_v13 = vcombine.high %v1885_v17, %v1889_v4  ;;  %v8381_v20 = vcombine.low %v1885_v17, %v1889_v4  ;;  %v8412_v39 = vcombine.high %v1916_v55, %v1920_v57  ;;  %v1941_v17 = vld [vmem:[#allocation20 + $0x2d8] sm:$0xff]  ;;  %v1956_v31 = vld [vmem:[#allocation20 + $0x350] sm:$0xff] }
 0x5bf   : > { %v8414_v40 = vcombine.high %v1917_v30, %v1921_v58  ;;  %v1945_v4 = vld [vmem:[#allocation20 + $0x2f8] sm:$0xff]  ;;  %v1960_v23 = vld [vmem:[#allocation20 + $0x370] sm:$0xff] }
 0x5c0   : > { %3599 = vmatpush1.bf16.msra.mxu0 %v8355_v45  ;;  %v8411_v45 = vcombine.low %v1916_v55, %v1920_v57  ;;  %v1961_v25 = vld [vmem:[#allocation20 + $0x378] sm:$0xff]  ;;  %v1964_v36 = vld [vmem:[#allocation20 + $0x390] sm:$0xff] }
 0x5c1   : > { %3681 = vmatpush1.bf16.msra.mxu1 %v8357_v46  ;;  %3600 = vmatprep.subr.bf16.mxu0 %v8364_v49  ;;  %v8413_v46 = vcombine.low %v1917_v30, %v1921_v58  ;;  %v8420_v49 = vcombine.high %v1924_v41, %v1928_v42  ;;  %v1968_v48 = vld [vmem:[#allocation20 + $0x3b0] sm:$0xff]  ;;  %v1965_v61 = vld [vmem:[#allocation20 + $0x398] sm:$0xff] }
 0x5c2   : > { %3682 = vmatprep.subr.bf16.mxu1 %v8366_v50  ;;  %v8422_v50 = vcombine.high %v1925_v43, %v1929_v44  ;;  %v1969_v32 = vld [vmem:[#allocation20 + $0x3b8] sm:$0xff]  ;;  %v1972_v55 = vld [vmem:[#allocation20 + $0x3d0] sm:$0xff] }
 0x5c3   : > { %v1976_v57 = vld [vmem:[#allocation20 + $0x3f0] sm:$0xff]  ;;  %v1973_v30 = vld [vmem:[#allocation20 + $0x3d8] sm:$0xff] }
 0x5c4   : > { %3601 = vmatpush1.bf16.msra.mxu0 %v8363_v62  ;;  %v8419_v62 = vcombine.low %v1924_v41, %v1928_v42  ;;  %v1977_v58 = vld [vmem:[#allocation20 + $0x3f8] sm:$0xff]  ;;  %v1980_v41 = vld [vmem:[#allocation20 + $0x410] sm:$0xff] }
 0x5c5   : > { %3683 = vmatpush1.bf16.msra.mxu1 %v8365_v63  ;;  %3602 = vmatprep.subr.bf16.mxu0 %v8372_v0  ;;  %v8421_v63 = vcombine.low %v1925_v43, %v1929_v44  ;;  %v8428_v0 = vcombine.high %v1932_v51, %v1936_v52  ;;  %v1984_v42 = vld [vmem:[#allocation20 + $0x430] sm:$0xff]  ;;  %v1981_v43 = vld [vmem:[#allocation20 + $0x418] sm:$0xff] }
 0x5c6   : > { %3684 = vmatprep.subr.bf16.mxu1 %v8374_v1  ;;  %v8430_v1 = vcombine.high %v1933_v56, %v1937_v60  ;;  %v1985_v44 = vld [vmem:[#allocation20 + $0x438] sm:$0xff] }
 0x5c8   : > { %3603 = vmatpush1.bf16.msra.mxu0 %v8371_v5  ;;  %v8427_v5 = vcombine.low %v1932_v51, %v1936_v52  ;;  %v1988_v51 = vld [vmem:[#allocation20 + $0x450] sm:$0xff] }
 0x5c9   : > { %3685 = vmatpush1.bf16.msra.mxu1 %v8373_v9  ;;  %3604 = vmatprep.subr.bf16.mxu0 %v8380_v11  ;;  %v8429_v9 = vcombine.low %v1933_v56, %v1937_v60  ;;  %v8436_v11 = vcombine.high %v1940_v2, %v1944_v3  ;;  %v1992_v52 = vld [vmem:[#allocation20 + $0x470] sm:$0xff]  ;;  %v8475_v56 = vcombine.low %v1980_v41, %v1984_v42  ;;  %v1989_v60 = vld [vmem:[#allocation20 + $0x458] sm:$0xff] }
 0x5ca   : > { %3686 = vmatprep.subr.bf16.mxu1 %v8382_v13  ;;  %v8438_v13 = vcombine.high %v1941_v17, %v1945_v4 }
 0x5cc   : > { %3605 = vmatpush1.bf16.msra.mxu0 %v8379_v47  ;;  %v8435_v47 = vcombine.low %v1940_v2, %v1944_v3  ;;  %v2000_v2 = vld [vmem:[#allocation20 + $0x4b0] sm:$0xff] }
 0x5cd   : > { %3687 = vmatpush1.bf16.msra.mxu1 %v8381_v20  ;;  %3606 = vmatprep.subr.bf16.mxu0 %v8388_v21  ;;  %v8437_v20 = vcombine.low %v1941_v17, %v1945_v4  ;;  %v8444_v21 = vcombine.high %v1948_v14, %v1952_v15  ;;  %v1997_v17 = vld [vmem:[#allocation20 + $0x498] sm:$0xff] }
 0x5ce   : > { %3688 = vmatprep.subr.bf16.mxu1 %v8390_v22  ;;  %v8446_v22 = vcombine.high %v1949_v16, %v1953_v18  ;;  %v2001_v4 = vld [vmem:[#allocation20 + $0x4b8] sm:$0xff] }
 0x5d0   : > { %3607 = vmatpush1.bf16.msra.mxu0 %v8387_v26  ;;  %v8443_v26 = vcombine.low %v1948_v14, %v1952_v15  ;;  %v2004_v14 = vld [vmem:[#allocation20 + $0x4d0] sm:$0xff] }
 0x5d1   : > { %3689 = vmatpush1.bf16.msra.mxu1 %v8389_v27  ;;  %3608 = vmatprep.subr.bf16.mxu0 %v8396_v28  ;;  %v8445_v27 = vcombine.low %v1949_v16, %v1953_v18  ;;  %v8452_v28 = vcombine.high %v1956_v31, %v1960_v23  ;;  %v2008_v15 = vld [vmem:[#allocation20 + $0x4f0] sm:$0xff]  ;;  %v2005_v16 = vld [vmem:[#allocation20 + $0x4d8] sm:$0xff] }
 0x5d2   : > { %3690 = vmatprep.subr.bf16.mxu1 %v8398_v29  ;;  %v8454_v29 = vcombine.high %v1957_v24, %v1961_v25  ;;  %v2009_v18 = vld [vmem:[#allocation20 + $0x4f8] sm:$0xff] }
 0x5d4   : > { %3609 = vmatpush1.bf16.msra.mxu0 %v8395_v33  ;;  %v8451_v33 = vcombine.low %v1956_v31, %v1960_v23  ;;  %v2016_v31 = vld [vmem:[#allocation20 + $0x530] sm:$0xff]  ;;  %v2013_v23 = vld [vmem:[#allocation20 + $0x518] sm:$0xff] }
 0x5d5   : > { %3691 = vmatpush1.bf16.msra.mxu1 %v8397_v35  ;;  %3610 = vmatprep.subr.bf16.mxu0 %v8404_v53  ;;  %v8453_v35 = vcombine.low %v1957_v24, %v1961_v25  ;;  %v8460_v53 = vcombine.high %v1964_v36, %v1968_v48  ;;  %v2017_v24 = vld [vmem:[#allocation20 + $0x538] sm:$0xff]  ;;  %v8501_v25 = vcombine.low %v2005_v16, %v2009_v18 }
 0x5d6   : > { %3692 = vmatprep.subr.bf16.mxu1 %v8406_v54  ;;  %v8462_v54 = vcombine.high %v1965_v61, %v1969_v32 }
 0x5d8   : > { %3611 = vmatpush1.bf16.msra.mxu0 %v8403_v37  ;;  %v8459_v37 = vcombine.low %v1964_v36, %v1968_v48  ;;  %v2021_v36 = vld [vmem:[#allocation20 + $0x558] sm:$0xff] }
 0x5d9   : > { %3693 = vmatpush1.bf16.msra.mxu1 %v8405_v34  ;;  %3612 = vmatprep.subr.bf16.mxu0 %v8412_v39  ;;  %v8461_v34 = vcombine.low %v1965_v61, %v1969_v32  ;;  %v8468_v39 = vcombine.high %v1972_v55, %v1976_v57  ;;  %v2025_v48 = vld [vmem:[#allocation20 + $0x578] sm:$0xff]  ;;  %v8509_v32 = vcombine.low %v2013_v23, %v2017_v24 }
 0x5da   : > { %3694 = vmatprep.subr.bf16.mxu1 %v8414_v40  ;;  %v8470_v40 = vcombine.high %v1973_v30, %v1977_v58 }
 0x5dc   : > { %3613 = vmatpush1.bf16.msra.mxu0 %v8411_v45  ;;  %v8467_v45 = vcombine.low %v1972_v55, %v1976_v57  ;;  %v2029_v55 = vld [vmem:[#allocation20 + $0x598] sm:$0xff] }
 0x5dd   : > { %3695 = vmatpush1.bf16.msra.mxu1 %v8413_v46  ;;  %3614 = vmatprep.subr.bf16.mxu0 %v8420_v49  ;;  %v8469_v46 = vcombine.low %v1973_v30, %v1977_v58  ;;  %v8476_v49 = vcombine.high %v1980_v41, %v1984_v42  ;;  %v2033_v57 = vld [vmem:[#allocation20 + $0x5b8] sm:$0xff]  ;;  %v8517_v58 = vcombine.low %v2021_v36, %v2025_v48 }
 0x5de   : > { %3696 = vmatprep.subr.bf16.mxu1 %v8422_v50  ;;  %v8478_v50 = vcombine.high %v1981_v43, %v1985_v44  ;;  %v2037_v41 = vld [vmem:[#allocation20 + $0x5d8] sm:$0xff] }
 0x5df   : > { %v2041_v42 = vld [vmem:[#allocation20 + $0x5f8] sm:$0xff] }
 0x5e0   : > { %3615 = vmatpush1.bf16.msra.mxu0 %v8419_v62  ;;  %v1993_v62 = vld [vmem:[#allocation20 + $0x478] sm:$0xff] }
 0x5e1   : > { %3697 = vmatpush1.bf16.msra.mxu1 %v8421_v63  ;;  %3616 = vmatprep.subr.bf16.mxu0 %v8428_v0  ;;  %v8477_v63 = vcombine.low %v1981_v43, %v1985_v44  ;;  %v8484_v0 = vcombine.high %v1988_v51, %v1992_v52  ;;  %v8486_v3 = vcombine.high %v1989_v60, %v1993_v62 }
 0x5e2   : > { %3698 = vmatprep.subr.bf16.mxu1 %v8430_v1  ;;  %v1996_v1 = vld [vmem:[#allocation20 + $0x490] sm:$0xff]  ;;  %v8525_v44 = vcombine.low %v2029_v55, %v2033_v57 }
 0x5e4   : > { %3617 = vmatpush1.bf16.msra.mxu0 %v8427_v5  ;;  %v8483_v5 = vcombine.low %v1988_v51, %v1992_v52  ;;  %v2045_v51 = vld [vmem:[#allocation20 + $0x618] sm:$0xff] }
 0x5e5   : > { %3699 = vmatpush1.bf16.msra.mxu1 %v8429_v9  ;;  %3618 = vmatprep.subr.bf16.mxu0 %v8436_v11  ;;  %v8485_v9 = vcombine.low %v1989_v60, %v1993_v62  ;;  %v8492_v11 = vcombine.high %v1996_v1, %v2000_v2  ;;  %v2049_v52 = vld [vmem:[#allocation20 + $0x638] sm:$0xff]  ;;  %v8533_v60 = vcombine.low %v2037_v41, %v2041_v42 }
 0x5e6   : > { %3700 = vmatprep.subr.bf16.mxu1 %v8438_v13  ;;  %v8494_v13 = vcombine.high %v1997_v17, %v2001_v4 }
 0x5e8   : > { %3619 = vmatpush1.bf16.msra.mxu0 %v8435_v47  ;;  %v8491_v47 = vcombine.low %v1996_v1, %v2000_v2  ;;  %v2056_v1 = vld [vmem:[#allocation20 + $0x670] sm:$0xff]  ;;  %v2053_v2 = vld [vmem:[#allocation20 + $0x658] sm:$0xff] }
 0x5e9   : > { %3701 = vmatpush1.bf16.msra.mxu1 %v8437_v20  ;;  %3620 = vmatprep.subr.bf16.mxu0 %v8444_v21  ;;  %v8500_v20 = vcombine.high %v2004_v14, %v2008_v15  ;;  %v8502_v21 = vcombine.high %v2005_v16, %v2009_v18 }
 0x5ea   : > { %3702 = vmatprep.subr.bf16.mxu1 %v8446_v22  ;;  %v2012_v22 = vld [vmem:[#allocation20 + $0x510] sm:$0xff] }
 0x5eb   : > { %v8507_v61 = vcombine.low %v2012_v22, %v2016_v31 }
 0x5ec   : > { %3621 = vmatpush1.bf16.msra.mxu0 %v8443_v26  ;;  %v8508_v26 = vcombine.high %v2012_v22, %v2016_v31  ;;  %v2069_v22 = vld [vmem:[#allocation20 + $0x6d8] sm:$0xff] }
 0x5ed   : > { %3703 = vmatpush1.bf16.msra.mxu1 %v8445_v27  ;;  %3622 = vmatprep.subr.bf16.mxu0 %v8452_v28  ;;  %v8510_v27 = vcombine.high %v2013_v23, %v2017_v24  ;;  %v2020_v28 = vld [vmem:[#allocation20 + $0x550] sm:$0xff]  ;;  %v2073_v31 = vld [vmem:[#allocation20 + $0x6f8] sm:$0xff] }
 0x5ee   : > { %3704 = vmatprep.subr.bf16.mxu1 %v8454_v29  ;;  %v2024_v29 = vld [vmem:[#allocation20 + $0x570] sm:$0xff] }
 0x5ef   : > { %v8515_v30 = vcombine.low %v2020_v28, %v2024_v29 }
 0x5f0   : > { %3623 = vmatpush1.bf16.msra.mxu0 %v8451_v33  ;;  %v8516_v33 = vcombine.high %v2020_v28, %v2024_v29  ;;  %v2077_v28 = vld [vmem:[#allocation20 + $0x718] sm:$0xff] }
 0x5f1   : > { %3705 = vmatpush1.bf16.msra.mxu1 %v8453_v35  ;;  %3624 = vmatprep.subr.bf16.mxu0 %v8460_v53  ;;  %v8518_v35 = vcombine.high %v2021_v36, %v2025_v48  ;;  %v2028_v53 = vld [vmem:[#allocation20 + $0x590] sm:$0xff]  ;;  %v2081_v29 = vld [vmem:[#allocation20 + $0x738] sm:$0xff]  ;;  %v8565_v48 = vcombine.low %v2069_v22, %v2073_v31 }
 0x5f2   : > { %3706 = vmatprep.subr.bf16.mxu1 %v8462_v54  ;;  %v2032_v54 = vld [vmem:[#allocation20 + $0x5b0] sm:$0xff] }
 0x5f3   : > { %v8523_v43 = vcombine.low %v2028_v53, %v2032_v54 }
 0x5f4   : > { %3625 = vmatpush1.bf16.msra.mxu0 %v8459_v37  ;;  %v8524_v37 = vcombine.high %v2028_v53, %v2032_v54  ;;  %v2085_v53 = vld [vmem:[#allocation20 + $0x758] sm:$0xff] }
 0x5f5   : > { %3707 = vmatpush1.bf16.msra.mxu1 %v8461_v34  ;;  %3626 = vmatprep.subr.bf16.mxu0 %v8468_v39  ;;  %v8526_v34 = vcombine.high %v2029_v55, %v2033_v57  ;;  %v2036_v39 = vld [vmem:[#allocation20 + $0x5d0] sm:$0xff]  ;;  %v2089_v54 = vld [vmem:[#allocation20 + $0x778] sm:$0xff]  ;;  %v8573_v57 = vcombine.low %v2077_v28, %v2081_v29 }
 0x5f6   : > { %3708 = vmatprep.subr.bf16.mxu1 %v8470_v40  ;;  %v2040_v40 = vld [vmem:[#allocation20 + $0x5f0] sm:$0xff] }
 0x5f8   : > { %3627 = vmatpush1.bf16.msra.mxu0 %v8467_v45  ;;  %v8532_v45 = vcombine.high %v2036_v39, %v2040_v40 }
 0x5f9   : > { %3709 = vmatpush1.bf16.msra.mxu1 %v8469_v46  ;;  %3637 = vmatprep.subr.bf16.mxu0 %v8476_v49  ;;  %v8534_v46 = vcombine.high %v2037_v41, %v2041_v42  ;;  %v2044_v49 = vld [vmem:[#allocation20 + $0x610] sm:$0xff]  ;;  %v8581_v42 = vcombine.low %v2085_v53, %v2089_v54 }
 0x5fa   : > { %3719 = vmatprep.subr.bf16.mxu1 %v8478_v50  ;;  %v2048_v50 = vld [vmem:[#allocation20 + $0x630] sm:$0xff] }
 0x5fb   : > { %3629 = vmatmul.mubr.bf16.vlgmr.msra.gmra.mrb[8].mxu0 %v10661_v19  ;;  %v8540_v62 = vcombine.high %v2044_v49, %v2048_v50 }
 0x5fc   : > { %3711 = vmatmul.mubr.bf16.vlgmr.msra.gmra.mrb[16].mxu1 %v10661_v19  ;;  %3638 = vmatpush1.bf16.msra.mxu0 %v8475_v56  ;;  %v8493_v19 = vcombine.low %v1997_v17, %v2001_v4  ;;  %v8531_v56 = vcombine.low %v2036_v39, %v2040_v40  ;;  %v8539_v17 = vcombine.low %v2044_v49, %v2048_v50  ;;  %v2093_v39 = vld [vmem:[#allocation20 + $0x798] sm:$0xff] }
 0x5fd   : > { %3669 = vmatprep.mubr.bf16.mxu0 %v10705_v59  ;;  %3720 = vmatpush1.bf16.msra.mxu1 %v8477_v63  ;;  %v8542_v63 = vcombine.high %v2045_v51, %v2049_v52  ;;  %v8541_v4 = vcombine.low %v2045_v51, %v2049_v52  ;;  %v2097_v40 = vld [vmem:[#allocation20 + $0x7b8] sm:$0xff] }
 0x5fe   : > { %3751 = vmatprep.mubr.bf16.mxu1 %v10705_v59  ;;  %3639 = vmatprep.subr.bf16.mxu0 %v8484_v0  ;;  %v8499_v59 = vcombine.low %v2004_v14, %v2008_v15  ;;  %v2052_v0 = vld [vmem:[#allocation20 + $0x650] sm:$0xff]  ;;  %v2061_v14 = vld [vmem:[#allocation20 + $0x698] sm:$0xff]  ;;  %v8589_v52 = vcombine.low %v2093_v39, %v2097_v40 }
 0x5ff   : > { %3721 = vmatprep.subr.bf16.mxu1 %v8486_v3  ;;  %v2057_v3 = vld [vmem:[#allocation20 + $0x678] sm:$0xff]  ;;  %v8547_v16 = vcombine.low %v2052_v0, %v2056_v1 }
 0x600   : > { %3640 = vmatpush1.bf16.msra.mxu0 %v8483_v5  ;;  %v8548_v5 = vcombine.high %v2052_v0, %v2056_v1  ;;  %v2065_v15 = vld [vmem:[#allocation20 + $0x6b8] sm:$0xff]  ;;  %v8549_v18 = vcombine.low %v2053_v2, %v2057_v3 }
 0x601   : > { %3722 = vmatpush1.bf16.msra.mxu1 %v8485_v9  ;;  %3641 = vmatprep.subr.bf16.mxu0 %v8492_v11  ;;  %v8550_v9 = vcombine.high %v2053_v2, %v2057_v3  ;;  %v2060_v11 = vld [vmem:[#allocation20 + $0x690] sm:$0xff]  ;;  %v8557_v24 = vcombine.low %v2061_v14, %v2065_v15  ;;  %v2101_v49 = vld [vmem:[#allocation20 + $0x7d8] sm:$0xff] }
 0x602   : > { %3723 = vmatprep.subr.bf16.mxu1 %v8494_v13  ;;  %v2064_v13 = vld [vmem:[#allocation20 + $0x6b0] sm:$0xff]  ;;  %v2105_v50 = vld [vmem:[#allocation20 + $0x7f8] sm:$0xff] }
 0x603   : > { %v8555_v23 = vcombine.low %v2060_v11, %v2064_v13  ;;  %v8597_v1 = vcombine.low %v2101_v49, %v2105_v50  ;;  %v4052_v3 = vld [vmem:[%s10571_s6] sm:$0xff] }
 0x604   : > { %3642 = vmatpush1.bf16.msra.mxu0 %v8491_v47  ;;  %v8556_v47 = vcombine.high %v2060_v11, %v2064_v13 }
 0x605   : > { %3724 = vmatpush1.bf16.msra.mxu1 %v8493_v19  ;;  %3643 = vmatprep.subr.bf16.mxu0 %v8500_v20  ;;  %v8558_v19 = vcombine.high %v2061_v14, %v2065_v15  ;;  %v2068_v20 = vld [vmem:[#allocation20 + $0x6d0] sm:$0xff]  ;;  %v4072_v14 = vld [vmem:[%s10571_s6 + $0xa0] sm:$0xff]  ;;  %v4074_v15 = vld [vmem:[%s10571_s6 + $0xb0] sm:$0xff] }
 0x606   : > { %3725 = vmatprep.subr.bf16.mxu1 %v8502_v21  ;;  %v2072_v21 = vld [vmem:[#allocation20 + $0x6f0] sm:$0xff] }
 0x607   : > { %v8563_v36 = vcombine.low %v2068_v20, %v2072_v21 }
 0x608   : > { %3644 = vmatpush1.bf16.msra.mxu0 %v8499_v59  ;;  %v8564_v59 = vcombine.high %v2068_v20, %v2072_v21  ;;  %v4701_v20 = vunpack.c.l.s8.bf16 %v4074_v15  ;;  %v4073_v21 = vld [vmem:[%s10571_s6 + $0xa8] sm:$0xff] }
 0x609   : > { %3726 = vmatpush1.bf16.msra.mxu1 %v8501_v25  ;;  %3645 = vmatprep.subr.bf16.mxu0 %v8508_v26  ;;  %v8566_v25 = vcombine.high %v2069_v22, %v2073_v31  ;;  %v2076_v26 = vld [vmem:[#allocation20 + $0x710] sm:$0xff]  ;;  %v4700_v31 = vunpack.c.l.s8.bf16 %v4073_v21 }
 0x60a   : > { %3727 = vmatprep.subr.bf16.mxu1 %v8510_v27  ;;  %v2080_v27 = vld [vmem:[#allocation20 + $0x730] sm:$0xff] }
 0x60b   : > { %v8571_v55 = vcombine.low %v2076_v26, %v2080_v27 }
 0x60c   : > { %3646 = vmatpush1.bf16.msra.mxu0 %v8507_v61  ;;  %v8572_v61 = vcombine.high %v2076_v26, %v2080_v27  ;;  %v4719_v26 = vunpack.c.h.s8.bf16 %v4073_v21 }
 0x60d   : > { %3728 = vmatpush1.bf16.msra.mxu1 %v8509_v32  ;;  %3647 = vmatprep.subr.bf16.mxu0 %v8516_v33  ;;  %v8574_v32 = vcombine.high %v2077_v28, %v2081_v29  ;;  %v2084_v33 = vld [vmem:[#allocation20 + $0x750] sm:$0xff]  ;;  %v4090_v28 = vld [vmem:[%s10571_s6 + $0x130] sm:$0xff] }
 0x60e   : > { %3729 = vmatprep.subr.bf16.mxu1 %v8518_v35  ;;  %v2088_v35 = vld [vmem:[#allocation20 + $0x770] sm:$0xff] }
 0x60f   : > { %v8579_v41 = vcombine.low %v2084_v33, %v2088_v35 }
 0x610   : > { %3648 = vmatpush1.bf16.msra.mxu0 %v8515_v30  ;;  %v8580_v30 = vcombine.high %v2084_v33, %v2088_v35  ;;  %v4110_v35 = vld [vmem:[%s10571_s6 + $0x1d0] sm:$0xff] }
 0x611   : > { %3730 = vmatpush1.bf16.msra.mxu1 %v8517_v58  ;;  %3649 = vmatprep.subr.bf16.mxu0 %v8524_v37  ;;  %v8582_v58 = vcombine.high %v2085_v53, %v2089_v54  ;;  %v2092_v37 = vld [vmem:[#allocation20 + $0x790] sm:$0xff]  ;;  %v4112_v53 = vld [vmem:[%s10571_s6 + $0x1e0] sm:$0xff]  ;;  %v4755_v54 = vunpack.c.h.s8.bf16 %v4090_v28 }
 0x612   : > { %3731 = vmatprep.subr.bf16.mxu1 %v8526_v34  ;;  %v2096_v34 = vld [vmem:[#allocation20 + $0x7b0] sm:$0xff] }
 0x613   : > { %v8587_v51 = vcombine.low %v2092_v37, %v2096_v34 }
 0x614   : > { %3650 = vmatpush1.bf16.msra.mxu0 %v8523_v43  ;;  %v8588_v43 = vcombine.high %v2092_v37, %v2096_v34  ;;  %v4111_v37 = vld [vmem:[%s10571_s6 + $0x1d8] sm:$0xff] }
 0x615   : > { %3732 = vmatpush1.bf16.msra.mxu1 %v8525_v44  ;;  %3651 = vmatprep.subr.bf16.mxu0 %v8532_v45  ;;  %v8590_v44 = vcombine.high %v2093_v39, %v2097_v40  ;;  %v2100_v45 = vld [vmem:[#allocation20 + $0x7d0] sm:$0xff]  ;;  %v4776_v39 = vunpack.c.l.s8.bf16 %v4111_v37  ;;  %v4794_v40 = vunpack.c.h.s8.bf16 %v4110_v35 }
 0x616   : > { %3733 = vmatprep.subr.bf16.mxu1 %v8534_v46  ;;  %v2104_v46 = vld [vmem:[#allocation20 + $0x7f0] sm:$0xff] }
 0x617   : > { %v8595_v0 = vcombine.low %v2100_v45, %v2104_v46 }
 0x618   : > { %3652 = vmatpush1.bf16.msra.mxu0 %v8531_v56  ;;  %v8596_v56 = vcombine.high %v2100_v45, %v2104_v46  ;;  %v4795_v45 = vunpack.c.h.s8.bf16 %v4111_v37  ;;  %v10761_v37 = vld [vmem:[#allocation22] sm:$0xff] }
 0x619   : > { %3734 = vmatpush1.bf16.msra.mxu1 %v8533_v60  ;;  %3653 = vmatprep.subr.bf16.mxu0 %v8540_v62  ;;  %v8598_v60 = vcombine.high %v2101_v49, %v2105_v50  ;;  %v4053_v62 = vld [vmem:[%s10571_s6 + $0x8] sm:$0xff]  ;;  %v4128_v49 = vld [vmem:[%s10571_s6 + $0x260] sm:$0xff] }
 0x61a   : > { %3735 = vmatprep.subr.bf16.mxu1 %v8542_v63  ;;  %v4055_v63 = vld [vmem:[%s10571_s6 + $0x18] sm:$0xff]  ;;  %v4661_v2 = vunpack.c.l.s8.bf16 %v4053_v62  ;;  %v4680_v11 = vunpack.c.h.s8.bf16 %v4053_v62 }
 0x61b   : > { %v4682_v13 = vunpack.c.h.s8.bf16 %v4055_v63 }
 0x61c   : > { %3654 = vmatpush1.bf16.msra.mxu0 %v8539_v17  ;;  %v4663_v17 = vunpack.c.l.s8.bf16 %v4055_v63  ;;  %v4148_v63 = vld [vmem:[%s10571_s6 + $0x300] sm:$0xff] }
 0x61d   : > { %3736 = vmatpush1.bf16.msra.mxu1 %v8541_v4  ;;  %3655 = vmatprep.subr.bf16.mxu0 %v8548_v5  ;;  %v4054_v4 = vld [vmem:[%s10571_s6 + $0x10] sm:$0xff]  ;;  %v4660_v5 = vunpack.c.l.s8.bf16 %v4052_v3 }
 0x61e   : > { %3737 = vmatprep.subr.bf16.mxu1 %v8550_v9  ;;  %v4662_v9 = vunpack.c.l.s8.bf16 %v4054_v4 }
 0x620   : > { %3656 = vmatpush1.bf16.msra.mxu0 %v8547_v16  ;;  %v4679_v16 = vunpack.c.h.s8.bf16 %v4052_v3  ;;  %v4851_v3 = vunpack.c.l.s8.bf16 %v4148_v63 }
 0x621   : > { %3738 = vmatpush1.bf16.msra.mxu1 %v8549_v18  ;;  %3657 = vmatprep.subr.bf16.mxu0 %v8556_v47  ;;  %v4681_v18 = vunpack.c.h.s8.bf16 %v4054_v4  ;;  %v4699_v47 = vunpack.c.l.s8.bf16 %v4072_v14 }
 0x622   : > { %3739 = vmatprep.subr.bf16.mxu1 %v8558_v19  ;;  %v4071_v19 = vld [vmem:[%s10571_s6 + $0x98] sm:$0xff] }
 0x623   : > { %v4698_v22 = vunpack.c.l.s8.bf16 %v4071_v19 }
 0x624   : > { %3658 = vmatpush1.bf16.msra.mxu0 %v8555_v23  ;;  %v4720_v23 = vunpack.c.h.s8.bf16 %v4074_v15  ;;  %v4167_v15 = vld [vmem:[%s10571_s6 + $0x398] sm:$0xff] }
 0x625   : > { %3740 = vmatpush1.bf16.msra.mxu1 %v8557_v24  ;;  %3659 = vmatprep.subr.bf16.mxu0 %v8564_v59  ;;  %v4091_v24 = vld [vmem:[%s10571_s6 + $0x138] sm:$0xff]  ;;  %v4093_v59 = vld [vmem:[%s10571_s6 + $0x148] sm:$0xff] }
 0x626   : > { %3741 = vmatprep.subr.bf16.mxu1 %v8566_v25  ;;  %v4717_v25 = vunpack.c.h.s8.bf16 %v4071_v19  ;;  %v4737_v27 = vunpack.c.l.s8.bf16 %v4091_v24  ;;  %v4739_v29 = vunpack.c.l.s8.bf16 %v4093_v59  ;;  %v4758_v33 = vunpack.c.h.s8.bf16 %v4093_v59  ;;  %v4186_v59 = vld [vmem:[%s10571_s6 + $0x430] sm:$0xff] }
 0x627   : > { %v4889_v19 = vunpack.c.l.s8.bf16 %v4167_v15 }
 0x628   : > { %3660 = vmatpush1.bf16.msra.mxu0 %v8563_v36  ;;  %v4092_v36 = vld [vmem:[%s10571_s6 + $0x140] sm:$0xff] }
 0x629   : > { %3742 = vmatpush1.bf16.msra.mxu1 %v8565_v48  ;;  %3661 = vmatprep.subr.bf16.mxu0 %v8572_v61  ;;  %v4736_v48 = vunpack.c.l.s8.bf16 %v4090_v28  ;;  %v4738_v61 = vunpack.c.l.s8.bf16 %v4092_v36  ;;  %v4927_v28 = vunpack.c.l.s8.bf16 %v4186_v59 }
 0x62a   : > { %3743 = vmatprep.subr.bf16.mxu1 %v8574_v32  ;;  %v4756_v32 = vunpack.c.h.s8.bf16 %v4091_v24 }
 0x62c   : > { %3662 = vmatpush1.bf16.msra.mxu0 %v8571_v55  ;;  %v4757_v55 = vunpack.c.h.s8.bf16 %v4092_v36 }
 0x62d   : > { %3744 = vmatpush1.bf16.msra.mxu1 %v8573_v57  ;;  %3663 = vmatprep.subr.bf16.mxu0 %v8580_v30  ;;  %v4775_v57 = vunpack.c.l.s8.bf16 %v4110_v35  ;;  %v4109_v30 = vld [vmem:[%s10571_s6 + $0x1c8] sm:$0xff] }
 0x62e   : > { %3745 = vmatprep.subr.bf16.mxu1 %v8582_v58  ;;  %v4777_v58 = vunpack.c.l.s8.bf16 %v4112_v53  ;;  %v4774_v34 = vunpack.c.l.s8.bf16 %v4109_v30 }
 0x630   : > { %3664 = vmatpush1.bf16.msra.mxu0 %v8579_v41  ;;  %v4796_v41 = vunpack.c.h.s8.bf16 %v4112_v53  ;;  %v10754_v53 = vld [vmem:[%s10571_s6 + $0x4c8] sm:$0xff] }
 0x631   : > { %3746 = vmatpush1.bf16.msra.mxu1 %v8581_v42  ;;  %3665 = vmatprep.subr.bf16.mxu0 %v8588_v43  ;;  %v4129_v42 = vld [vmem:[%s10571_s6 + $0x268] sm:$0xff]  ;;  %v4131_v43 = vld [vmem:[%s10571_s6 + $0x278] sm:$0xff] }
 0x632   : > { %3747 = vmatprep.subr.bf16.mxu1 %v8590_v44  ;;  %v4793_v44 = vunpack.c.h.s8.bf16 %v4109_v30  ;;  %v4813_v46 = vunpack.c.l.s8.bf16 %v4129_v42  ;;  %v4815_v50 = vunpack.c.l.s8.bf16 %v4131_v43  ;;  %v4834_v62 = vunpack.c.h.s8.bf16 %v4131_v43 }
 0x633   : > { %v4965_v30 = vunpack.c.l.s8.bf16 %v10754_v53 }
 0x634   : > { %3666 = vmatpush1.bf16.msra.mxu0 %v8587_v51  ;;  %v4130_v51 = vld [vmem:[%s10571_s6 + $0x270] sm:$0xff] }
 0x635   : > { %3748 = vmatpush1.bf16.msra.mxu1 %v8589_v52  ;;  %3667 = vmatprep.subr.bf16.mxu0 %v8596_v56  ;;  %v4812_v52 = vunpack.c.l.s8.bf16 %v4128_v49  ;;  %v4814_v56 = vunpack.c.l.s8.bf16 %v4130_v51 }
 0x636   : > { %3749 = vmatprep.subr.bf16.mxu1 %v8598_v60  ;;  %v4832_v60 = vunpack.c.h.s8.bf16 %v4129_v42 }
 0x638   : > { %3668 = vmatpush1.bf16.msra.mxu0 %v8595_v0  ;;  %v4150_v0 = vld [vmem:[%s10571_s6 + $0x310] sm:$0xff] }
 0x639   : > { %3750 = vmatpush1.bf16.msra.mxu1 %v8597_v1  ;;  %5884 = vmatprep.subr.bf16.mxu0 %v4661_v2  ;;  %v4831_v1 = vunpack.c.h.s8.bf16 %v4128_v49  ;;  %v4833_v2 = vunpack.c.h.s8.bf16 %v4130_v51  ;;  %v4853_v4 = vunpack.c.l.s8.bf16 %v4150_v0 }
 0x63a   : > { %6048 = vmatprep.subr.bf16.mxu1 %v4663_v17  ;;  %v4147_v17 = vld [vmem:[%s10571_s6 + $0x2f8] sm:$0xff] }
 0x63b   : > { %3670 = vmatmul.mubr.bf16.vlgmr.msra.gmra.mrb[8].mxu0 %v10707_v38 }
 0x63c   : > { %3752 = vmatmul.mubr.bf16.vlgmr.msra.gmra.mrb[16].mxu1 %v10707_v38  ;;  %5885 = vmatpush1.bf16.msra.mxu0 %v4660_v5  ;;  %v4718_v38 = vunpack.c.h.s8.bf16 %v4072_v14  ;;  %v4149_v5 = vld [vmem:[%s10571_s6 + $0x308] sm:$0xff]  ;;  %v4872_v14 = vunpack.c.h.s8.bf16 %v4150_v0 }
 0x63d   : > { %6049 = vmatpush1.bf16.msra.mxu1 %v4662_v9  ;;  %5886 = vmatprep.subr.bf16.mxu0 %v4680_v11  ;;  %v4850_v9 = vunpack.c.l.s8.bf16 %v4147_v17  ;;  %v4852_v11 = vunpack.c.l.s8.bf16 %v4149_v5 }
 0x63e   : > { %6050 = vmatprep.subr.bf16.mxu1 %v4682_v13  ;;  %v4870_v13 = vunpack.c.h.s8.bf16 %v4148_v63 }
 0x640   : > { %5887 = vmatpush1.bf16.msra.mxu0 %v4679_v16  ;;  %v4169_v16 = vld [vmem:[%s10571_s6 + $0x3a8] sm:$0xff] }
 0x641   : > { %6051 = vmatpush1.bf16.msra.mxu1 %v4681_v18  ;;  %5888 = vmatprep.subr.bf16.mxu0 %v4699_v47  ;;  %v4869_v18 = vunpack.c.h.s8.bf16 %v4147_v17  ;;  %v4871_v47 = vunpack.c.h.s8.bf16 %v4149_v5  ;;  %v4891_v21 = vunpack.c.l.s8.bf16 %v4169_v16  ;;  %v4910_v24 = vunpack.c.h.s8.bf16 %v4169_v16 }
 0x642   : > { %6052 = vmatprep.subr.bf16.mxu1 %v4701_v20  ;;  %v4166_v20 = vld [vmem:[%s10571_s6 + $0x390] sm:$0xff] }
 0x644   : > { %5889 = vmatpush1.bf16.msra.mxu0 %v4698_v22  ;;  %v4168_v22 = vld [vmem:[%s10571_s6 + $0x3a0] sm:$0xff] }
 0x645   : > { %6053 = vmatpush1.bf16.msra.mxu1 %v4700_v31  ;;  %5890 = vmatprep.subr.bf16.mxu0 %v4718_v38  ;;  %v4888_v31 = vunpack.c.l.s8.bf16 %v4166_v20  ;;  %v4890_v38 = vunpack.c.l.s8.bf16 %v4168_v22 }
 0x646   : > { %6054 = vmatprep.subr.bf16.mxu1 %v4720_v23  ;;  %v4908_v23 = vunpack.c.h.s8.bf16 %v4167_v15 }
 0x648   : > { %5891 = vmatpush1.bf16.msra.mxu0 %v4717_v25  ;;  %v4188_v25 = vld [vmem:[%s10571_s6 + $0x440] sm:$0xff] }
 0x649   : > { %6055 = vmatpush1.bf16.msra.mxu1 %v4719_v26  ;;  %5892 = vmatprep.subr.bf16.mxu0 %v4737_v27  ;;  %v4907_v26 = vunpack.c.h.s8.bf16 %v4166_v20  ;;  %v4909_v27 = vunpack.c.h.s8.bf16 %v4168_v22  ;;  %v4929_v36 = vunpack.c.l.s8.bf16 %v4188_v25  ;;  %v4948_v35 = vunpack.c.h.s8.bf16 %v4188_v25 }
 0x64a   : > { %6056 = vmatprep.subr.bf16.mxu1 %v4739_v29  ;;  %v4185_v29 = vld [vmem:[%s10571_s6 + $0x428] sm:$0xff] }
 0x64c   : > { %5893 = vmatpush1.bf16.msra.mxu0 %v4736_v48  ;;  %v4187_v48 = vld [vmem:[%s10571_s6 + $0x438] sm:$0xff] }
 0x64d   : > { %6057 = vmatpush1.bf16.msra.mxu1 %v4738_v61  ;;  %5894 = vmatprep.subr.bf16.mxu0 %v4756_v32  ;;  %v4926_v61 = vunpack.c.l.s8.bf16 %v4185_v29  ;;  %v4928_v32 = vunpack.c.l.s8.bf16 %v4187_v48 }
 0x64e   : > { %6058 = vmatprep.subr.bf16.mxu1 %v4758_v33  ;;  %v4946_v33 = vunpack.c.h.s8.bf16 %v4186_v59 }
 0x650   : > { %5895 = vmatpush1.bf16.msra.mxu0 %v4755_v54  ;;  %v10757_v54 = vld [vmem:[%s10571_s6 + $0x4d8] sm:$0xff] }
 0x651   : > { %6059 = vmatpush1.bf16.msra.mxu1 %v4757_v55  ;;  %5896 = vmatprep.subr.bf16.mxu0 %v4775_v57  ;;  %v4945_v55 = vunpack.c.h.s8.bf16 %v4185_v29  ;;  %v4947_v57 = vunpack.c.h.s8.bf16 %v4187_v48 }
 0x652   : > { %6060 = vmatprep.subr.bf16.mxu1 %v4777_v58  ;;  %v4967_v58 = vunpack.c.l.s8.bf16 %v10757_v54 }
 0x654   : > { %5897 = vmatpush1.bf16.msra.mxu0 %v4774_v34  ;;  %v2115_v34 = vrot.slane %v10761_v37, %v10594_v8 }
 0x655   : > { %6061 = vmatpush1.bf16.msra.mxu1 %v4776_v39  ;;  %5898 = vmatprep.subr.bf16.mxu0 %v4794_v40  ;;  %v2119_v39 = vrot.slane %v10761_v37, %v10597_v10  ;;  %v2127_v40 = vrot.slane %v10761_v37, %v10655_v12 }
 0x656   : > { %6062 = vmatprep.subr.bf16.mxu1 %v4796_v41 }
 0x658   : > { %5899 = vmatpush1.bf16.msra.mxu0 %v4793_v44 }
 0x659   : > { %6063 = vmatpush1.bf16.msra.mxu1 %v4795_v45  ;;  %5900 = vmatprep.subr.bf16.mxu0 %v4813_v46 }
 0x65a   : > { %6064 = vmatprep.subr.bf16.mxu1 %v4815_v50 }
 0x65c   : > { %5901 = vmatpush1.bf16.msra.mxu0 %v4812_v52 }
 0x65d   : > { %6065 = vmatpush1.bf16.msra.mxu1 %v4814_v56  ;;  %5902 = vmatprep.subr.bf16.mxu0 %v4832_v60 }
 0x65e   : > { %6066 = vmatprep.subr.bf16.mxu1 %v4834_v62 }
 0x660   : > { %5903 = vmatpush1.bf16.msra.mxu0 %v4831_v1 }
 0x661   : > { %6067 = vmatpush1.bf16.msra.mxu1 %v4833_v2  ;;  %5904 = vmatprep.subr.bf16.mxu0 %v4851_v3 }
 0x662   : > { %6068 = vmatprep.subr.bf16.mxu1 %v4853_v4 }
 0x664   : > { %5905 = vmatpush1.bf16.msra.mxu0 %v4850_v9 }
 0x665   : > { %6069 = vmatpush1.bf16.msra.mxu1 %v4852_v11  ;;  %5906 = vmatprep.subr.bf16.mxu0 %v4870_v13 }
 0x666   : > { %6070 = vmatprep.subr.bf16.mxu1 %v4872_v14 }
 0x668   : > { %5907 = vmatpush1.bf16.msra.mxu0 %v4869_v18  ;;  %v2123_v18 = vrot.slane %v10761_v37, %v10652_v6 }
 0x669   : > { %6071 = vmatpush1.bf16.msra.mxu1 %v4871_v47  ;;  %5908 = vmatprep.subr.bf16.mxu0 %v4889_v19 }
 0x66a   : > { %6072 = vmatprep.subr.bf16.mxu1 %v4891_v21 }
 0x66c   : > { %5909 = vmatpush1.bf16.msra.mxu0 %v4888_v31 }
 0x66d   : > { %6073 = vmatpush1.bf16.msra.mxu1 %v4890_v38  ;;  %5910 = vmatprep.subr.bf16.mxu0 %v4908_v23 }
 0x66e   : > { %6074 = vmatprep.subr.bf16.mxu1 %v4910_v24 }
 0x670   : > { %5911 = vmatpush1.bf16.msra.mxu0 %v4907_v26 }
 0x671   : > { %6075 = vmatpush1.bf16.msra.mxu1 %v4909_v27  ;;  %5912 = vmatprep.subr.bf16.mxu0 %v4927_v28 }
 0x672   : > { %6076 = vmatprep.subr.bf16.mxu1 %v4929_v36 }
 0x674   : > { %5913 = vmatpush1.bf16.msra.mxu0 %v4926_v61 }
 0x675   : > { %6077 = vmatpush1.bf16.msra.mxu1 %v4928_v32  ;;  %5914 = vmatprep.subr.bf16.mxu0 %v4946_v33 }
 0x676   : > { %6078 = vmatprep.subr.bf16.mxu1 %v4948_v35 }
 0x678   : > { %5915 = vmatpush1.bf16.msra.mxu0 %v4945_v55 }
 0x679   : > { %6079 = vmatpush1.bf16.msra.mxu1 %v4947_v57  ;;  %5925 = vmatprep.subr.bf16.mxu0 %v4965_v30 }
 0x67a   : > { %6089 = vmatprep.subr.bf16.mxu1 %v4967_v58 }
 0x68e   : > { %v3507_v41 = vpop.f32.mrb[4].mxu0  ;;  %v3589_v42 = vpop.f32.mrb[12].mxu1 }
 0x68f   : > { %v8733_v43 = vadd.f32 %v3507_v41, %v2115_v34  ;;  %v3509_v44 = vpop.f32.mrb[5].mxu0  ;;  %v3591_v45 = vpop.f32.mrb[13].mxu1  ;;  %v8735_v38 = vadd.f32 %v3589_v42, %v2123_v18 }
 0x690   : > { %v8734_v46 = vadd.f32 %v3509_v44, %v2119_v39  ;;  %v8736_v49 = vadd.f32 %v3591_v45, %v2127_v40  ;;  %v3511_v50 = vpop.f32.mrb[6].mxu0  ;;  %v3593_v51 = vpop.f32.mrb[14].mxu1 }
 0x691   : > { %v3762_v52 = vsel %vm1136_vm2, %v8733_v43, 0.0  ;;  %v3512_v56 = vpop.f32.mrb[7].mxu0  ;;  %v3594_v60 = vpop.f32.mrb[15].mxu1  ;;  %v3776_v28 = vsel %vm1136_vm2, %v8735_v38, 0.0 }
 0x692   : > { %v3763_v62 = vrot.slane %v3762_v52, 4  ;;  %v3769_v63 = vsel %vm1136_vm2, %v8734_v46, 0.0  ;;  %v3783_v0 = vsel %vm1136_vm2, %v8736_v49, 0.0  ;;  %v3777_v32 = vrot.slane %v3776_v28, 4 }
 0x693   : > { %v3770_v1 = vrot.slane %v3769_v63, 4  ;;  %v3784_v2 = vrot.slane %v3783_v0, 4 }
 0x694   : > { %v3764_v3 = vadd.f32 %v3763_v62, %v3762_v52  ;;  %v3778_v40 = vadd.f32 %v3777_v32, %v3776_v28 }
 0x695   : > { %v3771_v17 = vadd.f32 %v3770_v1, %v3769_v63  ;;  %v3785_v4 = vadd.f32 %v3784_v2, %v3783_v0 }
 0x696   : > { %v3765_v5 = vrot.slane %v3764_v3, 2 }
 0x697   : > { %v3772_v9 = vrot.slane %v3771_v17, 2  ;;  %v3786_v11 = vrot.slane %v3785_v4, 2 }
 0x698   : > { %v3766_v13 = vadd.f32 %v3765_v5, %v3764_v3 }
 0x699   : > { %v3773_v14 = vadd.f32 %v3772_v9, %v3771_v17  ;;  %v3787_v15 = vadd.f32 %v3786_v11, %v3785_v4  ;;  %v10778_v9 = vld [vmem:[#allocation23] sm:$0xff]  ;;  %v10780_v11 = vld [vmem:[#allocation25] sm:$0xff] }
 0x69a   : > { %v3767_v16 = vrot.slane %v3766_v13, 1  ;;  %v3983_v18 = vrot.slane %v10780_v11, %v10594_v8 }
 0x69b   : > { %v3774_v47 = vrot.slane %v3773_v14, 1  ;;  %v3788_v19 = vrot.slane %v3787_v15, 1 }
 0x69c   : > { %v3768_v20 = vadd.f32 %v3767_v16, %v3766_v13 }
 0x69d   : > { %v3775_v21 = vadd.f32 %v3774_v47, %v3773_v14  ;;  %v3789_v22 = vadd.f32 %v3788_v19, %v3787_v15  ;;  %v3934_v14 = vrot.slane %v10778_v9, %v10594_v8  ;;  %v3938_v47 = vrot.slane %v10778_v9, %v10597_v10 }
 0x69e   : > { %v3818_v31 = vmul.f32 0.5, %v3768_v20 }
 0x69f   : > { %v3819_v23 = vmul.f32 0.5, %v3775_v21  ;;  %v3821_v24 = vmul.f32 0.5, %v3789_v22  ;;  %v3946_v21 = vrot.slane %v10778_v9, %v10655_v12 }
 0x6a0   : > { %v3826_v59 = vsub.f32 %v8733_v43, %v3818_v31 }
 0x6a1   : > { %v3827_v25 = vsub.f32 %v8734_v46, %v3819_v23  ;;  %v3829_v26 = vsub.f32 %v8736_v49, %v3821_v24  ;;  %v3779_v49 = vrot.slane %v3778_v40, 2  ;;  %v3987_v24 = vrot.slane %v10780_v11, %v10597_v10 }
 0x6a2   : > { %v3834_v27 = vmul.f32 %v3826_v59, %v3826_v59 }
 0x6a3   : > { %v3835_v29 = vmul.f32 %v3827_v25, %v3827_v25  ;;  %v3837_v36 = vmul.f32 %v3829_v26, %v3829_v26  ;;  %v3780_v63 = vadd.f32 %v3779_v49, %v3778_v40 }
 0x6a4   : > { %v3842_v48 = vsel %vm1136_vm2, %v3834_v27, 0.0  ;;  %v3995_v27 = vrot.slane %v10780_v11, %v10655_v12 }
 0x6a5   : > { %v3843_v61 = vrot.slane %v3842_v48, 4  ;;  %v3849_v33 = vsel %vm1136_vm2, %v3835_v29, 0.0  ;;  %v3863_v35 = vsel %vm1136_vm2, %v3837_v36, 0.0  ;;  %v3781_v4 = vrot.slane %v3780_v63, 1 }
 0x6a6   : > { %v3850_v55 = vrot.slane %v3849_v33, 4  ;;  %v3864_v57 = vrot.slane %v3863_v35, 4 }
 0x6a7   : > { %v3844_v30 = vadd.f32 %v3843_v61, %v3842_v48  ;;  %v3782_v5 = vadd.f32 %v3781_v4, %v3780_v63 }
 0x6a8   : > { %v3851_v58 = vadd.f32 %v3850_v55, %v3849_v33  ;;  %v3865_v34 = vadd.f32 %v3864_v57, %v3863_v35  ;;  %v4206_v35 = vld [vmem:[%s10571_s6 + $0x4d0] sm:$0xff] }
 0x6a9   : > { %v3845_v39 = vrot.slane %v3844_v30, 2  ;;  %v3820_v13 = vmul.f32 0.5, %v3782_v5  ;;  %v4966_v40 = vunpack.c.l.s8.bf16 %v4206_v35 }
 0x6aa   : > { %v3852_v41 = vrot.slane %v3851_v58, 2  ;;  %v3866_v42 = vrot.slane %v3865_v34, 2 }
 0x6ab   : > { %v3846_v43 = vadd.f32 %v3845_v39, %v3844_v30  ;;  %v10788_v20 = vsub.f32 %v8735_v38, %v3820_v13 }
 0x6ac   : > { %v3853_v44 = vadd.f32 %v3852_v41, %v3851_v58  ;;  %v3867_v45 = vadd.f32 %v3866_v42, %v3865_v34 }
 0x6ad   : > { %v3847_v46 = vrot.slane %v3846_v43, 1  ;;  %v3836_v38 = vmul.f32 %v10788_v20, %v10788_v20 }
 0x6ae   : > { %v3854_v50 = vrot.slane %v3853_v44, 1  ;;  %v3868_v51 = vrot.slane %v3867_v45, 1 }
 0x6af   : > { %v3848_v52 = vadd.f32 %v3847_v46, %v3846_v43  ;;  %v4984_v43 = vunpack.c.h.s8.bf16 %v10754_v53  ;;  %v4226_v46 = vld [vmem:[%s10571_s6 + $0x570] sm:$0xff] }
 0x6b0   : > { %v3855_v56 = vadd.f32 %v3854_v50, %v3853_v44  ;;  %v3869_v60 = vadd.f32 %v3868_v51, %v3867_v45  ;;  %v4986_v44 = vunpack.c.h.s8.bf16 %v10757_v54  ;;  %v4224_v45 = vld [vmem:[%s10571_s6 + $0x560] sm:$0xff]  ;;  %v4985_v51 = vunpack.c.h.s8.bf16 %v4206_v35 }
 0x6b1   : > { %v3898_v62 = vmul.f32 0.5, %v3848_v52  ;;  %v5003_v53 = vunpack.c.l.s8.bf16 %v4224_v45  ;;  %v5005_v54 = vunpack.c.l.s8.bf16 %v4226_v46 }
 0x6b2   : > { %v3899_v0 = vmul.f32 0.5, %v3855_v56  ;;  %v3901_v1 = vmul.f32 0.5, %v3869_v60  ;;  %v4223_v56 = vld [vmem:[%s10571_s6 + $0x558] sm:$0xff]  ;;  %v4225_v60 = vld [vmem:[%s10571_s6 + $0x568] sm:$0xff] }
 0x6b3   : > { %v3906_v2 = vadd.f32 0.8, %v3898_v62  ;;  %v5002_v62 = vunpack.c.l.s8.bf16 %v4223_v56  ;;  %v5004_v63 = vunpack.c.l.s8.bf16 %v4225_v60  ;;  %v5021_v4 = vunpack.c.h.s8.bf16 %v4223_v56 }
 0x6b4   : > { %v3907_v3 = vadd.f32 0.8, %v3899_v0  ;;  %v3909_v17 = vadd.f32 0.8, %v3901_v1  ;;  %v5022_v1 = vunpack.c.h.s8.bf16 %v4224_v45  ;;  %v5023_v5 = vunpack.c.h.s8.bf16 %v4225_v60 }
 0x6b5   : > { %9232 = vrsqrt.f32 %v3906_v2  ;;  %v5024_v2 = vunpack.c.h.s8.bf16 %v4226_v46 }
 0x6b6   : > { %9234 = vrsqrt.f32 %v3907_v3  ;;  %v4243_v3 = vld [vmem:[%s10571_s6 + $0x5f8] sm:$0xff] }
 0x6b7   : > { %9236 = vrsqrt.f32 %v3909_v17  ;;  %v4245_v17 = vld [vmem:[%s10571_s6 + $0x608] sm:$0xff] }
 0x6bf   : > { %v9233_v15 = vpop.eup %9232 }
 0x6c0   : > { %v3922_v16 = vmul.f32 %v9233_v15, %v3826_v59  ;;  %v9235_v19 = vpop.eup %9234  ;;  %v5043_v15 = vunpack.c.l.s8.bf16 %v4245_v17 }
 0x6c1   : > { %v9237_v22 = vpop.eup %9236  ;;  %v3923_v23 = vmul.f32 %v9235_v19, %v3827_v25  ;;  %v4204_v25 = vld [vmem:[%s10571_s6 + $0x4c0] sm:$0xff] }
 0x6c2   : > { %v3971_v31 = vmul.f32 %v3934_v14, %v3922_v16  ;;  %v3925_v59 = vmul.f32 %v9237_v22, %v3829_v26  ;;  %v3856_v26 = vsel %vm1136_vm2, %v3836_v38, 0.0  ;;  %v4964_v39 = vunpack.c.l.s8.bf16 %v4204_v25  ;;  %v4242_v16 = vld [vmem:[%s10571_s6 + $0x5f0] sm:$0xff] }
 0x6c3   : > { %v3972_v29 = vmul.f32 %v3938_v47, %v3923_v23  ;;  %v3857_v42 = vrot.slane %v3856_v26, 4  ;;  %v4983_v50 = vunpack.c.h.s8.bf16 %v4204_v25  ;;  %v5041_v14 = vunpack.c.l.s8.bf16 %v4243_v3  ;;  %v4262_v23 = vld [vmem:[%s10571_s6 + $0x690] sm:$0xff] }
 0x6c4   : > { %v4020_v28 = vadd.f32 %v3983_v18, %v3971_v31  ;;  %v3974_v36 = vmul.f32 %v3946_v21, %v3925_v59  ;;  %v4244_v18 = vld [vmem:[%s10571_s6 + $0x600] sm:$0xff]  ;;  %v5040_v47 = vunpack.c.l.s8.bf16 %v4242_v16  ;;  %v5060_v22 = vunpack.c.h.s8.bf16 %v4243_v3 }
 0x6c5   : > { %v4021_v61 = vadd.f32 %v3987_v24, %v3972_v29  ;;  %v3858_v52 = vadd.f32 %v3857_v42, %v3856_v26  ;;  %v5042_v19 = vunpack.c.l.s8.bf16 %v4244_v18  ;;  %v5062_v31 = vunpack.c.h.s8.bf16 %v4245_v17  ;;  %v4264_v24 = vld [vmem:[%s10571_s6 + $0x6a0] sm:$0xff]  ;;  %v4283_v26 = vld [vmem:[%s10571_s6 + $0x738] sm:$0xff] }
 0x6c6   : > { %vm4028_vm9 = vcmp.gt.f32.partialorder %v4020_v28, 0.0  ;;  %v4036_v48 = vmul.f32 0.2, %v4020_v28  ;;  %v4023_v32 = vadd.f32 %v3995_v27, %v3974_v36  ;;  %v5059_v59 = vunpack.c.h.s8.bf16 %v4242_v16  ;;  %v4261_v36 = vld [vmem:[%s10571_s6 + $0x688] sm:$0xff]  ;;  %v4280_v42 = vld [vmem:[%s10571_s6 + $0x720] sm:$0xff]  ;;  %v4319_v17 = vld [vmem:[%s10571_s6 + $0x858] sm:$0xff] }
 0x6c7   : > { %vm4029_vm10 = vcmp.gt.f32.partialorder %v4021_v61, 0.0  ;;  %v4037_v33 = vmul.f32 0.2, %v4021_v61  ;;  %v3859_v0 = vrot.slane %v3858_v52, 2  ;;  %v5061_v27 = vunpack.c.h.s8.bf16 %v4244_v18  ;;  %v4318_v18 = vld [vmem:[%s10571_s6 + $0x850] sm:$0xff] }
 0x6c8   : > { %v4044_v55 = vsel %vm4028_vm9, %v4020_v28, %v4036_v48  ;;  %vm4031_vm11 = vcmp.gt.f32.partialorder %v4023_v32, 0.0  ;;  %v4039_v57 = vmul.f32 0.2, %v4023_v32  ;;  %v5079_v29 = vunpack.c.l.s8.bf16 %v4262_v23  ;;  %v4263_v48 = vld [vmem:[%s10571_s6 + $0x698] sm:$0xff] }
 0x6c9   : > { %v4045_v30 = vsel %vm4029_vm10, %v4021_v61, %v4037_v33  ;;  %v10803_v41 = vpack.c.bf16 %v4044_v55, %v4044_v55  ;;  %v3860_v13 = vadd.f32 %v3859_v0, %v3858_v52  ;;  %v5081_v38 = vunpack.c.l.s8.bf16 %v4264_v24  ;;  %v4281_v55 = vld [vmem:[%s10571_s6 + $0x728] sm:$0xff]  ;;  %v4302_v52 = vld [vmem:[%s10571_s6 + $0x7d0] sm:$0xff] }
 0x6ca   : > { %v10801_v58 = vpack.c.bf16 %v4045_v30, %v4045_v30  ;;  %v4047_v34 = vsel %vm4031_vm11, %v4023_v32, %v4039_v57  ;;  %v5078_v61 = vunpack.c.l.s8.bf16 %v4261_v36  ;;  %v5080_v32 = vunpack.c.l.s8.bf16 %v4263_v48 }
 0x6cb   : > { %v10811_v49 = vpack.c.bf16 %v4047_v34, %v4047_v34  ;;  %v3861_v21 = vrot.slane %v3860_v13, 1  ;;  %v5098_v25 = vunpack.c.h.s8.bf16 %v4262_v23  ;;  %v5100_v35 = vunpack.c.h.s8.bf16 %v4264_v24 }
 0x6cc   : > { %5916 = vmatprep.mubr.bf16.mxu0 %v10801_v58  ;;  %6080 = vmatprep.mubr.bf16.mxu1 %v10801_v58  ;;  %v5097_v57 = vunpack.c.h.s8.bf16 %v4261_v36  ;;  %v5099_v30 = vunpack.c.h.s8.bf16 %v4263_v48  ;;  %v5136_v46 = vunpack.c.h.s8.bf16 %v4281_v55  ;;  %v5157_v60 = vunpack.c.l.s8.bf16 %v4302_v52 }
 0x6cd   : > { %5917 = vmatmul.mubr.bf16.vlgmr.msra.gmra.mrb[12].mxu0 %v10803_v41  ;;  %6081 = vmatmul.mubr.bf16.vlgmr.msra.gmra.mrb[20].mxu1 %v10803_v41  ;;  %v3862_v28 = vadd.f32 %v3861_v21, %v3860_v13  ;;  %v5176_v3 = vunpack.c.h.s8.bf16 %v4302_v52  ;;  %v3942_v21 = vrot.slane %v10778_v9, %v10652_v6  ;;  %v5212_v23 = vunpack.c.h.s8.bf16 %v4319_v17 }
 0x6ce   : > { %5926 = vmatpush1.bf16.msra.mxu0 %v4964_v39  ;;  %6090 = vmatpush1.bf16.msra.mxu1 %v4966_v40  ;;  %v5117_v39 = vunpack.c.l.s8.bf16 %v4281_v55  ;;  %v5119_v40 = vunpack.c.l.s8.bf16 %v4283_v26  ;;  %v10859_v52 = vsub.s32 7, %v10591_v7 }
 0x6cf   : > { %5957 = vmatprep.mubr.bf16.mxu0 %v10811_v49  ;;  %6121 = vmatprep.mubr.bf16.mxu1 %v10811_v49  ;;  %v3900_v33 = vmul.f32 0.5, %v3862_v28  ;;  %v4338_v28 = vld [vmem:[%s10571_s6 + $0x8f0] sm:$0xff] }
 0x6d0   : > { %5927 = vmatprep.subr.bf16.mxu0 %v4984_v43  ;;  %6091 = vmatprep.subr.bf16.mxu1 %v4986_v44  ;;  %v4282_v43 = vld [vmem:[%s10571_s6 + $0x730] sm:$0xff]  ;;  %v5116_v44 = vunpack.c.l.s8.bf16 %v4280_v42  ;;  %v5231_v36 = vunpack.c.l.s8.bf16 %v4338_v28  ;;  %v5250_v55 = vunpack.c.h.s8.bf16 %v4338_v28 }
 0x6d1   : > { %v3908_v34 = vadd.f32 0.8, %v3900_v33  ;;  %v5118_v45 = vunpack.c.l.s8.bf16 %v4282_v43 }
 0x6d2   : > { %5928 = vmatpush1.bf16.msra.mxu0 %v4983_v50  ;;  %6092 = vmatpush1.bf16.msra.mxu1 %v4985_v51  ;;  %v5138_v50 = vunpack.c.h.s8.bf16 %v4283_v26  ;;  %v4300_v51 = vld [vmem:[%s10571_s6 + $0x7c0] sm:$0xff] }
 0x6d3   : > { %5929 = vmatprep.subr.bf16.mxu0 %v5003_v53  ;;  %6093 = vmatprep.subr.bf16.mxu1 %v5005_v54  ;;  %9238 = vrsqrt.f32 %v3908_v34  ;;  %v5135_v53 = vunpack.c.h.s8.bf16 %v4280_v42  ;;  %v5137_v54 = vunpack.c.h.s8.bf16 %v4282_v43  ;;  %v5155_v56 = vunpack.c.l.s8.bf16 %v4300_v51  ;;  %v4359_v34 = vld [vmem:[%s10571_s6 + $0x998] sm:$0xff] }
 0x6d4   : > { %v10851_v42 = vsub.s32 4, %v10591_v7 }
 0x6d6   : > { %5930 = vmatpush1.bf16.msra.mxu0 %v5002_v62  ;;  %6094 = vmatpush1.bf16.msra.mxu1 %v5004_v63  ;;  %v4299_v62 = vld [vmem:[%s10571_s6 + $0x7b8] sm:$0xff]  ;;  %v4301_v63 = vld [vmem:[%s10571_s6 + $0x7c8] sm:$0xff] }
 0x6d7   : > { %5931 = vmatprep.subr.bf16.mxu0 %v5022_v1  ;;  %6095 = vmatprep.subr.bf16.mxu1 %v5024_v2  ;;  %v5154_v0 = vunpack.c.l.s8.bf16 %v4299_v62  ;;  %v5156_v1 = vunpack.c.l.s8.bf16 %v4301_v63  ;;  %v5174_v2 = vunpack.c.h.s8.bf16 %v4300_v51  ;;  %v5173_v13 = vunpack.c.h.s8.bf16 %v4299_v62 }
 0x6da   : > { %5932 = vmatpush1.bf16.msra.mxu0 %v5021_v4  ;;  %6096 = vmatpush1.bf16.msra.mxu1 %v5023_v5  ;;  %v4321_v4 = vld [vmem:[%s10571_s6 + $0x868] sm:$0xff] }
 0x6db   : > { %5933 = vmatprep.subr.bf16.mxu0 %v5041_v14  ;;  %6097 = vmatprep.subr.bf16.mxu1 %v5043_v15  ;;  %v5175_v14 = vunpack.c.h.s8.bf16 %v4301_v63  ;;  %v5193_v15 = vunpack.c.l.s8.bf16 %v4319_v17  ;;  %v5195_v16 = vunpack.c.l.s8.bf16 %v4321_v4  ;;  %v5214_v24 = vunpack.c.h.s8.bf16 %v4321_v4 }
 0x6dd   : > { %v9239_v5 = vpop.eup %9238 }
 0x6de   : > { %5934 = vmatpush1.bf16.msra.mxu0 %v5040_v47  ;;  %6098 = vmatpush1.bf16.msra.mxu1 %v5042_v19  ;;  %v4320_v47 = vld [vmem:[%s10571_s6 + $0x860] sm:$0xff]  ;;  %v3924_v19 = vmul.f32 %v9239_v5, %v10788_v20  ;;  %v5211_v20 = vunpack.c.h.s8.bf16 %v4318_v18 }
 0x6df   : > { %5935 = vmatprep.subr.bf16.mxu0 %v5060_v22  ;;  %6099 = vmatprep.subr.bf16.mxu1 %v5062_v31  ;;  %v5192_v22 = vunpack.c.l.s8.bf16 %v4318_v18  ;;  %v5194_v31 = vunpack.c.l.s8.bf16 %v4320_v47 }
 0x6e2   : > { %5936 = vmatpush1.bf16.msra.mxu0 %v5059_v59  ;;  %6100 = vmatpush1.bf16.msra.mxu1 %v5061_v27  ;;  %v3973_v59 = vmul.f32 %v3942_v21, %v3924_v19  ;;  %v3991_v27 = vrot.slane %v10780_v11, %v10652_v6 }
 0x6e3   : > { %5937 = vmatprep.subr.bf16.mxu0 %v5079_v29  ;;  %6101 = vmatprep.subr.bf16.mxu1 %v5081_v38  ;;  %v4340_v29 = vld [vmem:[%s10571_s6 + $0x900] sm:$0xff]  ;;  %v5213_v38 = vunpack.c.h.s8.bf16 %v4320_v47 }
 0x6e4   : > { %v5233_v48 = vunpack.c.l.s8.bf16 %v4340_v29  ;;  %v4022_v33 = vadd.f32 %v3991_v27, %v3973_v59  ;;  %v5252_v26 = vunpack.c.h.s8.bf16 %v4340_v29 }
 0x6e6   : > { %5938 = vmatpush1.bf16.msra.mxu0 %v5078_v61  ;;  %6102 = vmatpush1.bf16.msra.mxu1 %v5080_v32  ;;  %v4337_v61 = vld [vmem:[%s10571_s6 + $0x8e8] sm:$0xff]  ;;  %v4339_v32 = vld [vmem:[%s10571_s6 + $0x8f8] sm:$0xff]  ;;  %vm4030_vm12 = vcmp.gt.f32.partialorder %v4022_v33, 0.0 }
 0x6e7   : > { %5939 = vmatprep.subr.bf16.mxu0 %v5098_v25  ;;  %6103 = vmatprep.subr.bf16.mxu1 %v5100_v35  ;;  %v5230_v25 = vunpack.c.l.s8.bf16 %v4337_v61  ;;  %v5232_v35 = vunpack.c.l.s8.bf16 %v4339_v32 }
 0x6ea   : > { %5940 = vmatpush1.bf16.msra.mxu0 %v5097_v57  ;;  %6104 = vmatpush1.bf16.msra.mxu1 %v5099_v30  ;;  %v4038_v57 = vmul.f32 0.2, %v4022_v33  ;;  %v4357_v30 = vld [vmem:[%s10571_s6 + $0x988] sm:$0xff] }
 0x6eb   : > { %5941 = vmatprep.subr.bf16.mxu0 %v5117_v39  ;;  %6105 = vmatprep.subr.bf16.mxu1 %v5119_v40  ;;  %v5249_v39 = vunpack.c.h.s8.bf16 %v4337_v61  ;;  %v5251_v40 = vunpack.c.h.s8.bf16 %v4339_v32  ;;  %v5269_v43 = vunpack.c.l.s8.bf16 %v4357_v30  ;;  %v5288_v63 = vunpack.c.h.s8.bf16 %v4357_v30 }
 0x6ec   : > { %v4046_v51 = vsel %vm4030_vm12, %v4022_v33, %v4038_v57  ;;  %v4397_v57 = vld [vmem:[%s10571_s6 + $0xac8] sm:$0xff] }
 0x6ee   : > { %5942 = vmatpush1.bf16.msra.mxu0 %v5116_v44  ;;  %6106 = vmatpush1.bf16.msra.mxu1 %v5118_v45  ;;  %v5271_v44 = vunpack.c.l.s8.bf16 %v4359_v34  ;;  %v4356_v45 = vld [vmem:[%s10571_s6 + $0x980] sm:$0xff] }
 0x6ef   : > { %5943 = vmatprep.subr.bf16.mxu0 %v5136_v46  ;;  %6107 = vmatprep.subr.bf16.mxu1 %v5138_v50  ;;  %v4358_v46 = vld [vmem:[%s10571_s6 + $0x990] sm:$0xff]  ;;  %v10856_v50 = vsub.s32 5, %v10591_v7 }
 0x6f1   : > { %v2135_v62 = vrot.slane %v10761_v37, %v10856_v50 }
 0x6f2   : > { %5944 = vmatpush1.bf16.msra.mxu0 %v5135_v53  ;;  %6108 = vmatpush1.bf16.msra.mxu1 %v5137_v54  ;;  %v5268_v53 = vunpack.c.l.s8.bf16 %v4356_v45  ;;  %v5270_v54 = vunpack.c.l.s8.bf16 %v4358_v46 }
 0x6f3   : > { %5945 = vmatprep.subr.bf16.mxu0 %v5155_v56  ;;  %6109 = vmatprep.subr.bf16.mxu1 %v5157_v60  ;;  %v2131_v56 = vrot.slane %v10761_v37, %v10851_v42  ;;  %v10863_v60 = vpack.c.bf16 %v4046_v51, %v4046_v51 }
 0x6f6   : > { %5946 = vmatpush1.bf16.msra.mxu0 %v5154_v0  ;;  %6110 = vmatpush1.bf16.msra.mxu1 %v5156_v1  ;;  %v5290_v0 = vunpack.c.h.s8.bf16 %v4359_v34  ;;  %v2143_v1 = vrot.slane %v10761_v37, %v10859_v52  ;;  %v10892_v34 = vsub.s32 6, %v10591_v7 }
 0x6f7   : > { %5947 = vmatprep.subr.bf16.mxu0 %v5174_v2  ;;  %6111 = vmatprep.subr.bf16.mxu1 %v5176_v3  ;;  %v4376_v2 = vld [vmem:[%s10571_s6 + $0xa20] sm:$0xff]  ;;  %v4378_v3 = vld [vmem:[%s10571_s6 + $0xa30] sm:$0xff] }
 0x6f8   : > { %v5307_v19 = vunpack.c.l.s8.bf16 %v4376_v2  ;;  %v5309_v21 = vunpack.c.l.s8.bf16 %v4378_v3 }
 0x6fa   : > { %5948 = vmatpush1.bf16.msra.mxu0 %v5173_v13  ;;  %6112 = vmatpush1.bf16.msra.mxu1 %v5175_v14  ;;  %v5287_v14 = vunpack.c.h.s8.bf16 %v4356_v45 }
 0x6fb   : > { %5949 = vmatprep.subr.bf16.mxu0 %v5193_v15  ;;  %6113 = vmatprep.subr.bf16.mxu1 %v5195_v16  ;;  %v5289_v15 = vunpack.c.h.s8.bf16 %v4358_v46 }
 0x6fe   : > { %5950 = vmatpush1.bf16.msra.mxu0 %v5192_v22  ;;  %6114 = vmatpush1.bf16.msra.mxu1 %v5194_v31  ;;  %v4375_v22 = vld [vmem:[%s10571_s6 + $0xa18] sm:$0xff]  ;;  %v4377_v31 = vld [vmem:[%s10571_s6 + $0xa28] sm:$0xff] }
 0x6ff   : > { %5951 = vmatprep.subr.bf16.mxu0 %v5212_v23  ;;  %6115 = vmatprep.subr.bf16.mxu1 %v5214_v24  ;;  %v5308_v61 = vunpack.c.l.s8.bf16 %v4377_v31 }
 0x702   : > { %5952 = vmatpush1.bf16.msra.mxu0 %v5211_v20  ;;  %6116 = vmatpush1.bf16.msra.mxu1 %v5213_v38 }
 0x703   : > { %5953 = vmatprep.subr.bf16.mxu0 %v5231_v36  ;;  %6117 = vmatprep.subr.bf16.mxu1 %v5233_v48  ;;  %v5306_v48 = vunpack.c.l.s8.bf16 %v4375_v22 }
 0x706   : > { %5954 = vmatpush1.bf16.msra.mxu0 %v5230_v25  ;;  %6118 = vmatpush1.bf16.msra.mxu1 %v5232_v35  ;;  %v5326_v25 = vunpack.c.h.s8.bf16 %v4376_v2  ;;  %v5328_v35 = vunpack.c.h.s8.bf16 %v4378_v3 }
 0x707   : > { %5955 = vmatprep.subr.bf16.mxu0 %v5250_v55  ;;  %6119 = vmatprep.subr.bf16.mxu1 %v5252_v26  ;;  %v4395_v26 = vld [vmem:[%s10571_s6 + $0xab8] sm:$0xff] }
 0x708   : > { %v5345_v51 = vunpack.c.l.s8.bf16 %v4395_v26 }
 0x70a   : > { %5956 = vmatpush1.bf16.msra.mxu0 %v5249_v39  ;;  %6120 = vmatpush1.bf16.msra.mxu1 %v5251_v40 }
 0x70b   : > { %5966 = vmatprep.subr.bf16.mxu0 %v5269_v43  ;;  %6130 = vmatprep.subr.bf16.mxu1 %v5271_v44  ;;  %v5325_v43 = vunpack.c.h.s8.bf16 %v4375_v22  ;;  %v5327_v44 = vunpack.c.h.s8.bf16 %v4377_v31 }
 0x70d   : > { %5958 = vmatmul.mubr.bf16.vlgmr.msra.gmra.mrb[12].mxu0 %v10863_v60  ;;  %6122 = vmatmul.mubr.bf16.vlgmr.msra.gmra.mrb[20].mxu1 %v10863_v60 }
 0x70e   : > { %v3671_v17 = vpop.f32.mrb[8].mxu0  ;;  %5967 = vmatpush1.bf16.msra.mxu0 %v5268_v53  ;;  %6131 = vmatpush1.bf16.msra.mxu1 %v5270_v54  ;;  %v5347_v53 = vunpack.c.l.s8.bf16 %v4397_v57  ;;  %v4394_v54 = vld [vmem:[%s10571_s6 + $0xab0] sm:$0xff] }
 0x70f   : > { %v10873_v4 = vadd.f32 %v3671_v17, %v2131_v56  ;;  %v10875_v5 = vpop.f32.mrb[16].mxu1  ;;  %v3673_v13 = vpop.f32.mrb[9].mxu0  ;;  %5968 = vmatprep.subr.bf16.mxu0 %v5288_v63  ;;  %6132 = vmatprep.subr.bf16.mxu1 %v5290_v0  ;;  %v4396_v56 = vld [vmem:[%s10571_s6 + $0xac0] sm:$0xff]  ;;  %v2139_v0 = vrot.slane %v10761_v37, %v10892_v34  ;;  %v5344_v3 = vunpack.c.l.s8.bf16 %v4394_v54 }
 0x710   : > { %v10877_v16 = vadd.f32 %v3673_v13, %v2135_v62  ;;  %v3755_v18 = vpop.f32.mrb[17].mxu1  ;;  %v3675_v47 = vpop.f32.mrb[10].mxu0  ;;  %v5346_v17 = vunpack.c.l.s8.bf16 %v4396_v56 }
 0x711   : > { %v3790_v23 = vsel %vm1136_vm2, %v10873_v4, 0.0  ;;  %v10883_v24 = vadd.f32 %v3755_v18, %v2143_v1  ;;  %v3757_v59 = vpop.f32.mrb[18].mxu1  ;;  %v3676_v27 = vpop.f32.mrb[11].mxu0  ;;  %v5366_v18 = vunpack.c.h.s8.bf16 %v4397_v57  ;;  %v10901_v37 = vadd.f32 %v10875_v5, %v2139_v0  ;;  %v4432_v0 = vld [vmem:[%s10571_s6 + $0xbe0] sm:$0xff] }
 0x712   : > { %v3791_v28 = vrot.slane %v3790_v23, 4  ;;  %v3797_v29 = vsel %vm1136_vm2, %v10877_v16, 0.0  ;;  %v3758_v20 = vpop.f32.mrb[19].mxu1  ;;  %5969 = vmatpush1.bf16.msra.mxu0 %v5287_v14  ;;  %6133 = vmatpush1.bf16.msra.mxu1 %v5289_v15  ;;  %v5364_v15 = vunpack.c.h.s8.bf16 %v4395_v26  ;;  %v5363_v59 = vunpack.c.h.s8.bf16 %v4394_v54 }
 0x713   : > { %v3798_v38 = vrot.slane %v3797_v29, 4  ;;  %v3811_v36 = vsel %vm1136_vm2, %v10883_v24, 0.0  ;;  %5970 = vmatprep.subr.bf16.mxu0 %v5307_v19  ;;  %6134 = vmatprep.subr.bf16.mxu1 %v5309_v21  ;;  %v4414_v19 = vld [vmem:[%s10571_s6 + $0xb50] sm:$0xff]  ;;  %v4416_v21 = vld [vmem:[%s10571_s6 + $0xb60] sm:$0xff]  ;;  %v5365_v27 = vunpack.c.h.s8.bf16 %v4396_v56 }
 0x714   : > { %v3792_v32 = vadd.f32 %v3791_v28, %v3790_v23  ;;  %v3812_v33 = vrot.slane %v3811_v36, 4  ;;  %v5383_v20 = vunpack.c.l.s8.bf16 %v4414_v19  ;;  %v5402_v26 = vunpack.c.h.s8.bf16 %v4414_v19 }
 0x715   : > { %v3799_v55 = vadd.f32 %v3798_v38, %v3797_v29  ;;  %v5385_v38 = vunpack.c.l.s8.bf16 %v4416_v21  ;;  %v5404_v57 = vunpack.c.h.s8.bf16 %v4416_v21 }
 0x716   : > { %v3793_v30 = vrot.slane %v3792_v32, 2  ;;  %v3813_v39 = vadd.f32 %v3812_v33, %v3811_v36  ;;  %5971 = vmatpush1.bf16.msra.mxu0 %v5306_v48  ;;  %6135 = vmatpush1.bf16.msra.mxu1 %v5308_v61  ;;  %v4413_v36 = vld [vmem:[%s10571_s6 + $0xb48] sm:$0xff]  ;;  %v4415_v48 = vld [vmem:[%s10571_s6 + $0xb58] sm:$0xff] }
 0x717   : > { %v3800_v40 = vrot.slane %v3799_v55, 2  ;;  %5972 = vmatprep.subr.bf16.mxu0 %v5326_v25  ;;  %6136 = vmatprep.subr.bf16.mxu1 %v5328_v35  ;;  %v5382_v25 = vunpack.c.l.s8.bf16 %v4413_v36  ;;  %v5384_v35 = vunpack.c.l.s8.bf16 %v4415_v48  ;;  %v5403_v54 = vunpack.c.h.s8.bf16 %v4415_v48 }
 0x718   : > { %v3794_v45 = vadd.f32 %v3793_v30, %v3792_v32  ;;  %v3814_v46 = vrot.slane %v3813_v39, 2  ;;  %v3804_v32 = vsel %vm1136_vm2, %v10901_v37, 0.0  ;;  %v5439_v48 = vunpack.c.h.s8.bf16 %v4432_v0 }
 0x719   : > { %v3801_v62 = vadd.f32 %v3800_v40, %v3799_v55  ;;  %v4433_v40 = vld [vmem:[%s10571_s6 + $0xbe8] sm:$0xff] }
 0x71a   : > { %v3795_v63 = vrot.slane %v3794_v45, 1  ;;  %v3815_v1 = vadd.f32 %v3814_v46, %v3813_v39  ;;  %5973 = vmatpush1.bf16.msra.mxu0 %v5325_v43  ;;  %6137 = vmatpush1.bf16.msra.mxu1 %v5327_v44  ;;  %v4435_v43 = vld [vmem:[%s10571_s6 + $0xbf8] sm:$0xff]  ;;  %v5440_v21 = vunpack.c.h.s8.bf16 %v4433_v40 }
 0x71b   : > { %v3802_v2 = vrot.slane %v3801_v62, 1  ;;  %5974 = vmatprep.subr.bf16.mxu0 %v5345_v51  ;;  %6138 = vmatprep.subr.bf16.mxu1 %v5347_v53  ;;  %v5401_v53 = vunpack.c.h.s8.bf16 %v4413_v36 }
 0x71c   : > { %v3796_v13 = vadd.f32 %v3795_v63, %v3794_v45  ;;  %v3816_v14 = vrot.slane %v3815_v1, 1  ;;  %v5423_v63 = vunpack.c.l.s8.bf16 %v4435_v43 }
 0x71d   : > { %v3803_v47 = vadd.f32 %v3802_v2, %v3801_v62  ;;  %v5421_v62 = vunpack.c.l.s8.bf16 %v4433_v40 }
 0x71e   : > { %v3822_v22 = vmul.f32 0.5, %v3796_v13  ;;  %v3817_v31 = vadd.f32 %v3816_v14, %v3815_v1  ;;  %5975 = vmatpush1.bf16.msra.mxu0 %v5344_v3  ;;  %6139 = vmatpush1.bf16.msra.mxu1 %v5346_v17  ;;  %v4434_v1 = vld [vmem:[%s10571_s6 + $0xbf0] sm:$0xff] }
 0x71f   : > { %v3823_v23 = vmul.f32 0.5, %v3803_v47  ;;  %5976 = vmatprep.subr.bf16.mxu0 %v5364_v15  ;;  %6140 = vmatprep.subr.bf16.mxu1 %v5366_v18  ;;  %v5420_v18 = vunpack.c.l.s8.bf16 %v4432_v0  ;;  %v5422_v47 = vunpack.c.l.s8.bf16 %v4434_v1 }
 0x720   : > { %v10904_v28 = vsub.f32 %v10873_v4, %v3822_v22  ;;  %v3825_v29 = vmul.f32 0.5, %v3817_v31  ;;  %v5442_v22 = vunpack.c.h.s8.bf16 %v4435_v43 }
 0x721   : > { %v10909_v61 = vsub.f32 %v10877_v16, %v3823_v23 }
 0x722   : > { %v3838_v5 = vmul.f32 %v10904_v28, %v10904_v28  ;;  %v10916_v4 = vsub.f32 %v10883_v24, %v3825_v29  ;;  %5977 = vmatpush1.bf16.msra.mxu0 %v5363_v59  ;;  %6141 = vmatpush1.bf16.msra.mxu1 %v5365_v27  ;;  %v3805_v24 = vrot.slane %v3804_v32, 4  ;;  %v4452_v27 = vld [vmem:[%s10571_s6 + $0xc80] sm:$0xff]  ;;  %v4454_v29 = vld [vmem:[%s10571_s6 + $0xc90] sm:$0xff] }
 0x723   : > { %v3839_v33 = vmul.f32 %v10909_v61, %v10909_v61  ;;  %5978 = vmatprep.subr.bf16.mxu0 %v5383_v20  ;;  %6142 = vmatprep.subr.bf16.mxu1 %v5385_v38 }
 0x724   : > { %v3870_v16 = vsel %vm1136_vm2, %v3838_v5, 0.0  ;;  %v3841_v55 = vmul.f32 %v10916_v4, %v10916_v4  ;;  %v3806_v3 = vadd.f32 %v3805_v24, %v3804_v32  ;;  %v5441_v5 = vunpack.c.h.s8.bf16 %v4434_v1 }
 0x725   : > { %v3871_v30 = vrot.slane %v3870_v16, 4  ;;  %v3877_v39 = vsel %vm1136_vm2, %v3839_v33, 0.0  ;;  %v5459_v33 = vunpack.c.l.s8.bf16 %v4452_v27 }
 0x726   : > { %v3878_v44 = vrot.slane %v3877_v39, 4  ;;  %v3891_v45 = vsel %vm1136_vm2, %v3841_v55, 0.0  ;;  %5979 = vmatpush1.bf16.msra.mxu0 %v5382_v25  ;;  %6143 = vmatpush1.bf16.msra.mxu1 %v5384_v35  ;;  %v3807_v23 = vrot.slane %v3806_v3, 2  ;;  %v5461_v25 = vunpack.c.l.s8.bf16 %v4454_v29  ;;  %v4451_v35 = vld [vmem:[%s10571_s6 + $0xc78] sm:$0xff] }
 0x727   : > { %v3872_v46 = vadd.f32 %v3871_v30, %v3870_v16  ;;  %v3892_v51 = vrot.slane %v3891_v45, 4  ;;  %5980 = vmatprep.subr.bf16.mxu0 %v5402_v26  ;;  %6144 = vmatprep.subr.bf16.mxu1 %v5404_v57  ;;  %v4453_v16 = vld [vmem:[%s10571_s6 + $0xc88] sm:$0xff]  ;;  %v5458_v40 = vunpack.c.l.s8.bf16 %v4451_v35 }
 0x728   : > { %v3879_v56 = vadd.f32 %v3878_v44, %v3877_v39  ;;  %v3808_v26 = vadd.f32 %v3807_v23, %v3806_v3  ;;  %v5460_v43 = vunpack.c.l.s8.bf16 %v4453_v16  ;;  %v4472_v3 = vld [vmem:[%s10571_s6 + $0xd20] sm:$0xff]  ;;  %v3999_v23 = vrot.slane %v10780_v11, %v10851_v42 }
 0x729   : > { %v3873_v2 = vrot.slane %v3872_v46, 2  ;;  %v3893_v17 = vadd.f32 %v3892_v51, %v3891_v45  ;;  %v5478_v45 = vunpack.c.h.s8.bf16 %v4452_v27  ;;  %v5517_v27 = vunpack.c.h.s8.bf16 %v4472_v3 }
 0x72a   : > { %v3880_v13 = vrot.slane %v3879_v56, 2  ;;  %5981 = vmatpush1.bf16.msra.mxu0 %v5401_v53  ;;  %6145 = vmatpush1.bf16.msra.mxu1 %v5403_v54  ;;  %v3809_v51 = vrot.slane %v3808_v26, 1  ;;  %v4471_v54 = vld [vmem:[%s10571_s6 + $0xd18] sm:$0xff] }
 0x72b   : > { %v3874_v14 = vadd.f32 %v3873_v2, %v3872_v46  ;;  %v3894_v15 = vrot.slane %v3893_v17, 2  ;;  %5982 = vmatprep.subr.bf16.mxu0 %v5421_v62  ;;  %6146 = vmatprep.subr.bf16.mxu1 %v5423_v63  ;;  %v5480_v46 = vunpack.c.h.s8.bf16 %v4454_v29  ;;  %v5477_v62 = vunpack.c.h.s8.bf16 %v4451_v35  ;;  %v4470_v2 = vld [vmem:[%s10571_s6 + $0xd10] sm:$0xff] }
 0x72c   : > { %v3881_v19 = vadd.f32 %v3880_v13, %v3879_v56  ;;  %v4473_v56 = vld [vmem:[%s10571_s6 + $0xd28] sm:$0xff]  ;;  %v5479_v63 = vunpack.c.h.s8.bf16 %v4453_v16  ;;  %v5497_v0 = vunpack.c.l.s8.bf16 %v4471_v54  ;;  %v5496_v13 = vunpack.c.l.s8.bf16 %v4470_v2 }
 0x72d   : > { %v3875_v31 = vrot.slane %v3874_v14, 1  ;;  %v3895_v59 = vadd.f32 %v3894_v15, %v3893_v17  ;;  %v5499_v1 = vunpack.c.l.s8.bf16 %v4473_v56  ;;  %v3810_v17 = vadd.f32 %v3809_v51, %v3808_v26 }
 0x72e   : > { %v3882_v20 = vrot.slane %v3881_v19, 1  ;;  %5983 = vmatpush1.bf16.msra.mxu0 %v5420_v18  ;;  %6147 = vmatpush1.bf16.msra.mxu1 %v5422_v47  ;;  %v5516_v15 = vunpack.c.h.s8.bf16 %v4471_v54  ;;  %v5518_v18 = vunpack.c.h.s8.bf16 %v4473_v56 }
 0x72f   : > { %v3876_v38 = vadd.f32 %v3875_v31, %v3874_v14  ;;  %v3896_v36 = vrot.slane %v3895_v59, 1  ;;  %5984 = vmatprep.subr.bf16.mxu0 %v5440_v21  ;;  %6148 = vmatprep.subr.bf16.mxu1 %v5442_v22  ;;  %v5498_v14 = vunpack.c.l.s8.bf16 %v4472_v3  ;;  %v3824_v47 = vmul.f32 0.5, %v3810_v17  ;;  %v4492_v21 = vld [vmem:[%s10571_s6 + $0xdc0] sm:$0xff] }
 0x730   : > { %v3883_v32 = vadd.f32 %v3882_v20, %v3881_v19  ;;  %v4490_v19 = vld [vmem:[%s10571_s6 + $0xdb0] sm:$0xff]  ;;  %v3950_v22 = vrot.slane %v10778_v9, %v10851_v42  ;;  %v3954_v20 = vrot.slane %v10778_v9, %v10856_v50 }
 0x731   : > { %v3902_v55 = vmul.f32 0.5, %v3876_v38  ;;  %v3897_v57 = vadd.f32 %v3896_v36, %v3895_v59  ;;  %v5515_v59 = vunpack.c.h.s8.bf16 %v4470_v2  ;;  %v5535_v38 = vunpack.c.l.s8.bf16 %v4490_v19 }
 0x732   : > { %v3903_v30 = vmul.f32 0.5, %v3883_v32  ;;  %5985 = vmatpush1.bf16.msra.mxu0 %v5439_v48  ;;  %6149 = vmatpush1.bf16.msra.mxu1 %v5441_v5  ;;  %v5537_v36 = vunpack.c.l.s8.bf16 %v4492_v21  ;;  %v4489_v48 = vld [vmem:[%s10571_s6 + $0xda8] sm:$0xff]  ;;  %v4491_v5 = vld [vmem:[%s10571_s6 + $0xdb8] sm:$0xff] }
 0x733   : > { %v3910_v24 = vadd.f32 0.8, %v3902_v55  ;;  %v3905_v39 = vmul.f32 0.5, %v3897_v57  ;;  %5986 = vmatprep.subr.bf16.mxu0 %v5459_v33  ;;  %6150 = vmatprep.subr.bf16.mxu1 %v5461_v25  ;;  %v10949_v33 = vsub.f32 %v10901_v37, %v3824_v47  ;;  %v3962_v25 = vrot.slane %v10778_v9, %v10859_v52 }
 0x734   : > { %v3911_v44 = vadd.f32 0.8, %v3903_v30  ;;  %v4003_v55 = vrot.slane %v10780_v11, %v10856_v50  ;;  %v4011_v57 = vrot.slane %v10780_v11, %v10859_v52  ;;  %v5534_v37 = vunpack.c.l.s8.bf16 %v4489_v48 }
 0x735   : > { %9240 = vrsqrt.f32 %v3910_v24  ;;  %v3913_v53 = vadd.f32 0.8, %v3905_v39  ;;  %v5536_v30 = vunpack.c.l.s8.bf16 %v4491_v5  ;;  %v5554_v39 = vunpack.c.h.s8.bf16 %v4490_v19 }
 0x736   : > { %9242 = vrsqrt.f32 %v3911_v44  ;;  %5987 = vmatpush1.bf16.msra.mxu0 %v5458_v40  ;;  %6151 = vmatpush1.bf16.msra.mxu1 %v5460_v43  ;;  %v3840_v40 = vmul.f32 %v10949_v33, %v10949_v33  ;;  %v4509_v44 = vld [vmem:[%s10571_s6 + $0xe48] sm:$0xff]  ;;  %v5553_v51 = vunpack.c.h.s8.bf16 %v4489_v48  ;;  %v4527_v48 = vld [vmem:[%s10571_s6 + $0xed8] sm:$0xff] }
 0x737   : > { %9244 = vrsqrt.f32 %v3913_v53  ;;  %5988 = vmatprep.subr.bf16.mxu0 %v5478_v45  ;;  %6152 = vmatprep.subr.bf16.mxu1 %v5480_v46  ;;  %v5555_v53 = vunpack.c.h.s8.bf16 %v4491_v5  ;;  %v5573_v56 = vunpack.c.l.s8.bf16 %v4509_v44  ;;  %v4529_v5 = vld [vmem:[%s10571_s6 + $0xee8] sm:$0xff] }
 0x738   : > { %v3884_v2 = vsel %vm1136_vm2, %v3840_v40, 0.0 }
 0x739   : > { %v3885_v19 = vrot.slane %v3884_v2, 4 }
 0x73a   : > { %5989 = vmatpush1.bf16.msra.mxu0 %v5477_v62  ;;  %6153 = vmatpush1.bf16.msra.mxu1 %v5479_v63  ;;  %v4508_v63 = vld [vmem:[%s10571_s6 + $0xe40] sm:$0xff] }
 0x73b   : > { %5990 = vmatprep.subr.bf16.mxu0 %v5497_v0  ;;  %6154 = vmatprep.subr.bf16.mxu1 %v5499_v1  ;;  %v4510_v0 = vld [vmem:[%s10571_s6 + $0xe50] sm:$0xff] }
 0x73e   : > { %5991 = vmatpush1.bf16.msra.mxu0 %v5496_v13  ;;  %6155 = vmatpush1.bf16.msra.mxu1 %v5498_v14 }
 0x73f   : > { %v9241_v31 = vpop.eup %9240  ;;  %5992 = vmatprep.subr.bf16.mxu0 %v5516_v15  ;;  %6156 = vmatprep.subr.bf16.mxu1 %v5518_v18  ;;  %v5572_v15 = vunpack.c.l.s8.bf16 %v4508_v63  ;;  %v5574_v18 = vunpack.c.l.s8.bf16 %v4510_v0 }
 0x740   : > { %v3926_v29 = vmul.f32 %v9241_v31, %v10904_v28  ;;  %v9243_v32 = vpop.eup %9242  ;;  %v4528_v31 = vld [vmem:[%s10571_s6 + $0xee0] sm:$0xff] }
 0x741   : > { %v9245_v35 = vpop.eup %9244  ;;  %v3927_v28 = vmul.f32 %v9243_v32, %v10909_v61  ;;  %v5556_v61 = vunpack.c.h.s8.bf16 %v4492_v21  ;;  %v5592_v21 = vunpack.c.h.s8.bf16 %v4509_v44  ;;  %v5610_v32 = vunpack.c.l.s8.bf16 %v4527_v48 }
 0x742   : > { %v3975_v16 = vmul.f32 %v3950_v22, %v3926_v29  ;;  %v3929_v26 = vmul.f32 %v9245_v35, %v10916_v4  ;;  %5993 = vmatpush1.bf16.msra.mxu0 %v5515_v59  ;;  %6157 = vmatpush1.bf16.msra.mxu1 %v5517_v27  ;;  %v4511_v4 = vld [vmem:[%s10571_s6 + $0xe58] sm:$0xff]  ;;  %v5591_v27 = vunpack.c.h.s8.bf16 %v4508_v63  ;;  %v5593_v29 = vunpack.c.h.s8.bf16 %v4510_v0  ;;  %v4565_v63 = vld [vmem:[%s10571_s6 + $0x1008] sm:$0xff] }
 0x743   : > { %v3976_v9 = vmul.f32 %v3954_v20, %v3927_v28  ;;  %5994 = vmatprep.subr.bf16.mxu0 %v5535_v38  ;;  %6158 = vmatprep.subr.bf16.mxu1 %v5537_v36  ;;  %v5575_v62 = vunpack.c.l.s8.bf16 %v4511_v4  ;;  %v5594_v22 = vunpack.c.h.s8.bf16 %v4511_v4  ;;  %v3886_v20 = vadd.f32 %v3885_v19, %v3884_v2  ;;  %v4567_v0 = vld [vmem:[%s10571_s6 + $0x1018] sm:$0xff] }
 0x744   : > { %v4024_v24 = vadd.f32 %v3999_v23, %v3975_v16  ;;  %v3978_v43 = vmul.f32 %v3962_v25, %v3929_v26  ;;  %v4530_v23 = vld [vmem:[%s10571_s6 + $0xef0] sm:$0xff]  ;;  %v5611_v38 = vunpack.c.l.s8.bf16 %v4528_v31  ;;  %v5612_v25 = vunpack.c.l.s8.bf16 %v4529_v5  ;;  %v4549_v26 = vld [vmem:[%s10571_s6 + $0xf88] sm:$0xff] }
 0x745   : > { %v4025_v45 = vadd.f32 %v4003_v55, %v3976_v9  ;;  %v5613_v36 = vunpack.c.l.s8.bf16 %v4530_v23  ;;  %v3887_v35 = vrot.slane %v3886_v20, 2  ;;  %v5630_v16 = vunpack.c.h.s8.bf16 %v4528_v31  ;;  %v4547_v55 = vld [vmem:[%s10571_s6 + $0xf78] sm:$0xff] }
 0x746   : > { %vm4032_vm13 = vcmp.gt.f32.partialorder %v4024_v24, 0.0  ;;  %v4040_v11 = vmul.f32 0.2, %v4024_v24  ;;  %v4027_v46 = vadd.f32 %v4011_v57, %v3978_v43  ;;  %5995 = vmatpush1.bf16.msra.mxu0 %v5534_v37  ;;  %6159 = vmatpush1.bf16.msra.mxu1 %v5536_v30  ;;  %v5632_v28 = vunpack.c.h.s8.bf16 %v4530_v23 }
 0x747   : > { %vm4033_vm14 = vcmp.gt.f32.partialorder %v4025_v45, 0.0  ;;  %v4041_v54 = vmul.f32 0.2, %v4025_v45  ;;  %5996 = vmatprep.subr.bf16.mxu0 %v5554_v39  ;;  %6160 = vmatprep.subr.bf16.mxu1 %v5556_v61  ;;  %v5629_v57 = vunpack.c.h.s8.bf16 %v4527_v48  ;;  %v5631_v37 = vunpack.c.h.s8.bf16 %v4529_v5  ;;  %v4546_v39 = vld [vmem:[%s10571_s6 + $0xf70] sm:$0xff]  ;;  %v4548_v61 = vld [vmem:[%s10571_s6 + $0xf80] sm:$0xff] }
 0x748   : > { %v4048_v1 = vsel %vm4032_vm13, %v4024_v24, %v4040_v11  ;;  %vm4035_vm15 = vcmp.gt.f32.partialorder %v4027_v46, 0.0  ;;  %v4043_v3 = vmul.f32 0.2, %v4027_v46  ;;  %v3888_v30 = vadd.f32 %v3887_v35, %v3886_v20  ;;  %v4604_v5 = vld [vmem:[%s10571_s6 + $0x1140] sm:$0xff] }
 0x749   : > { %v4049_v17 = vsel %vm4033_vm14, %v4025_v45, %v4041_v54  ;;  %v10969_v47 = vpack.c.bf16 %v4048_v1, %v4048_v1  ;;  %v5649_v24 = vunpack.c.l.s8.bf16 %v4547_v55  ;;  %v5651_v9 = vunpack.c.l.s8.bf16 %v4549_v26  ;;  %v4566_v45 = vld [vmem:[%s10571_s6 + $0x1010] sm:$0xff] }
 0x74a   : > { %v10967_v13 = vpack.c.bf16 %v4049_v17, %v4049_v17  ;;  %v4051_v14 = vsel %vm4035_vm15, %v4027_v46, %v4043_v3  ;;  %5997 = vmatpush1.bf16.msra.mxu0 %v5553_v51  ;;  %6161 = vmatpush1.bf16.msra.mxu1 %v5555_v53  ;;  %v5648_v40 = vunpack.c.l.s8.bf16 %v4546_v39  ;;  %v5650_v43 = vunpack.c.l.s8.bf16 %v4548_v61  ;;  %v4568_v46 = vld [vmem:[%s10571_s6 + $0x1020] sm:$0xff] }
 0x74b   : > { %6007 = vmatprep.subr.bf16.mxu0 %v5573_v56  ;;  %6171 = vmatprep.subr.bf16.mxu1 %v5575_v62  ;;  %v10975_v59 = vpack.c.bf16 %v4051_v14, %v4051_v14  ;;  %v3889_v44 = vrot.slane %v3888_v30, 1  ;;  %v5668_v4 = vunpack.c.h.s8.bf16 %v4547_v55  ;;  %v5670_v11 = vunpack.c.h.s8.bf16 %v4549_v26  ;;  %v4603_v55 = vld [vmem:[%s10571_s6 + $0x1138] sm:$0xff]  ;;  %v4605_v26 = vld [vmem:[%s10571_s6 + $0x1148] sm:$0xff] }
 0x74c   : > { %5998 = vmatprep.mubr.bf16.mxu0 %v10967_v13  ;;  %6162 = vmatprep.mubr.bf16.mxu1 %v10967_v13  ;;  %v5667_v51 = vunpack.c.h.s8.bf16 %v4546_v39  ;;  %v5669_v53 = vunpack.c.h.s8.bf16 %v4548_v61  ;;  %v5687_v56 = vunpack.c.l.s8.bf16 %v4566_v45  ;;  %v5689_v62 = vunpack.c.l.s8.bf16 %v4568_v46  ;;  %v4625_v39 = vld [vmem:[%s10571_s6 + $0x11e8] sm:$0xff] }
 0x74d   : > { %5999 = vmatmul.mubr.bf16.vlgmr.msra.gmra.mrb[12].mxu0 %v10969_v47  ;;  %6163 = vmatmul.mubr.bf16.vlgmr.msra.gmra.mrb[20].mxu1 %v10969_v47  ;;  %v3890_v54 = vadd.f32 %v3889_v44, %v3888_v30  ;;  %v5686_v1 = vunpack.c.l.s8.bf16 %v4565_v63  ;;  %v5688_v2 = vunpack.c.l.s8.bf16 %v4567_v0  ;;  %v5706_v17 = vunpack.c.h.s8.bf16 %v4566_v45  ;;  %v4624_v45 = vld [vmem:[%s10571_s6 + $0x11e0] sm:$0xff] }
 0x74e   : > { %6008 = vmatpush1.bf16.msra.mxu0 %v5572_v15  ;;  %6172 = vmatpush1.bf16.msra.mxu1 %v5574_v18  ;;  %v5708_v14 = vunpack.c.h.s8.bf16 %v4568_v46  ;;  %v4585_v15 = vld [vmem:[%s10571_s6 + $0x10a8] sm:$0xff]  ;;  %v4587_v18 = vld [vmem:[%s10571_s6 + $0x10b8] sm:$0xff]  ;;  %v5705_v19 = vunpack.c.h.s8.bf16 %v4565_v63  ;;  %v5782_v30 = vunpack.c.h.s8.bf16 %v4604_v5  ;;  %v5822_v63 = vunpack.c.h.s8.bf16 %v4625_v39 }
 0x74f   : > { %6039 = vmatprep.mubr.bf16.mxu0 %v10975_v59  ;;  %6203 = vmatprep.mubr.bf16.mxu1 %v10975_v59  ;;  %v3904_v3 = vmul.f32 0.5, %v3890_v54  ;;  %v5725_v31 = vunpack.c.l.s8.bf16 %v4585_v15  ;;  %v5727_v23 = vunpack.c.l.s8.bf16 %v4587_v18  ;;  %v5746_v48 = vunpack.c.h.s8.bf16 %v4587_v18 }
 0x750   : > { %6009 = vmatprep.subr.bf16.mxu0 %v5592_v21  ;;  %6173 = vmatprep.subr.bf16.mxu1 %v5594_v22  ;;  %v5707_v21 = vunpack.c.h.s8.bf16 %v4567_v0 }
 0x751   : > { %v3912_v22 = vadd.f32 0.8, %v3904_v3  ;;  %v4642_v3 = vld [vmem:[%s10571_s6 + $0x1270] sm:$0xff] }
 0x752   : > { %6010 = vmatpush1.bf16.msra.mxu0 %v5591_v27  ;;  %6174 = vmatpush1.bf16.msra.mxu1 %v5593_v29  ;;  %v4584_v27 = vld [vmem:[%s10571_s6 + $0x10a0] sm:$0xff]  ;;  %v4586_v29 = vld [vmem:[%s10571_s6 + $0x10b0] sm:$0xff] }
 0x753   : > { %6011 = vmatprep.subr.bf16.mxu0 %v5611_v38  ;;  %6175 = vmatprep.subr.bf16.mxu1 %v5613_v36  ;;  %v5724_v20 = vunpack.c.l.s8.bf16 %v4584_v27  ;;  %v5726_v38 = vunpack.c.l.s8.bf16 %v4586_v29  ;;  %9246 = vrsqrt.f32 %v3912_v22  ;;  %v5744_v36 = vunpack.c.h.s8.bf16 %v4585_v15 }
 0x754   : > { %v5745_v35 = vunpack.c.h.s8.bf16 %v4586_v29  ;;  %v5839_v15 = vunpack.c.l.s8.bf16 %v4642_v3 }
 0x756   : > { %6012 = vmatpush1.bf16.msra.mxu0 %v5610_v32  ;;  %6176 = vmatpush1.bf16.msra.mxu1 %v5612_v25  ;;  %v4606_v32 = vld [vmem:[%s10571_s6 + $0x1150] sm:$0xff]  ;;  %v5743_v25 = vunpack.c.h.s8.bf16 %v4584_v27  ;;  %v5858_v27 = vunpack.c.h.s8.bf16 %v4642_v3 }
 0x757   : > { %6013 = vmatprep.subr.bf16.mxu0 %v5630_v16  ;;  %6177 = vmatprep.subr.bf16.mxu1 %v5632_v28  ;;  %v5763_v16 = vunpack.c.l.s8.bf16 %v4604_v5  ;;  %v5765_v28 = vunpack.c.l.s8.bf16 %v4606_v32 }
 0x75a   : > { %6014 = vmatpush1.bf16.msra.mxu0 %v5629_v57  ;;  %6178 = vmatpush1.bf16.msra.mxu1 %v5631_v37  ;;  %v5762_v57 = vunpack.c.l.s8.bf16 %v4603_v55  ;;  %v5764_v37 = vunpack.c.l.s8.bf16 %v4605_v26 }
 0x75b   : > { %6015 = vmatprep.subr.bf16.mxu0 %v5649_v24  ;;  %6179 = vmatprep.subr.bf16.mxu1 %v5651_v9  ;;  %v5784_v24 = vunpack.c.h.s8.bf16 %v4606_v32  ;;  %v4623_v9 = vld [vmem:[%s10571_s6 + $0x11d8] sm:$0xff] }
 0x75c   : > { %v5801_v44 = vunpack.c.l.s8.bf16 %v4623_v9 }
 0x75d   : > { %v9247_v61 = vpop.eup %9246 }
 0x75e   : > { %6016 = vmatpush1.bf16.msra.mxu0 %v5648_v40  ;;  %6180 = vmatpush1.bf16.msra.mxu1 %v5650_v43  ;;  %v5781_v40 = vunpack.c.h.s8.bf16 %v4603_v55  ;;  %v5783_v43 = vunpack.c.h.s8.bf16 %v4605_v26  ;;  %v3928_v46 = vmul.f32 %v9247_v61, %v10949_v33 }
 0x75f   : > { %6017 = vmatprep.subr.bf16.mxu0 %v5668_v4  ;;  %6181 = vmatprep.subr.bf16.mxu1 %v5670_v11  ;;  %v5803_v4 = vunpack.c.l.s8.bf16 %v4625_v39  ;;  %v4622_v11 = vld [vmem:[%s10571_s6 + $0x11d0] sm:$0xff] }
 0x760   : > { %v5800_v54 = vunpack.c.l.s8.bf16 %v4622_v11  ;;  %v5819_v33 = vunpack.c.h.s8.bf16 %v4622_v11 }
 0x762   : > { %6018 = vmatpush1.bf16.msra.mxu0 %v5667_v51  ;;  %6182 = vmatpush1.bf16.msra.mxu1 %v5669_v53  ;;  %v9286_v51 = vld [vmem:[#allocation23] sm:$0xff] }
 0x763   : > { %6019 = vmatprep.subr.bf16.mxu0 %v5687_v56  ;;  %6183 = vmatprep.subr.bf16.mxu1 %v5689_v62  ;;  %v3958_v53 = vrot.slane %v9286_v51, %v10892_v34  ;;  %v5802_v56 = vunpack.c.l.s8.bf16 %v4624_v45  ;;  %v5820_v62 = vunpack.c.h.s8.bf16 %v4623_v9  ;;  %v4078_v9 = vld [vmem:[%s10571_s6 + $0xd0] sm:$0xff] }
 0x764   : > { %v4724_v51 = vunpack.c.h.s8.bf16 %v4078_v9 }
 0x765   : > { %v3977_v0 = vmul.f32 %v3958_v53, %v3928_v46  ;;  %v4095_v53 = vld [vmem:[%s10571_s6 + $0x158] sm:$0xff] }
 0x766   : > { %6020 = vmatpush1.bf16.msra.mxu0 %v5686_v1  ;;  %6184 = vmatpush1.bf16.msra.mxu1 %v5688_v2  ;;  %v9287_v1 = vld [vmem:[#allocation25] sm:$0xff] }
 0x767   : > { %6021 = vmatprep.subr.bf16.mxu0 %v5706_v17  ;;  %6185 = vmatprep.subr.bf16.mxu1 %v5708_v14  ;;  %v4007_v2 = vrot.slane %v9287_v1, %v10892_v34  ;;  %v4644_v17 = vld [vmem:[%s10571_s6 + $0x1280] sm:$0xff]  ;;  %v5821_v14 = vunpack.c.h.s8.bf16 %v4624_v45 }
 0x768   : > { %v5841_v18 = vunpack.c.l.s8.bf16 %v4644_v17  ;;  %v5860_v29 = vunpack.c.h.s8.bf16 %v4644_v17 }
 0x769   : > { %v4026_v22 = vadd.f32 %v4007_v2, %v3977_v0  ;;  %v4094_v0 = vld [vmem:[%s10571_s6 + $0x150] sm:$0xff]  ;;  %v4096_v2 = vld [vmem:[%s10571_s6 + $0x160] sm:$0xff] }
 0x76a   : > { %6022 = vmatpush1.bf16.msra.mxu0 %v5705_v19  ;;  %6186 = vmatpush1.bf16.msra.mxu1 %v5707_v21  ;;  %v4641_v19 = vld [vmem:[%s10571_s6 + $0x1268] sm:$0xff]  ;;  %v4643_v21 = vld [vmem:[%s10571_s6 + $0x1278] sm:$0xff]  ;;  %v4740_v3 = vunpack.c.l.s8.bf16 %v4094_v0  ;;  %v4742_v17 = vunpack.c.l.s8.bf16 %v4096_v2 }
 0x76b   : > { %6023 = vmatprep.subr.bf16.mxu0 %v5725_v31  ;;  %6187 = vmatprep.subr.bf16.mxu1 %v5727_v23  ;;  %v5838_v31 = vunpack.c.l.s8.bf16 %v4641_v19  ;;  %v5840_v23 = vunpack.c.l.s8.bf16 %v4643_v21  ;;  %vm4034_vm0 = vcmp.gt.f32.partialorder %v4026_v22, 0.0  ;;  %v5859_v5 = vunpack.c.h.s8.bf16 %v4643_v21 }
 0x76c   : > { %v4761_v21 = vunpack.c.h.s8.bf16 %v4096_v2 }
 0x76e   : > { %6024 = vmatpush1.bf16.msra.mxu0 %v5724_v20  ;;  %6188 = vmatpush1.bf16.msra.mxu1 %v5726_v38  ;;  %v4042_v20 = vmul.f32 0.2, %v4026_v22  ;;  %v4057_v38 = vld [vmem:[%s10571_s6 + $0x28] sm:$0xff] }
 0x76f   : > { %6025 = vmatprep.subr.bf16.mxu0 %v5744_v36  ;;  %6189 = vmatprep.subr.bf16.mxu1 %v5746_v48  ;;  %v4059_v36 = vld [vmem:[%s10571_s6 + $0x38] sm:$0xff]  ;;  %v5857_v48 = vunpack.c.h.s8.bf16 %v4641_v19  ;;  %v4665_v32 = vunpack.c.l.s8.bf16 %v4057_v38  ;;  %v4759_v19 = vunpack.c.h.s8.bf16 %v4094_v0 }
 0x772   : > { %6026 = vmatpush1.bf16.msra.mxu0 %v5743_v25  ;;  %6190 = vmatpush1.bf16.msra.mxu1 %v5745_v35  ;;  %v4667_v25 = vunpack.c.l.s8.bf16 %v4059_v36  ;;  %v4056_v35 = vld [vmem:[%s10571_s6 + $0x20] sm:$0xff] }
 0x773   : > { %6027 = vmatprep.subr.bf16.mxu0 %v5763_v16  ;;  %6191 = vmatprep.subr.bf16.mxu1 %v5765_v28  ;;  %v4050_v16 = vsel %vm4034_vm0, %v4026_v22, %v4042_v20  ;;  %v4058_v28 = vld [vmem:[%s10571_s6 + $0x30] sm:$0xff]  ;;  %v4664_v55 = vunpack.c.l.s8.bf16 %v4056_v35  ;;  %v4683_v39 = vunpack.c.h.s8.bf16 %v4056_v35 }
 0x774   : > { %v11014_v26 = vpack.c.bf16 %v4050_v16, %v4050_v16  ;;  %v4685_v61 = vunpack.c.h.s8.bf16 %v4058_v28  ;;  %v4132_v16 = vld [vmem:[%s10571_s6 + $0x280] sm:$0xff] }
 0x776   : > { %6028 = vmatpush1.bf16.msra.mxu0 %v5762_v57  ;;  %6192 = vmatpush1.bf16.msra.mxu1 %v5764_v37  ;;  %v4666_v57 = vunpack.c.l.s8.bf16 %v4058_v28  ;;  %v4684_v37 = vunpack.c.h.s8.bf16 %v4057_v38 }
 0x777   : > { %6029 = vmatprep.subr.bf16.mxu0 %v5782_v30  ;;  %6193 = vmatprep.subr.bf16.mxu1 %v5784_v24  ;;  %v4686_v30 = vunpack.c.h.s8.bf16 %v4059_v36  ;;  %v4076_v24 = vld [vmem:[%s10571_s6 + $0xc0] sm:$0xff] }
 0x778   : > { %v4722_v46 = vunpack.c.h.s8.bf16 %v4076_v24 }
 0x77a   : > { %6030 = vmatpush1.bf16.msra.mxu0 %v5781_v40  ;;  %6194 = vmatpush1.bf16.msra.mxu1 %v5783_v43  ;;  %v4703_v40 = vunpack.c.l.s8.bf16 %v4076_v24  ;;  %v4075_v43 = vld [vmem:[%s10571_s6 + $0xb8] sm:$0xff] }
 0x77b   : > { %6031 = vmatprep.subr.bf16.mxu0 %v5801_v44  ;;  %6195 = vmatprep.subr.bf16.mxu1 %v5803_v4  ;;  %v4705_v44 = vunpack.c.l.s8.bf16 %v4078_v9  ;;  %v4077_v4 = vld [vmem:[%s10571_s6 + $0xc8] sm:$0xff]  ;;  %v4702_v11 = vunpack.c.l.s8.bf16 %v4075_v43  ;;  %v4152_v9 = vld [vmem:[%s10571_s6 + $0x320] sm:$0xff] }
 0x77c   : > { %v4704_v45 = vunpack.c.l.s8.bf16 %v4077_v4 }
 0x77e   : > { %6032 = vmatpush1.bf16.msra.mxu0 %v5800_v54  ;;  %6196 = vmatpush1.bf16.msra.mxu1 %v5802_v56  ;;  %v4097_v54 = vld [vmem:[%s10571_s6 + $0x168] sm:$0xff]  ;;  %v4721_v56 = vunpack.c.h.s8.bf16 %v4075_v43  ;;  %v4855_v43 = vunpack.c.l.s8.bf16 %v4152_v9 }
 0x77f   : > { %6033 = vmatprep.subr.bf16.mxu0 %v5820_v62  ;;  %6197 = vmatprep.subr.bf16.mxu1 %v5822_v63  ;;  %v4723_v62 = vunpack.c.h.s8.bf16 %v4077_v4  ;;  %v4741_v63 = vunpack.c.l.s8.bf16 %v4095_v53  ;;  %v4743_v1 = vunpack.c.l.s8.bf16 %v4097_v54 }
 0x782   : > { %6034 = vmatpush1.bf16.msra.mxu0 %v5819_v33  ;;  %6198 = vmatpush1.bf16.msra.mxu1 %v5821_v14  ;;  %v4760_v33 = vunpack.c.h.s8.bf16 %v4095_v53  ;;  %v4762_v14 = vunpack.c.h.s8.bf16 %v4097_v54  ;;  %v4171_v54 = vld [vmem:[%s10571_s6 + $0x3b8] sm:$0xff] }
 0x783   : > { %6035 = vmatprep.subr.bf16.mxu0 %v5839_v15  ;;  %6199 = vmatprep.subr.bf16.mxu1 %v5841_v18  ;;  %v4114_v15 = vld [vmem:[%s10571_s6 + $0x1f0] sm:$0xff]  ;;  %v4116_v18 = vld [vmem:[%s10571_s6 + $0x200] sm:$0xff]  ;;  %v4893_v0 = vunpack.c.l.s8.bf16 %v4171_v54 }
 0x784   : > { %v4779_v22 = vunpack.c.l.s8.bf16 %v4114_v15  ;;  %v4798_v38 = vunpack.c.h.s8.bf16 %v4114_v15  ;;  %v4800_v36 = vunpack.c.h.s8.bf16 %v4116_v18 }
 0x786   : > { %6036 = vmatpush1.bf16.msra.mxu0 %v5838_v31  ;;  %6200 = vmatpush1.bf16.msra.mxu1 %v5840_v23  ;;  %v4113_v31 = vld [vmem:[%s10571_s6 + $0x1e8] sm:$0xff]  ;;  %v4781_v23 = vunpack.c.l.s8.bf16 %v4116_v18  ;;  %v4190_v18 = vld [vmem:[%s10571_s6 + $0x450] sm:$0xff] }
 0x787   : > { %6037 = vmatprep.subr.bf16.mxu0 %v5858_v27  ;;  %6201 = vmatprep.subr.bf16.mxu1 %v5860_v29  ;;  %v4115_v27 = vld [vmem:[%s10571_s6 + $0x1f8] sm:$0xff]  ;;  %v4778_v29 = vunpack.c.l.s8.bf16 %v4113_v31 }
 0x788   : > { %v4780_v20 = vunpack.c.l.s8.bf16 %v4115_v27 }
 0x78a   : > { %6038 = vmatpush1.bf16.msra.mxu0 %v5857_v48  ;;  %6202 = vmatpush1.bf16.msra.mxu1 %v5859_v5  ;;  %v4133_v48 = vld [vmem:[%s10571_s6 + $0x288] sm:$0xff]  ;;  %v4135_v5 = vld [vmem:[%s10571_s6 + $0x298] sm:$0xff] }
 0x78b   : > { %6212 = vmatprep.subr.bf16.mxu0 %v4665_v32  ;;  %6376 = vmatprep.subr.bf16.mxu1 %v4667_v25  ;;  %v4797_v32 = vunpack.c.h.s8.bf16 %v4113_v31  ;;  %v4799_v25 = vunpack.c.h.s8.bf16 %v4115_v27  ;;  %v4817_v35 = vunpack.c.l.s8.bf16 %v4133_v48  ;;  %v4819_v28 = vunpack.c.l.s8.bf16 %v4135_v5 }
 0x78c   : > { %v4838_v24 = vunpack.c.h.s8.bf16 %v4135_v5  ;;  %v4931_v31 = vunpack.c.l.s8.bf16 %v4190_v18  ;;  %v4209_v5 = vld [vmem:[%s10571_s6 + $0x4e8] sm:$0xff] }
 0x78d   : > { %6040 = vmatmul.mubr.bf16.vlgmr.msra.gmra.mrb[12].mxu0 %v11014_v26  ;;  %6204 = vmatmul.mubr.bf16.vlgmr.msra.gmra.mrb[20].mxu1 %v11014_v26 }
 0x78e   : > { %6213 = vmatpush1.bf16.msra.mxu0 %v4664_v55  ;;  %6244 = vmatprep.mubr.bf16.mxu0 %v10801_v58  ;;  %v4134_v55 = vld [vmem:[%s10571_s6 + $0x290] sm:$0xff] }
 0x78f   : > { %6377 = vmatpush1.bf16.msra.mxu1 %v4666_v57  ;;  %6408 = vmatprep.mubr.bf16.mxu1 %v10801_v58  ;;  %v4816_v57 = vunpack.c.l.s8.bf16 %v4132_v16 }
 0x790   : > { %6214 = vmatprep.subr.bf16.mxu0 %v4684_v37  ;;  %6378 = vmatprep.subr.bf16.mxu1 %v4686_v30  ;;  %v4818_v37 = vunpack.c.l.s8.bf16 %v4134_v55  ;;  %v4836_v30 = vunpack.c.h.s8.bf16 %v4133_v48 }
 0x792   : > { %6215 = vmatpush1.bf16.msra.mxu0 %v4683_v39  ;;  %v4154_v39 = vld [vmem:[%s10571_s6 + $0x330] sm:$0xff] }
 0x793   : > { %6379 = vmatpush1.bf16.msra.mxu1 %v4685_v61  ;;  %6216 = vmatprep.subr.bf16.mxu0 %v4703_v40  ;;  %v4835_v61 = vunpack.c.h.s8.bf16 %v4132_v16  ;;  %v4837_v40 = vunpack.c.h.s8.bf16 %v4134_v55  ;;  %v4857_v4 = vunpack.c.l.s8.bf16 %v4154_v39  ;;  %v4876_v53 = vunpack.c.h.s8.bf16 %v4154_v39 }
 0x794   : > { %6380 = vmatprep.subr.bf16.mxu1 %v4705_v44  ;;  %v4151_v44 = vld [vmem:[%s10571_s6 + $0x318] sm:$0xff]  ;;  %v4969_v16 = vunpack.c.l.s8.bf16 %v4209_v5 }
 0x796   : > { %6217 = vmatpush1.bf16.msra.mxu0 %v4702_v11  ;;  %v4153_v11 = vld [vmem:[%s10571_s6 + $0x328] sm:$0xff] }
 0x797   : > { %6381 = vmatpush1.bf16.msra.mxu1 %v4704_v45  ;;  %6218 = vmatprep.subr.bf16.mxu0 %v4722_v46  ;;  %v4854_v45 = vunpack.c.l.s8.bf16 %v4151_v44  ;;  %v4856_v46 = vunpack.c.l.s8.bf16 %v4153_v11 }
 0x798   : > { %6382 = vmatprep.subr.bf16.mxu1 %v4724_v51  ;;  %v4874_v51 = vunpack.c.h.s8.bf16 %v4152_v9  ;;  %v4228_v9 = vld [vmem:[%s10571_s6 + $0x580] sm:$0xff] }
 0x79a   : > { %6219 = vmatpush1.bf16.msra.mxu0 %v4721_v56  ;;  %v4173_v56 = vld [vmem:[%s10571_s6 + $0x3c8] sm:$0xff] }
 0x79b   : > { %6383 = vmatpush1.bf16.msra.mxu1 %v4723_v62  ;;  %6220 = vmatprep.subr.bf16.mxu0 %v4741_v63  ;;  %v4873_v62 = vunpack.c.h.s8.bf16 %v4151_v44  ;;  %v4875_v63 = vunpack.c.h.s8.bf16 %v4153_v11  ;;  %v4895_v2 = vunpack.c.l.s8.bf16 %v4173_v56  ;;  %v4914_v15 = vunpack.c.h.s8.bf16 %v4173_v56  ;;  %v4247_v56 = vld [vmem:[%s10571_s6 + $0x618] sm:$0xff] }
 0x79c   : > { %6384 = vmatprep.subr.bf16.mxu1 %v4743_v1  ;;  %v4170_v1 = vld [vmem:[%s10571_s6 + $0x3b0] sm:$0xff]  ;;  %v5007_v44 = vunpack.c.l.s8.bf16 %v4228_v9 }
 0x79e   : > { %6221 = vmatpush1.bf16.msra.mxu0 %v4740_v3  ;;  %v4172_v3 = vld [vmem:[%s10571_s6 + $0x3c0] sm:$0xff] }
 0x79f   : > { %6385 = vmatpush1.bf16.msra.mxu1 %v4742_v17  ;;  %6222 = vmatprep.subr.bf16.mxu0 %v4760_v33  ;;  %v4892_v17 = vunpack.c.l.s8.bf16 %v4170_v1  ;;  %v4894_v33 = vunpack.c.l.s8.bf16 %v4172_v3 }
 0x7a0   : > { %6386 = vmatprep.subr.bf16.mxu1 %v4762_v14  ;;  %v4912_v14 = vunpack.c.h.s8.bf16 %v4171_v54 }
 0x7a2   : > { %6223 = vmatpush1.bf16.msra.mxu0 %v4759_v19  ;;  %v4192_v19 = vld [vmem:[%s10571_s6 + $0x460] sm:$0xff] }
 0x7a3   : > { %6387 = vmatpush1.bf16.msra.mxu1 %v4761_v21  ;;  %6224 = vmatprep.subr.bf16.mxu0 %v4779_v22  ;;  %v4911_v21 = vunpack.c.h.s8.bf16 %v4170_v1  ;;  %v4913_v22 = vunpack.c.h.s8.bf16 %v4172_v3  ;;  %v4933_v27 = vunpack.c.l.s8.bf16 %v4192_v19  ;;  %v4952_v48 = vunpack.c.h.s8.bf16 %v4192_v19  ;;  %v4266_v19 = vld [vmem:[%s10571_s6 + $0x6b0] sm:$0xff] }
 0x7a4   : > { %6388 = vmatprep.subr.bf16.mxu1 %v4781_v23  ;;  %v4189_v23 = vld [vmem:[%s10571_s6 + $0x448] sm:$0xff]  ;;  %v5045_v1 = vunpack.c.l.s8.bf16 %v4247_v56 }
 0x7a6   : > { %6225 = vmatpush1.bf16.msra.mxu0 %v4778_v29  ;;  %v4191_v29 = vld [vmem:[%s10571_s6 + $0x458] sm:$0xff] }
 0x7a7   : > { %6389 = vmatpush1.bf16.msra.mxu1 %v4780_v20  ;;  %6226 = vmatprep.subr.bf16.mxu0 %v4798_v38  ;;  %v4930_v20 = vunpack.c.l.s8.bf16 %v4189_v23  ;;  %v4932_v38 = vunpack.c.l.s8.bf16 %v4191_v29 }
 0x7a8   : > { %6390 = vmatprep.subr.bf16.mxu1 %v4800_v36  ;;  %v4950_v36 = vunpack.c.h.s8.bf16 %v4190_v18 }
 0x7aa   : > { %6227 = vmatpush1.bf16.msra.mxu0 %v4797_v32  ;;  %v4211_v32 = vld [vmem:[%s10571_s6 + $0x4f8] sm:$0xff] }
 0x7ab   : > { %6391 = vmatpush1.bf16.msra.mxu1 %v4799_v25  ;;  %6228 = vmatprep.subr.bf16.mxu0 %v4817_v35  ;;  %v4949_v25 = vunpack.c.h.s8.bf16 %v4189_v23  ;;  %v4951_v35 = vunpack.c.h.s8.bf16 %v4191_v29  ;;  %v4971_v55 = vunpack.c.l.s8.bf16 %v4211_v32  ;;  %v4990_v39 = vunpack.c.h.s8.bf16 %v4211_v32  ;;  %v4285_v32 = vld [vmem:[%s10571_s6 + $0x748] sm:$0xff] }
 0x7ac   : > { %6392 = vmatprep.subr.bf16.mxu1 %v4819_v28  ;;  %v4208_v28 = vld [vmem:[%s10571_s6 + $0x4e0] sm:$0xff]  ;;  %v5083_v23 = vunpack.c.l.s8.bf16 %v4266_v19 }
 0x7ae   : > { %6229 = vmatpush1.bf16.msra.mxu0 %v4816_v57  ;;  %v4210_v57 = vld [vmem:[%s10571_s6 + $0x4f0] sm:$0xff] }
 0x7af   : > { %6393 = vmatpush1.bf16.msra.mxu1 %v4818_v37  ;;  %6230 = vmatprep.subr.bf16.mxu0 %v4836_v30  ;;  %v4968_v37 = vunpack.c.l.s8.bf16 %v4208_v28  ;;  %v4970_v30 = vunpack.c.l.s8.bf16 %v4210_v57 }
 0x7b0   : > { %6394 = vmatprep.subr.bf16.mxu1 %v4838_v24  ;;  %v4988_v24 = vunpack.c.h.s8.bf16 %v4209_v5 }
 0x7b2   : > { %6231 = vmatpush1.bf16.msra.mxu0 %v4835_v61  ;;  %v4230_v61 = vld [vmem:[%s10571_s6 + $0x590] sm:$0xff] }
 0x7b3   : > { %6395 = vmatpush1.bf16.msra.mxu1 %v4837_v40  ;;  %6232 = vmatprep.subr.bf16.mxu0 %v4855_v43  ;;  %v4987_v40 = vunpack.c.h.s8.bf16 %v4208_v28  ;;  %v4989_v43 = vunpack.c.h.s8.bf16 %v4210_v57  ;;  %v5009_v11 = vunpack.c.l.s8.bf16 %v4230_v61  ;;  %v5028_v54 = vunpack.c.h.s8.bf16 %v4230_v61  ;;  %v4304_v61 = vld [vmem:[%s10571_s6 + $0x7e0] sm:$0xff] }
 0x7b4   : > { %6396 = vmatprep.subr.bf16.mxu1 %v4857_v4  ;;  %v4227_v4 = vld [vmem:[%s10571_s6 + $0x578] sm:$0xff]  ;;  %v5121_v28 = vunpack.c.l.s8.bf16 %v4285_v32 }
 0x7b6   : > { %6233 = vmatpush1.bf16.msra.mxu0 %v4854_v45  ;;  %v4229_v45 = vld [vmem:[%s10571_s6 + $0x588] sm:$0xff] }
 0x7b7   : > { %6397 = vmatpush1.bf16.msra.mxu1 %v4856_v46  ;;  %6234 = vmatprep.subr.bf16.mxu0 %v4874_v51  ;;  %v5006_v46 = vunpack.c.l.s8.bf16 %v4227_v4  ;;  %v5008_v51 = vunpack.c.l.s8.bf16 %v4229_v45 }
 0x7b8   : > { %6398 = vmatprep.subr.bf16.mxu1 %v4876_v53  ;;  %v5026_v53 = vunpack.c.h.s8.bf16 %v4228_v9  ;;  %v5140_v9 = vunpack.c.h.s8.bf16 %v4285_v32 }
 0x7ba   : > { %6235 = vmatpush1.bf16.msra.mxu0 %v4873_v62  ;;  %v4249_v62 = vld [vmem:[%s10571_s6 + $0x628] sm:$0xff] }
 0x7bb   : > { %6399 = vmatpush1.bf16.msra.mxu1 %v4875_v63  ;;  %6236 = vmatprep.subr.bf16.mxu0 %v4893_v0  ;;  %v5025_v63 = vunpack.c.h.s8.bf16 %v4227_v4  ;;  %v5027_v0 = vunpack.c.h.s8.bf16 %v4229_v45  ;;  %v5047_v3 = vunpack.c.l.s8.bf16 %v4249_v62  ;;  %v5066_v18 = vunpack.c.h.s8.bf16 %v4249_v62  ;;  %v4323_v62 = vld [vmem:[%s10571_s6 + $0x878] sm:$0xff] }
 0x7bc   : > { %6400 = vmatprep.subr.bf16.mxu1 %v4895_v2  ;;  %v4246_v2 = vld [vmem:[%s10571_s6 + $0x610] sm:$0xff]  ;;  %v5159_v4 = vunpack.c.l.s8.bf16 %v4304_v61 }
 0x7be   : > { %6237 = vmatpush1.bf16.msra.mxu0 %v4892_v17  ;;  %v4248_v17 = vld [vmem:[%s10571_s6 + $0x620] sm:$0xff] }
 0x7bf   : > { %6401 = vmatpush1.bf16.msra.mxu1 %v4894_v33  ;;  %6238 = vmatprep.subr.bf16.mxu0 %v4912_v14  ;;  %v5044_v33 = vunpack.c.l.s8.bf16 %v4246_v2  ;;  %v5046_v14 = vunpack.c.l.s8.bf16 %v4248_v17 }
 0x7c0   : > { %6402 = vmatprep.subr.bf16.mxu1 %v4914_v15  ;;  %v5064_v15 = vunpack.c.h.s8.bf16 %v4247_v56 }
 0x7c2   : > { %6239 = vmatpush1.bf16.msra.mxu0 %v4911_v21  ;;  %v4268_v21 = vld [vmem:[%s10571_s6 + $0x6c0] sm:$0xff] }
 0x7c3   : > { %6403 = vmatpush1.bf16.msra.mxu1 %v4913_v22  ;;  %6240 = vmatprep.subr.bf16.mxu0 %v4931_v31  ;;  %v5063_v22 = vunpack.c.h.s8.bf16 %v4246_v2  ;;  %v5065_v31 = vunpack.c.h.s8.bf16 %v4248_v17  ;;  %v5085_v29 = vunpack.c.l.s8.bf16 %v4268_v21  ;;  %v5104_v5 = vunpack.c.h.s8.bf16 %v4268_v21  ;;  %v4342_v21 = vld [vmem:[%s10571_s6 + $0x910] sm:$0xff] }
 0x7c4   : > { %6404 = vmatprep.subr.bf16.mxu1 %v4933_v27  ;;  %v4265_v27 = vld [vmem:[%s10571_s6 + $0x6a8] sm:$0xff]  ;;  %v5197_v2 = vunpack.c.l.s8.bf16 %v4323_v62 }
 0x7c6   : > { %6241 = vmatpush1.bf16.msra.mxu0 %v4930_v20  ;;  %v4267_v20 = vld [vmem:[%s10571_s6 + $0x6b8] sm:$0xff] }
 0x7c7   : > { %6405 = vmatpush1.bf16.msra.mxu1 %v4932_v38  ;;  %6242 = vmatprep.subr.bf16.mxu0 %v4950_v36  ;;  %v5082_v38 = vunpack.c.l.s8.bf16 %v4265_v27  ;;  %v5084_v36 = vunpack.c.l.s8.bf16 %v4267_v20 }
 0x7c8   : > { %6406 = vmatprep.subr.bf16.mxu1 %v4952_v48  ;;  %v5102_v48 = vunpack.c.h.s8.bf16 %v4266_v19 }
 0x7ca   : > { %6243 = vmatpush1.bf16.msra.mxu0 %v4949_v25  ;;  %v4287_v25 = vld [vmem:[%s10571_s6 + $0x758] sm:$0xff] }
 0x7cb   : > { %6407 = vmatpush1.bf16.msra.mxu1 %v4951_v35  ;;  %6253 = vmatprep.subr.bf16.mxu0 %v4969_v16  ;;  %v5101_v35 = vunpack.c.h.s8.bf16 %v4265_v27  ;;  %v5103_v16 = vunpack.c.h.s8.bf16 %v4267_v20  ;;  %v5123_v57 = vunpack.c.l.s8.bf16 %v4287_v25  ;;  %v5235_v27 = vunpack.c.l.s8.bf16 %v4342_v21 }
 0x7cc   : > { %6417 = vmatprep.subr.bf16.mxu1 %v4971_v55  ;;  %v4284_v55 = vld [vmem:[%s10571_s6 + $0x740] sm:$0xff] }
 0x7cd   : > { %6245 = vmatmul.mubr.bf16.vlgmr.msra.gmra.mrb[16].mxu0 %v10803_v41 }
 0x7ce   : > { %6409 = vmatmul.mubr.bf16.vlgmr.msra.gmra.mrb[24].mxu1 %v10803_v41  ;;  %6254 = vmatpush1.bf16.msra.mxu0 %v4968_v37  ;;  %v4286_v37 = vld [vmem:[%s10571_s6 + $0x750] sm:$0xff] }
 0x7cf   : > { %6285 = vmatprep.mubr.bf16.mxu0 %v10811_v49  ;;  %6418 = vmatpush1.bf16.msra.mxu1 %v4970_v30  ;;  %v5120_v30 = vunpack.c.l.s8.bf16 %v4284_v55 }
 0x7d0   : > { %6449 = vmatprep.mubr.bf16.mxu1 %v10811_v49  ;;  %6255 = vmatprep.subr.bf16.mxu0 %v4988_v24  ;;  %v5122_v24 = vunpack.c.l.s8.bf16 %v4286_v37 }
 0x7d1   : > { %6419 = vmatprep.subr.bf16.mxu1 %v4990_v39  ;;  %v5142_v39 = vunpack.c.h.s8.bf16 %v4287_v25  ;;  %v4361_v25 = vld [vmem:[%s10571_s6 + $0x9a8] sm:$0xff] }
 0x7d2   : > { %6256 = vmatpush1.bf16.msra.mxu0 %v4987_v40  ;;  %v4306_v40 = vld [vmem:[%s10571_s6 + $0x7f0] sm:$0xff] }
 0x7d3   : > { %6420 = vmatpush1.bf16.msra.mxu1 %v4989_v43  ;;  %6257 = vmatprep.subr.bf16.mxu0 %v5007_v44  ;;  %v5139_v43 = vunpack.c.h.s8.bf16 %v4284_v55  ;;  %v5141_v44 = vunpack.c.h.s8.bf16 %v4286_v37  ;;  %v5161_v45 = vunpack.c.l.s8.bf16 %v4306_v40  ;;  %v5180_v56 = vunpack.c.h.s8.bf16 %v4306_v40 }
 0x7d4   : > { %6421 = vmatprep.subr.bf16.mxu1 %v5009_v11  ;;  %v4303_v11 = vld [vmem:[%s10571_s6 + $0x7d8] sm:$0xff]  ;;  %v5273_v55 = vunpack.c.l.s8.bf16 %v4361_v25 }
 0x7d6   : > { %6258 = vmatpush1.bf16.msra.mxu0 %v5006_v46  ;;  %v4305_v46 = vld [vmem:[%s10571_s6 + $0x7e8] sm:$0xff] }
 0x7d7   : > { %6422 = vmatpush1.bf16.msra.mxu1 %v5008_v51  ;;  %6259 = vmatprep.subr.bf16.mxu0 %v5026_v53  ;;  %v5158_v51 = vunpack.c.l.s8.bf16 %v4303_v11  ;;  %v5160_v53 = vunpack.c.l.s8.bf16 %v4305_v46 }
 0x7d8   : > { %6423 = vmatprep.subr.bf16.mxu1 %v5028_v54  ;;  %v5178_v54 = vunpack.c.h.s8.bf16 %v4304_v61  ;;  %v4380_v61 = vld [vmem:[%s10571_s6 + $0xa40] sm:$0xff] }
 0x7da   : > { %6260 = vmatpush1.bf16.msra.mxu0 %v5025_v63  ;;  %v4325_v63 = vld [vmem:[%s10571_s6 + $0x888] sm:$0xff] }
 0x7db   : > { %6424 = vmatpush1.bf16.msra.mxu1 %v5027_v0  ;;  %6261 = vmatprep.subr.bf16.mxu0 %v5045_v1  ;;  %v5177_v0 = vunpack.c.h.s8.bf16 %v4303_v11  ;;  %v5179_v1 = vunpack.c.h.s8.bf16 %v4305_v46  ;;  %v5199_v17 = vunpack.c.l.s8.bf16 %v4325_v63  ;;  %v5218_v19 = vunpack.c.h.s8.bf16 %v4325_v63  ;;  %v4399_v63 = vld [vmem:[%s10571_s6 + $0xad8] sm:$0xff] }
 0x7dc   : > { %6425 = vmatprep.subr.bf16.mxu1 %v5047_v3  ;;  %v4322_v3 = vld [vmem:[%s10571_s6 + $0x870] sm:$0xff]  ;;  %v5311_v11 = vunpack.c.l.s8.bf16 %v4380_v61 }
 0x7de   : > { %6262 = vmatpush1.bf16.msra.mxu0 %v5044_v33  ;;  %v4324_v33 = vld [vmem:[%s10571_s6 + $0x880] sm:$0xff] }
 0x7df   : > { %6426 = vmatpush1.bf16.msra.mxu1 %v5046_v14  ;;  %6263 = vmatprep.subr.bf16.mxu0 %v5064_v15  ;;  %v5196_v14 = vunpack.c.l.s8.bf16 %v4322_v3  ;;  %v5198_v15 = vunpack.c.l.s8.bf16 %v4324_v33 }
 0x7e0   : > { %6427 = vmatprep.subr.bf16.mxu1 %v5066_v18  ;;  %v5216_v18 = vunpack.c.h.s8.bf16 %v4323_v62 }
 0x7e2   : > { %6264 = vmatpush1.bf16.msra.mxu0 %v5063_v22  ;;  %v4344_v22 = vld [vmem:[%s10571_s6 + $0x920] sm:$0xff] }
 0x7e3   : > { %6428 = vmatpush1.bf16.msra.mxu1 %v5065_v31  ;;  %6265 = vmatprep.subr.bf16.mxu0 %v5083_v23  ;;  %v5215_v31 = vunpack.c.h.s8.bf16 %v4322_v3  ;;  %v5217_v23 = vunpack.c.h.s8.bf16 %v4324_v33  ;;  %v5237_v20 = vunpack.c.l.s8.bf16 %v4344_v22  ;;  %v5256_v32 = vunpack.c.h.s8.bf16 %v4344_v22  ;;  %v4418_v22 = vld [vmem:[%s10571_s6 + $0xb70] sm:$0xff] }
 0x7e4   : > { %6429 = vmatprep.subr.bf16.mxu1 %v5085_v29  ;;  %v4341_v29 = vld [vmem:[%s10571_s6 + $0x908] sm:$0xff]  ;;  %v5349_v3 = vunpack.c.l.s8.bf16 %v4399_v63 }
 0x7e6   : > { %6266 = vmatpush1.bf16.msra.mxu0 %v5082_v38  ;;  %v4343_v38 = vld [vmem:[%s10571_s6 + $0x918] sm:$0xff] }
 0x7e7   : > { %6430 = vmatpush1.bf16.msra.mxu1 %v5084_v36  ;;  %6267 = vmatprep.subr.bf16.mxu0 %v5102_v48  ;;  %v5234_v36 = vunpack.c.l.s8.bf16 %v4341_v29  ;;  %v5236_v48 = vunpack.c.l.s8.bf16 %v4343_v38 }
 0x7e8   : > { %6431 = vmatprep.subr.bf16.mxu1 %v5104_v5  ;;  %v5254_v5 = vunpack.c.h.s8.bf16 %v4342_v21 }
 0x7ea   : > { %6268 = vmatpush1.bf16.msra.mxu0 %v5101_v35  ;;  %v4363_v35 = vld [vmem:[%s10571_s6 + $0x9b8] sm:$0xff] }
 0x7eb   : > { %6432 = vmatpush1.bf16.msra.mxu1 %v5103_v16  ;;  %6269 = vmatprep.subr.bf16.mxu0 %v5121_v28  ;;  %v5253_v16 = vunpack.c.h.s8.bf16 %v4341_v29  ;;  %v5255_v28 = vunpack.c.h.s8.bf16 %v4343_v38  ;;  %v5275_v37 = vunpack.c.l.s8.bf16 %v4363_v35  ;;  %v5294_v40 = vunpack.c.h.s8.bf16 %v4363_v35  ;;  %v4437_v35 = vld [vmem:[%s10571_s6 + $0xc08] sm:$0xff] }
 0x7ec   : > { %6433 = vmatprep.subr.bf16.mxu1 %v5123_v57  ;;  %v4360_v57 = vld [vmem:[%s10571_s6 + $0x9a0] sm:$0xff]  ;;  %v5387_v29 = vunpack.c.l.s8.bf16 %v4418_v22 }
 0x7ee   : > { %6270 = vmatpush1.bf16.msra.mxu0 %v5120_v30  ;;  %v4362_v30 = vld [vmem:[%s10571_s6 + $0x9b0] sm:$0xff] }
 0x7ef   : > { %6434 = vmatpush1.bf16.msra.mxu1 %v5122_v24  ;;  %6271 = vmatprep.subr.bf16.mxu0 %v5140_v9  ;;  %v5272_v24 = vunpack.c.l.s8.bf16 %v4360_v57  ;;  %v5274_v9 = vunpack.c.l.s8.bf16 %v4362_v30 }
 0x7f0   : > { %6435 = vmatprep.subr.bf16.mxu1 %v5142_v39  ;;  %v5292_v39 = vunpack.c.h.s8.bf16 %v4361_v25 }
 0x7f2   : > { %6272 = vmatpush1.bf16.msra.mxu0 %v5139_v43  ;;  %v4382_v43 = vld [vmem:[%s10571_s6 + $0xa50] sm:$0xff] }
 0x7f3   : > { %6436 = vmatpush1.bf16.msra.mxu1 %v5141_v44  ;;  %6273 = vmatprep.subr.bf16.mxu0 %v5159_v4  ;;  %v5291_v44 = vunpack.c.h.s8.bf16 %v4360_v57  ;;  %v5293_v4 = vunpack.c.h.s8.bf16 %v4362_v30  ;;  %v5313_v46 = vunpack.c.l.s8.bf16 %v4382_v43  ;;  %v5332_v62 = vunpack.c.h.s8.bf16 %v4382_v43  ;;  %v4456_v43 = vld [vmem:[%s10571_s6 + $0xca0] sm:$0xff] }
 0x7f4   : > { %6437 = vmatprep.subr.bf16.mxu1 %v5161_v45  ;;  %v4379_v45 = vld [vmem:[%s10571_s6 + $0xa38] sm:$0xff]  ;;  %v5425_v57 = vunpack.c.l.s8.bf16 %v4437_v35 }
 0x7f6   : > { %6274 = vmatpush1.bf16.msra.mxu0 %v5158_v51  ;;  %v4381_v51 = vld [vmem:[%s10571_s6 + $0xa48] sm:$0xff] }
 0x7f7   : > { %6438 = vmatpush1.bf16.msra.mxu1 %v5160_v53  ;;  %6275 = vmatprep.subr.bf16.mxu0 %v5178_v54  ;;  %v5310_v53 = vunpack.c.l.s8.bf16 %v4379_v45  ;;  %v5312_v54 = vunpack.c.l.s8.bf16 %v4381_v51 }
 0x7f8   : > { %6439 = vmatprep.subr.bf16.mxu1 %v5180_v56  ;;  %v5330_v56 = vunpack.c.h.s8.bf16 %v4380_v61  ;;  %v5444_v61 = vunpack.c.h.s8.bf16 %v4437_v35 }
 0x7fa   : > { %6276 = vmatpush1.bf16.msra.mxu0 %v5177_v0  ;;  %v4401_v0 = vld [vmem:[%s10571_s6 + $0xae8] sm:$0xff] }
 0x7fb   : > { %6440 = vmatpush1.bf16.msra.mxu1 %v5179_v1  ;;  %6277 = vmatprep.subr.bf16.mxu0 %v5197_v2  ;;  %v5329_v1 = vunpack.c.h.s8.bf16 %v4379_v45  ;;  %v5331_v2 = vunpack.c.h.s8.bf16 %v4381_v51  ;;  %v5351_v33 = vunpack.c.l.s8.bf16 %v4401_v0  ;;  %v5370_v21 = vunpack.c.h.s8.bf16 %v4401_v0  ;;  %v4475_v0 = vld [vmem:[%s10571_s6 + $0xd38] sm:$0xff] }
 0x7fc   : > { %6441 = vmatprep.subr.bf16.mxu1 %v5199_v17  ;;  %v4398_v17 = vld [vmem:[%s10571_s6 + $0xad0] sm:$0xff]  ;;  %v5463_v45 = vunpack.c.l.s8.bf16 %v4456_v43 }
 0x7fe   : > { %6278 = vmatpush1.bf16.msra.mxu0 %v5196_v14  ;;  %v4400_v14 = vld [vmem:[%s10571_s6 + $0xae0] sm:$0xff] }
 0x7ff   : > { %6442 = vmatpush1.bf16.msra.mxu1 %v5198_v15  ;;  %6279 = vmatprep.subr.bf16.mxu0 %v5216_v18  ;;  %v5348_v15 = vunpack.c.l.s8.bf16 %v4398_v17  ;;  %v5350_v18 = vunpack.c.l.s8.bf16 %v4400_v14 }
 0x800   : > { %6443 = vmatprep.subr.bf16.mxu1 %v5218_v19  ;;  %v5368_v19 = vunpack.c.h.s8.bf16 %v4399_v63 }
 0x802   : > { %6280 = vmatpush1.bf16.msra.mxu0 %v5215_v31  ;;  %v4420_v31 = vld [vmem:[%s10571_s6 + $0xb80] sm:$0xff] }
 0x803   : > { %6444 = vmatpush1.bf16.msra.mxu1 %v5217_v23  ;;  %6281 = vmatprep.subr.bf16.mxu0 %v5235_v27  ;;  %v5367_v23 = vunpack.c.h.s8.bf16 %v4398_v17  ;;  %v5369_v27 = vunpack.c.h.s8.bf16 %v4400_v14  ;;  %v5389_v38 = vunpack.c.l.s8.bf16 %v4420_v31  ;;  %v5408_v25 = vunpack.c.h.s8.bf16 %v4420_v31  ;;  %v4494_v31 = vld [vmem:[%s10571_s6 + $0xdd0] sm:$0xff] }
 0x804   : > { %6445 = vmatprep.subr.bf16.mxu1 %v5237_v20  ;;  %v4417_v20 = vld [vmem:[%s10571_s6 + $0xb68] sm:$0xff]  ;;  %v5501_v17 = vunpack.c.l.s8.bf16 %v4475_v0 }
 0x806   : > { %6282 = vmatpush1.bf16.msra.mxu0 %v5234_v36  ;;  %v4419_v36 = vld [vmem:[%s10571_s6 + $0xb78] sm:$0xff] }
 0x807   : > { %6446 = vmatpush1.bf16.msra.mxu1 %v5236_v48  ;;  %6283 = vmatprep.subr.bf16.mxu0 %v5254_v5  ;;  %v5386_v48 = vunpack.c.l.s8.bf16 %v4417_v20  ;;  %v5388_v5 = vunpack.c.l.s8.bf16 %v4419_v36 }
 0x808   : > { %6447 = vmatprep.subr.bf16.mxu1 %v5256_v32  ;;  %v5406_v32 = vunpack.c.h.s8.bf16 %v4418_v22 }
 0x80a   : > { %6284 = vmatpush1.bf16.msra.mxu0 %v5253_v16  ;;  %v4439_v16 = vld [vmem:[%s10571_s6 + $0xc18] sm:$0xff] }
 0x80b   : > { %6448 = vmatpush1.bf16.msra.mxu1 %v5255_v28  ;;  %6294 = vmatprep.subr.bf16.mxu0 %v5273_v55  ;;  %v5405_v28 = vunpack.c.h.s8.bf16 %v4417_v20  ;;  %v5407_v55 = vunpack.c.h.s8.bf16 %v4419_v36  ;;  %v5427_v30 = vunpack.c.l.s8.bf16 %v4439_v16  ;;  %v5539_v20 = vunpack.c.l.s8.bf16 %v4494_v31 }
 0x80c   : > { %6458 = vmatprep.subr.bf16.mxu1 %v5275_v37  ;;  %v4436_v37 = vld [vmem:[%s10571_s6 + $0xc00] sm:$0xff] }
 0x80d   : > { %6286 = vmatmul.mubr.bf16.vlgmr.msra.gmra.mrb[16].mxu0 %v10863_v60 }
 0x80e   : > { %6450 = vmatmul.mubr.bf16.vlgmr.msra.gmra.mrb[24].mxu1 %v10863_v60  ;;  %6295 = vmatpush1.bf16.msra.mxu0 %v5272_v24  ;;  %v4438_v24 = vld [vmem:[%s10571_s6 + $0xc10] sm:$0xff] }
 0x80f   : > { %6326 = vmatprep.mubr.bf16.mxu0 %v10967_v13  ;;  %6459 = vmatpush1.bf16.msra.mxu1 %v5274_v9  ;;  %v5424_v9 = vunpack.c.l.s8.bf16 %v4436_v37 }
 0x810   : > { %6490 = vmatprep.mubr.bf16.mxu1 %v10967_v13  ;;  %6296 = vmatprep.subr.bf16.mxu0 %v5292_v39  ;;  %v5426_v39 = vunpack.c.l.s8.bf16 %v4438_v24 }
 0x811   : > { %6460 = vmatprep.subr.bf16.mxu1 %v5294_v40  ;;  %v5446_v40 = vunpack.c.h.s8.bf16 %v4439_v16  ;;  %v4513_v16 = vld [vmem:[%s10571_s6 + $0xe68] sm:$0xff] }
 0x812   : > { %6297 = vmatpush1.bf16.msra.mxu0 %v5291_v44  ;;  %v4458_v44 = vld [vmem:[%s10571_s6 + $0xcb0] sm:$0xff] }
 0x813   : > { %6461 = vmatpush1.bf16.msra.mxu1 %v5293_v4  ;;  %6298 = vmatprep.subr.bf16.mxu0 %v5311_v11  ;;  %v5443_v4 = vunpack.c.h.s8.bf16 %v4436_v37  ;;  %v5445_v11 = vunpack.c.h.s8.bf16 %v4438_v24  ;;  %v5465_v51 = vunpack.c.l.s8.bf16 %v4458_v44  ;;  %v5484_v63 = vunpack.c.h.s8.bf16 %v4458_v44 }
 0x814   : > { %6462 = vmatprep.subr.bf16.mxu1 %v5313_v46  ;;  %v4455_v46 = vld [vmem:[%s10571_s6 + $0xc98] sm:$0xff]  ;;  %v5577_v37 = vunpack.c.l.s8.bf16 %v4513_v16 }
 0x816   : > { %6299 = vmatpush1.bf16.msra.mxu0 %v5310_v53  ;;  %v4457_v53 = vld [vmem:[%s10571_s6 + $0xca8] sm:$0xff] }
 0x817   : > { %6463 = vmatpush1.bf16.msra.mxu1 %v5312_v54  ;;  %6300 = vmatprep.subr.bf16.mxu0 %v5330_v56  ;;  %v5462_v54 = vunpack.c.l.s8.bf16 %v4455_v46  ;;  %v5464_v56 = vunpack.c.l.s8.bf16 %v4457_v53 }
 0x818   : > { %6464 = vmatprep.subr.bf16.mxu1 %v5332_v62  ;;  %v5482_v62 = vunpack.c.h.s8.bf16 %v4456_v43  ;;  %v4532_v43 = vld [vmem:[%s10571_s6 + $0xf00] sm:$0xff] }
 0x81a   : > { %6301 = vmatpush1.bf16.msra.mxu0 %v5329_v1  ;;  %v4477_v1 = vld [vmem:[%s10571_s6 + $0xd48] sm:$0xff] }
 0x81b   : > { %6465 = vmatpush1.bf16.msra.mxu1 %v5331_v2  ;;  %6302 = vmatprep.subr.bf16.mxu0 %v5349_v3  ;;  %v5481_v2 = vunpack.c.h.s8.bf16 %v4455_v46  ;;  %v5483_v3 = vunpack.c.h.s8.bf16 %v4457_v53  ;;  %v5503_v14 = vunpack.c.l.s8.bf16 %v4477_v1  ;;  %v5522_v22 = vunpack.c.h.s8.bf16 %v4477_v1  ;;  %v4551_v1 = vld [vmem:[%s10571_s6 + $0xf98] sm:$0xff] }
 0x81c   : > { %6466 = vmatprep.subr.bf16.mxu1 %v5351_v33  ;;  %v4474_v33 = vld [vmem:[%s10571_s6 + $0xd30] sm:$0xff]  ;;  %v5615_v46 = vunpack.c.l.s8.bf16 %v4532_v43 }
 0x81e   : > { %6303 = vmatpush1.bf16.msra.mxu0 %v5348_v15  ;;  %v4476_v15 = vld [vmem:[%s10571_s6 + $0xd40] sm:$0xff] }
 0x81f   : > { %6467 = vmatpush1.bf16.msra.mxu1 %v5350_v18  ;;  %6304 = vmatprep.subr.bf16.mxu0 %v5368_v19  ;;  %v5500_v18 = vunpack.c.l.s8.bf16 %v4474_v33  ;;  %v5502_v19 = vunpack.c.l.s8.bf16 %v4476_v15 }
 0x820   : > { %6468 = vmatprep.subr.bf16.mxu1 %v5370_v21  ;;  %v5520_v21 = vunpack.c.h.s8.bf16 %v4475_v0 }
 0x822   : > { %6305 = vmatpush1.bf16.msra.mxu0 %v5367_v23  ;;  %v4496_v23 = vld [vmem:[%s10571_s6 + $0xde0] sm:$0xff] }
 0x823   : > { %6469 = vmatpush1.bf16.msra.mxu1 %v5369_v27  ;;  %6306 = vmatprep.subr.bf16.mxu0 %v5387_v29  ;;  %v5519_v27 = vunpack.c.h.s8.bf16 %v4474_v33  ;;  %v5521_v29 = vunpack.c.h.s8.bf16 %v4476_v15  ;;  %v5541_v36 = vunpack.c.l.s8.bf16 %v4496_v23  ;;  %v5560_v35 = vunpack.c.h.s8.bf16 %v4496_v23  ;;  %v7640_v23 = vld [vmem:[%s10585_s14] sm:$0xff] }
 0x824   : > { %6470 = vmatprep.subr.bf16.mxu1 %v5389_v38  ;;  %v4493_v38 = vld [vmem:[%s10571_s6 + $0xdc8] sm:$0xff]  ;;  %v5653_v33 = vunpack.c.l.s8.bf16 %v4551_v1 }
 0x826   : > { %6307 = vmatpush1.bf16.msra.mxu0 %v5386_v48  ;;  %v4495_v48 = vld [vmem:[%s10571_s6 + $0xdd8] sm:$0xff] }
 0x827   : > { %6471 = vmatpush1.bf16.msra.mxu1 %v5388_v5  ;;  %6308 = vmatprep.subr.bf16.mxu0 %v5406_v32  ;;  %v5538_v5 = vunpack.c.l.s8.bf16 %v4493_v38  ;;  %v5540_v32 = vunpack.c.l.s8.bf16 %v4495_v48 }
 0x828   : > { %6472 = vmatprep.subr.bf16.mxu1 %v5408_v25  ;;  %v5558_v25 = vunpack.c.h.s8.bf16 %v4494_v31  ;;  %v5672_v31 = vunpack.c.h.s8.bf16 %v4551_v1 }
 0x82a   : > { %6309 = vmatpush1.bf16.msra.mxu0 %v5405_v28  ;;  %v4515_v28 = vld [vmem:[%s10571_s6 + $0xe78] sm:$0xff] }
 0x82b   : > { %6473 = vmatpush1.bf16.msra.mxu1 %v5407_v55  ;;  %6310 = vmatprep.subr.bf16.mxu0 %v5425_v57  ;;  %v5557_v55 = vunpack.c.h.s8.bf16 %v4493_v38  ;;  %v5559_v57 = vunpack.c.h.s8.bf16 %v4495_v48  ;;  %v5579_v24 = vunpack.c.l.s8.bf16 %v4515_v28  ;;  %v5598_v44 = vunpack.c.h.s8.bf16 %v4515_v28 }
 0x82c   : > { %6474 = vmatprep.subr.bf16.mxu1 %v5427_v30  ;;  %v4512_v30 = vld [vmem:[%s10571_s6 + $0xe60] sm:$0xff] }
 0x82e   : > { %6311 = vmatpush1.bf16.msra.mxu0 %v5424_v9  ;;  %v4514_v9 = vld [vmem:[%s10571_s6 + $0xe70] sm:$0xff] }
 0x82f   : > { %6475 = vmatpush1.bf16.msra.mxu1 %v5426_v39  ;;  %6312 = vmatprep.subr.bf16.mxu0 %v5444_v61  ;;  %v5576_v39 = vunpack.c.l.s8.bf16 %v4512_v30  ;;  %v5578_v61 = vunpack.c.l.s8.bf16 %v4514_v9 }
 0x830   : > { %6476 = vmatprep.subr.bf16.mxu1 %v5446_v40  ;;  %v5596_v40 = vunpack.c.h.s8.bf16 %v4513_v16 }
 0x832   : > { %6313 = vmatpush1.bf16.msra.mxu0 %v5443_v4  ;;  %v4534_v4 = vld [vmem:[%s10571_s6 + $0xf10] sm:$0xff] }
 0x833   : > { %6477 = vmatpush1.bf16.msra.mxu1 %v5445_v11  ;;  %6314 = vmatprep.subr.bf16.mxu0 %v5463_v45  ;;  %v5595_v11 = vunpack.c.h.s8.bf16 %v4512_v30  ;;  %v5597_v45 = vunpack.c.h.s8.bf16 %v4514_v9  ;;  %v5617_v53 = vunpack.c.l.s8.bf16 %v4534_v4  ;;  %v5636_v0 = vunpack.c.h.s8.bf16 %v4534_v4 }
 0x834   : > { %6478 = vmatprep.subr.bf16.mxu1 %v5465_v51  ;;  %v4531_v51 = vld [vmem:[%s10571_s6 + $0xef8] sm:$0xff]  ;;  %v7653_v30 = vrot.slane %v7640_v23, %v10597_v10 }
 0x836   : > { %6315 = vmatpush1.bf16.msra.mxu0 %v5462_v54  ;;  %v4533_v54 = vld [vmem:[%s10571_s6 + $0xf08] sm:$0xff] }
 0x837   : > { %6479 = vmatpush1.bf16.msra.mxu1 %v5464_v56  ;;  %6316 = vmatprep.subr.bf16.mxu0 %v5482_v62  ;;  %v5614_v56 = vunpack.c.l.s8.bf16 %v4531_v51  ;;  %v5616_v62 = vunpack.c.l.s8.bf16 %v4533_v54 }
 0x838   : > { %6480 = vmatprep.subr.bf16.mxu1 %v5484_v63  ;;  %v5634_v63 = vunpack.c.h.s8.bf16 %v4532_v43 }
 0x83a   : > { %6317 = vmatpush1.bf16.msra.mxu0 %v5481_v2  ;;  %v4553_v2 = vld [vmem:[%s10571_s6 + $0xfa8] sm:$0xff] }
 0x83b   : > { %6481 = vmatpush1.bf16.msra.mxu1 %v5483_v3  ;;  %6318 = vmatprep.subr.bf16.mxu0 %v5501_v17  ;;  %v5633_v3 = vunpack.c.h.s8.bf16 %v4531_v51  ;;  %v5635_v17 = vunpack.c.h.s8.bf16 %v4533_v54  ;;  %v5655_v15 = vunpack.c.l.s8.bf16 %v4553_v2 }
 0x83c   : > { %6482 = vmatprep.subr.bf16.mxu1 %v5503_v14  ;;  %v4550_v14 = vld [vmem:[%s10571_s6 + $0xf90] sm:$0xff] }
 0x83e   : > { %6319 = vmatpush1.bf16.msra.mxu0 %v5500_v18  ;;  %v4552_v18 = vld [vmem:[%s10571_s6 + $0xfa0] sm:$0xff] }
 0x83f   : > { %6483 = vmatpush1.bf16.msra.mxu1 %v5502_v19  ;;  %6320 = vmatprep.subr.bf16.mxu0 %v5520_v21  ;;  %v5652_v19 = vunpack.c.l.s8.bf16 %v4550_v14  ;;  %v7520_v21 = vld [vmem:[%s10581_s5] sm:$0xff]  ;;  %v5673_v16 = vunpack.c.h.s8.bf16 %v4552_v18 }
 0x840   : > { %6484 = vmatprep.subr.bf16.mxu1 %v5522_v22  ;;  %v5654_v22 = vunpack.c.l.s8.bf16 %v4552_v18  ;;  %v7537_v38 = vrot.slane %v7520_v21, %v10652_v6  ;;  %v7533_v48 = vrot.slane %v7520_v21, %v10597_v10 }
 0x842   : > { %6321 = vmatpush1.bf16.msra.mxu0 %v5519_v27  ;;  %v5674_v27 = vunpack.c.h.s8.bf16 %v4553_v2 }
 0x843   : > { %6485 = vmatpush1.bf16.msra.mxu1 %v5521_v29  ;;  %6322 = vmatprep.subr.bf16.mxu0 %v5539_v20  ;;  %v4570_v29 = vld [vmem:[%s10571_s6 + $0x1030] sm:$0xff]  ;;  %v7529_v20 = vrot.slane %v7520_v21, %v10594_v8 }
 0x844   : > { %6486 = vmatprep.subr.bf16.mxu1 %v5541_v36  ;;  %v4572_v36 = vld [vmem:[%s10571_s6 + $0x1040] sm:$0xff]  ;;  %v5691_v28 = vunpack.c.l.s8.bf16 %v4570_v29 }
 0x845   : > { %v5693_v9 = vunpack.c.l.s8.bf16 %v4572_v36 }
 0x846   : > { %6323 = vmatpush1.bf16.msra.mxu0 %v5538_v5  ;;  %v7541_v5 = vrot.slane %v7520_v21, %v10655_v12  ;;  %v9938_v21 = vmov 1966171168  }
 0x847   : > { %6487 = vmatpush1.bf16.msra.mxu1 %v5540_v32  ;;  %6324 = vmatprep.subr.bf16.mxu0 %v5558_v25  ;;  %v5671_v32 = vunpack.c.h.s8.bf16 %v4550_v14  ;;  %v7649_v25 = vrot.slane %v7640_v23, %v10594_v8 }
 0x848   : > { %6488 = vmatprep.subr.bf16.mxu1 %v5560_v35  ;;  %v7657_v35 = vrot.slane %v7640_v23, %v10652_v6 }
 0x84a   : > { %6325 = vmatpush1.bf16.msra.mxu0 %v5557_v55  ;;  %v4569_v55 = vld [vmem:[%s10571_s6 + $0x1028] sm:$0xff] }
 0x84b   : > { %6489 = vmatpush1.bf16.msra.mxu1 %v5559_v57  ;;  %6335 = vmatprep.subr.bf16.mxu0 %v5577_v37  ;;  %v5690_v51 = vunpack.c.l.s8.bf16 %v4569_v55  ;;  %v5709_v14 = vunpack.c.h.s8.bf16 %v4569_v55 }
 0x84c   : > { %6499 = vmatprep.subr.bf16.mxu1 %v5579_v24  ;;  %v7661_v24 = vrot.slane %v7640_v23, %v10655_v12  ;;  %v4590_v23 = vld [vmem:[%s10571_s6 + $0x10d0] sm:$0xff] }
 0x84d   : > { %6327 = vmatmul.mubr.bf16.vlgmr.msra.gmra.mrb[16].mxu0 %v10969_v47 }
 0x84e   : > { %6491 = vmatmul.mubr.bf16.vlgmr.msra.gmra.mrb[24].mxu1 %v10969_v47  ;;  %6336 = vmatpush1.bf16.msra.mxu0 %v5576_v39  ;;  %v4571_v39 = vld [vmem:[%s10571_s6 + $0x1038] sm:$0xff] }
 0x84f   : > { %6367 = vmatprep.mubr.bf16.mxu0 %v10975_v59  ;;  %6500 = vmatpush1.bf16.msra.mxu1 %v5578_v61 }
 0x850   : > { %6531 = vmatprep.mubr.bf16.mxu1 %v10975_v59  ;;  %6337 = vmatprep.subr.bf16.mxu0 %v5596_v40 }
 0x851   : > { %6501 = vmatprep.subr.bf16.mxu1 %v5598_v44 }
 0x852   : > { %6338 = vmatpush1.bf16.msra.mxu0 %v5595_v11 }
 0x853   : > { %6502 = vmatpush1.bf16.msra.mxu1 %v5597_v45  ;;  %6339 = vmatprep.subr.bf16.mxu0 %v5615_v46 }
 0x854   : > { %6503 = vmatprep.subr.bf16.mxu1 %v5617_v53 }
 0x856   : > { %6340 = vmatpush1.bf16.msra.mxu0 %v5614_v56 }
 0x857   : > { %6504 = vmatpush1.bf16.msra.mxu1 %v5616_v62  ;;  %6341 = vmatprep.subr.bf16.mxu0 %v5634_v63  ;;  %v5692_v63 = vunpack.c.l.s8.bf16 %v4571_v39 }
 0x858   : > { %6505 = vmatprep.subr.bf16.mxu1 %v5636_v0  ;;  %v5710_v0 = vunpack.c.h.s8.bf16 %v4570_v29  ;;  %v5730_v29 = vunpack.c.l.s8.bf16 %v4590_v23 }
 0x85a   : > { %6342 = vmatpush1.bf16.msra.mxu0 %v5633_v3  ;;  %v5712_v3 = vunpack.c.h.s8.bf16 %v4572_v36 }
 0x85b   : > { %6506 = vmatpush1.bf16.msra.mxu1 %v5635_v17  ;;  %6343 = vmatprep.subr.bf16.mxu0 %v5653_v33  ;;  %v4589_v17 = vld [vmem:[%s10571_s6 + $0x10c8] sm:$0xff]  ;;  %v4591_v33 = vld [vmem:[%s10571_s6 + $0x10d8] sm:$0xff] }
 0x85c   : > { %6507 = vmatprep.subr.bf16.mxu1 %v5655_v15  ;;  %v5711_v15 = vunpack.c.h.s8.bf16 %v4571_v39  ;;  %v5729_v18 = vunpack.c.l.s8.bf16 %v4589_v17  ;;  %v5750_v36 = vunpack.c.h.s8.bf16 %v4591_v33 }
 0x85e   : > { %6344 = vmatpush1.bf16.msra.mxu0 %v5652_v19  ;;  %v4588_v19 = vld [vmem:[%s10571_s6 + $0x10c0] sm:$0xff] }
 0x85f   : > { %6508 = vmatpush1.bf16.msra.mxu1 %v5654_v22  ;;  %6345 = vmatprep.subr.bf16.mxu0 %v5672_v31  ;;  %v7822_v22 = vunpack.c.l.s4 %v9938_v21  ;;  %v5731_v31 = vunpack.c.l.s8.bf16 %v4591_v33  ;;  %v4646_v33 = vld [vmem:[%s10571_s6 + $0x1290] sm:$0xff]  ;;  %v4645_v21 = vld [vmem:[%s10571_s6 + $0x1288] sm:$0xff] }
 0x860   : > { %v6041_v57 = vpop.f32.mrb[12].mxu0  ;;  %v6205_v37 = vpop.f32.mrb[20].mxu1  ;;  %6509 = vmatprep.subr.bf16.mxu1 %v5674_v27  ;;  %v5728_v27 = vunpack.c.l.s8.bf16 %v4588_v19 }
 0x861   : > { %v7621_v61 = vmul.f32 %v7529_v20, %v6041_v57  ;;  %v7623_v40 = vmul.f32 %v7537_v38, %v6205_v37  ;;  %v6043_v43 = vpop.f32.mrb[13].mxu0  ;;  %v6207_v44 = vpop.f32.mrb[21].mxu1  ;;  %v5748_v20 = vunpack.c.h.s8.bf16 %v4589_v17  ;;  %v7823_v38 = vunpack.c.0.s8 %v7822_v22 }
 0x862   : > { %v7622_v4 = vmul.f32 %v7533_v48, %v6043_v43  ;;  %v7624_v11 = vmul.f32 %v7541_v5, %v6207_v44  ;;  %v6045_v45 = vpop.f32.mrb[14].mxu0  ;;  %v6209_v46 = vpop.f32.mrb[22].mxu1  ;;  %6346 = vmatpush1.bf16.msra.mxu0 %v5671_v32  ;;  %v4608_v48 = vld [vmem:[%s10571_s6 + $0x1160] sm:$0xff]  ;;  %v4610_v5 = vld [vmem:[%s10571_s6 + $0x1170] sm:$0xff]  ;;  %v5747_v32 = vunpack.c.h.s8.bf16 %v4588_v19  ;;  %v5843_v19 = vunpack.c.l.s8.bf16 %v4646_v33 }
 0x863   : > { %v7741_v53 = vadd.f32 %v7649_v25, %v7621_v61  ;;  %v7743_v54 = vadd.f32 %v7657_v35, %v7623_v40  ;;  %6510 = vmatpush1.bf16.msra.mxu1 %v5673_v16  ;;  %v6046_v56 = vpop.f32.mrb[15].mxu0  ;;  %v6210_v62 = vpop.f32.mrb[23].mxu1  ;;  %6347 = vmatprep.subr.bf16.mxu0 %v5691_v28  ;;  %v5749_v35 = vunpack.c.h.s8.bf16 %v4590_v23  ;;  %v5767_v16 = vunpack.c.l.s8.bf16 %v4608_v48  ;;  %v4607_v28 = vld [vmem:[%s10571_s6 + $0x1158] sm:$0xff]  ;;  %v4629_v46 = vld [vmem:[%s10571_s6 + $0x1208] sm:$0xff] }
 0x864   : > { %v7742_v1 = vadd.f32 %v7653_v30, %v7622_v4  ;;  %v7744_v2 = vadd.f32 %v7661_v24, %v7624_v11  ;;  %6511 = vmatprep.subr.bf16.mxu1 %v5693_v9  ;;  %v11158_v57 = vsub.s32 %v7823_v38, %v10591_v7  ;;  %v5769_v37 = vunpack.c.l.s8.bf16 %v4610_v5  ;;  %v4609_v30 = vld [vmem:[%s10571_s6 + $0x1168] sm:$0xff]  ;;  %v4627_v11 = vld [vmem:[%s10571_s6 + $0x11f8] sm:$0xff]  ;;  %v4626_v62 = vld [vmem:[%s10571_s6 + $0x11f0] sm:$0xff] }
 0x865   : > { %9248 = vtanh.f32 %v7741_v53  ;;  %v5766_v61 = vunpack.c.l.s8.bf16 %v4607_v28  ;;  %v5768_v43 = vunpack.c.l.s8.bf16 %v4609_v30  ;;  %v5786_v44 = vunpack.c.h.s8.bf16 %v4608_v48  ;;  %v4061_v38 = vld [vmem:[%s10571_s6 + $0x48] sm:$0xff] }
 0x866   : > { %9250 = vtanh.f32 %v7743_v54  ;;  %6348 = vmatpush1.bf16.msra.mxu0 %v5690_v51  ;;  %v5788_v7 = vunpack.c.h.s8.bf16 %v4610_v5  ;;  %v5785_v51 = vunpack.c.h.s8.bf16 %v4607_v28  ;;  %v5787_v54 = vunpack.c.h.s8.bf16 %v4609_v30  ;;  %v4080_v30 = vld [vmem:[%s10571_s6 + $0xe0] sm:$0xff] }
 0x867   : > { %9252 = vtanh.f32 %v7742_v1  ;;  %6512 = vmatpush1.bf16.msra.mxu1 %v5692_v63  ;;  %6349 = vmatprep.subr.bf16.mxu0 %v5710_v0  ;;  %v5805_v56 = vunpack.c.l.s8.bf16 %v4627_v11  ;;  %v5807_v63 = vunpack.c.l.s8.bf16 %v4629_v46  ;;  %v4628_v0 = vld [vmem:[%s10571_s6 + $0x1200] sm:$0xff]  ;;  %v5804_v1 = vunpack.c.l.s8.bf16 %v4626_v62 }
 0x868   : > { %9254 = vtanh.f32 %v7744_v2  ;;  %6513 = vmatprep.subr.bf16.mxu1 %v5712_v3  ;;  %v5806_v2 = vunpack.c.l.s8.bf16 %v4628_v0  ;;  %v5824_v3 = vunpack.c.h.s8.bf16 %v4627_v11  ;;  %v5826_v17 = vunpack.c.h.s8.bf16 %v4629_v46 }
 0x869   : > { %v5842_v23 = vunpack.c.l.s8.bf16 %v4645_v21  ;;  %v5861_v48 = vunpack.c.h.s8.bf16 %v4645_v21  ;;  %v4120_v21 = vld [vmem:[%s10571_s6 + $0x220] sm:$0xff] }
 0x86a   : > { %6350 = vmatpush1.bf16.msra.mxu0 %v5709_v14  ;;  %v4648_v14 = vld [vmem:[%s10571_s6 + $0x12a0] sm:$0xff] }
 0x86b   : > { %6514 = vmatpush1.bf16.msra.mxu1 %v5711_v15  ;;  %6351 = vmatprep.subr.bf16.mxu0 %v5729_v18  ;;  %v5823_v15 = vunpack.c.h.s8.bf16 %v4626_v62  ;;  %v5825_v18 = vunpack.c.h.s8.bf16 %v4628_v0  ;;  %v5845_v22 = vunpack.c.l.s8.bf16 %v4648_v14  ;;  %v4101_v62 = vld [vmem:[%s10571_s6 + $0x188] sm:$0xff] }
 0x86c   : > { %6515 = vmatprep.subr.bf16.mxu1 %v5731_v31  ;;  %v4647_v31 = vld [vmem:[%s10571_s6 + $0x1298] sm:$0xff] }
 0x86d   : > { %v5863_v5 = vunpack.c.h.s8.bf16 %v4647_v31 }
 0x86e   : > { %6352 = vmatpush1.bf16.msra.mxu0 %v5728_v27  ;;  %v5844_v27 = vunpack.c.l.s8.bf16 %v4647_v31 }
 0x86f   : > { %v9249_v25 = vpop.eup %9248  ;;  %6516 = vmatpush1.bf16.msra.mxu1 %v5730_v29  ;;  %6353 = vmatprep.subr.bf16.mxu0 %v5748_v20  ;;  %v5862_v29 = vunpack.c.h.s8.bf16 %v4646_v33  ;;  %v5864_v20 = vunpack.c.h.s8.bf16 %v4648_v14 }
 0x870   : > { %v9251_v55 = vpop.eup %9250  ;;  %6517 = vmatprep.subr.bf16.mxu1 %v5750_v36  ;;  %v4063_v36 = vld [vmem:[%s10571_s6 + $0x58] sm:$0xff] }
 0x871   : > { %v9253_v24 = vpop.eup %9252 }
 0x872   : > { %v9255_v9 = vpop.eup %9254  ;;  %v8599_v39 = vpack.c.bf16 %v9253_v24, %v9249_v25  ;;  %6354 = vmatpush1.bf16.msra.mxu0 %v5747_v32  ;;  %v4669_v32 = vunpack.c.l.s8.bf16 %v4061_v38  ;;  %v4060_v25 = vld [vmem:[%s10571_s6 + $0x40] sm:$0xff]  ;;  %v4690_v24 = vunpack.c.h.s8.bf16 %v4063_v36 }
 0x873   : > { %v8600_v40 = vpack.c.bf16 %v9255_v9, %v9251_v55  ;;  %6518 = vmatpush1.bf16.msra.mxu1 %v5749_v35  ;;  %6355 = vmatprep.subr.bf16.mxu0 %v5767_v16  ;;  %v4671_v35 = vunpack.c.l.s8.bf16 %v4063_v36  ;;  %v4062_v16 = vld [vmem:[%s10571_s6 + $0x50] sm:$0xff]  ;;  %v4668_v28 = vunpack.c.l.s8.bf16 %v4060_v25 }
 0x874   : > { %v11162_v4 = vrot.slane %v8599_v39, %v11158_v57  ;;  %6519 = vmatprep.subr.bf16.mxu1 %v5769_v37  ;;  %v4670_v55 = vunpack.c.l.s8.bf16 %v4062_v16  ;;  %v4688_v37 = vunpack.c.h.s8.bf16 %v4061_v38  ;;  %v4082_v9 = vld [vmem:[%s10571_s6 + $0xf0] sm:$0xff]  ;;  %v4687_v39 = vunpack.c.h.s8.bf16 %v4060_v25  ;;  %v4139_v25 = vld [vmem:[%s10571_s6 + $0x2b8] sm:$0xff] }
 0x875   : > { %v11166_v45 = vrot.slane %v8600_v40, %v11158_v57  ;;  %v4707_v40 = vunpack.c.l.s8.bf16 %v4080_v30 }
 0x876   : > { %6356 = vmatpush1.bf16.msra.mxu0 %v5766_v61  ;;  %v4689_v61 = vunpack.c.h.s8.bf16 %v4062_v16 }
 0x877   : > { %v7849_v53 = vcombine.low %v11162_v4, %v11166_v45  ;;  %6520 = vmatpush1.bf16.msra.mxu1 %v5768_v43  ;;  %6357 = vmatprep.subr.bf16.mxu0 %v5786_v44  ;;  %v4079_v43 = vld [vmem:[%s10571_s6 + $0xd8] sm:$0xff]  ;;  %v4709_v44 = vunpack.c.l.s8.bf16 %v4082_v9 }
 0x878   : > { %6521 = vmatprep.subr.bf16.mxu1 %v5788_v7  ;;  %v4081_v7 = vld [vmem:[%s10571_s6 + $0xe8] sm:$0xff]  ;;  %v4706_v11 = vunpack.c.l.s8.bf16 %v4079_v43 }
 0x879   : > { %v4708_v46 = vunpack.c.l.s8.bf16 %v4081_v7  ;;  %v4727_v0 = vunpack.c.h.s8.bf16 %v4081_v7 }
 0x87a   : > { %6358 = vmatpush1.bf16.msra.mxu0 %v5785_v51  ;;  %v4726_v51 = vunpack.c.h.s8.bf16 %v4080_v30  ;;  %v4138_v30 = vld [vmem:[%s10571_s6 + $0x2b0] sm:$0xff] }
 0x87b   : > { %6522 = vmatpush1.bf16.msra.mxu1 %v5787_v54  ;;  %6359 = vmatprep.subr.bf16.mxu0 %v5805_v56  ;;  %v4728_v54 = vunpack.c.h.s8.bf16 %v4082_v9  ;;  %v4099_v56 = vld [vmem:[%s10571_s6 + $0x178] sm:$0xff]  ;;  %v4822_v9 = vunpack.c.l.s8.bf16 %v4138_v30  ;;  %v4841_v7 = vunpack.c.h.s8.bf16 %v4138_v30 }
 0x87c   : > { %6523 = vmatprep.subr.bf16.mxu1 %v5807_v63  ;;  %v4725_v63 = vunpack.c.h.s8.bf16 %v4079_v43  ;;  %v4158_v43 = vld [vmem:[%s10571_s6 + $0x350] sm:$0xff] }
 0x87e   : > { %6360 = vmatpush1.bf16.msra.mxu0 %v5804_v1  ;;  %v4745_v1 = vunpack.c.l.s8.bf16 %v4099_v56 }
 0x87f   : > { %6524 = vmatpush1.bf16.msra.mxu1 %v5806_v2  ;;  %6361 = vmatprep.subr.bf16.mxu0 %v5824_v3  ;;  %v4098_v2 = vld [vmem:[%s10571_s6 + $0x170] sm:$0xff]  ;;  %v4747_v3 = vunpack.c.l.s8.bf16 %v4101_v62 }
 0x880   : > { %6525 = vmatprep.subr.bf16.mxu1 %v5826_v17  ;;  %v4100_v17 = vld [vmem:[%s10571_s6 + $0x180] sm:$0xff]  ;;  %v4744_v33 = vunpack.c.l.s8.bf16 %v4098_v2 }
 0x881   : > { %v4746_v14 = vunpack.c.l.s8.bf16 %v4100_v17  ;;  %v4765_v31 = vunpack.c.h.s8.bf16 %v4100_v17 }
 0x882   : > { %6362 = vmatpush1.bf16.msra.mxu0 %v5823_v15  ;;  %v4764_v15 = vunpack.c.h.s8.bf16 %v4099_v56 }
 0x883   : > { %6526 = vmatpush1.bf16.msra.mxu1 %v5825_v18  ;;  %6363 = vmatprep.subr.bf16.mxu0 %v5843_v19  ;;  %v4766_v18 = vunpack.c.h.s8.bf16 %v4101_v62  ;;  %v4118_v19 = vld [vmem:[%s10571_s6 + $0x210] sm:$0xff] }
 0x884   : > { %6527 = vmatprep.subr.bf16.mxu1 %v5845_v22  ;;  %v4763_v22 = vunpack.c.h.s8.bf16 %v4098_v2  ;;  %v4177_v2 = vld [vmem:[%s10571_s6 + $0x3e8] sm:$0xff] }
 0x886   : > { %6364 = vmatpush1.bf16.msra.mxu0 %v5842_v23  ;;  %v4783_v23 = vunpack.c.l.s8.bf16 %v4118_v19 }
 0x887   : > { %6528 = vmatpush1.bf16.msra.mxu1 %v5844_v27  ;;  %6365 = vmatprep.subr.bf16.mxu0 %v5862_v29  ;;  %v4117_v27 = vld [vmem:[%s10571_s6 + $0x208] sm:$0xff]  ;;  %v4785_v29 = vunpack.c.l.s8.bf16 %v4120_v21 }
 0x888   : > { %6529 = vmatprep.subr.bf16.mxu1 %v5864_v20  ;;  %v4119_v20 = vld [vmem:[%s10571_s6 + $0x218] sm:$0xff]  ;;  %v4782_v38 = vunpack.c.l.s8.bf16 %v4117_v27 }
 0x889   : > { %v4784_v36 = vunpack.c.l.s8.bf16 %v4119_v20  ;;  %v4803_v16 = vunpack.c.h.s8.bf16 %v4119_v20 }
 0x88a   : > { %6366 = vmatpush1.bf16.msra.mxu0 %v5861_v48  ;;  %v4802_v48 = vunpack.c.h.s8.bf16 %v4118_v19 }
 0x88b   : > { %6530 = vmatpush1.bf16.msra.mxu1 %v5863_v5  ;;  %6540 = vmatprep.subr.bf16.mxu0 %v4669_v32  ;;  %v4804_v5 = vunpack.c.h.s8.bf16 %v4120_v21  ;;  %v4137_v32 = vld [vmem:[%s10571_s6 + $0x2a8] sm:$0xff] }
 0x88c   : > { %6704 = vmatprep.subr.bf16.mxu1 %v4671_v35  ;;  %v4801_v35 = vunpack.c.h.s8.bf16 %v4117_v27  ;;  %v4196_v27 = vld [vmem:[%s10571_s6 + $0x480] sm:$0xff] }
 0x88d   : > { %6368 = vmatmul.mubr.bf16.vlgmr.msra.gmra.mrb[16].mxu0 %v11014_v26 }
 0x88e   : > { %6532 = vmatmul.mubr.bf16.vlgmr.msra.gmra.mrb[24].mxu1 %v11014_v26  ;;  %6541 = vmatpush1.bf16.msra.mxu0 %v4668_v28  ;;  %v4821_v28 = vunpack.c.l.s8.bf16 %v4137_v32 }
 0x88f   : > { %6572 = vmatprep.mubr.bf16.mxu0 %v10801_v58  ;;  %6705 = vmatpush1.bf16.msra.mxu1 %v4670_v55  ;;  %v4136_v55 = vld [vmem:[%s10571_s6 + $0x2a0] sm:$0xff] }
 0x890   : > { %6736 = vmatprep.mubr.bf16.mxu1 %v10801_v58  ;;  %6542 = vmatprep.subr.bf16.mxu0 %v4688_v37  ;;  %v4823_v37 = vunpack.c.l.s8.bf16 %v4139_v25 }
 0x891   : > { %6706 = vmatprep.subr.bf16.mxu1 %v4690_v24  ;;  %v4820_v24 = vunpack.c.l.s8.bf16 %v4136_v55 }
 0x892   : > { %6543 = vmatpush1.bf16.msra.mxu0 %v4687_v39  ;;  %v4840_v39 = vunpack.c.h.s8.bf16 %v4137_v32 }
 0x893   : > { %6707 = vmatpush1.bf16.msra.mxu1 %v4689_v61  ;;  %6544 = vmatprep.subr.bf16.mxu0 %v4707_v40  ;;  %v4842_v61 = vunpack.c.h.s8.bf16 %v4139_v25  ;;  %v4156_v40 = vld [vmem:[%s10571_s6 + $0x340] sm:$0xff] }
 0x894   : > { %6708 = vmatprep.subr.bf16.mxu1 %v4709_v44  ;;  %v4839_v44 = vunpack.c.h.s8.bf16 %v4136_v55  ;;  %v4215_v55 = vld [vmem:[%s10571_s6 + $0x518] sm:$0xff] }
 0x896   : > { %6545 = vmatpush1.bf16.msra.mxu0 %v4706_v11  ;;  %v4859_v11 = vunpack.c.l.s8.bf16 %v4156_v40 }
 0x897   : > { %6709 = vmatpush1.bf16.msra.mxu1 %v4708_v46  ;;  %6546 = vmatprep.subr.bf16.mxu0 %v4726_v51  ;;  %v4155_v46 = vld [vmem:[%s10571_s6 + $0x338] sm:$0xff]  ;;  %v4861_v51 = vunpack.c.l.s8.bf16 %v4158_v43 }
 0x898   : > { %6710 = vmatprep.subr.bf16.mxu1 %v4728_v54  ;;  %v4157_v54 = vld [vmem:[%s10571_s6 + $0x348] sm:$0xff]  ;;  %v4858_v56 = vunpack.c.l.s8.bf16 %v4155_v46 }
 0x899   : > { %v4860_v62 = vunpack.c.l.s8.bf16 %v4157_v54  ;;  %v4879_v17 = vunpack.c.h.s8.bf16 %v4157_v54 }
 0x89a   : > { %6547 = vmatpush1.bf16.msra.mxu0 %v4725_v63  ;;  %v4878_v63 = vunpack.c.h.s8.bf16 %v4156_v40 }
 0x89b   : > { %6711 = vmatpush1.bf16.msra.mxu1 %v4727_v0  ;;  %6548 = vmatprep.subr.bf16.mxu0 %v4745_v1  ;;  %v4880_v0 = vunpack.c.h.s8.bf16 %v4158_v43  ;;  %v4175_v1 = vld [vmem:[%s10571_s6 + $0x3d8] sm:$0xff] }
 0x89c   : > { %6712 = vmatprep.subr.bf16.mxu1 %v4747_v3  ;;  %v4877_v3 = vunpack.c.h.s8.bf16 %v4155_v46  ;;  %v4234_v46 = vld [vmem:[%s10571_s6 + $0x5b0] sm:$0xff] }
 0x89e   : > { %6549 = vmatpush1.bf16.msra.mxu0 %v4744_v33  ;;  %v4897_v33 = vunpack.c.l.s8.bf16 %v4175_v1 }
 0x89f   : > { %6713 = vmatpush1.bf16.msra.mxu1 %v4746_v14  ;;  %6550 = vmatprep.subr.bf16.mxu0 %v4764_v15  ;;  %v4174_v14 = vld [vmem:[%s10571_s6 + $0x3d0] sm:$0xff]  ;;  %v4899_v15 = vunpack.c.l.s8.bf16 %v4177_v2 }
 0x8a0   : > { %6714 = vmatprep.subr.bf16.mxu1 %v4766_v18  ;;  %v4176_v18 = vld [vmem:[%s10571_s6 + $0x3e0] sm:$0xff]  ;;  %v4896_v19 = vunpack.c.l.s8.bf16 %v4174_v14 }
 0x8a1   : > { %v4898_v21 = vunpack.c.l.s8.bf16 %v4176_v18  ;;  %v4917_v20 = vunpack.c.h.s8.bf16 %v4176_v18 }
 0x8a2   : > { %6551 = vmatpush1.bf16.msra.mxu0 %v4763_v22  ;;  %v4916_v22 = vunpack.c.h.s8.bf16 %v4175_v1 }
 0x8a3   : > { %6715 = vmatpush1.bf16.msra.mxu1 %v4765_v31  ;;  %6552 = vmatprep.subr.bf16.mxu0 %v4783_v23  ;;  %v4918_v31 = vunpack.c.h.s8.bf16 %v4177_v2  ;;  %v4194_v23 = vld [vmem:[%s10571_s6 + $0x470] sm:$0xff] }
 0x8a4   : > { %6716 = vmatprep.subr.bf16.mxu1 %v4785_v29  ;;  %v4915_v29 = vunpack.c.h.s8.bf16 %v4174_v14  ;;  %v4253_v14 = vld [vmem:[%s10571_s6 + $0x648] sm:$0xff] }
 0x8a6   : > { %6553 = vmatpush1.bf16.msra.mxu0 %v4782_v38  ;;  %v4935_v38 = vunpack.c.l.s8.bf16 %v4194_v23 }
 0x8a7   : > { %6717 = vmatpush1.bf16.msra.mxu1 %v4784_v36  ;;  %6554 = vmatprep.subr.bf16.mxu0 %v4802_v48  ;;  %v4193_v36 = vld [vmem:[%s10571_s6 + $0x468] sm:$0xff]  ;;  %v4937_v48 = vunpack.c.l.s8.bf16 %v4196_v27 }
 0x8a8   : > { %6718 = vmatprep.subr.bf16.mxu1 %v4804_v5  ;;  %v4195_v5 = vld [vmem:[%s10571_s6 + $0x478] sm:$0xff]  ;;  %v4934_v32 = vunpack.c.l.s8.bf16 %v4193_v36 }
 0x8a9   : > { %v4936_v25 = vunpack.c.l.s8.bf16 %v4195_v5  ;;  %v4955_v30 = vunpack.c.h.s8.bf16 %v4195_v5 }
 0x8aa   : > { %6555 = vmatpush1.bf16.msra.mxu0 %v4801_v35  ;;  %v4954_v35 = vunpack.c.h.s8.bf16 %v4194_v23 }
 0x8ab   : > { %6719 = vmatpush1.bf16.msra.mxu1 %v4803_v16  ;;  %6556 = vmatprep.subr.bf16.mxu0 %v4821_v28  ;;  %v4956_v16 = vunpack.c.h.s8.bf16 %v4196_v27  ;;  %v4213_v28 = vld [vmem:[%s10571_s6 + $0x508] sm:$0xff] }
 0x8ac   : > { %6720 = vmatprep.subr.bf16.mxu1 %v4823_v37  ;;  %v4953_v37 = vunpack.c.h.s8.bf16 %v4193_v36  ;;  %v4272_v36 = vld [vmem:[%s10571_s6 + $0x6e0] sm:$0xff] }
 0x8ae   : > { %6557 = vmatpush1.bf16.msra.mxu0 %v4820_v24  ;;  %v4973_v24 = vunpack.c.l.s8.bf16 %v4213_v28 }
 0x8af   : > { %6721 = vmatpush1.bf16.msra.mxu1 %v4822_v9  ;;  %6558 = vmatprep.subr.bf16.mxu0 %v4840_v39  ;;  %v4212_v9 = vld [vmem:[%s10571_s6 + $0x500] sm:$0xff]  ;;  %v4975_v39 = vunpack.c.l.s8.bf16 %v4215_v55 }
 0x8b0   : > { %6722 = vmatprep.subr.bf16.mxu1 %v4842_v61  ;;  %v4214_v61 = vld [vmem:[%s10571_s6 + $0x510] sm:$0xff]  ;;  %v4972_v40 = vunpack.c.l.s8.bf16 %v4212_v9 }
 0x8b1   : > { %v4974_v43 = vunpack.c.l.s8.bf16 %v4214_v61  ;;  %v4993_v54 = vunpack.c.h.s8.bf16 %v4214_v61 }
 0x8b2   : > { %6559 = vmatpush1.bf16.msra.mxu0 %v4839_v44  ;;  %v4992_v44 = vunpack.c.h.s8.bf16 %v4213_v28 }
 0x8b3   : > { %6723 = vmatpush1.bf16.msra.mxu1 %v4841_v7  ;;  %6560 = vmatprep.subr.bf16.mxu0 %v4859_v11  ;;  %v4232_v7 = vld [vmem:[%s10571_s6 + $0x5a0] sm:$0xff]  ;;  %v4994_v11 = vunpack.c.h.s8.bf16 %v4215_v55 }
 0x8b4   : > { %6724 = vmatprep.subr.bf16.mxu1 %v4861_v51  ;;  %v4991_v51 = vunpack.c.h.s8.bf16 %v4212_v9  ;;  %v4291_v9 = vld [vmem:[%s10571_s6 + $0x778] sm:$0xff] }
 0x8b6   : > { %6561 = vmatpush1.bf16.msra.mxu0 %v4858_v56  ;;  %v5011_v56 = vunpack.c.l.s8.bf16 %v4232_v7 }
 0x8b7   : > { %6725 = vmatpush1.bf16.msra.mxu1 %v4860_v62  ;;  %6562 = vmatprep.subr.bf16.mxu0 %v4878_v63  ;;  %v4231_v62 = vld [vmem:[%s10571_s6 + $0x598] sm:$0xff]  ;;  %v5013_v63 = vunpack.c.l.s8.bf16 %v4234_v46 }
 0x8b8   : > { %6726 = vmatprep.subr.bf16.mxu1 %v4880_v0  ;;  %v4233_v0 = vld [vmem:[%s10571_s6 + $0x5a8] sm:$0xff]  ;;  %v5010_v1 = vunpack.c.l.s8.bf16 %v4231_v62 }
 0x8b9   : > { %v5012_v2 = vunpack.c.l.s8.bf16 %v4233_v0  ;;  %v5031_v18 = vunpack.c.h.s8.bf16 %v4233_v0 }
 0x8ba   : > { %6563 = vmatpush1.bf16.msra.mxu0 %v4877_v3  ;;  %v5030_v3 = vunpack.c.h.s8.bf16 %v4232_v7  ;;  %v4290_v7 = vld [vmem:[%s10571_s6 + $0x770] sm:$0xff] }
 0x8bb   : > { %6727 = vmatpush1.bf16.msra.mxu1 %v4879_v17  ;;  %6564 = vmatprep.subr.bf16.mxu0 %v4897_v33  ;;  %v5032_v17 = vunpack.c.h.s8.bf16 %v4234_v46  ;;  %v4251_v33 = vld [vmem:[%s10571_s6 + $0x638] sm:$0xff]  ;;  %v5126_v46 = vunpack.c.l.s8.bf16 %v4290_v7  ;;  %v5145_v0 = vunpack.c.h.s8.bf16 %v4290_v7 }
 0x8bc   : > { %6728 = vmatprep.subr.bf16.mxu1 %v4899_v15  ;;  %v5029_v15 = vunpack.c.h.s8.bf16 %v4231_v62  ;;  %v4310_v62 = vld [vmem:[%s10571_s6 + $0x810] sm:$0xff] }
 0x8be   : > { %6565 = vmatpush1.bf16.msra.mxu0 %v4896_v19  ;;  %v5049_v19 = vunpack.c.l.s8.bf16 %v4251_v33 }
 0x8bf   : > { %6729 = vmatpush1.bf16.msra.mxu1 %v4898_v21  ;;  %6566 = vmatprep.subr.bf16.mxu0 %v4916_v22  ;;  %v4250_v21 = vld [vmem:[%s10571_s6 + $0x630] sm:$0xff]  ;;  %v5051_v22 = vunpack.c.l.s8.bf16 %v4253_v14 }
 0x8c0   : > { %6730 = vmatprep.subr.bf16.mxu1 %v4918_v31  ;;  %v4252_v31 = vld [vmem:[%s10571_s6 + $0x640] sm:$0xff]  ;;  %v5048_v23 = vunpack.c.l.s8.bf16 %v4250_v21 }
 0x8c1   : > { %v5050_v27 = vunpack.c.l.s8.bf16 %v4252_v31  ;;  %v5069_v5 = vunpack.c.h.s8.bf16 %v4252_v31 }
 0x8c2   : > { %6567 = vmatpush1.bf16.msra.mxu0 %v4915_v29  ;;  %v5068_v29 = vunpack.c.h.s8.bf16 %v4251_v33 }
 0x8c3   : > { %6731 = vmatpush1.bf16.msra.mxu1 %v4917_v20  ;;  %6568 = vmatprep.subr.bf16.mxu0 %v4935_v38  ;;  %v5070_v20 = vunpack.c.h.s8.bf16 %v4253_v14  ;;  %v4270_v38 = vld [vmem:[%s10571_s6 + $0x6d0] sm:$0xff] }
 0x8c4   : > { %6732 = vmatprep.subr.bf16.mxu1 %v4937_v48  ;;  %v5067_v48 = vunpack.c.h.s8.bf16 %v4250_v21  ;;  %v4329_v21 = vld [vmem:[%s10571_s6 + $0x8a8] sm:$0xff] }
 0x8c6   : > { %6569 = vmatpush1.bf16.msra.mxu0 %v4934_v32  ;;  %v5087_v32 = vunpack.c.l.s8.bf16 %v4270_v38 }
 0x8c7   : > { %6733 = vmatpush1.bf16.msra.mxu1 %v4936_v25  ;;  %6570 = vmatprep.subr.bf16.mxu0 %v4954_v35  ;;  %v4269_v25 = vld [vmem:[%s10571_s6 + $0x6c8] sm:$0xff]  ;;  %v5089_v35 = vunpack.c.l.s8.bf16 %v4272_v36 }
 0x8c8   : > { %6734 = vmatprep.subr.bf16.mxu1 %v4956_v16  ;;  %v4271_v16 = vld [vmem:[%s10571_s6 + $0x6d8] sm:$0xff]  ;;  %v5086_v28 = vunpack.c.l.s8.bf16 %v4269_v25 }
 0x8c9   : > { %v5088_v55 = vunpack.c.l.s8.bf16 %v4271_v16  ;;  %v5107_v61 = vunpack.c.h.s8.bf16 %v4271_v16 }
 0x8ca   : > { %6571 = vmatpush1.bf16.msra.mxu0 %v4953_v37  ;;  %v5106_v37 = vunpack.c.h.s8.bf16 %v4270_v38 }
 0x8cb   : > { %6735 = vmatpush1.bf16.msra.mxu1 %v4955_v30  ;;  %6581 = vmatprep.subr.bf16.mxu0 %v4973_v24  ;;  %v5108_v30 = vunpack.c.h.s8.bf16 %v4272_v36  ;;  %v4289_v24 = vld [vmem:[%s10571_s6 + $0x768] sm:$0xff] }
 0x8cc   : > { %6745 = vmatprep.subr.bf16.mxu1 %v4975_v39  ;;  %v5105_v39 = vunpack.c.h.s8.bf16 %v4269_v25  ;;  %v4348_v25 = vld [vmem:[%s10571_s6 + $0x940] sm:$0xff] }
 0x8cd   : > { %6573 = vmatmul.mubr.bf16.vlgmr.msra.gmra.mrb[20].mxu0 %v10803_v41 }
 0x8ce   : > { %6737 = vmatmul.mubr.bf16.vlgmr.msra.gmra.mrb[28].mxu1 %v10803_v41  ;;  %6582 = vmatpush1.bf16.msra.mxu0 %v4972_v40  ;;  %v5125_v40 = vunpack.c.l.s8.bf16 %v4289_v24 }
 0x8cf   : > { %6613 = vmatprep.mubr.bf16.mxu0 %v10811_v49  ;;  %6746 = vmatpush1.bf16.msra.mxu1 %v4974_v43  ;;  %v4288_v43 = vld [vmem:[%s10571_s6 + $0x760] sm:$0xff] }
 0x8d0   : > { %6777 = vmatprep.mubr.bf16.mxu1 %v10811_v49  ;;  %6583 = vmatprep.subr.bf16.mxu0 %v4992_v44  ;;  %v5127_v44 = vunpack.c.l.s8.bf16 %v4291_v9 }
 0x8d1   : > { %6747 = vmatprep.subr.bf16.mxu1 %v4994_v11  ;;  %v5124_v11 = vunpack.c.l.s8.bf16 %v4288_v43 }
 0x8d2   : > { %6584 = vmatpush1.bf16.msra.mxu0 %v4991_v51  ;;  %v5144_v51 = vunpack.c.h.s8.bf16 %v4289_v24 }
 0x8d3   : > { %6748 = vmatpush1.bf16.msra.mxu1 %v4993_v54  ;;  %6585 = vmatprep.subr.bf16.mxu0 %v5011_v56  ;;  %v5146_v54 = vunpack.c.h.s8.bf16 %v4291_v9  ;;  %v4308_v56 = vld [vmem:[%s10571_s6 + $0x800] sm:$0xff] }
 0x8d4   : > { %6749 = vmatprep.subr.bf16.mxu1 %v5013_v63  ;;  %v5143_v63 = vunpack.c.h.s8.bf16 %v4288_v43  ;;  %v4367_v43 = vld [vmem:[%s10571_s6 + $0x9d8] sm:$0xff] }
 0x8d6   : > { %6586 = vmatpush1.bf16.msra.mxu0 %v5010_v1  ;;  %v5163_v1 = vunpack.c.l.s8.bf16 %v4308_v56 }
 0x8d7   : > { %6750 = vmatpush1.bf16.msra.mxu1 %v5012_v2  ;;  %6587 = vmatprep.subr.bf16.mxu0 %v5030_v3  ;;  %v4307_v2 = vld [vmem:[%s10571_s6 + $0x7f8] sm:$0xff]  ;;  %v5165_v3 = vunpack.c.l.s8.bf16 %v4310_v62 }
 0x8d8   : > { %6751 = vmatprep.subr.bf16.mxu1 %v5032_v17  ;;  %v4309_v17 = vld [vmem:[%s10571_s6 + $0x808] sm:$0xff]  ;;  %v5162_v33 = vunpack.c.l.s8.bf16 %v4307_v2 }
 0x8d9   : > { %v5164_v14 = vunpack.c.l.s8.bf16 %v4309_v17  ;;  %v5183_v31 = vunpack.c.h.s8.bf16 %v4309_v17 }
 0x8da   : > { %6588 = vmatpush1.bf16.msra.mxu0 %v5029_v15  ;;  %v5182_v15 = vunpack.c.h.s8.bf16 %v4308_v56 }
 0x8db   : > { %6752 = vmatpush1.bf16.msra.mxu1 %v5031_v18  ;;  %6589 = vmatprep.subr.bf16.mxu0 %v5049_v19  ;;  %v5184_v18 = vunpack.c.h.s8.bf16 %v4310_v62  ;;  %v4327_v19 = vld [vmem:[%s10571_s6 + $0x898] sm:$0xff] }
 0x8dc   : > { %6753 = vmatprep.subr.bf16.mxu1 %v5051_v22  ;;  %v5181_v22 = vunpack.c.h.s8.bf16 %v4307_v2  ;;  %v4386_v2 = vld [vmem:[%s10571_s6 + $0xa70] sm:$0xff] }
 0x8de   : > { %6590 = vmatpush1.bf16.msra.mxu0 %v5048_v23  ;;  %v5201_v23 = vunpack.c.l.s8.bf16 %v4327_v19 }
 0x8df   : > { %6754 = vmatpush1.bf16.msra.mxu1 %v5050_v27  ;;  %6591 = vmatprep.subr.bf16.mxu0 %v5068_v29  ;;  %v4326_v27 = vld [vmem:[%s10571_s6 + $0x890] sm:$0xff]  ;;  %v5203_v29 = vunpack.c.l.s8.bf16 %v4329_v21 }
 0x8e0   : > { %6755 = vmatprep.subr.bf16.mxu1 %v5070_v20  ;;  %v4328_v20 = vld [vmem:[%s10571_s6 + $0x8a0] sm:$0xff]  ;;  %v5200_v38 = vunpack.c.l.s8.bf16 %v4326_v27 }
 0x8e1   : > { %v5202_v36 = vunpack.c.l.s8.bf16 %v4328_v20  ;;  %v5221_v16 = vunpack.c.h.s8.bf16 %v4328_v20 }
 0x8e2   : > { %6592 = vmatpush1.bf16.msra.mxu0 %v5067_v48  ;;  %v5220_v48 = vunpack.c.h.s8.bf16 %v4327_v19 }
 0x8e3   : > { %6756 = vmatpush1.bf16.msra.mxu1 %v5069_v5  ;;  %6593 = vmatprep.subr.bf16.mxu0 %v5087_v32  ;;  %v5222_v5 = vunpack.c.h.s8.bf16 %v4329_v21  ;;  %v4346_v32 = vld [vmem:[%s10571_s6 + $0x930] sm:$0xff] }
 0x8e4   : > { %6757 = vmatprep.subr.bf16.mxu1 %v5089_v35  ;;  %v5219_v35 = vunpack.c.h.s8.bf16 %v4326_v27  ;;  %v4405_v27 = vld [vmem:[%s10571_s6 + $0xb08] sm:$0xff] }
 0x8e6   : > { %6594 = vmatpush1.bf16.msra.mxu0 %v5086_v28  ;;  %v5239_v28 = vunpack.c.l.s8.bf16 %v4346_v32 }
 0x8e7   : > { %6758 = vmatpush1.bf16.msra.mxu1 %v5088_v55  ;;  %6595 = vmatprep.subr.bf16.mxu0 %v5106_v37  ;;  %v4345_v55 = vld [vmem:[%s10571_s6 + $0x928] sm:$0xff]  ;;  %v5241_v37 = vunpack.c.l.s8.bf16 %v4348_v25 }
 0x8e8   : > { %6759 = vmatprep.subr.bf16.mxu1 %v5108_v30  ;;  %v4347_v30 = vld [vmem:[%s10571_s6 + $0x938] sm:$0xff]  ;;  %v5238_v24 = vunpack.c.l.s8.bf16 %v4345_v55 }
 0x8e9   : > { %v5240_v9 = vunpack.c.l.s8.bf16 %v4347_v30  ;;  %v5259_v7 = vunpack.c.h.s8.bf16 %v4347_v30 }
 0x8ea   : > { %6596 = vmatpush1.bf16.msra.mxu0 %v5105_v39  ;;  %v5258_v39 = vunpack.c.h.s8.bf16 %v4346_v32 }
 0x8eb   : > { %6760 = vmatpush1.bf16.msra.mxu1 %v5107_v61  ;;  %6597 = vmatprep.subr.bf16.mxu0 %v5125_v40  ;;  %v5260_v61 = vunpack.c.h.s8.bf16 %v4348_v25  ;;  %v4365_v40 = vld [vmem:[%s10571_s6 + $0x9c8] sm:$0xff] }
 0x8ec   : > { %6761 = vmatprep.subr.bf16.mxu1 %v5127_v44  ;;  %v5257_v44 = vunpack.c.h.s8.bf16 %v4345_v55  ;;  %v4424_v55 = vld [vmem:[%s10571_s6 + $0xba0] sm:$0xff] }
 0x8ee   : > { %6598 = vmatpush1.bf16.msra.mxu0 %v5124_v11  ;;  %v5277_v11 = vunpack.c.l.s8.bf16 %v4365_v40 }
 0x8ef   : > { %6762 = vmatpush1.bf16.msra.mxu1 %v5126_v46  ;;  %6599 = vmatprep.subr.bf16.mxu0 %v5144_v51  ;;  %v4364_v46 = vld [vmem:[%s10571_s6 + $0x9c0] sm:$0xff]  ;;  %v5279_v51 = vunpack.c.l.s8.bf16 %v4367_v43 }
 0x8f0   : > { %6763 = vmatprep.subr.bf16.mxu1 %v5146_v54  ;;  %v4366_v54 = vld [vmem:[%s10571_s6 + $0x9d0] sm:$0xff]  ;;  %v5276_v56 = vunpack.c.l.s8.bf16 %v4364_v46 }
 0x8f1   : > { %v5278_v62 = vunpack.c.l.s8.bf16 %v4366_v54  ;;  %v5297_v17 = vunpack.c.h.s8.bf16 %v4366_v54 }
 0x8f2   : > { %6600 = vmatpush1.bf16.msra.mxu0 %v5143_v63  ;;  %v5296_v63 = vunpack.c.h.s8.bf16 %v4365_v40 }
 0x8f3   : > { %6764 = vmatpush1.bf16.msra.mxu1 %v5145_v0  ;;  %6601 = vmatprep.subr.bf16.mxu0 %v5163_v1  ;;  %v4384_v0 = vld [vmem:[%s10571_s6 + $0xa60] sm:$0xff]  ;;  %v5298_v1 = vunpack.c.h.s8.bf16 %v4367_v43 }
 0x8f4   : > { %6765 = vmatprep.subr.bf16.mxu1 %v5165_v3  ;;  %v5295_v3 = vunpack.c.h.s8.bf16 %v4364_v46  ;;  %v4443_v46 = vld [vmem:[%s10571_s6 + $0xc38] sm:$0xff] }
 0x8f6   : > { %6602 = vmatpush1.bf16.msra.mxu0 %v5162_v33  ;;  %v5315_v33 = vunpack.c.l.s8.bf16 %v4384_v0 }
 0x8f7   : > { %6766 = vmatpush1.bf16.msra.mxu1 %v5164_v14  ;;  %6603 = vmatprep.subr.bf16.mxu0 %v5182_v15  ;;  %v4383_v14 = vld [vmem:[%s10571_s6 + $0xa58] sm:$0xff]  ;;  %v5317_v15 = vunpack.c.l.s8.bf16 %v4386_v2 }
 0x8f8   : > { %6767 = vmatprep.subr.bf16.mxu1 %v5184_v18  ;;  %v4385_v18 = vld [vmem:[%s10571_s6 + $0xa68] sm:$0xff]  ;;  %v5314_v19 = vunpack.c.l.s8.bf16 %v4383_v14 }
 0x8f9   : > { %v5316_v21 = vunpack.c.l.s8.bf16 %v4385_v18  ;;  %v5335_v20 = vunpack.c.h.s8.bf16 %v4385_v18 }
 0x8fa   : > { %6604 = vmatpush1.bf16.msra.mxu0 %v5181_v22  ;;  %v5334_v22 = vunpack.c.h.s8.bf16 %v4384_v0  ;;  %v4442_v0 = vld [vmem:[%s10571_s6 + $0xc30] sm:$0xff] }
 0x8fb   : > { %6768 = vmatpush1.bf16.msra.mxu1 %v5183_v31  ;;  %6605 = vmatprep.subr.bf16.mxu0 %v5201_v23  ;;  %v5336_v31 = vunpack.c.h.s8.bf16 %v4386_v2  ;;  %v4403_v23 = vld [vmem:[%s10571_s6 + $0xaf8] sm:$0xff]  ;;  %v5430_v2 = vunpack.c.l.s8.bf16 %v4442_v0  ;;  %v5449_v18 = vunpack.c.h.s8.bf16 %v4442_v0 }
 0x8fc   : > { %6769 = vmatprep.subr.bf16.mxu1 %v5203_v29  ;;  %v5333_v29 = vunpack.c.h.s8.bf16 %v4383_v14  ;;  %v4462_v14 = vld [vmem:[%s10571_s6 + $0xcd0] sm:$0xff] }
 0x8fe   : > { %6606 = vmatpush1.bf16.msra.mxu0 %v5200_v38  ;;  %v5353_v38 = vunpack.c.l.s8.bf16 %v4403_v23 }
 0x8ff   : > { %6770 = vmatpush1.bf16.msra.mxu1 %v5202_v36  ;;  %6607 = vmatprep.subr.bf16.mxu0 %v5220_v48  ;;  %v4402_v36 = vld [vmem:[%s10571_s6 + $0xaf0] sm:$0xff]  ;;  %v5355_v48 = vunpack.c.l.s8.bf16 %v4405_v27 }
 0x900   : > { %6771 = vmatprep.subr.bf16.mxu1 %v5222_v5  ;;  %v4404_v5 = vld [vmem:[%s10571_s6 + $0xb00] sm:$0xff]  ;;  %v5352_v32 = vunpack.c.l.s8.bf16 %v4402_v36 }
 0x901   : > { %v5354_v25 = vunpack.c.l.s8.bf16 %v4404_v5  ;;  %v5373_v30 = vunpack.c.h.s8.bf16 %v4404_v5 }
 0x902   : > { %6608 = vmatpush1.bf16.msra.mxu0 %v5219_v35  ;;  %v5372_v35 = vunpack.c.h.s8.bf16 %v4403_v23 }
 0x903   : > { %6772 = vmatpush1.bf16.msra.mxu1 %v5221_v16  ;;  %6609 = vmatprep.subr.bf16.mxu0 %v5239_v28  ;;  %v5374_v16 = vunpack.c.h.s8.bf16 %v4405_v27  ;;  %v4422_v28 = vld [vmem:[%s10571_s6 + $0xb90] sm:$0xff] }
 0x904   : > { %6773 = vmatprep.subr.bf16.mxu1 %v5241_v37  ;;  %v5371_v37 = vunpack.c.h.s8.bf16 %v4402_v36  ;;  %v4481_v36 = vld [vmem:[%s10571_s6 + $0xd68] sm:$0xff] }
 0x906   : > { %6610 = vmatpush1.bf16.msra.mxu0 %v5238_v24  ;;  %v5391_v24 = vunpack.c.l.s8.bf16 %v4422_v28 }
 0x907   : > { %6774 = vmatpush1.bf16.msra.mxu1 %v5240_v9  ;;  %6611 = vmatprep.subr.bf16.mxu0 %v5258_v39  ;;  %v4421_v9 = vld [vmem:[%s10571_s6 + $0xb88] sm:$0xff]  ;;  %v5393_v39 = vunpack.c.l.s8.bf16 %v4424_v55 }
 0x908   : > { %6775 = vmatprep.subr.bf16.mxu1 %v5260_v61  ;;  %v4423_v61 = vld [vmem:[%s10571_s6 + $0xb98] sm:$0xff]  ;;  %v5390_v40 = vunpack.c.l.s8.bf16 %v4421_v9 }
 0x909   : > { %v5392_v43 = vunpack.c.l.s8.bf16 %v4423_v61  ;;  %v5411_v54 = vunpack.c.h.s8.bf16 %v4423_v61 }
 0x90a   : > { %6612 = vmatpush1.bf16.msra.mxu0 %v5257_v44  ;;  %v5410_v44 = vunpack.c.h.s8.bf16 %v4422_v28 }
 0x90b   : > { %6776 = vmatpush1.bf16.msra.mxu1 %v5259_v7  ;;  %6622 = vmatprep.subr.bf16.mxu0 %v5277_v11  ;;  %v5412_v7 = vunpack.c.h.s8.bf16 %v4424_v55  ;;  %v4441_v11 = vld [vmem:[%s10571_s6 + $0xc28] sm:$0xff] }
 0x90c   : > { %6786 = vmatprep.subr.bf16.mxu1 %v5279_v51  ;;  %v5409_v51 = vunpack.c.h.s8.bf16 %v4421_v9  ;;  %v4500_v9 = vld [vmem:[%s10571_s6 + $0xe00] sm:$0xff] }
 0x90d   : > { %6614 = vmatmul.mubr.bf16.vlgmr.msra.gmra.mrb[20].mxu0 %v10863_v60 }
 0x90e   : > { %6778 = vmatmul.mubr.bf16.vlgmr.msra.gmra.mrb[28].mxu1 %v10863_v60  ;;  %6623 = vmatpush1.bf16.msra.mxu0 %v5276_v56  ;;  %v5429_v56 = vunpack.c.l.s8.bf16 %v4441_v11 }
 0x90f   : > { %6654 = vmatprep.mubr.bf16.mxu0 %v10967_v13  ;;  %6787 = vmatpush1.bf16.msra.mxu1 %v5278_v62  ;;  %v4440_v62 = vld [vmem:[%s10571_s6 + $0xc20] sm:$0xff] }
 0x910   : > { %6818 = vmatprep.mubr.bf16.mxu1 %v10967_v13  ;;  %6624 = vmatprep.subr.bf16.mxu0 %v5296_v63  ;;  %v5431_v63 = vunpack.c.l.s8.bf16 %v4443_v46 }
 0x911   : > { %6788 = vmatprep.subr.bf16.mxu1 %v5298_v1  ;;  %v5428_v1 = vunpack.c.l.s8.bf16 %v4440_v62 }
 0x912   : > { %6625 = vmatpush1.bf16.msra.mxu0 %v5295_v3  ;;  %v5448_v3 = vunpack.c.h.s8.bf16 %v4441_v11 }
 0x913   : > { %6789 = vmatpush1.bf16.msra.mxu1 %v5297_v17  ;;  %6626 = vmatprep.subr.bf16.mxu0 %v5315_v33  ;;  %v5450_v17 = vunpack.c.h.s8.bf16 %v4443_v46  ;;  %v4460_v33 = vld [vmem:[%s10571_s6 + $0xcc0] sm:$0xff] }
 0x914   : > { %6790 = vmatprep.subr.bf16.mxu1 %v5317_v15  ;;  %v5447_v15 = vunpack.c.h.s8.bf16 %v4440_v62  ;;  %v4519_v62 = vld [vmem:[%s10571_s6 + $0xe98] sm:$0xff] }
 0x916   : > { %6627 = vmatpush1.bf16.msra.mxu0 %v5314_v19  ;;  %v5467_v19 = vunpack.c.l.s8.bf16 %v4460_v33 }
 0x917   : > { %6791 = vmatpush1.bf16.msra.mxu1 %v5316_v21  ;;  %6628 = vmatprep.subr.bf16.mxu0 %v5334_v22  ;;  %v4459_v21 = vld [vmem:[%s10571_s6 + $0xcb8] sm:$0xff]  ;;  %v5469_v22 = vunpack.c.l.s8.bf16 %v4462_v14 }
 0x918   : > { %6792 = vmatprep.subr.bf16.mxu1 %v5336_v31  ;;  %v4461_v31 = vld [vmem:[%s10571_s6 + $0xcc8] sm:$0xff]  ;;  %v5466_v23 = vunpack.c.l.s8.bf16 %v4459_v21 }
 0x919   : > { %v5468_v27 = vunpack.c.l.s8.bf16 %v4461_v31  ;;  %v5487_v5 = vunpack.c.h.s8.bf16 %v4461_v31 }
 0x91a   : > { %6629 = vmatpush1.bf16.msra.mxu0 %v5333_v29  ;;  %v5486_v29 = vunpack.c.h.s8.bf16 %v4460_v33 }
 0x91b   : > { %6793 = vmatpush1.bf16.msra.mxu1 %v5335_v20  ;;  %6630 = vmatprep.subr.bf16.mxu0 %v5353_v38  ;;  %v5488_v20 = vunpack.c.h.s8.bf16 %v4462_v14  ;;  %v4479_v38 = vld [vmem:[%s10571_s6 + $0xd58] sm:$0xff] }
 0x91c   : > { %6794 = vmatprep.subr.bf16.mxu1 %v5355_v48  ;;  %v5485_v48 = vunpack.c.h.s8.bf16 %v4459_v21  ;;  %v4538_v21 = vld [vmem:[%s10571_s6 + $0xf30] sm:$0xff] }
 0x91e   : > { %6631 = vmatpush1.bf16.msra.mxu0 %v5352_v32  ;;  %v5505_v32 = vunpack.c.l.s8.bf16 %v4479_v38 }
 0x91f   : > { %6795 = vmatpush1.bf16.msra.mxu1 %v5354_v25  ;;  %6632 = vmatprep.subr.bf16.mxu0 %v5372_v35  ;;  %v4478_v25 = vld [vmem:[%s10571_s6 + $0xd50] sm:$0xff]  ;;  %v5507_v35 = vunpack.c.l.s8.bf16 %v4481_v36 }
 0x920   : > { %6796 = vmatprep.subr.bf16.mxu1 %v5374_v16  ;;  %v4480_v16 = vld [vmem:[%s10571_s6 + $0xd60] sm:$0xff]  ;;  %v5504_v28 = vunpack.c.l.s8.bf16 %v4478_v25 }
 0x921   : > { %v5506_v55 = vunpack.c.l.s8.bf16 %v4480_v16  ;;  %v5525_v61 = vunpack.c.h.s8.bf16 %v4480_v16 }
 0x922   : > { %6633 = vmatpush1.bf16.msra.mxu0 %v5371_v37  ;;  %v5524_v37 = vunpack.c.h.s8.bf16 %v4479_v38 }
 0x923   : > { %6797 = vmatpush1.bf16.msra.mxu1 %v5373_v30  ;;  %6634 = vmatprep.subr.bf16.mxu0 %v5391_v24  ;;  %v5526_v30 = vunpack.c.h.s8.bf16 %v4481_v36  ;;  %v4498_v24 = vld [vmem:[%s10571_s6 + $0xdf0] sm:$0xff] }
 0x924   : > { %6798 = vmatprep.subr.bf16.mxu1 %v5393_v39  ;;  %v5523_v39 = vunpack.c.h.s8.bf16 %v4478_v25  ;;  %v4557_v25 = vld [vmem:[%s10571_s6 + $0xfc8] sm:$0xff] }
 0x926   : > { %6635 = vmatpush1.bf16.msra.mxu0 %v5390_v40  ;;  %v5543_v40 = vunpack.c.l.s8.bf16 %v4498_v24 }
 0x927   : > { %6799 = vmatpush1.bf16.msra.mxu1 %v5392_v43  ;;  %6636 = vmatprep.subr.bf16.mxu0 %v5410_v44  ;;  %v4497_v43 = vld [vmem:[%s10571_s6 + $0xde8] sm:$0xff]  ;;  %v5545_v44 = vunpack.c.l.s8.bf16 %v4500_v9 }
 0x928   : > { %6800 = vmatprep.subr.bf16.mxu1 %v5412_v7  ;;  %v4499_v7 = vld [vmem:[%s10571_s6 + $0xdf8] sm:$0xff]  ;;  %v5542_v11 = vunpack.c.l.s8.bf16 %v4497_v43 }
 0x929   : > { %v5544_v46 = vunpack.c.l.s8.bf16 %v4499_v7  ;;  %v5563_v0 = vunpack.c.h.s8.bf16 %v4499_v7  ;;  %v4576_v7 = vld [vmem:[%s10571_s6 + $0x1060] sm:$0xff] }
 0x92a   : > { %6637 = vmatpush1.bf16.msra.mxu0 %v5409_v51  ;;  %v5562_v51 = vunpack.c.h.s8.bf16 %v4498_v24 }
 0x92b   : > { %6801 = vmatpush1.bf16.msra.mxu1 %v5411_v54  ;;  %6638 = vmatprep.subr.bf16.mxu0 %v5429_v56  ;;  %v5564_v54 = vunpack.c.h.s8.bf16 %v4500_v9  ;;  %v4517_v56 = vld [vmem:[%s10571_s6 + $0xe88] sm:$0xff] }
 0x92c   : > { %6802 = vmatprep.subr.bf16.mxu1 %v5431_v63  ;;  %v5561_v63 = vunpack.c.h.s8.bf16 %v4497_v43  ;;  %v9288_v43 = vld [vmem:[%s10581_s5] sm:$0xff] }
 0x92e   : > { %6639 = vmatpush1.bf16.msra.mxu0 %v5428_v1  ;;  %v5581_v1 = vunpack.c.l.s8.bf16 %v4517_v56 }
 0x92f   : > { %6803 = vmatpush1.bf16.msra.mxu1 %v5430_v2  ;;  %6640 = vmatprep.subr.bf16.mxu0 %v5448_v3  ;;  %v4516_v2 = vld [vmem:[%s10571_s6 + $0xe80] sm:$0xff]  ;;  %v5583_v3 = vunpack.c.l.s8.bf16 %v4519_v62 }
 0x930   : > { %6804 = vmatprep.subr.bf16.mxu1 %v5450_v17  ;;  %v4518_v17 = vld [vmem:[%s10571_s6 + $0xe90] sm:$0xff]  ;;  %v5580_v33 = vunpack.c.l.s8.bf16 %v4516_v2 }
 0x931   : > { %v5582_v14 = vunpack.c.l.s8.bf16 %v4518_v17  ;;  %v5601_v31 = vunpack.c.h.s8.bf16 %v4518_v17 }
 0x932   : > { %6641 = vmatpush1.bf16.msra.mxu0 %v5447_v15  ;;  %v5600_v15 = vunpack.c.h.s8.bf16 %v4517_v56 }
 0x933   : > { %6805 = vmatpush1.bf16.msra.mxu1 %v5449_v18  ;;  %6642 = vmatprep.subr.bf16.mxu0 %v5467_v19  ;;  %v4536_v18 = vld [vmem:[%s10571_s6 + $0xf20] sm:$0xff]  ;;  %v5602_v19 = vunpack.c.h.s8.bf16 %v4519_v62  ;;  %v7557_v62 = vrot.slane %v9288_v43, %v10859_v52 }
 0x934   : > { %6806 = vmatprep.subr.bf16.mxu1 %v5469_v22  ;;  %v5599_v22 = vunpack.c.h.s8.bf16 %v4516_v2 }
 0x936   : > { %6643 = vmatpush1.bf16.msra.mxu0 %v5466_v23  ;;  %v5619_v23 = vunpack.c.l.s8.bf16 %v4536_v18 }
 0x937   : > { %6807 = vmatpush1.bf16.msra.mxu1 %v5468_v27  ;;  %6644 = vmatprep.subr.bf16.mxu0 %v5486_v29  ;;  %v4535_v27 = vld [vmem:[%s10571_s6 + $0xf18] sm:$0xff]  ;;  %v5621_v29 = vunpack.c.l.s8.bf16 %v4538_v21 }
 0x938   : > { %6808 = vmatprep.subr.bf16.mxu1 %v5488_v20  ;;  %v4537_v20 = vld [vmem:[%s10571_s6 + $0xf28] sm:$0xff]  ;;  %v5618_v38 = vunpack.c.l.s8.bf16 %v4535_v27 }
 0x939   : > { %v5620_v36 = vunpack.c.l.s8.bf16 %v4537_v20  ;;  %v5639_v16 = vunpack.c.h.s8.bf16 %v4537_v20 }
 0x93a   : > { %6645 = vmatpush1.bf16.msra.mxu0 %v5485_v48  ;;  %v5638_v48 = vunpack.c.h.s8.bf16 %v4536_v18 }
 0x93b   : > { %6809 = vmatpush1.bf16.msra.mxu1 %v5487_v5  ;;  %6646 = vmatprep.subr.bf16.mxu0 %v5505_v32  ;;  %v5640_v5 = vunpack.c.h.s8.bf16 %v4538_v21  ;;  %v4555_v32 = vld [vmem:[%s10571_s6 + $0xfb8] sm:$0xff] }
 0x93c   : > { %6810 = vmatprep.subr.bf16.mxu1 %v5507_v35  ;;  %v5637_v35 = vunpack.c.h.s8.bf16 %v4535_v27 }
 0x93e   : > { %6647 = vmatpush1.bf16.msra.mxu0 %v5504_v28  ;;  %v5657_v28 = vunpack.c.l.s8.bf16 %v4555_v32 }
 0x93f   : > { %6811 = vmatpush1.bf16.msra.mxu1 %v5506_v55  ;;  %6648 = vmatprep.subr.bf16.mxu0 %v5524_v37  ;;  %v4554_v55 = vld [vmem:[%s10571_s6 + $0xfb0] sm:$0xff]  ;;  %v5659_v37 = vunpack.c.l.s8.bf16 %v4557_v25 }
 0x940   : > { %6812 = vmatprep.subr.bf16.mxu1 %v5526_v30  ;;  %v4556_v30 = vld [vmem:[%s10571_s6 + $0xfc0] sm:$0xff]  ;;  %v5656_v24 = vunpack.c.l.s8.bf16 %v4554_v55 }
 0x941   : > { %v5658_v9 = vunpack.c.l.s8.bf16 %v4556_v30 }
 0x942   : > { %6649 = vmatpush1.bf16.msra.mxu0 %v5523_v39  ;;  %v5676_v39 = vunpack.c.h.s8.bf16 %v4555_v32 }
 0x943   : > { %6813 = vmatpush1.bf16.msra.mxu1 %v5525_v61  ;;  %6650 = vmatprep.subr.bf16.mxu0 %v5543_v40  ;;  %v5678_v61 = vunpack.c.h.s8.bf16 %v4557_v25  ;;  %v4574_v40 = vld [vmem:[%s10571_s6 + $0x1050] sm:$0xff] }
 0x944   : > { %6814 = vmatprep.subr.bf16.mxu1 %v5545_v44  ;;  %v7545_v44 = vrot.slane %v9288_v43, %v10851_v42  ;;  %v5714_v32 = vunpack.c.h.s8.bf16 %v4574_v40 }
 0x946   : > { %6651 = vmatpush1.bf16.msra.mxu0 %v5542_v11  ;;  %v7553_v11 = vrot.slane %v9288_v43, %v10892_v34 }
 0x947   : > { %6815 = vmatpush1.bf16.msra.mxu1 %v5544_v46  ;;  %6652 = vmatprep.subr.bf16.mxu0 %v5562_v51  ;;  %v7549_v46 = vrot.slane %v9288_v43, %v10856_v50  ;;  %v5675_v51 = vunpack.c.h.s8.bf16 %v4554_v55  ;;  %v4593_v55 = vld [vmem:[%s10571_s6 + $0x10e8] sm:$0xff]  ;;  %v4594_v43 = vld [vmem:[%s10571_s6 + $0x10f0] sm:$0xff] }
 0x948   : > { %6816 = vmatprep.subr.bf16.mxu1 %v5564_v54  ;;  %v9289_v54 = vld [vmem:[%s10585_s14] sm:$0xff] }
 0x949   : > { %v7665_v56 = vrot.slane %v9289_v54, %v10851_v42  ;;  %v7669_v17 = vrot.slane %v9289_v54, %v10856_v50  ;;  %v7677_v21 = vrot.slane %v9289_v54, %v10859_v52 }
 0x94a   : > { %6653 = vmatpush1.bf16.msra.mxu0 %v5561_v63  ;;  %v5677_v63 = vunpack.c.h.s8.bf16 %v4556_v30  ;;  %v4595_v30 = vld [vmem:[%s10571_s6 + $0x10f8] sm:$0xff] }
 0x94b   : > { %6817 = vmatpush1.bf16.msra.mxu1 %v5563_v0  ;;  %6663 = vmatprep.subr.bf16.mxu0 %v5581_v1  ;;  %v5695_v0 = vunpack.c.l.s8.bf16 %v4574_v40  ;;  %v4573_v1 = vld [vmem:[%s10571_s6 + $0x1048] sm:$0xff]  ;;  %v5735_v40 = vunpack.c.l.s8.bf16 %v4595_v30 }
 0x94c   : > { %6827 = vmatprep.subr.bf16.mxu1 %v5583_v3  ;;  %v7673_v3 = vrot.slane %v9289_v54, %v10892_v34  ;;  %v4614_v54 = vld [vmem:[%s10571_s6 + $0x1190] sm:$0xff] }
 0x94d   : > { %6655 = vmatmul.mubr.bf16.vlgmr.msra.gmra.mrb[20].mxu0 %v10969_v47 }
 0x94e   : > { %6819 = vmatmul.mubr.bf16.vlgmr.msra.gmra.mrb[28].mxu1 %v10969_v47  ;;  %6664 = vmatpush1.bf16.msra.mxu0 %v5580_v33  ;;  %v5697_v33 = vunpack.c.l.s8.bf16 %v4576_v7 }
 0x94f   : > { %6695 = vmatprep.mubr.bf16.mxu0 %v10975_v59  ;;  %6828 = vmatpush1.bf16.msra.mxu1 %v5582_v14  ;;  %v4575_v14 = vld [vmem:[%s10571_s6 + $0x1058] sm:$0xff] }
 0x950   : > { %6859 = vmatprep.mubr.bf16.mxu1 %v10975_v59  ;;  %6665 = vmatprep.subr.bf16.mxu0 %v5600_v15 }
 0x951   : > { %6829 = vmatprep.subr.bf16.mxu1 %v5602_v19 }
 0x952   : > { %6666 = vmatpush1.bf16.msra.mxu0 %v5599_v22 }
 0x953   : > { %6830 = vmatpush1.bf16.msra.mxu1 %v5601_v31  ;;  %6667 = vmatprep.subr.bf16.mxu0 %v5619_v23 }
 0x954   : > { %6831 = vmatprep.subr.bf16.mxu1 %v5621_v29  ;;  %v5694_v29 = vunpack.c.l.s8.bf16 %v4573_v1 }
 0x956   : > { %6668 = vmatpush1.bf16.msra.mxu0 %v5618_v38 }
 0x957   : > { %6832 = vmatpush1.bf16.msra.mxu1 %v5620_v36  ;;  %6669 = vmatprep.subr.bf16.mxu0 %v5638_v48 }
 0x958   : > { %6833 = vmatprep.subr.bf16.mxu1 %v5640_v5  ;;  %v5696_v5 = vunpack.c.l.s8.bf16 %v4575_v14 }
 0x95a   : > { %6670 = vmatpush1.bf16.msra.mxu0 %v5637_v35 }
 0x95b   : > { %6834 = vmatpush1.bf16.msra.mxu1 %v5639_v16  ;;  %6671 = vmatprep.subr.bf16.mxu0 %v5657_v28  ;;  %v5716_v28 = vunpack.c.h.s8.bf16 %v4576_v7  ;;  %v5734_v7 = vunpack.c.l.s8.bf16 %v4594_v43 }
 0x95c   : > { %6835 = vmatprep.subr.bf16.mxu1 %v5659_v37 }
 0x95e   : > { %6672 = vmatpush1.bf16.msra.mxu0 %v5656_v24  ;;  %v5713_v24 = vunpack.c.h.s8.bf16 %v4573_v1  ;;  %v4611_v1 = vld [vmem:[%s10571_s6 + $0x1178] sm:$0xff] }
 0x95f   : > { %6836 = vmatpush1.bf16.msra.mxu1 %v5658_v9  ;;  %6673 = vmatprep.subr.bf16.mxu0 %v5676_v39  ;;  %v5715_v9 = vunpack.c.h.s8.bf16 %v4575_v14  ;;  %v5733_v39 = vunpack.c.l.s8.bf16 %v4593_v55 }
 0x960   : > { %v6369_v2 = vpop.f32.mrb[16].mxu0  ;;  %6837 = vmatprep.subr.bf16.mxu1 %v5678_v61  ;;  %v4592_v61 = vld [vmem:[%s10571_s6 + $0x10e0] sm:$0xff] }
 0x961   : > { %v7625_v15 = vmul.f32 %v7545_v44, %v6369_v2  ;;  %v6533_v18 = vpop.f32.mrb[24].mxu1  ;;  %v6371_v19 = vpop.f32.mrb[17].mxu0  ;;  %v5732_v44 = vunpack.c.l.s8.bf16 %v4592_v61 }
 0x962   : > { %v7627_v22 = vmul.f32 %v7553_v11, %v6533_v18  ;;  %v7626_v31 = vmul.f32 %v7549_v46, %v6371_v19  ;;  %v6535_v23 = vpop.f32.mrb[25].mxu1  ;;  %v6373_v27 = vpop.f32.mrb[18].mxu0  ;;  %6674 = vmatpush1.bf16.msra.mxu0 %v5675_v51  ;;  %v5752_v11 = vunpack.c.h.s8.bf16 %v4593_v55  ;;  %v5754_v46 = vunpack.c.h.s8.bf16 %v4595_v30  ;;  %v4612_v51 = vld [vmem:[%s10571_s6 + $0x1180] sm:$0xff] }
 0x963   : > { %v7745_v20 = vadd.f32 %v7665_v56, %v7625_v15  ;;  %v7628_v38 = vmul.f32 %v7557_v62, %v6535_v23  ;;  %v6537_v36 = vpop.f32.mrb[26].mxu1  ;;  %6838 = vmatpush1.bf16.msra.mxu1 %v5677_v63  ;;  %v6374_v48 = vpop.f32.mrb[19].mxu0  ;;  %6675 = vmatprep.subr.bf16.mxu0 %v5695_v0  ;;  %v5751_v56 = vunpack.c.h.s8.bf16 %v4592_v61  ;;  %v5753_v63 = vunpack.c.h.s8.bf16 %v4594_v43  ;;  %v4631_v27 = vld [vmem:[%s10571_s6 + $0x1218] sm:$0xff]  ;;  %v4652_v61 = vld [vmem:[%s10571_s6 + $0x12c0] sm:$0xff] }
 0x964   : > { %v7747_v25 = vadd.f32 %v7673_v3, %v7627_v22  ;;  %v7746_v35 = vadd.f32 %v7669_v17, %v7626_v31  ;;  %v6538_v16 = vpop.f32.mrb[27].mxu1  ;;  %6839 = vmatprep.subr.bf16.mxu1 %v5697_v33  ;;  %v5771_v0 = vunpack.c.l.s8.bf16 %v4612_v51  ;;  %v5773_v3 = vunpack.c.l.s8.bf16 %v4614_v54  ;;  %v4613_v17 = vld [vmem:[%s10571_s6 + $0x1188] sm:$0xff] }
 0x965   : > { %9256 = vtanh.f32 %v7745_v20  ;;  %v7748_v37 = vadd.f32 %v7677_v21, %v7628_v38  ;;  %v5770_v18 = vunpack.c.l.s8.bf16 %v4611_v1  ;;  %v5772_v21 = vunpack.c.l.s8.bf16 %v4613_v17  ;;  %v4633_v20 = vld [vmem:[%s10571_s6 + $0x1228] sm:$0xff] }
 0x966   : > { %9258 = vtanh.f32 %v7747_v25  ;;  %6676 = vmatpush1.bf16.msra.mxu0 %v5694_v29  ;;  %v5790_v22 = vunpack.c.h.s8.bf16 %v4612_v51  ;;  %v5792_v23 = vunpack.c.h.s8.bf16 %v4614_v54  ;;  %v5789_v38 = vunpack.c.h.s8.bf16 %v4611_v1  ;;  %v4065_v54 = vld [vmem:[%s10571_s6 + $0x68] sm:$0xff]  ;;  %v4064_v1 = vld [vmem:[%s10571_s6 + $0x60] sm:$0xff] }
 0x967   : > { %9260 = vtanh.f32 %v7746_v35  ;;  %6840 = vmatpush1.bf16.msra.mxu1 %v5696_v5  ;;  %6677 = vmatprep.subr.bf16.mxu0 %v5714_v32  ;;  %v5791_v48 = vunpack.c.h.s8.bf16 %v4613_v17  ;;  %v5809_v5 = vunpack.c.l.s8.bf16 %v4631_v27  ;;  %v4630_v32 = vld [vmem:[%s10571_s6 + $0x1210] sm:$0xff]  ;;  %v5811_v25 = vunpack.c.l.s8.bf16 %v4633_v20  ;;  %v4632_v35 = vld [vmem:[%s10571_s6 + $0x1220] sm:$0xff] }
 0x968   : > { %9262 = vtanh.f32 %v7748_v37  ;;  %6841 = vmatprep.subr.bf16.mxu1 %v5716_v28  ;;  %v7857_v16 = vrot.slane %v7849_v53, %v11158_v57  ;;  %v5808_v55 = vunpack.c.l.s8.bf16 %v4630_v32  ;;  %v5810_v37 = vunpack.c.l.s8.bf16 %v4632_v35 }
 0x969   : > { %v5828_v30 = vunpack.c.h.s8.bf16 %v4631_v27  ;;  %v5827_v4 = vunpack.c.h.s8.bf16 %v4630_v32  ;;  %v5829_v45 = vunpack.c.h.s8.bf16 %v4632_v35  ;;  %v5849_v43 = vunpack.c.l.s8.bf16 %v4652_v61  ;;  %v4105_v32 = vld [vmem:[%s10571_s6 + $0x1a8] sm:$0xff] }
 0x96a   : > { %6678 = vmatpush1.bf16.msra.mxu0 %v5713_v24  ;;  %v5868_v51 = vunpack.c.h.s8.bf16 %v4652_v61  ;;  %v4672_v17 = vunpack.c.l.s8.bf16 %v4064_v1  ;;  %v4122_v61 = vld [vmem:[%s10571_s6 + $0x230] sm:$0xff] }
 0x96b   : > { %6842 = vmatpush1.bf16.msra.mxu1 %v5715_v9  ;;  %6679 = vmatprep.subr.bf16.mxu0 %v5733_v39  ;;  %v5830_v9 = vunpack.c.h.s8.bf16 %v4633_v20  ;;  %v4650_v39 = vld [vmem:[%s10571_s6 + $0x12b0] sm:$0xff] }
 0x96c   : > { %6843 = vmatprep.subr.bf16.mxu1 %v5735_v40  ;;  %v5847_v53 = vunpack.c.l.s8.bf16 %v4650_v39  ;;  %v4649_v40 = vld [vmem:[%s10571_s6 + $0x12a8] sm:$0xff] }
 0x96e   : > { %6680 = vmatpush1.bf16.msra.mxu0 %v5732_v44  ;;  %v4651_v44 = vld [vmem:[%s10571_s6 + $0x12b8] sm:$0xff] }
 0x96f   : > { %v9257_v62 = vpop.eup %9256  ;;  %6844 = vmatpush1.bf16.msra.mxu1 %v5734_v7  ;;  %6681 = vmatprep.subr.bf16.mxu0 %v5752_v11  ;;  %v5846_v7 = vunpack.c.l.s8.bf16 %v4649_v40  ;;  %v5848_v11 = vunpack.c.l.s8.bf16 %v4651_v44 }
 0x970   : > { %v9259_v2 = vpop.eup %9258  ;;  %6845 = vmatprep.subr.bf16.mxu1 %v5754_v46  ;;  %v5866_v46 = vunpack.c.h.s8.bf16 %v4650_v39  ;;  %v4770_v39 = vunpack.c.h.s8.bf16 %v4105_v32 }
 0x971   : > { %v9261_v33 = vpop.eup %9260 }
 0x972   : > { %v9263_v14 = vpop.eup %9262  ;;  %v8601_v15 = vpack.c.bf16 %v9261_v33, %v9257_v62  ;;  %6682 = vmatpush1.bf16.msra.mxu0 %v5751_v56  ;;  %v4067_v56 = vld [vmem:[%s10571_s6 + $0x78] sm:$0xff]  ;;  %v5865_v62 = vunpack.c.h.s8.bf16 %v4649_v40  ;;  %v4787_v40 = vunpack.c.l.s8.bf16 %v4122_v61 }
 0x973   : > { %v8602_v19 = vpack.c.bf16 %v9263_v14, %v9259_v2  ;;  %6846 = vmatpush1.bf16.msra.mxu1 %v5753_v63  ;;  %6683 = vmatprep.subr.bf16.mxu0 %v5771_v0  ;;  %v5867_v63 = vunpack.c.h.s8.bf16 %v4651_v44  ;;  %v4673_v0 = vunpack.c.l.s8.bf16 %v4065_v54  ;;  %v4675_v2 = vunpack.c.l.s8.bf16 %v4067_v56 }
 0x974   : > { %v7841_v31 = vrot.slane %v8601_v15, %v11158_v57  ;;  %6847 = vmatprep.subr.bf16.mxu1 %v5773_v3  ;;  %v4066_v3 = vld [vmem:[%s10571_s6 + $0x70] sm:$0xff]  ;;  %v4692_v14 = vunpack.c.h.s8.bf16 %v4065_v54  ;;  %v4084_v15 = vld [vmem:[%s10571_s6 + $0x100] sm:$0xff] }
 0x975   : > { %v7848_v29 = vrot.slane %v8602_v19, %v11158_v57  ;;  %v4674_v33 = vunpack.c.l.s8.bf16 %v4066_v3  ;;  %v4086_v19 = vld [vmem:[%s10571_s6 + $0x110] sm:$0xff] }
 0x976   : > { %6684 = vmatpush1.bf16.msra.mxu0 %v5770_v18  ;;  %v4694_v18 = vunpack.c.h.s8.bf16 %v4067_v56  ;;  %v4713_v27 = vunpack.c.l.s8.bf16 %v4086_v19  ;;  %v4141_v56 = vld [vmem:[%s10571_s6 + $0x2c8] sm:$0xff] }
 0x977   : > { %v7850_v36 = vcombine.low %v7841_v31, %v7848_v29  ;;  %6848 = vmatpush1.bf16.msra.mxu1 %v5772_v21  ;;  %6685 = vmatprep.subr.bf16.mxu0 %v5790_v22  ;;  %v4691_v21 = vunpack.c.h.s8.bf16 %v4064_v1  ;;  %v4693_v22 = vunpack.c.h.s8.bf16 %v4066_v3  ;;  %v4711_v31 = vunpack.c.l.s8.bf16 %v4084_v15  ;;  %v4085_v29 = vld [vmem:[%s10571_s6 + $0x108] sm:$0xff] }
 0x978   : > { %6849 = vmatprep.subr.bf16.mxu1 %v5792_v23  ;;  %v4083_v23 = vld [vmem:[%s10571_s6 + $0xf8] sm:$0xff]  ;;  %v4731_v35 = vunpack.c.h.s8.bf16 %v4085_v29  ;;  %v4825_v1 = vunpack.c.l.s8.bf16 %v4141_v56 }
 0x979   : > { %v7864_v28 = vrot.slane %v7850_v36, %v11158_v57  ;;  %v4710_v20 = vunpack.c.l.s8.bf16 %v4083_v23  ;;  %v4730_v36 = vunpack.c.h.s8.bf16 %v4084_v15  ;;  %v4844_v15 = vunpack.c.h.s8.bf16 %v4141_v56 }
 0x97a   : > { %6686 = vmatpush1.bf16.msra.mxu0 %v5789_v38  ;;  %v4712_v38 = vunpack.c.l.s8.bf16 %v4085_v29 }
 0x97b   : > { %6850 = vmatpush1.bf16.msra.mxu1 %v5791_v48  ;;  %6687 = vmatprep.subr.bf16.mxu0 %v5809_v5  ;;  %v7865_v24 = vcombine.low %v7857_v16, %v7864_v28  ;;  %v4732_v48 = vunpack.c.h.s8.bf16 %v4086_v19  ;;  %v4103_v5 = vld [vmem:[%s10571_s6 + $0x198] sm:$0xff]  ;;  %v4102_v28 = vld [vmem:[%s10571_s6 + $0x190] sm:$0xff]  ;;  %v4160_v19 = vld [vmem:[%s10571_s6 + $0x360] sm:$0xff] }
 0x97c   : > { %6851 = vmatprep.subr.bf16.mxu1 %v5811_v25  ;;  %v4729_v25 = vunpack.c.h.s8.bf16 %v4083_v23  ;;  %v4749_v16 = vunpack.c.l.s8.bf16 %v4103_v5  ;;  %v4863_v23 = vunpack.c.l.s8.bf16 %v4160_v19 }
 0x97d   : > { %7941 = vst [vmem:[%s11337_s8] sm:$0xff] %v7865_v24 }
 0x97e   : > { %6688 = vmatpush1.bf16.msra.mxu0 %v5808_v55  ;;  %v4751_v55 = vunpack.c.l.s8.bf16 %v4105_v32  ;;  %v4179_v32 = vld [vmem:[%s10571_s6 + $0x3f8] sm:$0xff] }
 0x97f   : > { %6852 = vmatpush1.bf16.msra.mxu1 %v5810_v37  ;;  %6689 = vmatprep.subr.bf16.mxu0 %v5828_v30  ;;  %v4104_v37 = vld [vmem:[%s10571_s6 + $0x1a0] sm:$0xff]  ;;  %v4748_v30 = vunpack.c.l.s8.bf16 %v4102_v28 }
 0x980   : > { %6853 = vmatprep.subr.bf16.mxu1 %v5830_v9  ;;  %v4750_v24 = vunpack.c.l.s8.bf16 %v4104_v37  ;;  %v4768_v9 = vunpack.c.h.s8.bf16 %v4103_v5 }
 0x982   : > { %6690 = vmatpush1.bf16.msra.mxu0 %v5827_v4  ;;  %v4124_v4 = vld [vmem:[%s10571_s6 + $0x240] sm:$0xff] }
 0x983   : > { %6854 = vmatpush1.bf16.msra.mxu1 %v5829_v45  ;;  %6691 = vmatprep.subr.bf16.mxu0 %v5847_v53  ;;  %v4767_v45 = vunpack.c.h.s8.bf16 %v4102_v28  ;;  %v4769_v53 = vunpack.c.h.s8.bf16 %v4104_v37  ;;  %v4789_v44 = vunpack.c.l.s8.bf16 %v4124_v4  ;;  %v4808_v54 = vunpack.c.h.s8.bf16 %v4124_v4  ;;  %v4198_v4 = vld [vmem:[%s10571_s6 + $0x490] sm:$0xff] }
 0x984   : > { %6855 = vmatprep.subr.bf16.mxu1 %v5849_v43  ;;  %v4121_v43 = vld [vmem:[%s10571_s6 + $0x228] sm:$0xff]  ;;  %v4901_v28 = vunpack.c.l.s8.bf16 %v4179_v32 }
 0x986   : > { %6692 = vmatpush1.bf16.msra.mxu0 %v5846_v7  ;;  %v4123_v7 = vld [vmem:[%s10571_s6 + $0x238] sm:$0xff] }
 0x987   : > { %6856 = vmatpush1.bf16.msra.mxu1 %v5848_v11  ;;  %6693 = vmatprep.subr.bf16.mxu0 %v5866_v46  ;;  %v4786_v11 = vunpack.c.l.s8.bf16 %v4121_v43  ;;  %v4788_v46 = vunpack.c.l.s8.bf16 %v4123_v7 }
 0x988   : > { %6857 = vmatprep.subr.bf16.mxu1 %v5868_v51  ;;  %v4806_v51 = vunpack.c.h.s8.bf16 %v4122_v61 }
 0x98a   : > { %6694 = vmatpush1.bf16.msra.mxu0 %v5865_v62  ;;  %v4143_v62 = vld [vmem:[%s10571_s6 + $0x2d8] sm:$0xff] }
 0x98b   : > { %6858 = vmatpush1.bf16.msra.mxu1 %v5867_v63  ;;  %6868 = vmatprep.subr.bf16.mxu0 %v4673_v0  ;;  %v4805_v63 = vunpack.c.h.s8.bf16 %v4121_v43  ;;  %v4807_v0 = vunpack.c.h.s8.bf16 %v4123_v7  ;;  %v4827_v3 = vunpack.c.l.s8.bf16 %v4143_v62  ;;  %v4939_v43 = vunpack.c.l.s8.bf16 %v4198_v4 }
 0x98c   : > { %7032 = vmatprep.subr.bf16.mxu1 %v4675_v2  ;;  %v4140_v2 = vld [vmem:[%s10571_s6 + $0x2c0] sm:$0xff] }
 0x98d   : > { %6696 = vmatmul.mubr.bf16.vlgmr.msra.gmra.mrb[20].mxu0 %v11014_v26 }
 0x98e   : > { %6860 = vmatmul.mubr.bf16.vlgmr.msra.gmra.mrb[28].mxu1 %v11014_v26  ;;  %6869 = vmatpush1.bf16.msra.mxu0 %v4672_v17  ;;  %v4142_v17 = vld [vmem:[%s10571_s6 + $0x2d0] sm:$0xff] }
 0x98f   : > { %6900 = vmatprep.mubr.bf16.mxu0 %v10801_v58  ;;  %7033 = vmatpush1.bf16.msra.mxu1 %v4674_v33  ;;  %v4824_v33 = vunpack.c.l.s8.bf16 %v4140_v2 }
 0x990   : > { %7064 = vmatprep.mubr.bf16.mxu1 %v10801_v58  ;;  %6870 = vmatprep.subr.bf16.mxu0 %v4692_v14  ;;  %v4826_v14 = vunpack.c.l.s8.bf16 %v4142_v17 }
 0x991   : > { %7034 = vmatprep.subr.bf16.mxu1 %v4694_v18  ;;  %v4846_v18 = vunpack.c.h.s8.bf16 %v4143_v62  ;;  %v4217_v62 = vld [vmem:[%s10571_s6 + $0x528] sm:$0xff] }
 0x992   : > { %6871 = vmatpush1.bf16.msra.mxu0 %v4691_v21  ;;  %v4162_v21 = vld [vmem:[%s10571_s6 + $0x370] sm:$0xff] }
 0x993   : > { %7035 = vmatpush1.bf16.msra.mxu1 %v4693_v22  ;;  %6872 = vmatprep.subr.bf16.mxu0 %v4711_v31  ;;  %v4843_v22 = vunpack.c.h.s8.bf16 %v4140_v2  ;;  %v4845_v31 = vunpack.c.h.s8.bf16 %v4142_v17  ;;  %v4865_v29 = vunpack.c.l.s8.bf16 %v4162_v21  ;;  %v4884_v5 = vunpack.c.h.s8.bf16 %v4162_v21 }
 0x994   : > { %7036 = vmatprep.subr.bf16.mxu1 %v4713_v27  ;;  %v4159_v27 = vld [vmem:[%s10571_s6 + $0x358] sm:$0xff]  ;;  %v4977_v2 = vunpack.c.l.s8.bf16 %v4217_v62 }
 0x996   : > { %6873 = vmatpush1.bf16.msra.mxu0 %v4710_v20  ;;  %v4161_v20 = vld [vmem:[%s10571_s6 + $0x368] sm:$0xff] }
 0x997   : > { %7037 = vmatpush1.bf16.msra.mxu1 %v4712_v38  ;;  %6874 = vmatprep.subr.bf16.mxu0 %v4730_v36  ;;  %v4862_v38 = vunpack.c.l.s8.bf16 %v4159_v27  ;;  %v4864_v36 = vunpack.c.l.s8.bf16 %v4161_v20 }
 0x998   : > { %7038 = vmatprep.subr.bf16.mxu1 %v4732_v48  ;;  %v4882_v48 = vunpack.c.h.s8.bf16 %v4160_v19  ;;  %v4236_v19 = vld [vmem:[%s10571_s6 + $0x5c0] sm:$0xff] }
 0x99a   : > { %6875 = vmatpush1.bf16.msra.mxu0 %v4729_v25  ;;  %v4181_v25 = vld [vmem:[%s10571_s6 + $0x408] sm:$0xff] }
 0x99b   : > { %7039 = vmatpush1.bf16.msra.mxu1 %v4731_v35  ;;  %6876 = vmatprep.subr.bf16.mxu0 %v4749_v16  ;;  %v4881_v35 = vunpack.c.h.s8.bf16 %v4159_v27  ;;  %v4883_v16 = vunpack.c.h.s8.bf16 %v4161_v20  ;;  %v4903_v37 = vunpack.c.l.s8.bf16 %v4181_v25  ;;  %v4922_v61 = vunpack.c.h.s8.bf16 %v4181_v25  ;;  %v4255_v25 = vld [vmem:[%s10571_s6 + $0x658] sm:$0xff] }
 0x99c   : > { %7040 = vmatprep.subr.bf16.mxu1 %v4751_v55  ;;  %v4178_v55 = vld [vmem:[%s10571_s6 + $0x3f0] sm:$0xff]  ;;  %v5015_v27 = vunpack.c.l.s8.bf16 %v4236_v19 }
 0x99e   : > { %6877 = vmatpush1.bf16.msra.mxu0 %v4748_v30  ;;  %v4180_v30 = vld [vmem:[%s10571_s6 + $0x400] sm:$0xff] }
 0x99f   : > { %7041 = vmatpush1.bf16.msra.mxu1 %v4750_v24  ;;  %6878 = vmatprep.subr.bf16.mxu0 %v4768_v9  ;;  %v4900_v24 = vunpack.c.l.s8.bf16 %v4178_v55  ;;  %v4902_v9 = vunpack.c.l.s8.bf16 %v4180_v30 }
 0x9a0   : > { %7042 = vmatprep.subr.bf16.mxu1 %v4770_v39  ;;  %v4920_v39 = vunpack.c.h.s8.bf16 %v4179_v32 }
 0x9a2   : > { %6879 = vmatpush1.bf16.msra.mxu0 %v4767_v45  ;;  %v4200_v45 = vld [vmem:[%s10571_s6 + $0x4a0] sm:$0xff] }
 0x9a3   : > { %7043 = vmatpush1.bf16.msra.mxu1 %v4769_v53  ;;  %6880 = vmatprep.subr.bf16.mxu0 %v4787_v40  ;;  %v4919_v53 = vunpack.c.h.s8.bf16 %v4178_v55  ;;  %v4921_v40 = vunpack.c.h.s8.bf16 %v4180_v30  ;;  %v4941_v7 = vunpack.c.l.s8.bf16 %v4200_v45  ;;  %v4960_v56 = vunpack.c.h.s8.bf16 %v4200_v45  ;;  %v4274_v45 = vld [vmem:[%s10571_s6 + $0x6f0] sm:$0xff] }
 0x9a4   : > { %7044 = vmatprep.subr.bf16.mxu1 %v4789_v44  ;;  %v4197_v44 = vld [vmem:[%s10571_s6 + $0x488] sm:$0xff]  ;;  %v5053_v55 = vunpack.c.l.s8.bf16 %v4255_v25 }
 0x9a6   : > { %6881 = vmatpush1.bf16.msra.mxu0 %v4786_v11  ;;  %v4199_v11 = vld [vmem:[%s10571_s6 + $0x498] sm:$0xff] }
 0x9a7   : > { %7045 = vmatpush1.bf16.msra.mxu1 %v4788_v46  ;;  %6882 = vmatprep.subr.bf16.mxu0 %v4806_v51  ;;  %v4938_v46 = vunpack.c.l.s8.bf16 %v4197_v44  ;;  %v4940_v51 = vunpack.c.l.s8.bf16 %v4199_v11 }
 0x9a8   : > { %7046 = vmatprep.subr.bf16.mxu1 %v4808_v54  ;;  %v4958_v54 = vunpack.c.h.s8.bf16 %v4198_v4 }
 0x9aa   : > { %6883 = vmatpush1.bf16.msra.mxu0 %v4805_v63  ;;  %v4219_v63 = vld [vmem:[%s10571_s6 + $0x538] sm:$0xff] }
 0x9ab   : > { %7047 = vmatpush1.bf16.msra.mxu1 %v4807_v0  ;;  %6884 = vmatprep.subr.bf16.mxu0 %v4825_v1  ;;  %v4957_v0 = vunpack.c.h.s8.bf16 %v4197_v44  ;;  %v4959_v1 = vunpack.c.h.s8.bf16 %v4199_v11  ;;  %v4979_v17 = vunpack.c.l.s8.bf16 %v4219_v63  ;;  %v4998_v21 = vunpack.c.h.s8.bf16 %v4219_v63  ;;  %v4293_v63 = vld [vmem:[%s10571_s6 + $0x788] sm:$0xff] }
 0x9ac   : > { %7048 = vmatprep.subr.bf16.mxu1 %v4827_v3  ;;  %v4216_v3 = vld [vmem:[%s10571_s6 + $0x520] sm:$0xff]  ;;  %v5091_v44 = vunpack.c.l.s8.bf16 %v4274_v45 }
 0x9ae   : > { %6885 = vmatpush1.bf16.msra.mxu0 %v4824_v33  ;;  %v4218_v33 = vld [vmem:[%s10571_s6 + $0x530] sm:$0xff] }
 0x9af   : > { %7049 = vmatpush1.bf16.msra.mxu1 %v4826_v14  ;;  %6886 = vmatprep.subr.bf16.mxu0 %v4844_v15  ;;  %v4976_v14 = vunpack.c.l.s8.bf16 %v4216_v3  ;;  %v4978_v15 = vunpack.c.l.s8.bf16 %v4218_v33 }
 0x9b0   : > { %7050 = vmatprep.subr.bf16.mxu1 %v4846_v18  ;;  %v4996_v18 = vunpack.c.h.s8.bf16 %v4217_v62 }
 0x9b2   : > { %6887 = vmatpush1.bf16.msra.mxu0 %v4843_v22  ;;  %v4238_v22 = vld [vmem:[%s10571_s6 + $0x5d0] sm:$0xff] }
 0x9b3   : > { %7051 = vmatpush1.bf16.msra.mxu1 %v4845_v31  ;;  %6888 = vmatprep.subr.bf16.mxu0 %v4863_v23  ;;  %v4995_v31 = vunpack.c.h.s8.bf16 %v4216_v3  ;;  %v4997_v23 = vunpack.c.h.s8.bf16 %v4218_v33  ;;  %v5017_v20 = vunpack.c.l.s8.bf16 %v4238_v22  ;;  %v5036_v32 = vunpack.c.h.s8.bf16 %v4238_v22  ;;  %v4312_v22 = vld [vmem:[%s10571_s6 + $0x820] sm:$0xff] }
 0x9b4   : > { %7052 = vmatprep.subr.bf16.mxu1 %v4865_v29  ;;  %v4235_v29 = vld [vmem:[%s10571_s6 + $0x5b8] sm:$0xff]  ;;  %v5129_v3 = vunpack.c.l.s8.bf16 %v4293_v63 }
 0x9b6   : > { %6889 = vmatpush1.bf16.msra.mxu0 %v4862_v38  ;;  %v4237_v38 = vld [vmem:[%s10571_s6 + $0x5c8] sm:$0xff] }
 0x9b7   : > { %7053 = vmatpush1.bf16.msra.mxu1 %v4864_v36  ;;  %6890 = vmatprep.subr.bf16.mxu0 %v4882_v48  ;;  %v5014_v36 = vunpack.c.l.s8.bf16 %v4235_v29  ;;  %v5016_v48 = vunpack.c.l.s8.bf16 %v4237_v38 }
 0x9b8   : > { %7054 = vmatprep.subr.bf16.mxu1 %v4884_v5  ;;  %v5034_v5 = vunpack.c.h.s8.bf16 %v4236_v19  ;;  %v5148_v19 = vunpack.c.h.s8.bf16 %v4293_v63 }
 0x9ba   : > { %6891 = vmatpush1.bf16.msra.mxu0 %v4881_v35  ;;  %v4257_v35 = vld [vmem:[%s10571_s6 + $0x668] sm:$0xff] }
 0x9bb   : > { %7055 = vmatpush1.bf16.msra.mxu1 %v4883_v16  ;;  %6892 = vmatprep.subr.bf16.mxu0 %v4901_v28  ;;  %v5033_v16 = vunpack.c.h.s8.bf16 %v4235_v29  ;;  %v5035_v28 = vunpack.c.h.s8.bf16 %v4237_v38  ;;  %v5055_v30 = vunpack.c.l.s8.bf16 %v4257_v35  ;;  %v5074_v4 = vunpack.c.h.s8.bf16 %v4257_v35  ;;  %v4331_v35 = vld [vmem:[%s10571_s6 + $0x8b8] sm:$0xff] }
 0x9bc   : > { %7056 = vmatprep.subr.bf16.mxu1 %v4903_v37  ;;  %v4254_v37 = vld [vmem:[%s10571_s6 + $0x650] sm:$0xff]  ;;  %v5167_v29 = vunpack.c.l.s8.bf16 %v4312_v22 }
 0x9be   : > { %6893 = vmatpush1.bf16.msra.mxu0 %v4900_v24  ;;  %v4256_v24 = vld [vmem:[%s10571_s6 + $0x660] sm:$0xff] }
 0x9bf   : > { %7057 = vmatpush1.bf16.msra.mxu1 %v4902_v9  ;;  %6894 = vmatprep.subr.bf16.mxu0 %v4920_v39  ;;  %v5052_v9 = vunpack.c.l.s8.bf16 %v4254_v37  ;;  %v5054_v39 = vunpack.c.l.s8.bf16 %v4256_v24 }
 0x9c0   : > { %7058 = vmatprep.subr.bf16.mxu1 %v4922_v61  ;;  %v5072_v61 = vunpack.c.h.s8.bf16 %v4255_v25 }
 0x9c2   : > { %6895 = vmatpush1.bf16.msra.mxu0 %v4919_v53  ;;  %v4276_v53 = vld [vmem:[%s10571_s6 + $0x700] sm:$0xff] }
 0x9c3   : > { %7059 = vmatpush1.bf16.msra.mxu1 %v4921_v40  ;;  %6896 = vmatprep.subr.bf16.mxu0 %v4939_v43  ;;  %v5071_v40 = vunpack.c.h.s8.bf16 %v4254_v37  ;;  %v5073_v43 = vunpack.c.h.s8.bf16 %v4256_v24  ;;  %v5093_v11 = vunpack.c.l.s8.bf16 %v4276_v53  ;;  %v5112_v62 = vunpack.c.h.s8.bf16 %v4276_v53  ;;  %v4350_v53 = vld [vmem:[%s10571_s6 + $0x950] sm:$0xff] }
 0x9c4   : > { %7060 = vmatprep.subr.bf16.mxu1 %v4941_v7  ;;  %v4273_v7 = vld [vmem:[%s10571_s6 + $0x6e8] sm:$0xff]  ;;  %v5205_v37 = vunpack.c.l.s8.bf16 %v4331_v35 }
 0x9c6   : > { %6897 = vmatpush1.bf16.msra.mxu0 %v4938_v46  ;;  %v4275_v46 = vld [vmem:[%s10571_s6 + $0x6f8] sm:$0xff] }
 0x9c7   : > { %7061 = vmatpush1.bf16.msra.mxu1 %v4940_v51  ;;  %6898 = vmatprep.subr.bf16.mxu0 %v4958_v54  ;;  %v5090_v51 = vunpack.c.l.s8.bf16 %v4273_v7  ;;  %v5092_v54 = vunpack.c.l.s8.bf16 %v4275_v46 }
 0x9c8   : > { %7062 = vmatprep.subr.bf16.mxu1 %v4960_v56  ;;  %v5110_v56 = vunpack.c.h.s8.bf16 %v4274_v45 }
 0x9ca   : > { %6899 = vmatpush1.bf16.msra.mxu0 %v4957_v0  ;;  %v4295_v0 = vld [vmem:[%s10571_s6 + $0x798] sm:$0xff] }
 0x9cb   : > { %7063 = vmatpush1.bf16.msra.mxu1 %v4959_v1  ;;  %6909 = vmatprep.subr.bf16.mxu0 %v4977_v2  ;;  %v5109_v1 = vunpack.c.h.s8.bf16 %v4273_v7  ;;  %v5111_v2 = vunpack.c.h.s8.bf16 %v4275_v46  ;;  %v5131_v33 = vunpack.c.l.s8.bf16 %v4295_v0  ;;  %v5243_v7 = vunpack.c.l.s8.bf16 %v4350_v53 }
 0x9cc   : > { %7073 = vmatprep.subr.bf16.mxu1 %v4979_v17  ;;  %v4292_v17 = vld [vmem:[%s10571_s6 + $0x780] sm:$0xff] }
 0x9cd   : > { %6901 = vmatmul.mubr.bf16.vlgmr.msra.gmra.mrb[24].mxu0 %v10803_v41 }
 0x9ce   : > { %7065 = vmatmul.mubr.bf16.vlgmr.msra.gmra.mrb[32].mxu1 %v10803_v41  ;;  %6910 = vmatpush1.bf16.msra.mxu0 %v4976_v14  ;;  %v4294_v14 = vld [vmem:[%s10571_s6 + $0x790] sm:$0xff] }
 0x9cf   : > { %6941 = vmatprep.mubr.bf16.mxu0 %v10811_v49  ;;  %7074 = vmatpush1.bf16.msra.mxu1 %v4978_v15  ;;  %v5128_v15 = vunpack.c.l.s8.bf16 %v4292_v17 }
 0x9d0   : > { %7105 = vmatprep.mubr.bf16.mxu1 %v10811_v49  ;;  %6911 = vmatprep.subr.bf16.mxu0 %v4996_v18  ;;  %v5130_v18 = vunpack.c.l.s8.bf16 %v4294_v14 }
 0x9d1   : > { %7075 = vmatprep.subr.bf16.mxu1 %v4998_v21  ;;  %v5150_v21 = vunpack.c.h.s8.bf16 %v4295_v0  ;;  %v4369_v0 = vld [vmem:[%s10571_s6 + $0x9e8] sm:$0xff] }
 0x9d2   : > { %6912 = vmatpush1.bf16.msra.mxu0 %v4995_v31  ;;  %v4314_v31 = vld [vmem:[%s10571_s6 + $0x830] sm:$0xff] }
 0x9d3   : > { %7076 = vmatpush1.bf16.msra.mxu1 %v4997_v23  ;;  %6913 = vmatprep.subr.bf16.mxu0 %v5015_v27  ;;  %v5147_v23 = vunpack.c.h.s8.bf16 %v4292_v17  ;;  %v5149_v27 = vunpack.c.h.s8.bf16 %v4294_v14  ;;  %v5169_v38 = vunpack.c.l.s8.bf16 %v4314_v31  ;;  %v5188_v25 = vunpack.c.h.s8.bf16 %v4314_v31 }
 0x9d4   : > { %7077 = vmatprep.subr.bf16.mxu1 %v5017_v20  ;;  %v4311_v20 = vld [vmem:[%s10571_s6 + $0x818] sm:$0xff]  ;;  %v5281_v17 = vunpack.c.l.s8.bf16 %v4369_v0 }
 0x9d6   : > { %6914 = vmatpush1.bf16.msra.mxu0 %v5014_v36  ;;  %v4313_v36 = vld [vmem:[%s10571_s6 + $0x828] sm:$0xff] }
 0x9d7   : > { %7078 = vmatpush1.bf16.msra.mxu1 %v5016_v48  ;;  %6915 = vmatprep.subr.bf16.mxu0 %v5034_v5  ;;  %v5166_v48 = vunpack.c.l.s8.bf16 %v4311_v20  ;;  %v5168_v5 = vunpack.c.l.s8.bf16 %v4313_v36 }
 0x9d8   : > { %7079 = vmatprep.subr.bf16.mxu1 %v5036_v32  ;;  %v5186_v32 = vunpack.c.h.s8.bf16 %v4312_v22  ;;  %v4388_v22 = vld [vmem:[%s10571_s6 + $0xa80] sm:$0xff] }
 0x9da   : > { %6916 = vmatpush1.bf16.msra.mxu0 %v5033_v16  ;;  %v4333_v16 = vld [vmem:[%s10571_s6 + $0x8c8] sm:$0xff] }
 0x9db   : > { %7080 = vmatpush1.bf16.msra.mxu1 %v5035_v28  ;;  %6917 = vmatprep.subr.bf16.mxu0 %v5053_v55  ;;  %v5185_v28 = vunpack.c.h.s8.bf16 %v4311_v20  ;;  %v5187_v55 = vunpack.c.h.s8.bf16 %v4313_v36  ;;  %v5207_v24 = vunpack.c.l.s8.bf16 %v4333_v16  ;;  %v5226_v45 = vunpack.c.h.s8.bf16 %v4333_v16  ;;  %v4407_v16 = vld [vmem:[%s10571_s6 + $0xb18] sm:$0xff] }
 0x9dc   : > { %7081 = vmatprep.subr.bf16.mxu1 %v5055_v30  ;;  %v4330_v30 = vld [vmem:[%s10571_s6 + $0x8b0] sm:$0xff]  ;;  %v5319_v20 = vunpack.c.l.s8.bf16 %v4388_v22 }
 0x9de   : > { %6918 = vmatpush1.bf16.msra.mxu0 %v5052_v9  ;;  %v4332_v9 = vld [vmem:[%s10571_s6 + $0x8c0] sm:$0xff] }
 0x9df   : > { %7082 = vmatpush1.bf16.msra.mxu1 %v5054_v39  ;;  %6919 = vmatprep.subr.bf16.mxu0 %v5072_v61  ;;  %v5204_v39 = vunpack.c.l.s8.bf16 %v4330_v30  ;;  %v5206_v61 = vunpack.c.l.s8.bf16 %v4332_v9 }
 0x9e0   : > { %7083 = vmatprep.subr.bf16.mxu1 %v5074_v4  ;;  %v5224_v4 = vunpack.c.h.s8.bf16 %v4331_v35 }
 0x9e2   : > { %6920 = vmatpush1.bf16.msra.mxu0 %v5071_v40  ;;  %v4352_v40 = vld [vmem:[%s10571_s6 + $0x960] sm:$0xff] }
 0x9e3   : > { %7084 = vmatpush1.bf16.msra.mxu1 %v5073_v43  ;;  %6921 = vmatprep.subr.bf16.mxu0 %v5091_v44  ;;  %v5223_v43 = vunpack.c.h.s8.bf16 %v4330_v30  ;;  %v5225_v44 = vunpack.c.h.s8.bf16 %v4332_v9  ;;  %v5245_v46 = vunpack.c.l.s8.bf16 %v4352_v40  ;;  %v5264_v63 = vunpack.c.h.s8.bf16 %v4352_v40  ;;  %v4426_v40 = vld [vmem:[%s10571_s6 + $0xbb0] sm:$0xff] }
 0x9e4   : > { %7085 = vmatprep.subr.bf16.mxu1 %v5093_v11  ;;  %v4349_v11 = vld [vmem:[%s10571_s6 + $0x948] sm:$0xff]  ;;  %v5357_v30 = vunpack.c.l.s8.bf16 %v4407_v16 }
 0x9e6   : > { %6922 = vmatpush1.bf16.msra.mxu0 %v5090_v51  ;;  %v4351_v51 = vld [vmem:[%s10571_s6 + $0x958] sm:$0xff] }
 0x9e7   : > { %7086 = vmatpush1.bf16.msra.mxu1 %v5092_v54  ;;  %6923 = vmatprep.subr.bf16.mxu0 %v5110_v56  ;;  %v5242_v54 = vunpack.c.l.s8.bf16 %v4349_v11  ;;  %v5244_v56 = vunpack.c.l.s8.bf16 %v4351_v51 }
 0x9e8   : > { %7087 = vmatprep.subr.bf16.mxu1 %v5112_v62  ;;  %v5262_v62 = vunpack.c.h.s8.bf16 %v4350_v53 }
 0x9ea   : > { %6924 = vmatpush1.bf16.msra.mxu0 %v5109_v1  ;;  %v4371_v1 = vld [vmem:[%s10571_s6 + $0x9f8] sm:$0xff] }
 0x9eb   : > { %7088 = vmatpush1.bf16.msra.mxu1 %v5111_v2  ;;  %6925 = vmatprep.subr.bf16.mxu0 %v5129_v3  ;;  %v5261_v2 = vunpack.c.h.s8.bf16 %v4349_v11  ;;  %v5263_v3 = vunpack.c.h.s8.bf16 %v4351_v51  ;;  %v5283_v14 = vunpack.c.l.s8.bf16 %v4371_v1  ;;  %v5302_v31 = vunpack.c.h.s8.bf16 %v4371_v1  ;;  %v4445_v1 = vld [vmem:[%s10571_s6 + $0xc48] sm:$0xff] }
 0x9ec   : > { %7089 = vmatprep.subr.bf16.mxu1 %v5131_v33  ;;  %v4368_v33 = vld [vmem:[%s10571_s6 + $0x9e0] sm:$0xff]  ;;  %v5395_v11 = vunpack.c.l.s8.bf16 %v4426_v40 }
 0x9ee   : > { %6926 = vmatpush1.bf16.msra.mxu0 %v5128_v15  ;;  %v4370_v15 = vld [vmem:[%s10571_s6 + $0x9f0] sm:$0xff] }
 0x9ef   : > { %7090 = vmatpush1.bf16.msra.mxu1 %v5130_v18  ;;  %6927 = vmatprep.subr.bf16.mxu0 %v5148_v19  ;;  %v5280_v18 = vunpack.c.l.s8.bf16 %v4368_v33  ;;  %v5282_v19 = vunpack.c.l.s8.bf16 %v4370_v15 }
 0x9f0   : > { %7091 = vmatprep.subr.bf16.mxu1 %v5150_v21  ;;  %v5300_v21 = vunpack.c.h.s8.bf16 %v4369_v0 }
 0x9f2   : > { %6928 = vmatpush1.bf16.msra.mxu0 %v5147_v23  ;;  %v4390_v23 = vld [vmem:[%s10571_s6 + $0xa90] sm:$0xff] }
 0x9f3   : > { %7092 = vmatpush1.bf16.msra.mxu1 %v5149_v27  ;;  %6929 = vmatprep.subr.bf16.mxu0 %v5167_v29  ;;  %v5299_v27 = vunpack.c.h.s8.bf16 %v4368_v33  ;;  %v5301_v29 = vunpack.c.h.s8.bf16 %v4370_v15  ;;  %v5321_v36 = vunpack.c.l.s8.bf16 %v4390_v23  ;;  %v5340_v35 = vunpack.c.h.s8.bf16 %v4390_v23  ;;  %v4464_v23 = vld [vmem:[%s10571_s6 + $0xce0] sm:$0xff] }
 0x9f4   : > { %7093 = vmatprep.subr.bf16.mxu1 %v5169_v38  ;;  %v4387_v38 = vld [vmem:[%s10571_s6 + $0xa78] sm:$0xff]  ;;  %v5433_v33 = vunpack.c.l.s8.bf16 %v4445_v1 }
 0x9f6   : > { %6930 = vmatpush1.bf16.msra.mxu0 %v5166_v48  ;;  %v4389_v48 = vld [vmem:[%s10571_s6 + $0xa88] sm:$0xff] }
 0x9f7   : > { %7094 = vmatpush1.bf16.msra.mxu1 %v5168_v5  ;;  %6931 = vmatprep.subr.bf16.mxu0 %v5186_v32  ;;  %v5318_v5 = vunpack.c.l.s8.bf16 %v4387_v38  ;;  %v5320_v32 = vunpack.c.l.s8.bf16 %v4389_v48 }
 0x9f8   : > { %7095 = vmatprep.subr.bf16.mxu1 %v5188_v25  ;;  %v5338_v25 = vunpack.c.h.s8.bf16 %v4388_v22  ;;  %v5452_v22 = vunpack.c.h.s8.bf16 %v4445_v1 }
 0x9fa   : > { %6932 = vmatpush1.bf16.msra.mxu0 %v5185_v28  ;;  %v4409_v28 = vld [vmem:[%s10571_s6 + $0xb28] sm:$0xff] }
 0x9fb   : > { %7096 = vmatpush1.bf16.msra.mxu1 %v5187_v55  ;;  %6933 = vmatprep.subr.bf16.mxu0 %v5205_v37  ;;  %v5337_v55 = vunpack.c.h.s8.bf16 %v4387_v38  ;;  %v5339_v37 = vunpack.c.h.s8.bf16 %v4389_v48  ;;  %v5359_v9 = vunpack.c.l.s8.bf16 %v4409_v28  ;;  %v5378_v53 = vunpack.c.h.s8.bf16 %v4409_v28  ;;  %v4483_v28 = vld [vmem:[%s10571_s6 + $0xd78] sm:$0xff] }
 0x9fc   : > { %7097 = vmatprep.subr.bf16.mxu1 %v5207_v24  ;;  %v4406_v24 = vld [vmem:[%s10571_s6 + $0xb10] sm:$0xff]  ;;  %v5471_v38 = vunpack.c.l.s8.bf16 %v4464_v23 }
 0x9fe   : > { %6934 = vmatpush1.bf16.msra.mxu0 %v5204_v39  ;;  %v4408_v39 = vld [vmem:[%s10571_s6 + $0xb20] sm:$0xff] }
 0x9ff   : > { %7098 = vmatpush1.bf16.msra.mxu1 %v5206_v61  ;;  %6935 = vmatprep.subr.bf16.mxu0 %v5224_v4  ;;  %v5356_v61 = vunpack.c.l.s8.bf16 %v4406_v24  ;;  %v5358_v4 = vunpack.c.l.s8.bf16 %v4408_v39 }
 0xa00   : > { %7099 = vmatprep.subr.bf16.mxu1 %v5226_v45  ;;  %v5376_v45 = vunpack.c.h.s8.bf16 %v4407_v16 }
 0xa02   : > { %6936 = vmatpush1.bf16.msra.mxu0 %v5223_v43  ;;  %v4428_v43 = vld [vmem:[%s10571_s6 + $0xbc0] sm:$0xff] }
 0xa03   : > { %7100 = vmatpush1.bf16.msra.mxu1 %v5225_v44  ;;  %6937 = vmatprep.subr.bf16.mxu0 %v5243_v7  ;;  %v5375_v44 = vunpack.c.h.s8.bf16 %v4406_v24  ;;  %v5377_v7 = vunpack.c.h.s8.bf16 %v4408_v39  ;;  %v5397_v51 = vunpack.c.l.s8.bf16 %v4428_v43  ;;  %v5416_v0 = vunpack.c.h.s8.bf16 %v4428_v43  ;;  %v4502_v43 = vld [vmem:[%s10571_s6 + $0xe10] sm:$0xff] }
 0xa04   : > { %7101 = vmatprep.subr.bf16.mxu1 %v5245_v46  ;;  %v4425_v46 = vld [vmem:[%s10571_s6 + $0xba8] sm:$0xff]  ;;  %v5509_v24 = vunpack.c.l.s8.bf16 %v4483_v28 }
 0xa06   : > { %6938 = vmatpush1.bf16.msra.mxu0 %v5242_v54  ;;  %v4427_v54 = vld [vmem:[%s10571_s6 + $0xbb8] sm:$0xff] }
 0xa07   : > { %7102 = vmatpush1.bf16.msra.mxu1 %v5244_v56  ;;  %6939 = vmatprep.subr.bf16.mxu0 %v5262_v62  ;;  %v5394_v56 = vunpack.c.l.s8.bf16 %v4425_v46  ;;  %v5396_v62 = vunpack.c.l.s8.bf16 %v4427_v54 }
 0xa08   : > { %7103 = vmatprep.subr.bf16.mxu1 %v5264_v63  ;;  %v5414_v63 = vunpack.c.h.s8.bf16 %v4426_v40 }
 0xa0a   : > { %6940 = vmatpush1.bf16.msra.mxu0 %v5261_v2  ;;  %v4447_v2 = vld [vmem:[%s10571_s6 + $0xc58] sm:$0xff] }
 0xa0b   : > { %7104 = vmatpush1.bf16.msra.mxu1 %v5263_v3  ;;  %6950 = vmatprep.subr.bf16.mxu0 %v5281_v17  ;;  %v5413_v3 = vunpack.c.h.s8.bf16 %v4425_v46  ;;  %v5415_v17 = vunpack.c.h.s8.bf16 %v4427_v54  ;;  %v5435_v15 = vunpack.c.l.s8.bf16 %v4447_v2  ;;  %v5547_v46 = vunpack.c.l.s8.bf16 %v4502_v43 }
 0xa0c   : > { %7114 = vmatprep.subr.bf16.mxu1 %v5283_v14  ;;  %v4444_v14 = vld [vmem:[%s10571_s6 + $0xc40] sm:$0xff] }
 0xa0d   : > { %6942 = vmatmul.mubr.bf16.vlgmr.msra.gmra.mrb[24].mxu0 %v10863_v60 }
 0xa0e   : > { %7106 = vmatmul.mubr.bf16.vlgmr.msra.gmra.mrb[32].mxu1 %v10863_v60  ;;  %6951 = vmatpush1.bf16.msra.mxu0 %v5280_v18  ;;  %v4446_v18 = vld [vmem:[%s10571_s6 + $0xc50] sm:$0xff] }
 0xa0f   : > { %6982 = vmatprep.mubr.bf16.mxu0 %v10967_v13  ;;  %7115 = vmatpush1.bf16.msra.mxu1 %v5282_v19  ;;  %v5432_v19 = vunpack.c.l.s8.bf16 %v4444_v14 }
 0xa10   : > { %7146 = vmatprep.mubr.bf16.mxu1 %v10967_v13  ;;  %6952 = vmatprep.subr.bf16.mxu0 %v5300_v21  ;;  %v5434_v21 = vunpack.c.l.s8.bf16 %v4446_v18 }
 0xa11   : > { %7116 = vmatprep.subr.bf16.mxu1 %v5302_v31  ;;  %v5454_v31 = vunpack.c.h.s8.bf16 %v4447_v2  ;;  %v4521_v2 = vld [vmem:[%s10571_s6 + $0xea8] sm:$0xff] }
 0xa12   : > { %6953 = vmatpush1.bf16.msra.mxu0 %v5299_v27  ;;  %v4466_v27 = vld [vmem:[%s10571_s6 + $0xcf0] sm:$0xff] }
 0xa13   : > { %7117 = vmatpush1.bf16.msra.mxu1 %v5301_v29  ;;  %6954 = vmatprep.subr.bf16.mxu0 %v5319_v20  ;;  %v5451_v29 = vunpack.c.h.s8.bf16 %v4444_v14  ;;  %v5453_v20 = vunpack.c.h.s8.bf16 %v4446_v18  ;;  %v5473_v48 = vunpack.c.l.s8.bf16 %v4466_v27  ;;  %v5492_v16 = vunpack.c.h.s8.bf16 %v4466_v27 }
 0xa14   : > { %7118 = vmatprep.subr.bf16.mxu1 %v5321_v36  ;;  %v4463_v36 = vld [vmem:[%s10571_s6 + $0xcd8] sm:$0xff]  ;;  %v5585_v14 = vunpack.c.l.s8.bf16 %v4521_v2 }
 0xa16   : > { %6955 = vmatpush1.bf16.msra.mxu0 %v5318_v5  ;;  %v4465_v5 = vld [vmem:[%s10571_s6 + $0xce8] sm:$0xff] }
 0xa17   : > { %7119 = vmatpush1.bf16.msra.mxu1 %v5320_v32  ;;  %6956 = vmatprep.subr.bf16.mxu0 %v5338_v25  ;;  %v5470_v32 = vunpack.c.l.s8.bf16 %v4463_v36  ;;  %v5472_v25 = vunpack.c.l.s8.bf16 %v4465_v5 }
 0xa18   : > { %7120 = vmatprep.subr.bf16.mxu1 %v5340_v35  ;;  %v5490_v35 = vunpack.c.h.s8.bf16 %v4464_v23  ;;  %v4540_v23 = vld [vmem:[%s10571_s6 + $0xf40] sm:$0xff] }
 0xa1a   : > { %6957 = vmatpush1.bf16.msra.mxu0 %v5337_v55  ;;  %v4485_v55 = vld [vmem:[%s10571_s6 + $0xd88] sm:$0xff] }
 0xa1b   : > { %7121 = vmatpush1.bf16.msra.mxu1 %v5339_v37  ;;  %6958 = vmatprep.subr.bf16.mxu0 %v5357_v30  ;;  %v5489_v37 = vunpack.c.h.s8.bf16 %v4463_v36  ;;  %v5491_v30 = vunpack.c.h.s8.bf16 %v4465_v5  ;;  %v5511_v39 = vunpack.c.l.s8.bf16 %v4485_v55  ;;  %v5530_v40 = vunpack.c.h.s8.bf16 %v4485_v55  ;;  %v4559_v55 = vld [vmem:[%s10571_s6 + $0xfd8] sm:$0xff] }
 0xa1c   : > { %7122 = vmatprep.subr.bf16.mxu1 %v5359_v9  ;;  %v4482_v9 = vld [vmem:[%s10571_s6 + $0xd70] sm:$0xff]  ;;  %v5623_v36 = vunpack.c.l.s8.bf16 %v4540_v23 }
 0xa1e   : > { %6959 = vmatpush1.bf16.msra.mxu0 %v5356_v61  ;;  %v4484_v61 = vld [vmem:[%s10571_s6 + $0xd80] sm:$0xff] }
 0xa1f   : > { %7123 = vmatpush1.bf16.msra.mxu1 %v5358_v4  ;;  %6960 = vmatprep.subr.bf16.mxu0 %v5376_v45  ;;  %v5508_v4 = vunpack.c.l.s8.bf16 %v4482_v9  ;;  %v5510_v45 = vunpack.c.l.s8.bf16 %v4484_v61 }
 0xa20   : > { %7124 = vmatprep.subr.bf16.mxu1 %v5378_v53  ;;  %v5528_v53 = vunpack.c.h.s8.bf16 %v4483_v28 }
 0xa22   : > { %6961 = vmatpush1.bf16.msra.mxu0 %v5375_v44  ;;  %v4504_v44 = vld [vmem:[%s10571_s6 + $0xe20] sm:$0xff] }
 0xa23   : > { %7125 = vmatpush1.bf16.msra.mxu1 %v5377_v7  ;;  %6962 = vmatprep.subr.bf16.mxu0 %v5395_v11  ;;  %v5527_v7 = vunpack.c.h.s8.bf16 %v4482_v9  ;;  %v5529_v11 = vunpack.c.h.s8.bf16 %v4484_v61  ;;  %v5549_v54 = vunpack.c.l.s8.bf16 %v4504_v44  ;;  %v5568_v1 = vunpack.c.h.s8.bf16 %v4504_v44  ;;  %v7641_v44 = vld [vmem:[%s10585_s14 + $0x8] sm:$0xff] }
 0xa24   : > { %7126 = vmatprep.subr.bf16.mxu1 %v5397_v51  ;;  %v4501_v51 = vld [vmem:[%s10571_s6 + $0xe08] sm:$0xff]  ;;  %v5661_v9 = vunpack.c.l.s8.bf16 %v4559_v55 }
 0xa26   : > { %6963 = vmatpush1.bf16.msra.mxu0 %v5394_v56  ;;  %v4503_v56 = vld [vmem:[%s10571_s6 + $0xe18] sm:$0xff] }
 0xa27   : > { %7127 = vmatpush1.bf16.msra.mxu1 %v5396_v62  ;;  %6964 = vmatprep.subr.bf16.mxu0 %v5414_v63  ;;  %v5546_v62 = vunpack.c.l.s8.bf16 %v4501_v51  ;;  %v5548_v63 = vunpack.c.l.s8.bf16 %v4503_v56 }
 0xa28   : > { %7128 = vmatprep.subr.bf16.mxu1 %v5416_v0  ;;  %v5566_v0 = vunpack.c.h.s8.bf16 %v4502_v43  ;;  %v5680_v43 = vunpack.c.h.s8.bf16 %v4559_v55 }
 0xa2a   : > { %6965 = vmatpush1.bf16.msra.mxu0 %v5413_v3  ;;  %v4523_v3 = vld [vmem:[%s10571_s6 + $0xeb8] sm:$0xff] }
 0xa2b   : > { %7129 = vmatpush1.bf16.msra.mxu1 %v5415_v17  ;;  %6966 = vmatprep.subr.bf16.mxu0 %v5433_v33  ;;  %v5565_v17 = vunpack.c.h.s8.bf16 %v4501_v51  ;;  %v5567_v33 = vunpack.c.h.s8.bf16 %v4503_v56  ;;  %v5587_v18 = vunpack.c.l.s8.bf16 %v4523_v3  ;;  %v5606_v27 = vunpack.c.h.s8.bf16 %v4523_v3  ;;  %v4580_v51 = vld [vmem:[%s10571_s6 + $0x1080] sm:$0xff]  ;;  %v4577_v3 = vld [vmem:[%s10571_s6 + $0x1068] sm:$0xff] }
 0xa2c   : > { %7130 = vmatprep.subr.bf16.mxu1 %v5435_v15  ;;  %v4520_v15 = vld [vmem:[%s10571_s6 + $0xea0] sm:$0xff]  ;;  %v5720_v55 = vunpack.c.h.s8.bf16 %v4580_v51 }
 0xa2e   : > { %6967 = vmatpush1.bf16.msra.mxu0 %v5432_v19  ;;  %v4522_v19 = vld [vmem:[%s10571_s6 + $0xeb0] sm:$0xff] }
 0xa2f   : > { %7131 = vmatpush1.bf16.msra.mxu1 %v5434_v21  ;;  %6968 = vmatprep.subr.bf16.mxu0 %v5452_v22  ;;  %v5584_v21 = vunpack.c.l.s8.bf16 %v4520_v15  ;;  %v5586_v22 = vunpack.c.l.s8.bf16 %v4522_v19 }
 0xa30   : > { %7132 = vmatprep.subr.bf16.mxu1 %v5454_v31  ;;  %v5604_v31 = vunpack.c.h.s8.bf16 %v4521_v2 }
 0xa32   : > { %6969 = vmatpush1.bf16.msra.mxu0 %v5451_v29  ;;  %v4542_v29 = vld [vmem:[%s10571_s6 + $0xf50] sm:$0xff] }
 0xa33   : > { %7133 = vmatpush1.bf16.msra.mxu1 %v5453_v20  ;;  %6970 = vmatprep.subr.bf16.mxu0 %v5471_v38  ;;  %v5603_v20 = vunpack.c.h.s8.bf16 %v4520_v15  ;;  %v5605_v38 = vunpack.c.h.s8.bf16 %v4522_v19  ;;  %v5625_v5 = vunpack.c.l.s8.bf16 %v4542_v29  ;;  %v5644_v28 = vunpack.c.h.s8.bf16 %v4542_v29 }
 0xa34   : > { %7134 = vmatprep.subr.bf16.mxu1 %v5473_v48  ;;  %v4539_v48 = vld [vmem:[%s10571_s6 + $0xf38] sm:$0xff]  ;;  %v5701_v15 = vunpack.c.l.s8.bf16 %v4580_v51 }
 0xa36   : > { %6971 = vmatpush1.bf16.msra.mxu0 %v5470_v32  ;;  %v4541_v32 = vld [vmem:[%s10571_s6 + $0xf48] sm:$0xff] }
 0xa37   : > { %7135 = vmatpush1.bf16.msra.mxu1 %v5472_v25  ;;  %6972 = vmatprep.subr.bf16.mxu0 %v5490_v35  ;;  %v5622_v25 = vunpack.c.l.s8.bf16 %v4539_v48  ;;  %v5624_v35 = vunpack.c.l.s8.bf16 %v4541_v32 }
 0xa38   : > { %7136 = vmatprep.subr.bf16.mxu1 %v5492_v16  ;;  %v5642_v16 = vunpack.c.h.s8.bf16 %v4540_v23 }
 0xa3a   : > { %6973 = vmatpush1.bf16.msra.mxu0 %v5489_v37  ;;  %v4561_v37 = vld [vmem:[%s10571_s6 + $0xfe8] sm:$0xff] }
 0xa3b   : > { %7137 = vmatpush1.bf16.msra.mxu1 %v5491_v30  ;;  %6974 = vmatprep.subr.bf16.mxu0 %v5509_v24  ;;  %v5641_v30 = vunpack.c.h.s8.bf16 %v4539_v48  ;;  %v5643_v24 = vunpack.c.h.s8.bf16 %v4541_v32  ;;  %v5663_v61 = vunpack.c.l.s8.bf16 %v4561_v37 }
 0xa3c   : > { %7138 = vmatprep.subr.bf16.mxu1 %v5511_v39  ;;  %v4558_v39 = vld [vmem:[%s10571_s6 + $0xfd0] sm:$0xff] }
 0xa3e   : > { %6975 = vmatpush1.bf16.msra.mxu0 %v5508_v4  ;;  %v4560_v4 = vld [vmem:[%s10571_s6 + $0xfe0] sm:$0xff] }
 0xa3f   : > { %7139 = vmatpush1.bf16.msra.mxu1 %v5510_v45  ;;  %6976 = vmatprep.subr.bf16.mxu0 %v5528_v53  ;;  %v5660_v45 = vunpack.c.l.s8.bf16 %v4558_v39  ;;  %v7521_v53 = vld [vmem:[%s10581_s5 + $0x8] sm:$0xff] }
 0xa40   : > { %7140 = vmatprep.subr.bf16.mxu1 %v5530_v40  ;;  %v5662_v40 = vunpack.c.l.s8.bf16 %v4560_v4  ;;  %v7565_v56 = vrot.slane %v7521_v53, %v10597_v10 }
 0xa42   : > { %6977 = vmatpush1.bf16.msra.mxu0 %v5527_v7  ;;  %v5682_v7 = vunpack.c.h.s8.bf16 %v4561_v37  ;;  %v4597_v37 = vld [vmem:[%s10571_s6 + $0x1108] sm:$0xff] }
 0xa43   : > { %7141 = vmatpush1.bf16.msra.mxu1 %v5529_v11  ;;  %6978 = vmatprep.subr.bf16.mxu0 %v5547_v46  ;;  %v4578_v11 = vld [vmem:[%s10571_s6 + $0x1070] sm:$0xff]  ;;  %v7561_v46 = vrot.slane %v7521_v53, %v10594_v8 }
 0xa44   : > { %7142 = vmatprep.subr.bf16.mxu1 %v5549_v54  ;;  %v7569_v54 = vrot.slane %v7521_v53, %v10652_v6  ;;  %v5699_v2 = vunpack.c.l.s8.bf16 %v4578_v11 }
 0xa46   : > { %6979 = vmatpush1.bf16.msra.mxu0 %v5546_v62  ;;  %v5679_v62 = vunpack.c.h.s8.bf16 %v4558_v39 }
 0xa47   : > { %7143 = vmatpush1.bf16.msra.mxu1 %v5548_v63  ;;  %6980 = vmatprep.subr.bf16.mxu0 %v5566_v0  ;;  %v7681_v63 = vrot.slane %v7641_v44, %v10594_v8  ;;  %v7573_v0 = vrot.slane %v7521_v53, %v10655_v12  ;;  %v4598_v53 = vld [vmem:[%s10571_s6 + $0x1110] sm:$0xff] }
 0xa48   : > { %7144 = vmatprep.subr.bf16.mxu1 %v5568_v1  ;;  %v5681_v1 = vunpack.c.h.s8.bf16 %v4560_v4  ;;  %v4596_v4 = vld [vmem:[%s10571_s6 + $0x1100] sm:$0xff] }
 0xa49   : > { %v5755_v51 = vunpack.c.h.s8.bf16 %v4596_v4 }
 0xa4a   : > { %6981 = vmatpush1.bf16.msra.mxu0 %v5565_v17 }
 0xa4b   : > { %7145 = vmatpush1.bf16.msra.mxu1 %v5567_v33  ;;  %6991 = vmatprep.subr.bf16.mxu0 %v5585_v14  ;;  %v7689_v33 = vrot.slane %v7641_v44, %v10652_v6  ;;  %v7685_v14 = vrot.slane %v7641_v44, %v10597_v10 }
 0xa4c   : > { %7155 = vmatprep.subr.bf16.mxu1 %v5587_v18  ;;  %v4579_v18 = vld [vmem:[%s10571_s6 + $0x1078] sm:$0xff] }
 0xa4d   : > { %6983 = vmatmul.mubr.bf16.vlgmr.msra.gmra.mrb[24].mxu0 %v10969_v47  ;;  %v5719_v39 = vunpack.c.h.s8.bf16 %v4579_v18 }
 0xa4e   : > { %7147 = vmatmul.mubr.bf16.vlgmr.msra.gmra.mrb[32].mxu1 %v10969_v47  ;;  %6992 = vmatpush1.bf16.msra.mxu0 %v5584_v21 }
 0xa4f   : > { %7023 = vmatprep.mubr.bf16.mxu0 %v10975_v59  ;;  %7156 = vmatpush1.bf16.msra.mxu1 %v5586_v22 }
 0xa50   : > { %7187 = vmatprep.mubr.bf16.mxu1 %v10975_v59  ;;  %6993 = vmatprep.subr.bf16.mxu0 %v5604_v31  ;;  %v7693_v31 = vrot.slane %v7641_v44, %v10655_v12  ;;  %v5756_v44 = vunpack.c.h.s8.bf16 %v4597_v37 }
 0xa51   : > { %7157 = vmatprep.subr.bf16.mxu1 %v5606_v27 }
 0xa52   : > { %6994 = vmatpush1.bf16.msra.mxu0 %v5603_v20 }
 0xa53   : > { %7158 = vmatpush1.bf16.msra.mxu1 %v5605_v38  ;;  %6995 = vmatprep.subr.bf16.mxu0 %v5623_v36  ;;  %v5698_v38 = vunpack.c.l.s8.bf16 %v4577_v3 }
 0xa54   : > { %7159 = vmatprep.subr.bf16.mxu1 %v5625_v5 }
 0xa56   : > { %6996 = vmatpush1.bf16.msra.mxu0 %v5622_v25  ;;  %v5700_v25 = vunpack.c.l.s8.bf16 %v4579_v18 }
 0xa57   : > { %7160 = vmatpush1.bf16.msra.mxu1 %v5624_v35  ;;  %6997 = vmatprep.subr.bf16.mxu0 %v5642_v16  ;;  %v5718_v35 = vunpack.c.h.s8.bf16 %v4578_v11  ;;  %v4616_v11 = vld [vmem:[%s10571_s6 + $0x11a0] sm:$0xff] }
 0xa58   : > { %7161 = vmatprep.subr.bf16.mxu1 %v5644_v28 }
 0xa5a   : > { %6998 = vmatpush1.bf16.msra.mxu0 %v5641_v30 }
 0xa5b   : > { %7162 = vmatpush1.bf16.msra.mxu1 %v5643_v24  ;;  %6999 = vmatprep.subr.bf16.mxu0 %v5661_v9  ;;  %v4599_v24 = vld [vmem:[%s10571_s6 + $0x1118] sm:$0xff]  ;;  %v5717_v9 = vunpack.c.h.s8.bf16 %v4577_v3 }
 0xa5c   : > { %7163 = vmatprep.subr.bf16.mxu1 %v5663_v61  ;;  %v5737_v61 = vunpack.c.l.s8.bf16 %v4597_v37 }
 0xa5e   : > { %7000 = vmatpush1.bf16.msra.mxu0 %v5660_v45  ;;  %v5739_v45 = vunpack.c.l.s8.bf16 %v4599_v24 }
 0xa5f   : > { %7164 = vmatpush1.bf16.msra.mxu1 %v5662_v40  ;;  %7001 = vmatprep.subr.bf16.mxu0 %v5680_v43  ;;  %v5736_v40 = vunpack.c.l.s8.bf16 %v4596_v4  ;;  %v5738_v43 = vunpack.c.l.s8.bf16 %v4598_v53 }
 0xa60   : > { %v6697_v17 = vpop.f32.mrb[20].mxu0  ;;  %7165 = vmatprep.subr.bf16.mxu1 %v5682_v7  ;;  %v5758_v7 = vunpack.c.h.s8.bf16 %v4599_v24 }
 0xa61   : > { %v7629_v19 = vmul.f32 %v7561_v46, %v6697_v17  ;;  %v6861_v21 = vpop.f32.mrb[28].mxu1  ;;  %v6699_v22 = vpop.f32.mrb[21].mxu0  ;;  %v4618_v46 = vld [vmem:[%s10571_s6 + $0x11b0] sm:$0xff] }
 0xa62   : > { %v7631_v23 = vmul.f32 %v7569_v54, %v6861_v21  ;;  %v7630_v27 = vmul.f32 %v7565_v56, %v6699_v22  ;;  %v6863_v29 = vpop.f32.mrb[29].mxu1  ;;  %v6701_v20 = vpop.f32.mrb[22].mxu0  ;;  %7002 = vmatpush1.bf16.msra.mxu0 %v5679_v62  ;;  %v5757_v56 = vunpack.c.h.s8.bf16 %v4598_v53  ;;  %v5775_v62 = vunpack.c.l.s8.bf16 %v4616_v11 }
 0xa63   : > { %v7749_v36 = vadd.f32 %v7681_v63, %v7629_v19  ;;  %v7632_v48 = vmul.f32 %v7573_v0, %v6863_v29  ;;  %v6865_v5 = vpop.f32.mrb[30].mxu1  ;;  %7166 = vmatpush1.bf16.msra.mxu1 %v5681_v1  ;;  %v6702_v32 = vpop.f32.mrb[23].mxu0  ;;  %7003 = vmatprep.subr.bf16.mxu0 %v5699_v2  ;;  %v4615_v63 = vld [vmem:[%s10571_s6 + $0x1198] sm:$0xff]  ;;  %v5777_v1 = vunpack.c.l.s8.bf16 %v4618_v46  ;;  %v4617_v2 = vld [vmem:[%s10571_s6 + $0x11a8] sm:$0xff]  ;;  %v5794_v19 = vunpack.c.h.s8.bf16 %v4616_v11 }
 0xa64   : > { %v7751_v16 = vadd.f32 %v7689_v33, %v7631_v23  ;;  %v7750_v28 = vadd.f32 %v7685_v14, %v7630_v27  ;;  %v6866_v12 = vpop.f32.mrb[31].mxu1  ;;  %7167 = vmatprep.subr.bf16.mxu1 %v5701_v15  ;;  %v5774_v14 = vunpack.c.l.s8.bf16 %v4615_v63  ;;  %v5776_v18 = vunpack.c.l.s8.bf16 %v4617_v2  ;;  %v4637_v27 = vld [vmem:[%s10571_s6 + $0x1248] sm:$0xff]  ;;  %v4636_v32 = vld [vmem:[%s10571_s6 + $0x1240] sm:$0xff] }
 0xa65   : > { %9264 = vtanh.f32 %v7749_v36  ;;  %v7752_v30 = vadd.f32 %v7693_v31, %v7632_v48  ;;  %v5796_v22 = vunpack.c.h.s8.bf16 %v4618_v46  ;;  %v4635_v31 = vld [vmem:[%s10571_s6 + $0x1238] sm:$0xff]  ;;  %v5793_v29 = vunpack.c.h.s8.bf16 %v4615_v63  ;;  %v4634_v48 = vld [vmem:[%s10571_s6 + $0x1230] sm:$0xff] }
 0xa66   : > { %9266 = vtanh.f32 %v7751_v16  ;;  %7004 = vmatpush1.bf16.msra.mxu0 %v5698_v38  ;;  %v5795_v38 = vunpack.c.h.s8.bf16 %v4617_v2  ;;  %v5813_v36 = vunpack.c.l.s8.bf16 %v4635_v31  ;;  %v5815_v5 = vunpack.c.l.s8.bf16 %v4637_v27  ;;  %v4654_v12 = vld [vmem:[%s10571_s6 + $0x12d0] sm:$0xff] }
 0xa67   : > { %9268 = vtanh.f32 %v7750_v28  ;;  %7168 = vmatpush1.bf16.msra.mxu1 %v5700_v25  ;;  %7005 = vmatprep.subr.bf16.mxu0 %v5718_v35  ;;  %v5812_v25 = vunpack.c.l.s8.bf16 %v4634_v48  ;;  %v5814_v35 = vunpack.c.l.s8.bf16 %v4636_v32  ;;  %v5832_v16 = vunpack.c.h.s8.bf16 %v4635_v31 }
 0xa68   : > { %9270 = vtanh.f32 %v7752_v30  ;;  %7169 = vmatprep.subr.bf16.mxu1 %v5720_v55  ;;  %v5834_v28 = vunpack.c.h.s8.bf16 %v4637_v27  ;;  %v4656_v55 = vld [vmem:[%s10571_s6 + $0x12e0] sm:$0xff]  ;;  %v5831_v37 = vunpack.c.h.s8.bf16 %v4634_v48  ;;  %v5833_v30 = vunpack.c.h.s8.bf16 %v4636_v32  ;;  %v4106_v32 = vld [vmem:[%s10571_s6 + $0x1b0] sm:$0xff] }
 0xa69   : > { %v5851_v24 = vunpack.c.l.s8.bf16 %v4654_v12  ;;  %v5870_v53 = vunpack.c.h.s8.bf16 %v4654_v12 }
 0xa6a   : > { %7006 = vmatpush1.bf16.msra.mxu0 %v5717_v9  ;;  %v4653_v9 = vld [vmem:[%s10571_s6 + $0x12c8] sm:$0xff] }
 0xa6b   : > { %7170 = vmatpush1.bf16.msra.mxu1 %v5719_v39  ;;  %7007 = vmatprep.subr.bf16.mxu0 %v5737_v61  ;;  %v5853_v39 = vunpack.c.l.s8.bf16 %v4656_v55  ;;  %v4655_v61 = vld [vmem:[%s10571_s6 + $0x12d8] sm:$0xff]  ;;  %v5850_v4 = vunpack.c.l.s8.bf16 %v4653_v9 }
 0xa6c   : > { %7171 = vmatprep.subr.bf16.mxu1 %v5739_v45  ;;  %v5852_v45 = vunpack.c.l.s8.bf16 %v4655_v61  ;;  %v5871_v11 = vunpack.c.h.s8.bf16 %v4655_v61  ;;  %v4125_v61 = vld [vmem:[%s10571_s6 + $0x248] sm:$0xff] }
 0xa6e   : > { %7008 = vmatpush1.bf16.msra.mxu0 %v5736_v40  ;;  %v5872_v40 = vunpack.c.h.s8.bf16 %v4656_v55 }
 0xa6f   : > { %v9265_v54 = vpop.eup %9264  ;;  %7172 = vmatpush1.bf16.msra.mxu1 %v5738_v43  ;;  %7009 = vmatprep.subr.bf16.mxu0 %v5756_v44  ;;  %v4069_v43 = vld [vmem:[%s10571_s6 + $0x88] sm:$0xff]  ;;  %v4146_v44 = vld [vmem:[%s10571_s6 + $0x2f0] sm:$0xff] }
 0xa70   : > { %v9267_v0 = vpop.eup %9266  ;;  %7173 = vmatprep.subr.bf16.mxu1 %v5758_v7  ;;  %v5869_v7 = vunpack.c.h.s8.bf16 %v4653_v9  ;;  %v4677_v46 = vunpack.c.l.s8.bf16 %v4069_v43  ;;  %v4849_v2 = vunpack.c.h.s8.bf16 %v4146_v44 }
 0xa71   : > { %v9269_v3 = vpop.eup %9268 }
 0xa72   : > { %v9271_v17 = vpop.eup %9270  ;;  %v8603_v33 = vpack.c.bf16 %v9269_v3, %v9265_v54  ;;  %7010 = vmatpush1.bf16.msra.mxu0 %v5755_v51  ;;  %v4068_v51 = vld [vmem:[%s10571_s6 + $0x80] sm:$0xff]  ;;  %v4830_v54 = vunpack.c.l.s8.bf16 %v4146_v44  ;;  %v4165_v3 = vld [vmem:[%s10571_s6 + $0x388] sm:$0xff] }
 0xa73   : > { %v8604_v15 = vpack.c.bf16 %v9271_v17, %v9267_v0  ;;  %7174 = vmatpush1.bf16.msra.mxu1 %v5757_v56  ;;  %7011 = vmatprep.subr.bf16.mxu0 %v5775_v62  ;;  %v4070_v56 = vld [vmem:[%s10571_s6 + $0x90] sm:$0xff]  ;;  %v4676_v62 = vunpack.c.l.s8.bf16 %v4068_v51  ;;  %v4696_v0 = vunpack.c.h.s8.bf16 %v4069_v43  ;;  %v4695_v17 = vunpack.c.h.s8.bf16 %v4068_v51 }
 0xa74   : > { %v11489_v21 = vrot.slane %v8603_v33, %v11158_v57  ;;  %7175 = vmatprep.subr.bf16.mxu1 %v5777_v1  ;;  %v4678_v63 = vunpack.c.l.s8.bf16 %v4070_v56  ;;  %v4088_v1 = vld [vmem:[%s10571_s6 + $0x120] sm:$0xff]  ;;  %v4697_v33 = vunpack.c.h.s8.bf16 %v4070_v56 }
 0xa75   : > { %v11493_v23 = vrot.slane %v8604_v15, %v11158_v57  ;;  %v4087_v15 = vld [vmem:[%s10571_s6 + $0x118] sm:$0xff]  ;;  %v4734_v27 = vunpack.c.h.s8.bf16 %v4088_v1  ;;  %v4144_v56 = vld [vmem:[%s10571_s6 + $0x2e0] sm:$0xff] }
 0xa76   : > { %7012 = vmatpush1.bf16.msra.mxu0 %v5774_v14  ;;  %v4715_v14 = vunpack.c.l.s8.bf16 %v4088_v1  ;;  %v4733_v48 = vunpack.c.h.s8.bf16 %v4087_v15 }
 0xa77   : > { %v7898_v20 = vcombine.low %v11489_v21, %v11493_v23  ;;  %7176 = vmatpush1.bf16.msra.mxu1 %v5776_v18  ;;  %7013 = vmatprep.subr.bf16.mxu0 %v5794_v19  ;;  %v4868_v18 = vunpack.c.l.s8.bf16 %v4165_v3  ;;  %v4089_v19 = vld [vmem:[%s10571_s6 + $0x128] sm:$0xff] }
 0xa78   : > { %7177 = vmatprep.subr.bf16.mxu1 %v5796_v22  ;;  %v4714_v22 = vunpack.c.l.s8.bf16 %v4087_v15  ;;  %v4716_v31 = vunpack.c.l.s8.bf16 %v4089_v19 }
 0xa7a   : > { %7014 = vmatpush1.bf16.msra.mxu0 %v5793_v29  ;;  %v4887_v29 = vunpack.c.h.s8.bf16 %v4165_v3 }
 0xa7b   : > { %7178 = vmatpush1.bf16.msra.mxu1 %v5795_v38  ;;  %7015 = vmatprep.subr.bf16.mxu0 %v5813_v36  ;;  %v4107_v38 = vld [vmem:[%s10571_s6 + $0x1b8] sm:$0xff]  ;;  %v4184_v36 = vld [vmem:[%s10571_s6 + $0x420] sm:$0xff] }
 0xa7c   : > { %7179 = vmatprep.subr.bf16.mxu1 %v5815_v5  ;;  %v4753_v5 = vunpack.c.l.s8.bf16 %v4107_v38  ;;  %v4772_v12 = vunpack.c.h.s8.bf16 %v4107_v38  ;;  %v4925_v55 = vunpack.c.h.s8.bf16 %v4184_v36 }
 0xa7e   : > { %7016 = vmatpush1.bf16.msra.mxu0 %v5812_v25  ;;  %v4906_v25 = vunpack.c.l.s8.bf16 %v4184_v36 }
 0xa7f   : > { %7180 = vmatpush1.bf16.msra.mxu1 %v5814_v35  ;;  %7017 = vmatprep.subr.bf16.mxu0 %v5832_v16  ;;  %v4108_v35 = vld [vmem:[%s10571_s6 + $0x1c0] sm:$0xff]  ;;  %v4752_v16 = vunpack.c.l.s8.bf16 %v4106_v32 }
 0xa80   : > { %7181 = vmatprep.subr.bf16.mxu1 %v5834_v28  ;;  %v4754_v28 = vunpack.c.l.s8.bf16 %v4108_v35  ;;  %v4773_v9 = vunpack.c.h.s8.bf16 %v4108_v35  ;;  %v4182_v35 = vld [vmem:[%s10571_s6 + $0x410] sm:$0xff] }
 0xa82   : > { %7018 = vmatpush1.bf16.msra.mxu0 %v5831_v37  ;;  %v4126_v37 = vld [vmem:[%s10571_s6 + $0x250] sm:$0xff] }
 0xa83   : > { %7182 = vmatpush1.bf16.msra.mxu1 %v5833_v30  ;;  %7019 = vmatprep.subr.bf16.mxu0 %v5851_v24  ;;  %v4203_v30 = vld [vmem:[%s10571_s6 + $0x4b8] sm:$0xff]  ;;  %v4771_v24 = vunpack.c.h.s8.bf16 %v4106_v32  ;;  %v4810_v43 = vunpack.c.h.s8.bf16 %v4126_v37 }
 0xa84   : > { %7183 = vmatprep.subr.bf16.mxu1 %v5853_v39  ;;  %v4791_v39 = vunpack.c.l.s8.bf16 %v4126_v37  ;;  %v4963_v44 = vunpack.c.h.s8.bf16 %v4203_v30 }
 0xa86   : > { %7020 = vmatpush1.bf16.msra.mxu0 %v5850_v4  ;;  %v4944_v4 = vunpack.c.l.s8.bf16 %v4203_v30 }
 0xa87   : > { %7184 = vmatpush1.bf16.msra.mxu1 %v5852_v45  ;;  %7021 = vmatprep.subr.bf16.mxu0 %v5870_v53  ;;  %v4127_v45 = vld [vmem:[%s10571_s6 + $0x258] sm:$0xff]  ;;  %v4790_v53 = vunpack.c.l.s8.bf16 %v4125_v61 }
 0xa88   : > { %7185 = vmatprep.subr.bf16.mxu1 %v5872_v40  ;;  %v4792_v40 = vunpack.c.l.s8.bf16 %v4127_v45  ;;  %v4811_v51 = vunpack.c.h.s8.bf16 %v4127_v45  ;;  %v4201_v45 = vld [vmem:[%s10571_s6 + $0x4a8] sm:$0xff] }
 0xa8a   : > { %7022 = vmatpush1.bf16.msra.mxu0 %v5869_v7  ;;  %v4145_v7 = vld [vmem:[%s10571_s6 + $0x2e8] sm:$0xff] }
 0xa8b   : > { %7186 = vmatpush1.bf16.msra.mxu1 %v5871_v11  ;;  %7196 = vmatprep.subr.bf16.mxu0 %v4677_v46  ;;  %v4298_v11 = vld [vmem:[%s10571_s6 + $0x7b0] sm:$0xff]  ;;  %v4809_v46 = vunpack.c.h.s8.bf16 %v4125_v61 }
 0xa8c   : > { %8625 = vmatprep.subr.bf16.mxu1 %v4830_v54  ;;  %v4829_v54 = vunpack.c.l.s8.bf16 %v4145_v7  ;;  %v5153_v3 = vunpack.c.h.s8.bf16 %v4298_v11 }
 0xa8d   : > { %7024 = vmatmul.mubr.bf16.vlgmr.msra.gmra.mrb[24].mxu0 %v11014_v26 }
 0xa8e   : > { %7188 = vmatmul.mubr.bf16.vlgmr.msra.gmra.mrb[32].mxu1 %v11014_v26  ;;  %7197 = vmatpush1.bf16.msra.mxu0 %v4676_v62  ;;  %v5134_v62 = vunpack.c.l.s8.bf16 %v4298_v11 }
 0xa8f   : > { %7228 = vmatprep.mubr.bf16.mxu0 %v10801_v58  ;;  %8626 = vmatpush3.bf16.msra.mxu1 %v4678_v63  ;;  %v4222_v63 = vld [vmem:[%s10571_s6 + $0x550] sm:$0xff] }
 0xa90   : > { %7392 = vmatprep.mubr.bf16.mxu1 %v10801_v58  ;;  %7198 = vmatprep.subr.bf16.mxu0 %v4696_v0  ;;  %v4735_v58 = vunpack.c.h.s8.bf16 %v4089_v19  ;;  %v4828_v0 = vunpack.c.l.s8.bf16 %v4144_v56  ;;  %v4982_v1 = vunpack.c.l.s8.bf16 %v4222_v63  ;;  %v5001_v15 = vunpack.c.h.s8.bf16 %v4222_v63  ;;  %v4163_v19 = vld [vmem:[%s10571_s6 + $0x378] sm:$0xff]  ;;  %v4220_v63 = vld [vmem:[%s10571_s6 + $0x540] sm:$0xff] }
 0xa91   : > { %8627 = vmatprep.subr.bf16.mxu1 %v4849_v2  ;;  %v4848_v2 = vunpack.c.h.s8.bf16 %v4145_v7 }
 0xa92   : > { %7199 = vmatpush1.bf16.msra.mxu0 %v4695_v17  ;;  %v4164_v17 = vld [vmem:[%s10571_s6 + $0x380] sm:$0xff] }
 0xa93   : > { %8628 = vmatpush3.bf16.msra.mxu1 %v4697_v33  ;;  %7200 = vmatprep.subr.bf16.mxu0 %v4715_v14  ;;  %v4317_v33 = vld [vmem:[%s10571_s6 + $0x848] sm:$0xff]  ;;  %v4847_v14 = vunpack.c.h.s8.bf16 %v4144_v56  ;;  %v4886_v38 = vunpack.c.h.s8.bf16 %v4164_v17 }
 0xa94   : > { %8629 = vmatprep.subr.bf16.mxu1 %v4868_v18  ;;  %v4867_v18 = vunpack.c.l.s8.bf16 %v4164_v17  ;;  %v5191_v36 = vunpack.c.h.s8.bf16 %v4317_v33 }
 0xa96   : > { %7201 = vmatpush1.bf16.msra.mxu0 %v4714_v22  ;;  %v5172_v22 = vunpack.c.l.s8.bf16 %v4317_v33  ;;  %v4240_v33 = vld [vmem:[%s10571_s6 + $0x5e0] sm:$0xff] }
 0xa97   : > { %8630 = vmatpush3.bf16.msra.mxu1 %v4716_v31  ;;  %7202 = vmatprep.subr.bf16.mxu0 %v4734_v27  ;;  %v4241_v31 = vld [vmem:[%s10571_s6 + $0x5e8] sm:$0xff]  ;;  %v4866_v27 = vunpack.c.l.s8.bf16 %v4163_v19 }
 0xa98   : > { %8631 = vmatprep.subr.bf16.mxu1 %v4887_v29  ;;  %v5020_v29 = vunpack.c.l.s8.bf16 %v4241_v31  ;;  %v5039_v32 = vunpack.c.h.s8.bf16 %v4241_v31  ;;  %v4239_v31 = vld [vmem:[%s10571_s6 + $0x5d8] sm:$0xff] }
 0xa9a   : > { %7203 = vmatpush1.bf16.msra.mxu0 %v4733_v48  ;;  %v4183_v48 = vld [vmem:[%s10571_s6 + $0x418] sm:$0xff] }
 0xa9b   : > { %8632 = vmatpush3.bf16.msra.mxu1 %v4735_v58  ;;  %7204 = vmatprep.subr.bf16.mxu0 %v4753_v5  ;;  %v4336_v58 = vld [vmem:[%s10571_s6 + $0x8e0] sm:$0xff]  ;;  %v4885_v5 = vunpack.c.h.s8.bf16 %v4163_v19  ;;  %v4924_v37 = vunpack.c.h.s8.bf16 %v4183_v48 }
 0xa9c   : > { %8633 = vmatprep.subr.bf16.mxu1 %v4906_v25  ;;  %v4905_v25 = vunpack.c.l.s8.bf16 %v4183_v48  ;;  %v5229_v30 = vunpack.c.h.s8.bf16 %v4336_v58  ;;  %v4259_v48 = vld [vmem:[%s10571_s6 + $0x678] sm:$0xff] }
 0xa9e   : > { %7205 = vmatpush1.bf16.msra.mxu0 %v4752_v16  ;;  %v5210_v16 = vunpack.c.l.s8.bf16 %v4336_v58  ;;  %v4488_v58 = vld [vmem:[%s10571_s6 + $0xda0] sm:$0xff] }
 0xa9f   : > { %8634 = vmatpush3.bf16.msra.mxu1 %v4754_v28  ;;  %7206 = vmatprep.subr.bf16.mxu0 %v4772_v12  ;;  %v4260_v28 = vld [vmem:[%s10571_s6 + $0x680] sm:$0xff]  ;;  %v4904_v12 = vunpack.c.l.s8.bf16 %v4182_v35 }
 0xaa0   : > { %8635 = vmatprep.subr.bf16.mxu1 %v4925_v55  ;;  %v5058_v55 = vunpack.c.l.s8.bf16 %v4260_v28  ;;  %v5077_v61 = vunpack.c.h.s8.bf16 %v4260_v28  ;;  %v4412_v28 = vld [vmem:[%s10571_s6 + $0xb40] sm:$0xff] }
 0xaa2   : > { %7207 = vmatpush1.bf16.msra.mxu0 %v4771_v24  ;;  %v4202_v24 = vld [vmem:[%s10571_s6 + $0x4b0] sm:$0xff] }
 0xaa3   : > { %8636 = vmatpush3.bf16.msra.mxu1 %v4773_v9  ;;  %7208 = vmatprep.subr.bf16.mxu0 %v4791_v39  ;;  %v4355_v9 = vld [vmem:[%s10571_s6 + $0x978] sm:$0xff]  ;;  %v4923_v39 = vunpack.c.h.s8.bf16 %v4182_v35  ;;  %v4962_v7 = vunpack.c.h.s8.bf16 %v4202_v24  ;;  %v4258_v35 = vld [vmem:[%s10571_s6 + $0x670] sm:$0xff] }
 0xaa4   : > { %8637 = vmatprep.subr.bf16.mxu1 %v4944_v4  ;;  %v4943_v4 = vunpack.c.l.s8.bf16 %v4202_v24  ;;  %v5267_v11 = vunpack.c.h.s8.bf16 %v4355_v9  ;;  %v4278_v24 = vld [vmem:[%s10571_s6 + $0x710] sm:$0xff] }
 0xaa6   : > { %7209 = vmatpush1.bf16.msra.mxu0 %v4790_v53  ;;  %v5248_v53 = vunpack.c.l.s8.bf16 %v4355_v9  ;;  %v4507_v9 = vld [vmem:[%s10571_s6 + $0xe38] sm:$0xff] }
 0xaa7   : > { %8638 = vmatpush3.bf16.msra.mxu1 %v4792_v40  ;;  %7210 = vmatprep.subr.bf16.mxu0 %v4810_v43  ;;  %v4279_v40 = vld [vmem:[%s10571_s6 + $0x718] sm:$0xff]  ;;  %v4942_v43 = vunpack.c.l.s8.bf16 %v4201_v45 }
 0xaa8   : > { %8639 = vmatprep.subr.bf16.mxu1 %v4963_v44  ;;  %v5096_v44 = vunpack.c.l.s8.bf16 %v4279_v40  ;;  %v5115_v56 = vunpack.c.h.s8.bf16 %v4279_v40  ;;  %v4431_v40 = vld [vmem:[%s10571_s6 + $0xbd8] sm:$0xff] }
 0xaaa   : > { %7211 = vmatpush1.bf16.msra.mxu0 %v4809_v46  ;;  %v4221_v46 = vld [vmem:[%s10571_s6 + $0x548] sm:$0xff] }
 0xaab   : > { %8640 = vmatpush3.bf16.msra.mxu1 %v4811_v51  ;;  %7212 = vmatprep.subr.bf16.mxu0 %v4829_v54  ;;  %v4450_v51 = vld [vmem:[%s10571_s6 + $0xc70] sm:$0xff]  ;;  %v4961_v54 = vunpack.c.h.s8.bf16 %v4201_v45  ;;  %v5000_v17 = vunpack.c.h.s8.bf16 %v4221_v46  ;;  %v4277_v45 = vld [vmem:[%s10571_s6 + $0x708] sm:$0xff] }
 0xaac   : > { %8647 = vmatprep.subr.bf16.mxu1 %v5134_v62  ;;  %v4981_v62 = vunpack.c.l.s8.bf16 %v4221_v46  ;;  %v4297_v46 = vld [vmem:[%s10571_s6 + $0x7a8] sm:$0xff] }
 0xaae   : > { %7393 = vmatmul.mubr.bf16.vlgmr.msra.gmra.mrb[36].mxu1 %v10803_v41  ;;  %7213 = vmatpush1.bf16.msra.mxu0 %v4828_v0  ;;  %v5438_v0 = vunpack.c.l.s8.bf16 %v4450_v51 }
 0xaaf   : > { %8648 = vmatpush3.bf16.msra.mxu1 %v4982_v1  ;;  %7432 = vmatprep.mubr.bf16.mxu1 %v10811_v49  ;;  %v4374_v1 = vld [vmem:[%s10571_s6 + $0xa10] sm:$0xff] }
 0xab0   : > { %7214 = vmatprep.subr.bf16.mxu0 %v4848_v2  ;;  %8649 = vmatprep.subr.bf16.mxu1 %v5153_v3  ;;  %v4980_v2 = vunpack.c.l.s8.bf16 %v4220_v63  ;;  %v5286_v3 = vunpack.c.l.s8.bf16 %v4374_v1  ;;  %v5305_v19 = vunpack.c.h.s8.bf16 %v4374_v1  ;;  %v4526_v1 = vld [vmem:[%s10571_s6 + $0xed0] sm:$0xff] }
 0xab2   : > { %7215 = vmatpush1.bf16.msra.mxu0 %v4847_v14  ;;  %v5457_v14 = vunpack.c.h.s8.bf16 %v4450_v51  ;;  %v4602_v51 = vld [vmem:[%s10571_s6 + $0x1130] sm:$0xff] }
 0xab3   : > { %8650 = vmatpush3.bf16.msra.mxu1 %v5001_v15  ;;  %7216 = vmatprep.subr.bf16.mxu0 %v4867_v18  ;;  %v4469_v15 = vld [vmem:[%s10571_s6 + $0xd08] sm:$0xff]  ;;  %v4999_v18 = vunpack.c.h.s8.bf16 %v4220_v63  ;;  %v4296_v63 = vld [vmem:[%s10571_s6 + $0x7a0] sm:$0xff] }
 0xab4   : > { %8651 = vmatprep.subr.bf16.mxu1 %v5172_v22  ;;  %v5019_v22 = vunpack.c.l.s8.bf16 %v4240_v33 }
 0xab6   : > { %7217 = vmatpush1.bf16.msra.mxu0 %v4866_v27  ;;  %v5476_v27 = vunpack.c.l.s8.bf16 %v4469_v15 }
 0xab7   : > { %8652 = vmatpush3.bf16.msra.mxu1 %v5020_v29  ;;  %7218 = vmatprep.subr.bf16.mxu0 %v4886_v38  ;;  %v4393_v29 = vld [vmem:[%s10571_s6 + $0xaa8] sm:$0xff] }
 0xab8   : > { %8653 = vmatprep.subr.bf16.mxu1 %v5191_v36  ;;  %v5324_v38 = vunpack.c.l.s8.bf16 %v4393_v29  ;;  %v5495_v36 = vunpack.c.h.s8.bf16 %v4469_v15  ;;  %v4621_v15 = vld [vmem:[%s10571_s6 + $0x11c8] sm:$0xff] }
 0xaba   : > { %7219 = vmatpush1.bf16.msra.mxu0 %v4885_v5  ;;  %v5037_v5 = vunpack.c.h.s8.bf16 %v4239_v31 }
 0xabb   : > { %8654 = vmatpush3.bf16.msra.mxu1 %v5039_v32  ;;  %7220 = vmatprep.subr.bf16.mxu0 %v4905_v25  ;;  %v5343_v32 = vunpack.c.h.s8.bf16 %v4393_v29  ;;  %v5057_v25 = vunpack.c.l.s8.bf16 %v4259_v48  ;;  %v4545_v29 = vld [vmem:[%s10571_s6 + $0xf68] sm:$0xff] }
 0xabc   : > { %8655 = vmatprep.subr.bf16.mxu1 %v5210_v16  ;;  %v5514_v16 = vunpack.c.l.s8.bf16 %v4488_v58 }
 0xabe   : > { %7221 = vmatpush1.bf16.msra.mxu0 %v4904_v12  ;;  %v5056_v12 = vunpack.c.l.s8.bf16 %v4258_v35 }
 0xabf   : > { %8656 = vmatpush3.bf16.msra.mxu1 %v5058_v55  ;;  %7222 = vmatprep.subr.bf16.mxu0 %v4924_v37  ;;  %v5362_v55 = vunpack.c.l.s8.bf16 %v4412_v28  ;;  %v5076_v37 = vunpack.c.h.s8.bf16 %v4259_v48  ;;  %v4335_v48 = vld [vmem:[%s10571_s6 + $0x8d8] sm:$0xff] }
 0xac0   : > { %8657 = vmatprep.subr.bf16.mxu1 %v5229_v30  ;;  %v5533_v30 = vunpack.c.h.s8.bf16 %v4488_v58  ;;  %v4640_v58 = vld [vmem:[%s10571_s6 + $0x1260] sm:$0xff] }
 0xac2   : > { %7223 = vmatpush1.bf16.msra.mxu0 %v4923_v39  ;;  %v5075_v39 = vunpack.c.h.s8.bf16 %v4258_v35  ;;  %v4334_v35 = vld [vmem:[%s10571_s6 + $0x8d0] sm:$0xff] }
 0xac3   : > { %8658 = vmatpush3.bf16.msra.mxu1 %v5077_v61  ;;  %7224 = vmatprep.subr.bf16.mxu0 %v4943_v4  ;;  %v5381_v61 = vunpack.c.h.s8.bf16 %v4412_v28  ;;  %v5095_v4 = vunpack.c.l.s8.bf16 %v4278_v24  ;;  %v4564_v28 = vld [vmem:[%s10571_s6 + $0x1000] sm:$0xff] }
 0xac4   : > { %8659 = vmatprep.subr.bf16.mxu1 %v5248_v53  ;;  %v5552_v53 = vunpack.c.l.s8.bf16 %v4507_v9 }
 0xac6   : > { %7225 = vmatpush1.bf16.msra.mxu0 %v4942_v43  ;;  %v5094_v43 = vunpack.c.l.s8.bf16 %v4277_v45 }
 0xac7   : > { %8660 = vmatpush3.bf16.msra.mxu1 %v5096_v44  ;;  %7226 = vmatprep.subr.bf16.mxu0 %v4962_v7  ;;  %v5400_v44 = vunpack.c.l.s8.bf16 %v4431_v40  ;;  %v5114_v7 = vunpack.c.h.s8.bf16 %v4278_v24  ;;  %v4354_v24 = vld [vmem:[%s10571_s6 + $0x970] sm:$0xff] }
 0xac8   : > { %8661 = vmatprep.subr.bf16.mxu1 %v5267_v11  ;;  %v5571_v11 = vunpack.c.h.s8.bf16 %v4507_v9  ;;  %v4659_v9 = vld [vmem:[%s10571_s6 + $0x12f8] sm:$0xff] }
 0xaca   : > { %7227 = vmatpush1.bf16.msra.mxu0 %v4961_v54  ;;  %v5113_v54 = vunpack.c.h.s8.bf16 %v4277_v45  ;;  %v4353_v45 = vld [vmem:[%s10571_s6 + $0x968] sm:$0xff] }
 0xacb   : > { %8662 = vmatpush3.bf16.msra.mxu1 %v5115_v56  ;;  %7237 = vmatprep.subr.bf16.mxu0 %v4981_v62  ;;  %v5419_v56 = vunpack.c.h.s8.bf16 %v4431_v40  ;;  %v5133_v62 = vunpack.c.l.s8.bf16 %v4297_v46  ;;  %v4583_v40 = vld [vmem:[%s10571_s6 + $0x1098] sm:$0xff] }
 0xacc   : > { %8669 = vmatprep.subr.bf16.mxu1 %v5438_v0  ;;  %v5742_v0 = vunpack.c.l.s8.bf16 %v4602_v51 }
 0xacd   : > { %7229 = vmatmul.mubr.bf16.vlgmr.msra.gmra.mrb[28].mxu0 %v10803_v41  ;;  %v5018_v41 = vunpack.c.l.s8.bf16 %v4239_v31  ;;  %v4315_v31 = vld [vmem:[%s10571_s6 + $0x838] sm:$0xff] }
 0xace   : > { %7433 = vmatmul.mubr.bf16.vlgmr.msra.gmra.mrb[40].mxu1 %v10863_v60  ;;  %7238 = vmatpush1.bf16.msra.mxu0 %v4980_v2  ;;  %v5132_v2 = vunpack.c.l.s8.bf16 %v4296_v63 }
 0xacf   : > { %7269 = vmatprep.mubr.bf16.mxu0 %v10811_v49  ;;  %8670 = vmatpush3.bf16.msra.mxu1 %v5286_v3  ;;  %v5038_v49 = vunpack.c.h.s8.bf16 %v4240_v33  ;;  %v5590_v3 = vunpack.c.l.s8.bf16 %v4526_v1  ;;  %v5761_v33 = vunpack.c.h.s8.bf16 %v4602_v51  ;;  %v5265_v51 = vunpack.c.h.s8.bf16 %v4353_v45 }
 0xad0   : > { %7472 = vmatprep.mubr.bf16.mxu1 %v10967_v13  ;;  %7239 = vmatprep.subr.bf16.mxu0 %v5000_v17  ;;  %v5152_v17 = vunpack.c.h.s8.bf16 %v4297_v46  ;;  %v4373_v46 = vld [vmem:[%s10571_s6 + $0xa08] sm:$0xff] }
 0xad1   : > { %8671 = vmatprep.subr.bf16.mxu1 %v5457_v14  ;;  %v4316_v14 = vld [vmem:[%s10571_s6 + $0x840] sm:$0xff] }
 0xad2   : > { %7240 = vmatpush1.bf16.msra.mxu0 %v4999_v18  ;;  %v5151_v18 = vunpack.c.h.s8.bf16 %v4296_v63 }
 0xad3   : > { %8672 = vmatpush3.bf16.msra.mxu1 %v5305_v19  ;;  %7241 = vmatprep.subr.bf16.mxu0 %v5019_v22  ;;  %v5609_v19 = vunpack.c.h.s8.bf16 %v4526_v1  ;;  %v5171_v22 = vunpack.c.l.s8.bf16 %v4316_v14  ;;  %v4392_v1 = vld [vmem:[%s10571_s6 + $0xaa0] sm:$0xff] }
 0xad4   : > { %8673 = vmatprep.subr.bf16.mxu1 %v5476_v27  ;;  %v5780_v27 = vunpack.c.l.s8.bf16 %v4621_v15 }
 0xad6   : > { %7242 = vmatpush1.bf16.msra.mxu0 %v5018_v41  ;;  %v5170_v41 = vunpack.c.l.s8.bf16 %v4315_v31 }
 0xad7   : > { %8674 = vmatpush3.bf16.msra.mxu1 %v5324_v38  ;;  %7243 = vmatprep.subr.bf16.mxu0 %v5038_v49  ;;  %v5628_v38 = vunpack.c.l.s8.bf16 %v4545_v29  ;;  %v5190_v49 = vunpack.c.h.s8.bf16 %v4316_v14  ;;  %v5342_v14 = vunpack.c.h.s8.bf16 %v4392_v1 }
 0xad8   : > { %8675 = vmatprep.subr.bf16.mxu1 %v5495_v36  ;;  %v5799_v36 = vunpack.c.h.s8.bf16 %v4621_v15  ;;  %v4411_v15 = vld [vmem:[%s10571_s6 + $0xb38] sm:$0xff] }
 0xada   : > { %7244 = vmatpush1.bf16.msra.mxu0 %v5037_v5  ;;  %v5189_v5 = vunpack.c.h.s8.bf16 %v4315_v31  ;;  %v4430_v31 = vld [vmem:[%s10571_s6 + $0xbd0] sm:$0xff] }
 0xadb   : > { %8676 = vmatpush3.bf16.msra.mxu1 %v5343_v32  ;;  %7245 = vmatprep.subr.bf16.mxu0 %v5057_v25  ;;  %v5647_v32 = vunpack.c.h.s8.bf16 %v4545_v29  ;;  %v5209_v25 = vunpack.c.l.s8.bf16 %v4335_v48  ;;  %v5399_v29 = vunpack.c.l.s8.bf16 %v4430_v31 }
 0xadc   : > { %8677 = vmatprep.subr.bf16.mxu1 %v5514_v16  ;;  %v5818_v16 = vunpack.c.l.s8.bf16 %v4640_v58 }
 0xade   : > { %7246 = vmatpush1.bf16.msra.mxu0 %v5056_v12  ;;  %v5208_v12 = vunpack.c.l.s8.bf16 %v4334_v35 }
 0xadf   : > { %8678 = vmatpush3.bf16.msra.mxu1 %v5362_v55  ;;  %7247 = vmatprep.subr.bf16.mxu0 %v5076_v37  ;;  %v5666_v55 = vunpack.c.l.s8.bf16 %v4564_v28  ;;  %v5228_v37 = vunpack.c.h.s8.bf16 %v4335_v48 }
 0xae0   : > { %8679 = vmatprep.subr.bf16.mxu1 %v5533_v30  ;;  %v5837_v30 = vunpack.c.h.s8.bf16 %v4640_v58 }
 0xae2   : > { %7248 = vmatpush1.bf16.msra.mxu0 %v5075_v39  ;;  %v5227_v39 = vunpack.c.h.s8.bf16 %v4334_v35  ;;  %v4468_v35 = vld [vmem:[%s10571_s6 + $0xd00] sm:$0xff] }
 0xae3   : > { %8680 = vmatpush3.bf16.msra.mxu1 %v5381_v61  ;;  %7249 = vmatprep.subr.bf16.mxu0 %v5095_v4  ;;  %v5685_v61 = vunpack.c.h.s8.bf16 %v4564_v28  ;;  %v5247_v4 = vunpack.c.l.s8.bf16 %v4354_v24  ;;  %v5475_v28 = vunpack.c.l.s8.bf16 %v4468_v35 }
 0xae4   : > { %8681 = vmatprep.subr.bf16.mxu1 %v5552_v53  ;;  %v5856_v53 = vunpack.c.l.s8.bf16 %v4659_v9 }
 0xae6   : > { %7250 = vmatpush1.bf16.msra.mxu0 %v5094_v43  ;;  %v5246_v43 = vunpack.c.l.s8.bf16 %v4353_v45  ;;  %v4506_v45 = vld [vmem:[%s10571_s6 + $0xe30] sm:$0xff] }
 0xae7   : > { %8682 = vmatpush3.bf16.msra.mxu1 %v5400_v44  ;;  %7251 = vmatprep.subr.bf16.mxu0 %v5114_v7  ;;  %v5704_v44 = vunpack.c.l.s8.bf16 %v4583_v40  ;;  %v5266_v7 = vunpack.c.h.s8.bf16 %v4354_v24 }
 0xae8   : > { %8683 = vmatprep.subr.bf16.mxu1 %v5571_v11  ;;  %v5875_v11 = vunpack.c.h.s8.bf16 %v4659_v9 }
 0xaea   : > { %7252 = vmatpush1.bf16.msra.mxu0 %v5113_v54  ;;  %v5723_v54 = vunpack.c.h.s8.bf16 %v4583_v40  ;;  %v5551_v40 = vunpack.c.l.s8.bf16 %v4506_v45 }
 0xaeb   : > { %8684 = vmatpush3.bf16.msra.mxu1 %v5419_v56  ;;  %7253 = vmatprep.subr.bf16.mxu0 %v5133_v62  ;;  %v5285_v56 = vunpack.c.l.s8.bf16 %v4373_v46  ;;  %v4372_v62 = vld [vmem:[%s10571_s6 + $0xa00] sm:$0xff] }
 0xaec   : > { %8691 = vmatprep.subr.bf16.mxu1 %v5742_v0  ;;  %v5284_v63 = vunpack.c.l.s8.bf16 %v4372_v62  ;;  %v5304_v0 = vunpack.c.h.s8.bf16 %v4373_v46 }
 0xaee   : > { %7473 = vmatmul.mubr.bf16.vlgmr.msra.gmra.mrb[44].mxu1 %v10969_v47  ;;  %7254 = vmatpush1.bf16.msra.mxu0 %v5132_v2  ;;  %v5303_v2 = vunpack.c.h.s8.bf16 %v4372_v62 }
 0xaef   : > { %8692 = vmatpush3.bf16.msra.mxu1 %v5590_v3  ;;  %7512 = vmatprep.mubr.bf16.mxu1 %v10975_v59  ;;  %v5323_v3 = vunpack.c.l.s8.bf16 %v4392_v1 }
 0xaf0   : > { %7255 = vmatprep.subr.bf16.mxu0 %v5152_v17  ;;  %8693 = vmatprep.subr.bf16.mxu1 %v5761_v33  ;;  %v4391_v17 = vld [vmem:[%s10571_s6 + $0xa98] sm:$0xff] }
 0xaf1   : > { %v5322_v33 = vunpack.c.l.s8.bf16 %v4391_v17 }
 0xaf2   : > { %7256 = vmatpush1.bf16.msra.mxu0 %v5151_v18  ;;  %v5341_v18 = vunpack.c.h.s8.bf16 %v4391_v17 }
 0xaf3   : > { %8694 = vmatpush3.bf16.msra.mxu1 %v5609_v19  ;;  %7257 = vmatprep.subr.bf16.mxu0 %v5171_v22  ;;  %v4410_v19 = vld [vmem:[%s10571_s6 + $0xb30] sm:$0xff] }
 0xaf4   : > { %8695 = vmatprep.subr.bf16.mxu1 %v5780_v27  ;;  %v5360_v22 = vunpack.c.l.s8.bf16 %v4410_v19  ;;  %v5379_v27 = vunpack.c.h.s8.bf16 %v4410_v19  ;;  %v9290_v19 = vld [vmem:[%s10581_s5 + $0x8] sm:$0xff] }
 0xaf6   : > { %7258 = vmatpush1.bf16.msra.mxu0 %v5170_v41  ;;  %v4429_v41 = vld [vmem:[%s10571_s6 + $0xbc8] sm:$0xff] }
 0xaf7   : > { %8696 = vmatpush3.bf16.msra.mxu1 %v5628_v38  ;;  %7259 = vmatprep.subr.bf16.mxu0 %v5190_v49  ;;  %v5398_v38 = vunpack.c.l.s8.bf16 %v4429_v41  ;;  %v5418_v49 = vunpack.c.h.s8.bf16 %v4430_v31  ;;  %v5417_v48 = vunpack.c.h.s8.bf16 %v4429_v41  ;;  %v7581_v31 = vrot.slane %v9290_v19, %v10856_v50 }
 0xaf8   : > { %8697 = vmatprep.subr.bf16.mxu1 %v5799_v36  ;;  %v4449_v36 = vld [vmem:[%s10571_s6 + $0xc68] sm:$0xff] }
 0xaf9   : > { %v5437_v58 = vunpack.c.l.s8.bf16 %v4449_v36 }
 0xafa   : > { %7260 = vmatpush1.bf16.msra.mxu0 %v5189_v5  ;;  %v4448_v5 = vld [vmem:[%s10571_s6 + $0xc60] sm:$0xff] }
 0xafb   : > { %8698 = vmatpush3.bf16.msra.mxu1 %v5647_v32  ;;  %7261 = vmatprep.subr.bf16.mxu0 %v5209_v25  ;;  %v5436_v32 = vunpack.c.l.s8.bf16 %v4448_v5  ;;  %v5456_v25 = vunpack.c.h.s8.bf16 %v4449_v36  ;;  %v4581_v36 = vld [vmem:[%s10571_s6 + $0x1088] sm:$0xff] }
 0xafc   : > { %8699 = vmatprep.subr.bf16.mxu1 %v5818_v16  ;;  %v5455_v16 = vunpack.c.h.s8.bf16 %v4448_v5 }
 0xafe   : > { %7262 = vmatpush1.bf16.msra.mxu0 %v5208_v12  ;;  %v4467_v12 = vld [vmem:[%s10571_s6 + $0xcf8] sm:$0xff] }
 0xaff   : > { %8700 = vmatpush3.bf16.msra.mxu1 %v5666_v55  ;;  %7263 = vmatprep.subr.bf16.mxu0 %v5228_v37  ;;  %v5474_v55 = vunpack.c.l.s8.bf16 %v4467_v12  ;;  %v5494_v37 = vunpack.c.h.s8.bf16 %v4468_v35  ;;  %v5493_v24 = vunpack.c.h.s8.bf16 %v4467_v12 }
 0xb00   : > { %8701 = vmatprep.subr.bf16.mxu1 %v5837_v30  ;;  %v4487_v30 = vld [vmem:[%s10571_s6 + $0xd98] sm:$0xff] }
 0xb01   : > { %v5513_v9 = vunpack.c.l.s8.bf16 %v4487_v30 }
 0xb02   : > { %7264 = vmatpush1.bf16.msra.mxu0 %v5227_v39  ;;  %v4486_v39 = vld [vmem:[%s10571_s6 + $0xd90] sm:$0xff] }
 0xb03   : > { %8702 = vmatpush3.bf16.msra.mxu1 %v5685_v61  ;;  %7265 = vmatprep.subr.bf16.mxu0 %v5247_v4  ;;  %v5512_v61 = vunpack.c.l.s8.bf16 %v4486_v39  ;;  %v5532_v4 = vunpack.c.h.s8.bf16 %v4487_v30 }
 0xb04   : > { %8703 = vmatprep.subr.bf16.mxu1 %v5856_v53  ;;  %v5531_v53 = vunpack.c.h.s8.bf16 %v4486_v39 }
 0xb06   : > { %7266 = vmatpush1.bf16.msra.mxu0 %v5246_v43  ;;  %v4505_v43 = vld [vmem:[%s10571_s6 + $0xe28] sm:$0xff] }
 0xb07   : > { %8704 = vmatpush3.bf16.msra.mxu1 %v5704_v44  ;;  %7267 = vmatprep.subr.bf16.mxu0 %v5266_v7  ;;  %v5550_v44 = vunpack.c.l.s8.bf16 %v4505_v43  ;;  %v5570_v7 = vunpack.c.h.s8.bf16 %v4506_v45  ;;  %v5569_v46 = vunpack.c.h.s8.bf16 %v4505_v43  ;;  %v4601_v45 = vld [vmem:[%s10571_s6 + $0x1128] sm:$0xff]  ;;  %v4600_v43 = vld [vmem:[%s10571_s6 + $0x1120] sm:$0xff] }
 0xb08   : > { %8705 = vmatprep.subr.bf16.mxu1 %v5875_v11  ;;  %v4525_v11 = vld [vmem:[%s10571_s6 + $0xec8] sm:$0xff] }
 0xb09   : > { %v5608_v62 = vunpack.c.h.s8.bf16 %v4525_v11 }
 0xb0a   : > { %7268 = vmatpush1.bf16.msra.mxu0 %v5265_v51  ;;  %v5589_v51 = vunpack.c.l.s8.bf16 %v4525_v11  ;;  %v4620_v11 = vld [vmem:[%s10571_s6 + $0x11c0] sm:$0xff] }
 0xb0b   : > { %8706 = vmatpush3.bf16.msra.mxu1 %v5723_v54  ;;  %7278 = vmatprep.subr.bf16.mxu0 %v5285_v56  ;;  %v4524_v54 = vld [vmem:[%s10571_s6 + $0xec0] sm:$0xff] }
 0xb0c   : > { %v5588_v56 = vunpack.c.l.s8.bf16 %v4524_v54 }
 0xb0d   : > { %7270 = vmatmul.mubr.bf16.vlgmr.msra.gmra.mrb[28].mxu0 %v10863_v60  ;;  %v5361_v60 = vunpack.c.l.s8.bf16 %v4411_v15 }
 0xb0e   : > { %7513 = vmatmul.mubr.bf16.vlgmr.msra.gmra.mrb[48].mxu1 %v11014_v26  ;;  %7279 = vmatpush1.bf16.msra.mxu0 %v5284_v63  ;;  %v4544_v63 = vld [vmem:[%s10571_s6 + $0xf60] sm:$0xff] }
 0xb0f   : > { %7310 = vmatprep.mubr.bf16.mxu0 %v10967_v13  ;;  %7280 = vmatprep.subr.bf16.mxu0 %v5304_v0  ;;  %v5380_v13 = vunpack.c.h.s8.bf16 %v4411_v15  ;;  %v5607_v0 = vunpack.c.h.s8.bf16 %v4524_v54  ;;  %v5627_v1 = vunpack.c.l.s8.bf16 %v4544_v63  ;;  %v5646_v17 = vunpack.c.h.s8.bf16 %v4544_v63  ;;  %v4562_v15 = vld [vmem:[%s10571_s6 + $0xff0] sm:$0xff] }
 0xb10   : > { %v5779_v54 = vunpack.c.l.s8.bf16 %v4620_v11 }
 0xb12   : > { %7281 = vmatpush1.bf16.msra.mxu0 %v5303_v2  ;;  %v4543_v2 = vld [vmem:[%s10571_s6 + $0xf58] sm:$0xff] }
 0xb13   : > { %7282 = vmatprep.subr.bf16.mxu0 %v5323_v3  ;;  %v5626_v3 = vunpack.c.l.s8.bf16 %v4543_v2 }
 0xb16   : > { %7283 = vmatpush1.bf16.msra.mxu0 %v5322_v33  ;;  %v4563_v33 = vld [vmem:[%s10571_s6 + $0xff8] sm:$0xff] }
 0xb17   : > { %7284 = vmatprep.subr.bf16.mxu0 %v5342_v14  ;;  %v5645_v14 = vunpack.c.h.s8.bf16 %v4543_v2 }
 0xb1a   : > { %7285 = vmatpush1.bf16.msra.mxu0 %v5341_v18  ;;  %v5684_v18 = vunpack.c.h.s8.bf16 %v4563_v33 }
 0xb1b   : > { %7286 = vmatprep.subr.bf16.mxu0 %v5361_v60  ;;  %v4582_v60 = vld [vmem:[%s10571_s6 + $0x1090] sm:$0xff] }
 0xb1e   : > { %7287 = vmatpush1.bf16.msra.mxu0 %v5360_v22  ;;  %v7577_v22 = vrot.slane %v9290_v19, %v10851_v42 }
 0xb1f   : > { %7288 = vmatprep.subr.bf16.mxu0 %v5380_v13  ;;  %v7585_v13 = vrot.slane %v9290_v19, %v10892_v34 }
 0xb22   : > { %7289 = vmatpush1.bf16.msra.mxu0 %v5379_v27  ;;  %v5683_v27 = vunpack.c.h.s8.bf16 %v4562_v15 }
 0xb23   : > { %7290 = vmatprep.subr.bf16.mxu0 %v5399_v29  ;;  %v9291_v29 = vld [vmem:[%s10585_s14 + $0x8] sm:$0xff] }
 0xb24   : > { %v7697_v41 = vrot.slane %v9291_v29, %v10851_v42  ;;  %v7701_v5 = vrot.slane %v9291_v29, %v10856_v50 }
 0xb26   : > { %7291 = vmatpush1.bf16.msra.mxu0 %v5398_v38  ;;  %v7589_v38 = vrot.slane %v9290_v19, %v10859_v52  ;;  %v7906_v19 = vrot.slane %v7898_v20, %v11158_v57 }
 0xb27   : > { %7292 = vmatprep.subr.bf16.mxu0 %v5418_v49  ;;  %v5703_v49 = vunpack.c.l.s8.bf16 %v4582_v60 }
 0xb2a   : > { %7293 = vmatpush1.bf16.msra.mxu0 %v5417_v48 }
 0xb2b   : > { %7294 = vmatprep.subr.bf16.mxu0 %v5437_v58  ;;  %v7705_v58 = vrot.slane %v9291_v29, %v10892_v34  ;;  %v5722_v34 = vunpack.c.h.s8.bf16 %v4582_v60  ;;  %v4638_v60 = vld [vmem:[%s10571_s6 + $0x1250] sm:$0xff] }
 0xb2e   : > { %7295 = vmatpush1.bf16.msra.mxu0 %v5436_v32 }
 0xb2f   : > { %7296 = vmatprep.subr.bf16.mxu0 %v5456_v25 }
 0xb32   : > { %7297 = vmatpush1.bf16.msra.mxu0 %v5455_v16  ;;  %v7709_v16 = vrot.slane %v9291_v29, %v10859_v52  ;;  %v4658_v29 = vld [vmem:[%s10571_s6 + $0x12f0] sm:$0xff] }
 0xb33   : > { %7298 = vmatprep.subr.bf16.mxu0 %v5475_v28  ;;  %v5874_v20 = vunpack.c.h.s8.bf16 %v4658_v29 }
 0xb36   : > { %7299 = vmatpush1.bf16.msra.mxu0 %v5474_v55 }
 0xb37   : > { %7300 = vmatprep.subr.bf16.mxu0 %v5494_v37  ;;  %v5702_v37 = vunpack.c.l.s8.bf16 %v4581_v36 }
 0xb3a   : > { %7301 = vmatpush1.bf16.msra.mxu0 %v5493_v24 }
 0xb3b   : > { %7302 = vmatprep.subr.bf16.mxu0 %v5513_v9 }
 0xb3e   : > { %7303 = vmatpush1.bf16.msra.mxu0 %v5512_v61 }
 0xb3f   : > { %7304 = vmatprep.subr.bf16.mxu0 %v5532_v4 }
 0xb42   : > { %7305 = vmatpush1.bf16.msra.mxu0 %v5531_v53  ;;  %v5721_v53 = vunpack.c.h.s8.bf16 %v4581_v36 }
 0xb43   : > { %7306 = vmatprep.subr.bf16.mxu0 %v5551_v40  ;;  %v5741_v40 = vunpack.c.l.s8.bf16 %v4601_v45 }
 0xb46   : > { %7307 = vmatpush1.bf16.msra.mxu0 %v5550_v44  ;;  %v5740_v44 = vunpack.c.l.s8.bf16 %v4600_v43 }
 0xb47   : > { %7308 = vmatprep.subr.bf16.mxu0 %v5570_v7  ;;  %v5760_v7 = vunpack.c.h.s8.bf16 %v4601_v45 }
 0xb4a   : > { %7309 = vmatpush1.bf16.msra.mxu0 %v5569_v46  ;;  %v5759_v46 = vunpack.c.h.s8.bf16 %v4600_v43 }
 0xb4b   : > { %7319 = vmatprep.subr.bf16.mxu0 %v5589_v51 }
 0xb4d   : > { %7311 = vmatmul.mubr.bf16.vlgmr.msra.gmra.mrb[28].mxu0 %v10969_v47  ;;  %v5665_v47 = vunpack.c.l.s8.bf16 %v4563_v33 }
 0xb4e   : > { %7320 = vmatpush1.bf16.msra.mxu0 %v5588_v56  ;;  %7351 = vmatprep.mubr.bf16.mxu0 %v10975_v59  ;;  %v5664_v59 = vunpack.c.l.s8.bf16 %v4562_v15  ;;  %v4619_v56 = vld [vmem:[%s10571_s6 + $0x11b8] sm:$0xff] }
 0xb4f   : > { %7321 = vmatprep.subr.bf16.mxu0 %v5608_v62  ;;  %v5778_v2 = vunpack.c.l.s8.bf16 %v4619_v56  ;;  %v5797_v15 = vunpack.c.h.s8.bf16 %v4619_v56 }
 0xb52   : > { %7322 = vmatpush1.bf16.msra.mxu0 %v5607_v0 }
 0xb53   : > { %7323 = vmatprep.subr.bf16.mxu0 %v5627_v1 }
 0xb56   : > { %7324 = vmatpush1.bf16.msra.mxu0 %v5626_v3 }
 0xb57   : > { %7325 = vmatprep.subr.bf16.mxu0 %v5646_v17  ;;  %v5798_v17 = vunpack.c.h.s8.bf16 %v4620_v11 }
 0xb5a   : > { %7326 = vmatpush1.bf16.msra.mxu0 %v5645_v14  ;;  %v4639_v14 = vld [vmem:[%s10571_s6 + $0x1258] sm:$0xff] }
 0xb5b   : > { %7327 = vmatprep.subr.bf16.mxu0 %v5665_v47 }
 0xb5e   : > { %7328 = vmatpush1.bf16.msra.mxu0 %v5664_v59 }
 0xb5f   : > { %7329 = vmatprep.subr.bf16.mxu0 %v5684_v18  ;;  %v5817_v18 = vunpack.c.l.s8.bf16 %v4639_v14 }
 0xb60   : > { %v7025_v48 = vpop.f32.mrb[24].mxu0 }
 0xb61   : > { %v7633_v32 = vmul.f32 %v7577_v22, %v7025_v48  ;;  %v7189_v25 = vpop.f32.mrb[32].mxu1  ;;  %v7027_v35 = vpop.f32.mrb[25].mxu0 }
 0xb62   : > { %v7635_v28 = vmul.f32 %v7585_v13, %v7189_v25  ;;  %v7634_v12 = vmul.f32 %v7581_v31, %v7027_v35  ;;  %v7191_v55 = vpop.f32.mrb[33].mxu1  ;;  %v7029_v42 = vpop.f32.mrb[26].mxu0  ;;  %7330 = vmatpush1.bf16.msra.mxu0 %v5683_v27  ;;  %v5816_v13 = vunpack.c.l.s8.bf16 %v4638_v60  ;;  %v5836_v31 = vunpack.c.h.s8.bf16 %v4639_v14 }
 0xb63   : > { %v7753_v30 = vadd.f32 %v7697_v41, %v7633_v32  ;;  %v7636_v24 = vmul.f32 %v7589_v38, %v7191_v55  ;;  %v7193_v9 = vpop.f32.mrb[34].mxu1  ;;  %v7030_v39 = vpop.f32.mrb[27].mxu0  ;;  %7331 = vmatprep.subr.bf16.mxu0 %v5703_v49  ;;  %v5835_v41 = vunpack.c.h.s8.bf16 %v4638_v60  ;;  %v5855_v38 = vunpack.c.l.s8.bf16 %v4658_v29  ;;  %v4657_v49 = vld [vmem:[%s10571_s6 + $0x12e8] sm:$0xff] }
 0xb64   : > { %v7755_v50 = vadd.f32 %v7705_v58, %v7635_v28  ;;  %v7754_v61 = vadd.f32 %v7701_v5, %v7634_v12  ;;  %v7194_v4 = vpop.f32.mrb[35].mxu1  ;;  %v5854_v58 = vunpack.c.l.s8.bf16 %v4657_v49  ;;  %v5873_v32 = vunpack.c.h.s8.bf16 %v4657_v49 }
 0xb65   : > { %9272 = vtanh.f32 %v7753_v30  ;;  %v7756_v52 = vadd.f32 %v7709_v16, %v7636_v24 }
 0xb66   : > { %9274 = vtanh.f32 %v7755_v50  ;;  %7332 = vmatpush1.bf16.msra.mxu0 %v5702_v37 }
 0xb67   : > { %9276 = vtanh.f32 %v7754_v61  ;;  %7333 = vmatprep.subr.bf16.mxu0 %v5722_v34 }
 0xb68   : > { %9278 = vtanh.f32 %v7756_v52  ;;  %v7522_v52 = vld [vmem:[%s10581_s5 + $0x10] sm:$0x7] }
 0xb6a   : > { %7334 = vmatpush1.bf16.msra.mxu0 %v5721_v53  ;;  %v7601_v53 = vrot.slane %v7522_v52, %v10652_v6 }
 0xb6b   : > { %7335 = vmatprep.subr.bf16.mxu0 %v5741_v40  ;;  %v7642_v40 = vld [vmem:[%s10585_s14 + $0x10] sm:$0x7] }
 0xb6c   : > { %v7717_v56 = vrot.slane %v7642_v40, %v10597_v10 }
 0xb6e   : > { %7336 = vmatpush1.bf16.msra.mxu0 %v5740_v44  ;;  %v7721_v44 = vrot.slane %v7642_v40, %v10652_v6 }
 0xb6f   : > { %v9273_v51 = vpop.eup %9272  ;;  %7337 = vmatprep.subr.bf16.mxu0 %v5760_v7  ;;  %v7593_v7 = vrot.slane %v7522_v52, %v10594_v8 }
 0xb70   : > { %v9275_v62 = vpop.eup %9274 }
 0xb71   : > { %v9277_v63 = vpop.eup %9276 }
 0xb72   : > { %v9279_v0 = vpop.eup %9278  ;;  %v8605_v1 = vpack.c.bf16 %v9277_v63, %v9273_v51  ;;  %7338 = vmatpush1.bf16.msra.mxu0 %v5759_v46  ;;  %v7597_v46 = vrot.slane %v7522_v52, %v10597_v10  ;;  %v7713_v51 = vrot.slane %v7642_v40, %v10594_v8 }
 0xb73   : > { %v8606_v3 = vpack.c.bf16 %v9279_v0, %v9275_v62  ;;  %7339 = vmatprep.subr.bf16.mxu0 %v5779_v54 }
 0xb74   : > { %v7890_v33 = vrot.slane %v8605_v1, %v11158_v57 }
 0xb75   : > { %v7897_v47 = vrot.slane %v8606_v3, %v11158_v57 }
 0xb76   : > { %7340 = vmatpush1.bf16.msra.mxu0 %v5778_v2 }
 0xb77   : > { %v7899_v59 = vcombine.low %v7890_v33, %v7897_v47  ;;  %7341 = vmatprep.subr.bf16.mxu0 %v5798_v17 }
 0xb79   : > { %v7913_v22 = vrot.slane %v7899_v59, %v11158_v57 }
 0xb7a   : > { %7342 = vmatpush1.bf16.msra.mxu0 %v5797_v15 }
 0xb7b   : > { %7343 = vmatprep.subr.bf16.mxu0 %v5817_v18  ;;  %v7914_v27 = vcombine.low %v7906_v19, %v7913_v22 }
 0xb7d   : > { %7942 = vst [vmem:[%s11337_s8 + $0x8] sm:$0xff] %v7914_v27 }
 0xb7e   : > { %7344 = vmatpush1.bf16.msra.mxu0 %v5816_v13 }
 0xb7f   : > { %7345 = vmatprep.subr.bf16.mxu0 %v5836_v31 }
 0xb81   : > { %v8641_v36 = vpop.f32.mrb[36].mxu1 }
 0xb82   : > { %v8642_v48 = vpop.f32.mrb[37].mxu1  ;;  %7346 = vmatpush1.bf16.msra.mxu0 %v5835_v41 }
 0xb83   : > { %v8643_v21 = vadd.f32 %v8642_v48, %v8641_v36  ;;  %v8644_v23 = vpop.f32.mrb[38].mxu1  ;;  %7347 = vmatprep.subr.bf16.mxu0 %v5855_v38 }
 0xb84   : > { %v8645_v5 = vpop.f32.mrb[39].mxu1 }
 0xb86   : > { %7348 = vmatpush1.bf16.msra.mxu0 %v5854_v58 }
 0xb87   : > { %7349 = vmatprep.subr.bf16.mxu0 %v5874_v20 }
 0xb8a   : > { %7350 = vmatpush1.bf16.msra.mxu0 %v5873_v32 }
 0xb8d   : > { %7352 = vmatmul.mubr.bf16.vlgmr.msra.gmra.mrb[28].mxu0 %v11014_v26 }
 0xba1   : > { %v8663_v25 = vpop.f32.mrb[40].mxu1 }
 0xba2   : > { %v8664_v35 = vpop.f32.mrb[41].mxu1 }
 0xba3   : > { %v8665_v16 = vadd.f32 %v8664_v35, %v8663_v25  ;;  %v8666_v28 = vpop.f32.mrb[42].mxu1 }
 0xba4   : > { %v8667_v12 = vpop.f32.mrb[43].mxu1 }
 0xba5   : > { %v7435_v55 = vadd.f32 %v8665_v16, %v8643_v21 }
 0xbc1   : > { %v8685_v42 = vpop.f32.mrb[44].mxu1 }
 0xbc2   : > { %v8686_v37 = vpop.f32.mrb[45].mxu1 }
 0xbc3   : > { %v8687_v30 = vadd.f32 %v8686_v37, %v8685_v42  ;;  %v8688_v24 = vpop.f32.mrb[46].mxu1 }
 0xbc4   : > { %v8689_v9 = vpop.f32.mrb[47].mxu1 }
 0xbc5   : > { %v7475_v39 = vadd.f32 %v8687_v30, %v7435_v55 }
 0xbe1   : > { %v8707_v34 = vpop.f32.mrb[48].mxu1 }
 0xbe2   : > { %v8708_v50 = vpop.f32.mrb[49].mxu1 }
 0xbe3   : > { %v8709_v61 = vadd.f32 %v8708_v50, %v8707_v34  ;;  %v8710_v4 = vpop.f32.mrb[50].mxu1 }
 0xbe4   : > { %v8711_v45 = vpop.f32.mrb[51].mxu1 }
 0xbe5   : > { %v7515_v26 = vadd.f32 %v8709_v61, %v7475_v39 }
 0xbe7   : > { %v7639_v43 = vmul.f32 %v7601_v53, %v7515_v26 }
 0xbe9   : > { %v7759_v11 = vadd.f32 %v7721_v44, %v7639_v43 }
 0xbeb   : > { %9280 = vtanh.f32 %v7759_v11 }
 0xbf5   : > { %v9281_v17 = vpop.eup %9280 }
 0xbf6   : > { %v7797_v33 = vpack.c.bf16 %v9281_v17, %v9281_v17 }
 0xbf8   : > { %v7929_v47 = vrot.slane %v7797_v33, %v11158_v57 }
 0xc60   : > { %v7353_v54 = vpop.f32.mrb[28].mxu0 }
 0xc61   : > { %v7637_v62 = vmul.f32 %v7593_v7, %v7353_v54  ;;  %v7355_v63 = vpop.f32.mrb[29].mxu0 }
 0xc62   : > { %v7638_v0 = vmul.f32 %v7597_v46, %v7355_v63  ;;  %v7357_v1 = vpop.f32.mrb[30].mxu0 }
 0xc63   : > { %v7757_v2 = vadd.f32 %v7713_v51, %v7637_v62  ;;  %v7358_v3 = vpop.f32.mrb[31].mxu0 }
 0xc64   : > { %v7758_v6 = vadd.f32 %v7717_v56, %v7638_v0 }
 0xc65   : > { %9282 = vtanh.f32 %v7757_v2 }
 0xc66   : > { %9284 = vtanh.f32 %v7758_v6 }
 0xc6f   : > { %v9283_v8 = vpop.eup %9282 }
 0xc70   : > { %v9285_v14 = vpop.eup %9284 }
 0xc71   : > { %v8607_v10 = vpack.c.bf16 %v9285_v14, %v9283_v8 }
 0xc73   : > { %v7922_v15 = vrot.slane %v8607_v10, %v11158_v57 }
 0xc75   : > { %v7930_v59 = vcombine.low %v7922_v15, %v7929_v47 }
 0xc77   : > { %8608 = vst.sshfl [vmem:[%s11337_s8 + $0x10] sm:$0x15 pattern:$0x73625140] %v7930_v59 }
 0xc78   : > { %9815 = shalt.err (!%p9812_p13)
}
 0xc79   : > { %s9816_s22 = scalar_lea.hbm %s11651_s24, 304  ;;  %s9820_s6 = scalar_lea.hbm %s11817_s3, 1216 }
 0xc7a   : > { %p9817_p9 = scmp.ne.s32.totalorder %s11651_s24, %s9816_s22  ;;  %p9821_p12 = scmp.lt.u32.totalorder %s11651_s24, %s11817_s3 }
 0xc7b   : > { %p9822_p5 = scmp.lt.u32.totalorder %s9820_s6, %s9816_s22  ;;  %p9824_p2 = scmp.lt.u32.totalorder %s9816_s22, %s11651_s24 }
 0xc7c   : > { %p9818_p11 = pnand %p9817_p9, %p11818_p3 }
 0xc7d   : > { %p9823_p0 = por %p9822_p5, %p9821_p12 }
 0xc7e   : > { %p9819_p8 = pneg %p9818_p11 }
 0xc7f   : > { %p9825_p4 = por %p9824_p2, %p9823_p0 }
 0xc81   : > { %p9826_p7 = pnand %p9825_p4, %p9819_p8 }
 0xc83   : > { %9829 = shalt.err (!%p9826_p7)
}
 0xc84   : > { %8936 = dma.vmem_to_hbm [thread:$0]  (%p11818_p3), %s11653_s15, 304, %s11651_s24, %s7945_s21  }
 0xc85 PF: > { %p9029_p6 = scmp.ge.s32.totalorder %s9904_s30, 2  ;;  %s7971_s20 = sand.u32 1, %s9892_s27  }
 0xc86   : > { %p11819_p1 = scmp.ne.s32.totalorder %s11779_s23, 0  ;;  %s7972_s14 = scalar_lea.sflag [#allocation4], %s7971_s20 }
 0xc88   : > { %p8995_p10 = pnand %p9029_p6, %p11819_p1 }
 0xc8a   : > { %9887 = dma.done.wait (!%p8995_p10), %s7972_s14, 304  }
 0xc8b   : > { %9889 = vsyncadd (!%p8995_p10), %s7972_s14, 4294966992  ;;  %s11820_s30 = sld [smem:[#allocation45_spill]]  ;;  %s11821_s8 = sld [smem:[#allocation43_spill]] }
 0xc8c   : > { %s11822_s29 = sld [smem:[#allocation46_spill]]  ;;  %s11823_s27 = smov %s9896_s28 }
 0xc91   : > { %p42_p13 = scmp.ge.s32.totalorder %s11820_s30, 6   ;;  %s11824_s28 = smov %s11821_s8 }
 0xc93   :  { %44 = sbr.rel (!%p42_p13) target bundleno = 35 (0x23), region = 222 }
 0xc9a   :  { %7977 = vsyncpa [#allocation3], 1 }
 0xc9b   :  { %7979 = vsyncpa [#allocation3 + $0x1], 1 }
 0xc9c   :  { %7980 = vsyncpa [#allocation6], 1 }
 0xc9d   :  { %7981 = vsyncpa [#allocation9], 1 }
 0xc9e   :  { %7982 = vsyncpa [#allocation12], 1 }
 0xc9f   :  { %7983 = vsyncpa [#allocation15], 1 }
 0xca0   :  { %7984 = vsyncpa [#allocation18], 1 }
 0xca1   :  { %7985 = vsyncpa [#allocation21], 1 }
 0xca2   :  { %7986 = vsyncpa [#allocation24], 1 }
 0xca3   :  { %7987 = vsyncpa [#allocation27], 1 }
 0xca4   :  { %7989 = vsyncpa [#allocation27 + $0x1], 1 }
 0xca5   :  { %7990 = vsyncpa [#allocation30], 1 }
 0xca6   :  { %7992 = vsyncpa [#allocation30 + $0x1], 1 }
 0xca7   :  { %7993 = vsyncpa [#allocation4], 1 }
 0xca8   :  { %7995 = vsyncpa [#allocation4 + $0x1], 1 }

</bundles_post_ra>
